<compile_context>
chip_gen: v6e
topology: v6e:2x2x1
jax: 0.10.0
libtpu: 0.0.40
codegen_flags: <defaults>
</compile_context>

<pallas_src>
import functools

import numpy as np
import jax
import jax.numpy as jnp
from jax.experimental import pallas as pl
from jax.experimental.pallas import tpu as pltpu

MAX_LANE_TILE = 2048           # lane (flattened-spatial) tile for W@X kernels
MAX_ROW_TILE = 1024            # row tile for the X@W kernel
VMEM_LIMIT = 32 * 1024 * 1024  # safe on v5e/v6e (128 MiB) and v7x (64 MiB)

IN_CH = 2                      # features = ['ct', 'suv']
OUT_CLASSES = 3                # multiclass segmentation logits
CONV_DTYPE = jnp.bfloat16      # MXU input dtype (f32 accumulation in-kernel)


def _round_up(x, m):
    return ((x + m - 1) // m) * m


# ----------------------------------------------------------------------------
# Pallas kernels
# ----------------------------------------------------------------------------
def _wx_kernel(w_ref, x_ref, b_ref, o_ref):
    # o[p, m] = sum_k w[p, k] * x[k, m] + b[p]
    y = jnp.dot(w_ref[...], x_ref[0], preferred_element_type=jnp.float32)
    o_ref[0] = (y + b_ref[...]).astype(o_ref.dtype)


def _wx_relu_kernel(w_ref, x_ref, b_ref, o_ref):
    y = jnp.dot(w_ref[...], x_ref[0], preferred_element_type=jnp.float32)
    o_ref[0] = jnp.maximum(y + b_ref[...], 0.0).astype(o_ref.dtype)


def _xw_kernel(x_ref, w_ref, o_ref):
    o_ref[...] = jnp.dot(
        x_ref[...], w_ref[...], preferred_element_type=jnp.float32
    ).astype(o_ref.dtype)


def _make_resize_sum_kernel(has_mat):
    """Fused depth-axis resize + deep-supervision sum.

    refs = [x_0, (R_0)?, x_1, (R_1)?, ..., x_{n-1}, (R_{n-1})?, out]
    out = sum_i (R_i @ x_i   if has_mat[i]   else   x_i)
    """
    n = len(has_mat)

    def kernel(*refs):
        o_ref = refs[-1]
        acc = None
        idx = 0
        for i in range(n):
            x_ref = refs[idx]
            idx += 1
            if has_mat[i]:
                r_ref = refs[idx]
                idx += 1
                t = jnp.dot(r_ref[...], x_ref[0],
                            preferred_element_type=jnp.float32)
            else:
                t = x_ref[0].astype(jnp.float32)
            acc = t if acc is None else acc + t
        o_ref[0] = acc

    return kernel


# ----------------------------------------------------------------------------
# Pallas wrappers
# ----------------------------------------------------------------------------
def pallas_wx(w, x, b=None, relu=False, out_dtype=jnp.float32):
    """out[b, p, m] = sum_k w[p, k] * x[b, k, m] (+ bias[p]), optional ReLU.

    w: (P, K), x: (B, K, M), b: (P,) or None -> (B, P, M).
    M (flattened spatial) is the lane axis of both the input and output blocks,
    tiled in multiples of 128 up to MAX_LANE_TILE; K is kept whole per block.
    """
    B, K, M = x.shape
    P = w.shape[0]
    if x.dtype != w.dtype:
        x = x.astype(w.dtype)
    tile = min(_round_up(M, 128), MAX_LANE_TILE)
    Mp = _round_up(M, tile)
    if Mp != M:
        x = jnp.pad(x, ((0, 0), (0, 0), (0, Mp - M)))
    if b is None:
        b = jnp.zeros((P,), jnp.float32)
    b2 = b.astype(jnp.float32).reshape(P, 1)
    kernel = _wx_relu_kernel if relu else _wx_kernel
    out = pl.pallas_call(
        kernel,
        out_shape=jax.ShapeDtypeStruct((B, P, Mp), out_dtype),
        grid=(B, Mp // tile),
        in_specs=[
            pl.BlockSpec((P, K), lambda bb, mm: (0, 0)),        # shared weight
            pl.BlockSpec((1, K, tile), lambda bb, mm: (bb, 0, mm)),
            pl.BlockSpec((P, 1), lambda bb, mm: (0, 0)),        # bias
        ],
        out_specs=pl.BlockSpec((1, P, tile), lambda bb, mm: (bb, 0, mm)),
        compiler_params=pltpu.CompilerParams(
            dimension_semantics=("parallel", "parallel"),
            vmem_limit_bytes=VMEM_LIMIT,
        ),
    )(w, x, b2)
    if Mp != M:
        out = out[..., :M]
    return out


def pallas_xw(x, w, out_dtype=jnp.float32):
    """out = x @ w; x: (R, K), w: (K, P); tiled over rows (multiple of 8)."""
    R, K = x.shape
    P = w.shape[1]
    if x.dtype != w.dtype:
        x = x.astype(w.dtype)
    tile = min(_round_up(R, 8), MAX_ROW_TILE)
    Rp = _round_up(R, tile)
    if Rp != R:
        x = jnp.pad(x, ((0, Rp - R), (0, 0)))
    out = pl.pallas_call(
        _xw_kernel,
        out_shape=jax.ShapeDtypeStruct((Rp, P), out_dtype),
        grid=(Rp // tile,),
        in_specs=[
            pl.BlockSpec((tile, K), lambda i: (i, 0)),
            pl.BlockSpec((K, P), lambda i: (0, 0)),
        ],
        out_specs=pl.BlockSpec((tile, P), lambda i: (i, 0)),
        compiler_params=pltpu.CompilerParams(
            dimension_semantics=("parallel",),
            vmem_limit_bytes=VMEM_LIMIT,
        ),
    )(x, w)
    if Rp != R:
        out = out[:R]
    return out


def pallas_resize_d_sum(branches, d_out):
    """Fused depth-axis linear resize + deep-supervision sum.

    branches: list of (x, R); x: (B, d_i, M) f32, R: (d_out, d_i) f32 or None
    (branch already at full depth -> pass-through). Returns (B, d_out, M) f32.
    """
    B = branches[0][0].shape[0]
    M = branches[0][0].shape[2]
    tile = min(_round_up(M, 128), MAX_LANE_TILE)
    Mp = _round_up(M, tile)
    has_mat = tuple(R is not None for _, R in branches)
    args = []
    in_specs = []
    for x, R in branches:
        k_i = x.shape[1]
        x = x.astype(jnp.float32)
        if Mp != M:
            x = jnp.pad(x, ((0, 0), (0, 0), (0, Mp - M)))
        args.append(x)
        in_specs.append(pl.BlockSpec((1, k_i, tile), lambda bb, mm: (bb, 0, mm)))
        if R is not None:
            args.append(R.astype(jnp.float32))
            in_specs.append(pl.BlockSpec((d_out, k_i), lambda bb, mm: (0, 0)))
    out = pl.pallas_call(
        _make_resize_sum_kernel(has_mat),
        out_shape=jax.ShapeDtypeStruct((B, d_out, Mp), jnp.float32),
        grid=(B, Mp // tile),
        in_specs=in_specs,
        out_specs=pl.BlockSpec((1, d_out, tile), lambda bb, mm: (bb, 0, mm)),
        compiler_params=pltpu.CompilerParams(
            dimension_semantics=("parallel", "parallel"),
            vmem_limit_bytes=VMEM_LIMIT,
        ),
    )(*args)
    if Mp != M:
        out = out[..., :M]
    return out


# ----------------------------------------------------------------------------
# Convolution / resize building blocks
# ----------------------------------------------------------------------------
def _im2col_ncdhw(x, ksize, stride, pad):
    """x: (N, C, D, H, W) -> (N, C*ksize^3, Do*Ho*Wo); K order (c, kd, kh, kw)."""
    N, C, D, H, W = x.shape
    xp = jnp.pad(x, ((0, 0), (0, 0), (pad, pad), (pad, pad), (pad, pad)))
    Do = (D + 2 * pad - ksize) // stride + 1
    Ho = (H + 2 * pad - ksize) // stride + 1
    Wo = (W + 2 * pad - ksize) // stride + 1
    taps = []
    for kd in range(ksize):
        for kh in range(ksize):
            for kw in range(ksize):
                sl = jax.lax.slice(
                    xp,
                    (0, 0, kd, kh, kw),
                    (N, C,
                     kd + (Do - 1) * stride + 1,
                     kh + (Ho - 1) * stride + 1,
                     kw + (Wo - 1) * stride + 1),
                    (1, 1, stride, stride, stride),
                )
                taps.append(sl)                       # (N, C, Do, Ho, Wo)
    pat = jnp.stack(taps, axis=2)                     # (N, C, k^3, Do, Ho, Wo)
    return pat.reshape(N, C * ksize ** 3, Do * Ho * Wo), (N, Do, Ho, Wo)


def conv3d(x, w, b, stride=1, relu=False, ksize=3, pad=1):
    """3D conv, NCDHW. w: (Cout, Cin*ksize^3) bf16 (K order cin,kd,kh,kw)."""
    # TODO(synk): fuse im2col into the matmul kernel (manual halo DMA) so the
    # 27x-inflated patch tensor never round-trips through HBM.
    patches, (N, Do, Ho, Wo) = _im2col_ncdhw(x, ksize, stride, pad)
    y = pallas_wx(w, patches, b, relu=relu, out_dtype=jnp.bfloat16)
    return y.reshape(N, w.shape[0], Do, Ho, Wo)


def conv1x1(x, w, b, relu=False, out_dtype=jnp.float32):
    """Pointwise conv, NCDHW. w: (Cout, Cin)."""
    N, C = x.shape[0], x.shape[1]
    sp = x.shape[2:]
    y = pallas_wx(w, x.reshape(N, C, -1), b, relu=relu, out_dtype=out_dtype)
    return y.reshape((N, w.shape[0]) + tuple(sp))


@functools.lru_cache(maxsize=None)
def _linear_resize_matrix(in_size, out_size):
    # Matches F.interpolate(mode='trilinear', align_corners=False) per axis
    # (half-pixel centers, clamped source coordinate).
    R = np.zeros((out_size, in_size), np.float32)
    if in_size == 1:
        R[:, 0] = 1.0
        return R
    scale = in_size / out_size
    for o in range(out_size):
        src = (o + 0.5) * scale - 0.5
        src = min(max(src, 0.0), in_size - 1.0)
        lo = int(np.floor(src))
        hi = min(lo + 1, in_size - 1)
        wgt = src - lo
        R[o, lo] += 1.0 - wgt
        R[o, hi] += wgt
    return R


def _resize_w(x, w_out):
    # (N, C, d, h, w_in) -> (N, C, d, h, w_out); contraction over minor axis.
    N, C, d, h, w_in = x.shape
    if w_in == w_out:
        return x
    R = jnp.asarray(_linear_resize_matrix(w_in, w_out))       # (w_out, w_in)
    y = pallas_xw(x.reshape(-1, w_in), R.T)
    return y.reshape(N, C, d, h, w_out)


def _resize_h(x, h_out):
    # (N, C, d, h_in, W) -> (N, C, d, h_out, W); W stays the lane axis.
    N, C, d, h_in, W = x.shape
    if h_in == h_out:
        return x
    R = jnp.asarray(_linear_resize_matrix(h_in, h_out))       # (h_out, h_in)
    y = pallas_wx(R, x.reshape(N * C * d, h_in, W))
    return y.reshape(N, C, d, h_out, W)


def upsample_nearest2x(x):
    # TODO(synk): fold the nearest-x2 repeat + channel concat into the decoder
    # conv's patch extraction so the x8-volume tensor never hits HBM.
    x = jnp.repeat(x, 2, axis=2)
    x = jnp.repeat(x, 2, axis=3)
    x = jnp.repeat(x, 2, axis=4)
    return x


# ----------------------------------------------------------------------------
# Reference helper functions (ported from the PyTorch module)
# ----------------------------------------------------------------------------
def select_deepsupervision_layers(s):
    return list(s[0:-2]) + [s[-2]]


def adaptative_weighting(outputs):
    # Defined by the reference module, but DeepSupervisionComposite performs an
    # UNWEIGHTED sum (weighting_fn is only used by plain DeepSupervision).
    elements = np.asarray([o.shape[2] for o in outputs], dtype=np.float32)
    return elements / elements.max()


def output_postprocessing_fn(x):
    # torch.argmax(x, dim=1, keepdim=True).type(torch.long); JAX x64 is
    # disabled by default so torch.long (int64) becomes int32 here.
    return jnp.argmax(x, axis=1, keepdims=True).astype(jnp.int32)


# ----------------------------------------------------------------------------
# Synthetic tiny 3D UNet backbone (ModuleWithIntermediate-style)
# ----------------------------------------------------------------------------
def init_params(key):
    def nrm(k, shape, fan_in, dtype=CONV_DTYPE):
        return ((1.0 / np.sqrt(fan_in))
                * jax.random.normal(k, shape, jnp.float32)).astype(dtype)

    ks = jax.random.split(key, 10)
    p = {}
    # backbone 3x3x3 convs: weight layout (Cout, Cin*27), K order (cin,kd,kh,kw)
    p["enc0_w"] = nrm(ks[0], (4, IN_CH * 27), IN_CH * 27)
    p["enc0_b"] = jnp.zeros((4,), jnp.float32)
    p["enc1_w"] = nrm(ks[1], (8, 4 * 27), 4 * 27)
    p["enc1_b"] = jnp.zeros((8,), jnp.float32)
    p["bott_w"] = nrm(ks[2], (8, 8 * 27), 8 * 27)
    p["bott_b"] = jnp.zeros((8,), jnp.float32)
    p["dec1_w"] = nrm(ks[3], (8, 16 * 27), 16 * 27)
    p["dec1_b"] = jnp.zeros((8,), jnp.float32)
    p["dec0_w"] = nrm(ks[4], (4, 12 * 27), 12 * 27)
    p["dec0_b"] = jnp.zeros((4,), jnp.float32)
    p["final_w"] = nrm(ks[5], (OUT_CLASSES, 4), 4)
    p["final_b"] = jnp.zeros((OUT_CLASSES,), jnp.float32)
    # DeepSupervisionComposite output blocks (1x1x1 conv, no norm/activation),
    # one per selected intermediate: [bottleneck(C=8), dec1(C=8), dec0(C=4)].
    p["ds0_w"] = nrm(ks[6], (OUT_CLASSES, 8), 8)
    p["ds0_b"] = jnp.zeros((OUT_CLASSES,), jnp.float32)
    p["ds1_w"] = nrm(ks[7], (OUT_CLASSES, 8), 8)
    p["ds1_b"] = jnp.zeros((OUT_CLASSES,), jnp.float32)
    p["ds2_w"] = nrm(ks[8], (OUT_CLASSES, 4), 4)
    p["ds2_b"] = jnp.zeros((OUT_CLASSES,), jnp.float32)
    return p


def backbone_forward_with_intermediate(p, x):
    """x: NCDHW bf16. Returns list of intermediates, final logits last."""
    e0 = conv3d(x, p["enc0_w"], p["enc0_b"], stride=1, relu=True)       # C=4, full
    e1 = conv3d(e0, p["enc1_w"], p["enc1_b"], stride=2, relu=True)      # C=8, /2
    bott = conv3d(e1, p["bott_w"], p["bott_b"], stride=2, relu=True)    # C=8, /4
    d1 = conv3d(jnp.concatenate([upsample_nearest2x(bott), e1], axis=1),
                p["dec1_w"], p["dec1_b"], stride=1, relu=True)          # C=8, /2
    d0 = conv3d(jnp.concatenate([upsample_nearest2x(d1), e0], axis=1),
                p["dec0_w"], p["dec0_b"], stride=1, relu=True)          # C=4, full
    # Final head: only its (static) shape is consumed by the composite path,
    # so XLA dead-code-eliminates this pallas_call under jit.
    final = conv1x1(d0, p["final_w"], p["final_b"], relu=False,
                    out_dtype=jnp.float32)                              # C=3, full
    return [bott, d1, d0, final]


def deep_supervision_composite_forward(p, x):
    """DeepSupervisionComposite.forward: 1x1 conv each selected intermediate,
    trilinear-resize to the final spatial shape, unweighted sum."""
    os_ = backbone_forward_with_intermediate(p, x)
    Nb = os_[-1].shape[0]
    D, H, W = os_[-1].shape[2:]                      # target spatial shape
    seq = select_deepsupervision_layers(os_)         # drops the final output
    ds_params = [("ds0_w", "ds0_b"), ("ds1_w", "ds1_b"), ("ds2_w", "ds2_b")]
    assert len(seq) == len(ds_params)
    Cout = p["ds0_w"].shape[0]
    branches = []
    for n, o in enumerate(seq):
        wname, bname = ds_params[n]
        o_tfm = conv1x1(o, p[wname], p[bname], relu=False,
                        out_dtype=jnp.float32)
        # Separable trilinear resize, transpose-free: W-axis then H-axis as
        # Pallas matmuls; the D-axis resize is fused with the DS sum below.
        o_tfm = _resize_w(o_tfm, W)
        o_tfm = _resize_h(o_tfm, H)
        d_in = o_tfm.shape[2]
        xb = o_tfm.reshape(Nb * Cout, d_in, H * W)
        R = None if d_in == D else jnp.asarray(_linear_resize_matrix(d_in, D))
        branches.append((xb, R))
    out = pallas_resize_d_sum(branches, D)           # (N*Cout, D, H*W)
    return out.reshape(Nb, Cout, D, H, W)


# ----------------------------------------------------------------------------
# ModelUNetMulticlassDeepSupervision forward (inference path, seg=None)
# ----------------------------------------------------------------------------
@jax.jit
def model_forward(params, ct, suv):
    # ct: (N, 1, D, H, W), suv: (N, 1, D, H, W)  [NCDHW, like PyTorch]
    assert ct.ndim == 5 and ct.shape[1] == 1
    features = jnp.concatenate([ct, suv], axis=1)          # features=['ct','suv']
    features = features.astype(CONV_DTYPE)
    o = deep_supervision_composite_forward(params, features)   # NCDHW f32
    # seg is None -> {'seg': OutputEmbedding(o)}; OutputEmbedding just wraps.
    return {"seg": o}


# TODO(synk): loss path (OutputSegmentation / loss_fn / boundary_loss with
# surface_loss_distance_transform) is training-only and depends on classes not
# provided; only the inference (seg=None) forward is implemented here.

if __name__ == "__main__":
    key = jax.random.PRNGKey(0)
    k_ct, k_suv = jax.random.split(key)
    N, D, H, W = 2, 16, 16, 16
    ct = jax.random.normal(k_ct, (N, 1, D, H, W), jnp.float32)
    suv = jax.random.normal(k_suv, (N, 1, D, H, W), jnp.float32)

    params = init_params(jax.random.PRNGKey(42))
    out = model_forward(params, ct, suv)
    seg = jax.block_until_ready(out["seg"])
    assert seg.shape == (N, OUT_CLASSES, D, H, W), seg.shape
    assert seg.dtype == jnp.float32

    # post-processing helper (defined by the module, not applied in forward)
    pred = jax.block_until_ready(output_postprocessing_fn(seg))
    assert pred.shape == (N, 1, D, H, W)

    print("KERNEL_OK")
</pallas_src>

<mosaic_0001>
module attributes {stable_mosaic.version = 11 : i64} {
  func.func @_wx_relu_kernel(%arg0: i32, %arg1: i32, %arg2: memref<4x54xbf16, #tpu.memory_space<vmem>>, %arg3: memref<1x54x2048xbf16, #tpu.memory_space<vmem>>, %arg4: memref<4x1xf32, #tpu.memory_space<vmem>>, %arg5: memref<1x4x2048xbf16, #tpu.memory_space<vmem>>) attributes {dimension_semantics = [#tpu.dimension_semantics<parallel>, #tpu.dimension_semantics<parallel>], iteration_bounds = array<i64: 2, 2>, scalar_prefetch = 0 : i64, scratch_operands = 0 : i64, tpu.core_type = #tpu.core_type<tc>, window_params = [{pipeline_mode = #tpu.pipeline_mode<synchronous>, transform_indices = @transform_0, window_bounds = array<i64: 4, 54>}, {transform_indices = @transform_1, window_bounds = array<i64: 1, 54, 2048>}, {pipeline_mode = #tpu.pipeline_mode<synchronous>, transform_indices = @transform_2, window_bounds = array<i64: 4, 1>}, {transform_indices = @transform_3, window_bounds = array<i64: 1, 4, 2048>}]} {
    %c0 = arith.constant 0 : index
    %c0_0 = arith.constant 0 : index
    %0 = vector.load %arg2[%c0, %c0_0] : memref<4x54xbf16, #tpu.memory_space<vmem>>, vector<4x54xbf16>
    %c0_1 = arith.constant 0 : index
    %c0_2 = arith.constant 0 : index
    %c0_3 = arith.constant 0 : index
    %1 = vector.load %arg3[%c0_1, %c0_2, %c0_3] : memref<1x54x2048xbf16, #tpu.memory_space<vmem>>, vector<1x54x2048xbf16>
    %2 = vector.shape_cast %1 : vector<1x54x2048xbf16> to vector<54x2048xbf16>
    %cst = arith.constant dense<0.000000e+00> : vector<4x2048xf32>
    %3 = tpu.matmul %0, %2, %cst {dimension_numbers = #tpu.dot_dimension_numbers<[1], [0], [0], [1], [0, 0, 1, 1], [], []>} : vector<4x54xbf16>, vector<54x2048xbf16>, vector<4x2048xf32> -> vector<4x2048xf32>
    %c0_4 = arith.constant 0 : index
    %c0_5 = arith.constant 0 : index
    %4 = vector.load %arg4[%c0_4, %c0_5] : memref<4x1xf32, #tpu.memory_space<vmem>>, vector<4x1xf32>
    %5 = vector.broadcast %4 : vector<4x1xf32> to vector<4x2048xf32>
    %6 = arith.addf %3, %5 : vector<4x2048xf32>
    %cst_6 = arith.constant 0.000000e+00 : f32
    %7 = vector.broadcast %cst_6 : f32 to vector<4x2048xf32>
    %8 = arith.maximumf %6, %7 : vector<4x2048xf32>
    %9 = arith.truncf %8 : vector<4x2048xf32> to vector<4x2048xbf16>
    %c0_7 = arith.constant 0 : index
    %c0_8 = arith.constant 0 : index
    %c0_9 = arith.constant 0 : index
    %10 = vector.load %arg5[%c0_7, %c0_8, %c0_9] : memref<1x4x2048xbf16, #tpu.memory_space<vmem>>, vector<1x4x2048xbf16>
    %11 = vector.shape_cast %10 : vector<1x4x2048xbf16> to vector<4x2048xbf16>
    %12 = vector.shape_cast %9 : vector<4x2048xbf16> to vector<1x4x2048xbf16>
    tpu.vector_store %arg5[%c0_7, %c0_8, %c0_9], %12 {strides = array<i32>} : memref<1x4x2048xbf16, #tpu.memory_space<vmem>>, vector<1x4x2048xbf16>,
    return
  }
  func.func @transform_0(%arg0: i32, %arg1: i32) -> (i32, i32) {
    %c0_i32 = arith.constant 0 : i32
    %c0_i32_0 = arith.constant 0 : i32
    %c0_i32_1 = arith.constant 0 : i32
    return %c0_i32, %c0_i32_0 : i32, i32
  }
  func.func @transform_1(%arg0: i32, %arg1: i32) -> (i32, i32, i32) {
    %c0_i32 = arith.constant 0 : i32
    %c0_i32_0 = arith.constant 0 : i32
    return %arg0, %c0_i32, %arg1 : i32, i32, i32
  }
  func.func @transform_2(%arg0: i32, %arg1: i32) -> (i32, i32) {
    %c0_i32 = arith.constant 0 : i32
    %c0_i32_0 = arith.constant 0 : i32
    %c0_i32_1 = arith.constant 0 : i32
    return %c0_i32, %c0_i32_0 : i32, i32
  }
  func.func @transform_3(%arg0: i32, %arg1: i32) -> (i32, i32, i32) {
    %c0_i32 = arith.constant 0 : i32
    %c0_i32_0 = arith.constant 0 : i32
    return %arg0, %c0_i32, %arg1 : i32, i32, i32
  }
}

module attributes {stable_mosaic.version = 11 : i64} {
  func.func @_wx_relu_kernel(%arg0: i32, %arg1: i32, %arg2: memref<8x108xbf16, #tpu.memory_space<vmem>>, %arg3: memref<1x108x512xbf16, #tpu.memory_space<vmem>>, %arg4: memref<8x1xf32, #tpu.memory_space<vmem>>, %arg5: memref<1x8x512xbf16, #tpu.memory_space<vmem>>) attributes {dimension_semantics = [#tpu.dimension_semantics<parallel>, #tpu.dimension_semantics<parallel>], iteration_bounds = array<i64: 2, 1>, scalar_prefetch = 0 : i64, scratch_operands = 0 : i64, tpu.core_type = #tpu.core_type<tc>, window_params = [{pipeline_mode = #tpu.pipeline_mode<synchronous>, transform_indices = @transform_0, window_bounds = array<i64: 8, 108>}, {transform_indices = @transform_1, window_bounds = array<i64: 1, 108, 512>}, {pipeline_mode = #tpu.pipeline_mode<synchronous>, transform_indices = @transform_2, window_bounds = array<i64: 8, 1>}, {transform_indices = @transform_3, window_bounds = array<i64: 1, 8, 512>}]} {
    %c0 = arith.constant 0 : index
    %c0_0 = arith.constant 0 : index
    %0 = vector.load %arg2[%c0, %c0_0] : memref<8x108xbf16, #tpu.memory_space<vmem>>, vector<8x108xbf16>
    %c0_1 = arith.constant 0 : index
    %c0_2 = arith.constant 0 : index
    %c0_3 = arith.constant 0 : index
    %1 = vector.load %arg3[%c0_1, %c0_2, %c0_3] : memref<1x108x512xbf16, #tpu.memory_space<vmem>>, vector<1x108x512xbf16>
    %2 = vector.shape_cast %1 : vector<1x108x512xbf16> to vector<108x512xbf16>
    %cst = arith.constant dense<0.000000e+00> : vector<8x512xf32>
    %3 = tpu.matmul %0, %2, %cst {dimension_numbers = #tpu.dot_dimension_numbers<[1], [0], [0], [1], [0, 0, 1, 1], [], []>} : vector<8x108xbf16>, vector<108x512xbf16>, vector<8x512xf32> -> vector<8x512xf32>
    %c0_4 = arith.constant 0 : index
    %c0_5 = arith.constant 0 : index
    %4 = vector.load %arg4[%c0_4, %c0_5] : memref<8x1xf32, #tpu.memory_space<vmem>>, vector<8x1xf32>
    %5 = vector.broadcast %4 : vector<8x1xf32> to vector<8x512xf32>
    %6 = arith.addf %3, %5 : vector<8x512xf32>
    %cst_6 = arith.constant 0.000000e+00 : f32
    %7 = vector.broadcast %cst_6 : f32 to vector<8x512xf32>
    %8 = arith.maximumf %6, %7 : vector<8x512xf32>
    %9 = arith.truncf %8 : vector<8x512xf32> to vector<8x512xbf16>
    %c0_7 = arith.constant 0 : index
    %c0_8 = arith.constant 0 : index
    %c0_9 = arith.constant 0 : index
    %10 = vector.load %arg5[%c0_7, %c0_8, %c0_9] : memref<1x8x512xbf16, #tpu.memory_space<vmem>>, vector<1x8x512xbf16>
    %11 = vector.shape_cast %10 : vector<1x8x512xbf16> to vector<8x512xbf16>
    %12 = vector.shape_cast %9 : vector<8x512xbf16> to vector<1x8x512xbf16>
    tpu.vector_store %arg5[%c0_7, %c0_8, %c0_9], %12 {strides = array<i32>} : memref<1x8x512xbf16, #tpu.memory_space<vmem>>, vector<1x8x512xbf16>,
    return
  }
  func.func @transform_0(%arg0: i32, %arg1: i32) -> (i32, i32) {
    %c0_i32 = arith.constant 0 : i32
    %c0_i32_0 = arith.constant 0 : i32
    %c0_i32_1 = arith.constant 0 : i32
    return %c0_i32, %c0_i32_0 : i32, i32
  }
  func.func @transform_1(%arg0: i32, %arg1: i32) -> (i32, i32, i32) {
    %c0_i32 = arith.constant 0 : i32
    %c0_i32_0 = arith.constant 0 : i32
    return %arg0, %c0_i32, %arg1 : i32, i32, i32
  }
  func.func @transform_2(%arg0: i32, %arg1: i32) -> (i32, i32) {
    %c0_i32 = arith.constant 0 : i32
    %c0_i32_0 = arith.constant 0 : i32
    %c0_i32_1 = arith.constant 0 : i32
    return %c0_i32, %c0_i32_0 : i32, i32
  }
  func.func @transform_3(%arg0: i32, %arg1: i32) -> (i32, i32, i32) {
    %c0_i32 = arith.constant 0 : i32
    %c0_i32_0 = arith.constant 0 : i32
    return %arg0, %c0_i32, %arg1 : i32, i32, i32
  }
}

module attributes {stable_mosaic.version = 11 : i64} {
  func.func @_wx_relu_kernel(%arg0: i32, %arg1: i32, %arg2: memref<8x216xbf16, #tpu.memory_space<vmem>>, %arg3: memref<1x216x128xbf16, #tpu.memory_space<vmem>>, %arg4: memref<8x1xf32, #tpu.memory_space<vmem>>, %arg5: memref<1x8x128xbf16, #tpu.memory_space<vmem>>) attributes {dimension_semantics = [#tpu.dimension_semantics<parallel>, #tpu.dimension_semantics<parallel>], iteration_bounds = array<i64: 2, 1>, scalar_prefetch = 0 : i64, scratch_operands = 0 : i64, tpu.core_type = #tpu.core_type<tc>, window_params = [{pipeline_mode = #tpu.pipeline_mode<synchronous>, transform_indices = @transform_0, window_bounds = array<i64: 8, 216>}, {transform_indices = @transform_1, window_bounds = array<i64: 1, 216, 128>}, {pipeline_mode = #tpu.pipeline_mode<synchronous>, transform_indices = @transform_2, window_bounds = array<i64: 8, 1>}, {transform_indices = @transform_3, window_bounds = array<i64: 1, 8, 128>}]} {
    %c0 = arith.constant 0 : index
    %c0_0 = arith.constant 0 : index
    %0 = vector.load %arg2[%c0, %c0_0] : memref<8x216xbf16, #tpu.memory_space<vmem>>, vector<8x216xbf16>
    %c0_1 = arith.constant 0 : index
    %c0_2 = arith.constant 0 : index
    %c0_3 = arith.constant 0 : index
    %1 = vector.load %arg3[%c0_1, %c0_2, %c0_3] : memref<1x216x128xbf16, #tpu.memory_space<vmem>>, vector<1x216x128xbf16>
    %2 = vector.shape_cast %1 : vector<1x216x128xbf16> to vector<216x128xbf16>
    %cst = arith.constant dense<0.000000e+00> : vector<8x128xf32>
    %3 = tpu.matmul %0, %2, %cst {dimension_numbers = #tpu.dot_dimension_numbers<[1], [0], [0], [1], [0, 0, 1, 1], [], []>} : vector<8x216xbf16>, vector<216x128xbf16>, vector<8x128xf32> -> vector<8x128xf32>
    %c0_4 = arith.constant 0 : index
    %c0_5 = arith.constant 0 : index
    %4 = vector.load %arg4[%c0_4, %c0_5] : memref<8x1xf32, #tpu.memory_space<vmem>>, vector<8x1xf32>
    %5 = vector.broadcast %4 : vector<8x1xf32> to vector<8x128xf32>
    %6 = arith.addf %3, %5 : vector<8x128xf32>
    %cst_6 = arith.constant 0.000000e+00 : f32
    %7 = vector.broadcast %cst_6 : f32 to vector<8x128xf32>
    %8 = arith.maximumf %6, %7 : vector<8x128xf32>
    %9 = arith.truncf %8 : vector<8x128xf32> to vector<8x128xbf16>
    %c0_7 = arith.constant 0 : index
    %c0_8 = arith.constant 0 : index
    %c0_9 = arith.constant 0 : index
    %10 = vector.load %arg5[%c0_7, %c0_8, %c0_9] : memref<1x8x128xbf16, #tpu.memory_space<vmem>>, vector<1x8x128xbf16>
    %11 = vector.shape_cast %10 : vector<1x8x128xbf16> to vector<8x128xbf16>
    %12 = vector.shape_cast %9 : vector<8x128xbf16> to vector<1x8x128xbf16>
    tpu.vector_store %arg5[%c0_7, %c0_8, %c0_9], %12 {strides = array<i32>} : memref<1x8x128xbf16, #tpu.memory_space<vmem>>, vector<1x8x128xbf16>,
    return
  }
  func.func @transform_0(%arg0: i32, %arg1: i32) -> (i32, i32) {
    %c0_i32 = arith.constant 0 : i32
    %c0_i32_0 = arith.constant 0 : i32
    %c0_i32_1 = arith.constant 0 : i32
    return %c0_i32, %c0_i32_0 : i32, i32
  }
  func.func @transform_1(%arg0: i32, %arg1: i32) -> (i32, i32, i32) {
    %c0_i32 = arith.constant 0 : i32
    %c0_i32_0 = arith.constant 0 : i32
    return %arg0, %c0_i32, %arg1 : i32, i32, i32
  }
  func.func @transform_2(%arg0: i32, %arg1: i32) -> (i32, i32) {
    %c0_i32 = arith.constant 0 : i32
    %c0_i32_0 = arith.constant 0 : i32
    %c0_i32_1 = arith.constant 0 : i32
    return %c0_i32, %c0_i32_0 : i32, i32
  }
  func.func @transform_3(%arg0: i32, %arg1: i32) -> (i32, i32, i32) {
    %c0_i32 = arith.constant 0 : i32
    %c0_i32_0 = arith.constant 0 : i32
    return %arg0, %c0_i32, %arg1 : i32, i32, i32
  }
}

module attributes {stable_mosaic.version = 11 : i64} {
  func.func @_wx_relu_kernel(%arg0: i32, %arg1: i32, %arg2: memref<8x432xbf16, #tpu.memory_space<vmem>>, %arg3: memref<1x432x512xbf16, #tpu.memory_space<vmem>>, %arg4: memref<8x1xf32, #tpu.memory_space<vmem>>, %arg5: memref<1x8x512xbf16, #tpu.memory_space<vmem>>) attributes {dimension_semantics = [#tpu.dimension_semantics<parallel>, #tpu.dimension_semantics<parallel>], iteration_bounds = array<i64: 2, 1>, scalar_prefetch = 0 : i64, scratch_operands = 0 : i64, tpu.core_type = #tpu.core_type<tc>, window_params = [{pipeline_mode = #tpu.pipeline_mode<synchronous>, transform_indices = @transform_0, window_bounds = array<i64: 8, 432>}, {transform_indices = @transform_1, window_bounds = array<i64: 1, 432, 512>}, {pipeline_mode = #tpu.pipeline_mode<synchronous>, transform_indices = @transform_2, window_bounds = array<i64: 8, 1>}, {transform_indices = @transform_3, window_bounds = array<i64: 1, 8, 512>}]} {
    %c0 = arith.constant 0 : index
    %c0_0 = arith.constant 0 : index
    %0 = vector.load %arg2[%c0, %c0_0] : memref<8x432xbf16, #tpu.memory_space<vmem>>, vector<8x432xbf16>
    %c0_1 = arith.constant 0 : index
    %c0_2 = arith.constant 0 : index
    %c0_3 = arith.constant 0 : index
    %1 = vector.load %arg3[%c0_1, %c0_2, %c0_3] : memref<1x432x512xbf16, #tpu.memory_space<vmem>>, vector<1x432x512xbf16>
    %2 = vector.shape_cast %1 : vector<1x432x512xbf16> to vector<432x512xbf16>
    %cst = arith.constant dense<0.000000e+00> : vector<8x512xf32>
    %3 = tpu.matmul %0, %2, %cst {dimension_numbers = #tpu.dot_dimension_numbers<[1], [0], [0], [1], [0, 0, 1, 1], [], []>} : vector<8x432xbf16>, vector<432x512xbf16>, vector<8x512xf32> -> vector<8x512xf32>
    %c0_4 = arith.constant 0 : index
    %c0_5 = arith.constant 0 : index
    %4 = vector.load %arg4[%c0_4, %c0_5] : memref<8x1xf32, #tpu.memory_space<vmem>>, vector<8x1xf32>
    %5 = vector.broadcast %4 : vector<8x1xf32> to vector<8x512xf32>
    %6 = arith.addf %3, %5 : vector<8x512xf32>
    %cst_6 = arith.constant 0.000000e+00 : f32
    %7 = vector.broadcast %cst_6 : f32 to vector<8x512xf32>
    %8 = arith.maximumf %6, %7 : vector<8x512xf32>
    %9 = arith.truncf %8 : vector<8x512xf32> to vector<8x512xbf16>
    %c0_7 = arith.constant 0 : index
    %c0_8 = arith.constant 0 : index
    %c0_9 = arith.constant 0 : index
    %10 = vector.load %arg5[%c0_7, %c0_8, %c0_9] : memref<1x8x512xbf16, #tpu.memory_space<vmem>>, vector<1x8x512xbf16>
    %11 = vector.shape_cast %10 : vector<1x8x512xbf16> to vector<8x512xbf16>
    %12 = vector.shape_cast %9 : vector<8x512xbf16> to vector<1x8x512xbf16>
    tpu.vector_store %arg5[%c0_7, %c0_8, %c0_9], %12 {strides = array<i32>} : memref<1x8x512xbf16, #tpu.memory_space<vmem>>, vector<1x8x512xbf16>,
    return
  }
  func.func @transform_0(%arg0: i32, %arg1: i32) -> (i32, i32) {
    %c0_i32 = arith.constant 0 : i32
    %c0_i32_0 = arith.constant 0 : i32
    %c0_i32_1 = arith.constant 0 : i32
    return %c0_i32, %c0_i32_0 : i32, i32
  }
  func.func @transform_1(%arg0: i32, %arg1: i32) -> (i32, i32, i32) {
    %c0_i32 = arith.constant 0 : i32
    %c0_i32_0 = arith.constant 0 : i32
    return %arg0, %c0_i32, %arg1 : i32, i32, i32
  }
  func.func @transform_2(%arg0: i32, %arg1: i32) -> (i32, i32) {
    %c0_i32 = arith.constant 0 : i32
    %c0_i32_0 = arith.constant 0 : i32
    %c0_i32_1 = arith.constant 0 : i32
    return %c0_i32, %c0_i32_0 : i32, i32
  }
  func.func @transform_3(%arg0: i32, %arg1: i32) -> (i32, i32, i32) {
    %c0_i32 = arith.constant 0 : i32
    %c0_i32_0 = arith.constant 0 : i32
    return %arg0, %c0_i32, %arg1 : i32, i32, i32
  }
}

module attributes {stable_mosaic.version = 11 : i64} {
  func.func @_wx_relu_kernel(%arg0: i32, %arg1: i32, %arg2: memref<4x324xbf16, #tpu.memory_space<vmem>>, %arg3: memref<1x324x2048xbf16, #tpu.memory_space<vmem>>, %arg4: memref<4x1xf32, #tpu.memory_space<vmem>>, %arg5: memref<1x4x2048xbf16, #tpu.memory_space<vmem>>) attributes {dimension_semantics = [#tpu.dimension_semantics<parallel>, #tpu.dimension_semantics<parallel>], iteration_bounds = array<i64: 2, 2>, scalar_prefetch = 0 : i64, scratch_operands = 0 : i64, tpu.core_type = #tpu.core_type<tc>, window_params = [{pipeline_mode = #tpu.pipeline_mode<synchronous>, transform_indices = @transform_0, window_bounds = array<i64: 4, 324>}, {transform_indices = @transform_1, window_bounds = array<i64: 1, 324, 2048>}, {pipeline_mode = #tpu.pipeline_mode<synchronous>, transform_indices = @transform_2, window_bounds = array<i64: 4, 1>}, {transform_indices = @transform_3, window_bounds = array<i64: 1, 4, 2048>}]} {
    %c0 = arith.constant 0 : index
    %c0_0 = arith.constant 0 : index
    %0 = vector.load %arg2[%c0, %c0_0] : memref<4x324xbf16, #tpu.memory_space<vmem>>, vector<4x324xbf16>
    %c0_1 = arith.constant 0 : index
    %c0_2 = arith.constant 0 : index
    %c0_3 = arith.constant 0 : index
    %1 = vector.load %arg3[%c0_1, %c0_2, %c0_3] : memref<1x324x2048xbf16, #tpu.memory_space<vmem>>, vector<1x324x2048xbf16>
    %2 = vector.shape_cast %1 : vector<1x324x2048xbf16> to vector<324x2048xbf16>
    %cst = arith.constant dense<0.000000e+00> : vector<4x2048xf32>
    %3 = tpu.matmul %0, %2, %cst {dimension_numbers = #tpu.dot_dimension_numbers<[1], [0], [0], [1], [0, 0, 1, 1], [], []>} : vector<4x324xbf16>, vector<324x2048xbf16>, vector<4x2048xf32> -> vector<4x2048xf32>
    %c0_4 = arith.constant 0 : index
    %c0_5 = arith.constant 0 : index
    %4 = vector.load %arg4[%c0_4, %c0_5] : memref<4x1xf32, #tpu.memory_space<vmem>>, vector<4x1xf32>
    %5 = vector.broadcast %4 : vector<4x1xf32> to vector<4x2048xf32>
    %6 = arith.addf %3, %5 : vector<4x2048xf32>
    %cst_6 = arith.constant 0.000000e+00 : f32
    %7 = vector.broadcast %cst_6 : f32 to vector<4x2048xf32>
    %8 = arith.maximumf %6, %7 : vector<4x2048xf32>
    %9 = arith.truncf %8 : vector<4x2048xf32> to vector<4x2048xbf16>
    %c0_7 = arith.constant 0 : index
    %c0_8 = arith.constant 0 : index
    %c0_9 = arith.constant 0 : index
    %10 = vector.load %arg5[%c0_7, %c0_8, %c0_9] : memref<1x4x2048xbf16, #tpu.memory_space<vmem>>, vector<1x4x2048xbf16>
    %11 = vector.shape_cast %10 : vector<1x4x2048xbf16> to vector<4x2048xbf16>
    %12 = vector.shape_cast %9 : vector<4x2048xbf16> to vector<1x4x2048xbf16>
    tpu.vector_store %arg5[%c0_7, %c0_8, %c0_9], %12 {strides = array<i32>} : memref<1x4x2048xbf16, #tpu.memory_space<vmem>>, vector<1x4x2048xbf16>,
    return
  }
  func.func @transform_0(%arg0: i32, %arg1: i32) -> (i32, i32) {
    %c0_i32 = arith.constant 0 : i32
    %c0_i32_0 = arith.constant 0 : i32
    %c0_i32_1 = arith.constant 0 : i32
    return %c0_i32, %c0_i32_0 : i32, i32
  }
  func.func @transform_1(%arg0: i32, %arg1: i32) -> (i32, i32, i32) {
    %c0_i32 = arith.constant 0 : i32
    %c0_i32_0 = arith.constant 0 : i32
    return %arg0, %c0_i32, %arg1 : i32, i32, i32
  }
  func.func @transform_2(%arg0: i32, %arg1: i32) -> (i32, i32) {
    %c0_i32 = arith.constant 0 : i32
    %c0_i32_0 = arith.constant 0 : i32
    %c0_i32_1 = arith.constant 0 : i32
    return %c0_i32, %c0_i32_0 : i32, i32
  }
  func.func @transform_3(%arg0: i32, %arg1: i32) -> (i32, i32, i32) {
    %c0_i32 = arith.constant 0 : i32
    %c0_i32_0 = arith.constant 0 : i32
    return %arg0, %c0_i32, %arg1 : i32, i32, i32
  }
}

module attributes {stable_mosaic.version = 11 : i64} {
  func.func @_wx_kernel(%arg0: i32, %arg1: i32, %arg2: memref<3x4xbf16, #tpu.memory_space<vmem>>, %arg3: memref<1x4x2048xbf16, #tpu.memory_space<vmem>>, %arg4: memref<3x1xf32, #tpu.memory_space<vmem>>, %arg5: memref<1x3x2048xf32, #tpu.memory_space<vmem>>) attributes {dimension_semantics = [#tpu.dimension_semantics<parallel>, #tpu.dimension_semantics<parallel>], iteration_bounds = array<i64: 2, 2>, scalar_prefetch = 0 : i64, scratch_operands = 0 : i64, tpu.core_type = #tpu.core_type<tc>, window_params = [{pipeline_mode = #tpu.pipeline_mode<synchronous>, transform_indices = @transform_0, window_bounds = array<i64: 3, 4>}, {transform_indices = @transform_1, window_bounds = array<i64: 1, 4, 2048>}, {pipeline_mode = #tpu.pipeline_mode<synchronous>, transform_indices = @transform_2, window_bounds = array<i64: 3, 1>}, {transform_indices = @transform_3, window_bounds = array<i64: 1, 3, 2048>}]} {
    %c0 = arith.constant 0 : index
    %c0_0 = arith.constant 0 : index
    %0 = vector.load %arg2[%c0, %c0_0] : memref<3x4xbf16, #tpu.memory_space<vmem>>, vector<3x4xbf16>
    %c0_1 = arith.constant 0 : index
    %c0_2 = arith.constant 0 : index
    %c0_3 = arith.constant 0 : index
    %1 = vector.load %arg3[%c0_1, %c0_2, %c0_3] : memref<1x4x2048xbf16, #tpu.memory_space<vmem>>, vector<1x4x2048xbf16>
    %2 = vector.shape_cast %1 : vector<1x4x2048xbf16> to vector<4x2048xbf16>
    %cst = arith.constant dense<0.000000e+00> : vector<3x2048xf32>
    %3 = tpu.matmul %0, %2, %cst {dimension_numbers = #tpu.dot_dimension_numbers<[1], [0], [0], [1], [0, 0, 1, 1], [], []>} : vector<3x4xbf16>, vector<4x2048xbf16>, vector<3x2048xf32> -> vector<3x2048xf32>
    %c0_4 = arith.constant 0 : index
    %c0_5 = arith.constant 0 : index
    %4 = vector.load %arg4[%c0_4, %c0_5] : memref<3x1xf32, #tpu.memory_space<vmem>>, vector<3x1xf32>
    %5 = vector.broadcast %4 : vector<3x1xf32> to vector<3x2048xf32>
    %6 = arith.addf %3, %5 : vector<3x2048xf32>
    %c0_6 = arith.constant 0 : index
    %c0_7 = arith.constant 0 : index
    %c0_8 = arith.constant 0 : index
    %7 = vector.load %arg5[%c0_6, %c0_7, %c0_8] : memref<1x3x2048xf32, #tpu.memory_space<vmem>>, vector<1x3x2048xf32>
    %8 = vector.shape_cast %7 : vector<1x3x2048xf32> to vector<3x2048xf32>
    %9 = vector.shape_cast %6 : vector<3x2048xf32> to vector<1x3x2048xf32>
    tpu.vector_store %arg5[%c0_6, %c0_7, %c0_8], %9 {strides = array<i32>} : memref<1x3x2048xf32, #tpu.memory_space<vmem>>, vector<1x3x2048xf32>,
    return
  }
  func.func @transform_0(%arg0: i32, %arg1: i32) -> (i32, i32) {
    %c0_i32 = arith.constant 0 : i32
    %c0_i32_0 = arith.constant 0 : i32
    %c0_i32_1 = arith.constant 0 : i32
    return %c0_i32, %c0_i32_0 : i32, i32
  }
  func.func @transform_1(%arg0: i32, %arg1: i32) -> (i32, i32, i32) {
    %c0_i32 = arith.constant 0 : i32
    %c0_i32_0 = arith.constant 0 : i32
    return %arg0, %c0_i32, %arg1 : i32, i32, i32
  }
  func.func @transform_2(%arg0: i32, %arg1: i32) -> (i32, i32) {
    %c0_i32 = arith.constant 0 : i32
    %c0_i32_0 = arith.constant 0 : i32
    %c0_i32_1 = arith.constant 0 : i32
    return %c0_i32, %c0_i32_0 : i32, i32
  }
  func.func @transform_3(%arg0: i32, %arg1: i32) -> (i32, i32, i32) {
    %c0_i32 = arith.constant 0 : i32
    %c0_i32_0 = arith.constant 0 : i32
    return %arg0, %c0_i32, %arg1 : i32, i32, i32
  }
}

module attributes {stable_mosaic.version = 11 : i64} {
  func.func @_wx_kernel(%arg0: i32, %arg1: i32, %arg2: memref<3x8xbf16, #tpu.memory_space<vmem>>, %arg3: memref<1x8x512xbf16, #tpu.memory_space<vmem>>, %arg4: memref<3x1xf32, #tpu.memory_space<vmem>>, %arg5: memref<1x3x512xf32, #tpu.memory_space<vmem>>) attributes {dimension_semantics = [#tpu.dimension_semantics<parallel>, #tpu.dimension_semantics<parallel>], iteration_bounds = array<i64: 2, 1>, scalar_prefetch = 0 : i64, scratch_operands = 0 : i64, tpu.core_type = #tpu.core_type<tc>, window_params = [{pipeline_mode = #tpu.pipeline_mode<synchronous>, transform_indices = @transform_0, window_bounds = array<i64: 3, 8>}, {transform_indices = @transform_1, window_bounds = array<i64: 1, 8, 512>}, {pipeline_mode = #tpu.pipeline_mode<synchronous>, transform_indices = @transform_2, window_bounds = array<i64: 3, 1>}, {transform_indices = @transform_3, window_bounds = array<i64: 1, 3, 512>}]} {
    %c0 = arith.constant 0 : index
    %c0_0 = arith.constant 0 : index
    %0 = vector.load %arg2[%c0, %c0_0] : memref<3x8xbf16, #tpu.memory_space<vmem>>, vector<3x8xbf16>
    %c0_1 = arith.constant 0 : index
    %c0_2 = arith.constant 0 : index
    %c0_3 = arith.constant 0 : index
    %1 = vector.load %arg3[%c0_1, %c0_2, %c0_3] : memref<1x8x512xbf16, #tpu.memory_space<vmem>>, vector<1x8x512xbf16>
    %2 = vector.shape_cast %1 : vector<1x8x512xbf16> to vector<8x512xbf16>
    %cst = arith.constant dense<0.000000e+00> : vector<3x512xf32>
    %3 = tpu.matmul %0, %2, %cst {dimension_numbers = #tpu.dot_dimension_numbers<[1], [0], [0], [1], [0, 0, 1, 1], [], []>} : vector<3x8xbf16>, vector<8x512xbf16>, vector<3x512xf32> -> vector<3x512xf32>
    %c0_4 = arith.constant 0 : index
    %c0_5 = arith.constant 0 : index
    %4 = vector.load %arg4[%c0_4, %c0_5] : memref<3x1xf32, #tpu.memory_space<vmem>>, vector<3x1xf32>
    %5 = vector.broadcast %4 : vector<3x1xf32> to vector<3x512xf32>
    %6 = arith.addf %3, %5 : vector<3x512xf32>
    %c0_6 = arith.constant 0 : index
    %c0_7 = arith.constant 0 : index
    %c0_8 = arith.constant 0 : index
    %7 = vector.load %arg5[%c0_6, %c0_7, %c0_8] : memref<1x3x512xf32, #tpu.memory_space<vmem>>, vector<1x3x512xf32>
    %8 = vector.shape_cast %7 : vector<1x3x512xf32> to vector<3x512xf32>
    %9 = vector.shape_cast %6 : vector<3x512xf32> to vector<1x3x512xf32>
    tpu.vector_store %arg5[%c0_6, %c0_7, %c0_8], %9 {strides = array<i32>} : memref<1x3x512xf32, #tpu.memory_space<vmem>>, vector<1x3x512xf32>,
    return
  }
  func.func @transform_0(%arg0: i32, %arg1: i32) -> (i32, i32) {
    %c0_i32 = arith.constant 0 : i32
    %c0_i32_0 = arith.constant 0 : i32
    %c0_i32_1 = arith.constant 0 : i32
    return %c0_i32, %c0_i32_0 : i32, i32
  }
  func.func @transform_1(%arg0: i32, %arg1: i32) -> (i32, i32, i32) {
    %c0_i32 = arith.constant 0 : i32
    %c0_i32_0 = arith.constant 0 : i32
    return %arg0, %c0_i32, %arg1 : i32, i32, i32
  }
  func.func @transform_2(%arg0: i32, %arg1: i32) -> (i32, i32) {
    %c0_i32 = arith.constant 0 : i32
    %c0_i32_0 = arith.constant 0 : i32
    %c0_i32_1 = arith.constant 0 : i32
    return %c0_i32, %c0_i32_0 : i32, i32
  }
  func.func @transform_3(%arg0: i32, %arg1: i32) -> (i32, i32, i32) {
    %c0_i32 = arith.constant 0 : i32
    %c0_i32_0 = arith.constant 0 : i32
    return %arg0, %c0_i32, %arg1 : i32, i32, i32
  }
}

module attributes {stable_mosaic.version = 11 : i64} {
  func.func @_xw_kernel(%arg0: i32, %arg1: memref<384x8xf32, #tpu.memory_space<vmem>>, %arg2: memref<8x16xf32, #tpu.memory_space<vmem>>, %arg3: memref<384x16xf32, #tpu.memory_space<vmem>>) attributes {dimension_semantics = [#tpu.dimension_semantics<parallel>], iteration_bounds = array<i64: 1>, scalar_prefetch = 0 : i64, scratch_operands = 0 : i64, tpu.core_type = #tpu.core_type<tc>, window_params = [{transform_indices = @transform_0, window_bounds = array<i64: 384, 8>}, {pipeline_mode = #tpu.pipeline_mode<synchronous>, transform_indices = @transform_1, window_bounds = array<i64: 8, 16>}, {transform_indices = @transform_2, window_bounds = array<i64: 384, 16>}]} {
    %c0 = arith.constant 0 : index
    %c0_0 = arith.constant 0 : index
    %0 = vector.load %arg1[%c0, %c0_0] : memref<384x8xf32, #tpu.memory_space<vmem>>, vector<384x8xf32>
    %c0_1 = arith.constant 0 : index
    %c0_2 = arith.constant 0 : index
    %1 = vector.load %arg2[%c0_1, %c0_2] : memref<8x16xf32, #tpu.memory_space<vmem>>, vector<8x16xf32>
    %cst = arith.constant dense<0.000000e+00> : vector<384x16xf32>
    %2 = tpu.matmul %0, %1, %cst {dimension_numbers = #tpu.dot_dimension_numbers<[1], [0], [0], [1], [0, 0, 1, 1], [], []>} : vector<384x8xf32>, vector<8x16xf32>, vector<384x16xf32> -> vector<384x16xf32>
    %c0_3 = arith.constant 0 : index
    %c0_4 = arith.constant 0 : index
    %3 = vector.load %arg3[%c0_3, %c0_4] : memref<384x16xf32, #tpu.memory_space<vmem>>, vector<384x16xf32>
    tpu.vector_store %arg3[%c0_3, %c0_4], %2 {strides = array<i32>} : memref<384x16xf32, #tpu.memory_space<vmem>>, vector<384x16xf32>,
    return
  }
  func.func @transform_0(%arg0: i32) -> (i32, i32) {
    %c0_i32 = arith.constant 0 : i32
    %c0_i32_0 = arith.constant 0 : i32
    return %arg0, %c0_i32 : i32, i32
  }
  func.func @transform_1(%arg0: i32) -> (i32, i32) {
    %c0_i32 = arith.constant 0 : i32
    %c0_i32_0 = arith.constant 0 : i32
    %c0_i32_1 = arith.constant 0 : i32
    return %c0_i32, %c0_i32_0 : i32, i32
  }
  func.func @transform_2(%arg0: i32) -> (i32, i32) {
    %c0_i32 = arith.constant 0 : i32
    %c0_i32_0 = arith.constant 0 : i32
    return %arg0, %c0_i32 : i32, i32
  }
}

module attributes {stable_mosaic.version = 11 : i64} {
  func.func @_wx_kernel(%arg0: i32, %arg1: i32, %arg2: memref<16x8xf32, #tpu.memory_space<vmem>>, %arg3: memref<1x8x128xf32, #tpu.memory_space<vmem>>, %arg4: memref<16x1xf32, #tpu.memory_space<vmem>>, %arg5: memref<1x16x128xf32, #tpu.memory_space<vmem>>) attributes {dimension_semantics = [#tpu.dimension_semantics<parallel>, #tpu.dimension_semantics<parallel>], iteration_bounds = array<i64: 48, 1>, scalar_prefetch = 0 : i64, scratch_operands = 0 : i64, tpu.core_type = #tpu.core_type<tc>, window_params = [{pipeline_mode = #tpu.pipeline_mode<synchronous>, transform_indices = @transform_0, window_bounds = array<i64: 16, 8>}, {transform_indices = @transform_1, window_bounds = array<i64: 1, 8, 128>}, {pipeline_mode = #tpu.pipeline_mode<synchronous>, transform_indices = @transform_2, window_bounds = array<i64: 16, 1>}, {transform_indices = @transform_3, window_bounds = array<i64: 1, 16, 128>}]} {
    %c0 = arith.constant 0 : index
    %c0_0 = arith.constant 0 : index
    %0 = vector.load %arg2[%c0, %c0_0] : memref<16x8xf32, #tpu.memory_space<vmem>>, vector<16x8xf32>
    %c0_1 = arith.constant 0 : index
    %c0_2 = arith.constant 0 : index
    %c0_3 = arith.constant 0 : index
    %1 = vector.load %arg3[%c0_1, %c0_2, %c0_3] : memref<1x8x128xf32, #tpu.memory_space<vmem>>, vector<1x8x128xf32>
    %2 = vector.shape_cast %1 : vector<1x8x128xf32> to vector<8x128xf32>
    %cst = arith.constant dense<0.000000e+00> : vector<16x128xf32>
    %3 = tpu.matmul %0, %2, %cst {dimension_numbers = #tpu.dot_dimension_numbers<[1], [0], [0], [1], [0, 0, 1, 1], [], []>} : vector<16x8xf32>, vector<8x128xf32>, vector<16x128xf32> -> vector<16x128xf32>
    %c0_4 = arith.constant 0 : index
    %c0_5 = arith.constant 0 : index
    %4 = vector.load %arg4[%c0_4, %c0_5] : memref<16x1xf32, #tpu.memory_space<vmem>>, vector<16x1xf32>
    %5 = vector.broadcast %4 : vector<16x1xf32> to vector<16x128xf32>
    %6 = arith.addf %3, %5 : vector<16x128xf32>
    %c0_6 = arith.constant 0 : index
    %c0_7 = arith.constant 0 : index
    %c0_8 = arith.constant 0 : index
    %7 = vector.load %arg5[%c0_6, %c0_7, %c0_8] : memref<1x16x128xf32, #tpu.memory_space<vmem>>, vector<1x16x128xf32>
    %8 = vector.shape_cast %7 : vector<1x16x128xf32> to vector<16x128xf32>
    %9 = vector.shape_cast %6 : vector<16x128xf32> to vector<1x16x128xf32>
    tpu.vector_store %arg5[%c0_6, %c0_7, %c0_8], %9 {strides = array<i32>} : memref<1x16x128xf32, #tpu.memory_space<vmem>>, vector<1x16x128xf32>,
    return
  }
  func.func @transform_0(%arg0: i32, %arg1: i32) -> (i32, i32) {
    %c0_i32 = arith.constant 0 : i32
    %c0_i32_0 = arith.constant 0 : i32
    %c0_i32_1 = arith.constant 0 : i32
    return %c0_i32, %c0_i32_0 : i32, i32
  }
  func.func @transform_1(%arg0: i32, %arg1: i32) -> (i32, i32, i32) {
    %c0_i32 = arith.constant 0 : i32
    %c0_i32_0 = arith.constant 0 : i32
    return %arg0, %c0_i32, %arg1 : i32, i32, i32
  }
  func.func @transform_2(%arg0: i32, %arg1: i32) -> (i32, i32) {
    %c0_i32 = arith.constant 0 : i32
    %c0_i32_0 = arith.constant 0 : i32
    %c0_i32_1 = arith.constant 0 : i32
    return %c0_i32, %c0_i32_0 : i32, i32
  }
  func.func @transform_3(%arg0: i32, %arg1: i32) -> (i32, i32, i32) {
    %c0_i32 = arith.constant 0 : i32
    %c0_i32_0 = arith.constant 0 : i32
    return %arg0, %c0_i32, %arg1 : i32, i32, i32
  }
}

module attributes {stable_mosaic.version = 11 : i64} {
  func.func @_wx_kernel(%arg0: i32, %arg1: i32, %arg2: memref<3x8xbf16, #tpu.memory_space<vmem>>, %arg3: memref<1x8x128xbf16, #tpu.memory_space<vmem>>, %arg4: memref<3x1xf32, #tpu.memory_space<vmem>>, %arg5: memref<1x3x128xf32, #tpu.memory_space<vmem>>) attributes {dimension_semantics = [#tpu.dimension_semantics<parallel>, #tpu.dimension_semantics<parallel>], iteration_bounds = array<i64: 2, 1>, scalar_prefetch = 0 : i64, scratch_operands = 0 : i64, tpu.core_type = #tpu.core_type<tc>, window_params = [{pipeline_mode = #tpu.pipeline_mode<synchronous>, transform_indices = @transform_0, window_bounds = array<i64: 3, 8>}, {transform_indices = @transform_1, window_bounds = array<i64: 1, 8, 128>}, {pipeline_mode = #tpu.pipeline_mode<synchronous>, transform_indices = @transform_2, window_bounds = array<i64: 3, 1>}, {transform_indices = @transform_3, window_bounds = array<i64: 1, 3, 128>}]} {
    %c0 = arith.constant 0 : index
    %c0_0 = arith.constant 0 : index
    %0 = vector.load %arg2[%c0, %c0_0] : memref<3x8xbf16, #tpu.memory_space<vmem>>, vector<3x8xbf16>
    %c0_1 = arith.constant 0 : index
    %c0_2 = arith.constant 0 : index
    %c0_3 = arith.constant 0 : index
    %1 = vector.load %arg3[%c0_1, %c0_2, %c0_3] : memref<1x8x128xbf16, #tpu.memory_space<vmem>>, vector<1x8x128xbf16>
    %2 = vector.shape_cast %1 : vector<1x8x128xbf16> to vector<8x128xbf16>
    %cst = arith.constant dense<0.000000e+00> : vector<3x128xf32>
    %3 = tpu.matmul %0, %2, %cst {dimension_numbers = #tpu.dot_dimension_numbers<[1], [0], [0], [1], [0, 0, 1, 1], [], []>} : vector<3x8xbf16>, vector<8x128xbf16>, vector<3x128xf32> -> vector<3x128xf32>
    %c0_4 = arith.constant 0 : index
    %c0_5 = arith.constant 0 : index
    %4 = vector.load %arg4[%c0_4, %c0_5] : memref<3x1xf32, #tpu.memory_space<vmem>>, vector<3x1xf32>
    %5 = vector.broadcast %4 : vector<3x1xf32> to vector<3x128xf32>
    %6 = arith.addf %3, %5 : vector<3x128xf32>
    %c0_6 = arith.constant 0 : index
    %c0_7 = arith.constant 0 : index
    %c0_8 = arith.constant 0 : index
    %7 = vector.load %arg5[%c0_6, %c0_7, %c0_8] : memref<1x3x128xf32, #tpu.memory_space<vmem>>, vector<1x3x128xf32>
    %8 = vector.shape_cast %7 : vector<1x3x128xf32> to vector<3x128xf32>
    %9 = vector.shape_cast %6 : vector<3x128xf32> to vector<1x3x128xf32>
    tpu.vector_store %arg5[%c0_6, %c0_7, %c0_8], %9 {strides = array<i32>} : memref<1x3x128xf32, #tpu.memory_space<vmem>>, vector<1x3x128xf32>,
    return
  }
  func.func @transform_0(%arg0: i32, %arg1: i32) -> (i32, i32) {
    %c0_i32 = arith.constant 0 : i32
    %c0_i32_0 = arith.constant 0 : i32
    %c0_i32_1 = arith.constant 0 : i32
    return %c0_i32, %c0_i32_0 : i32, i32
  }
  func.func @transform_1(%arg0: i32, %arg1: i32) -> (i32, i32, i32) {
    %c0_i32 = arith.constant 0 : i32
    %c0_i32_0 = arith.constant 0 : i32
    return %arg0, %c0_i32, %arg1 : i32, i32, i32
  }
  func.func @transform_2(%arg0: i32, %arg1: i32) -> (i32, i32) {
    %c0_i32 = arith.constant 0 : i32
    %c0_i32_0 = arith.constant 0 : i32
    %c0_i32_1 = arith.constant 0 : i32
    return %c0_i32, %c0_i32_0 : i32, i32
  }
  func.func @transform_3(%arg0: i32, %arg1: i32) -> (i32, i32, i32) {
    %c0_i32 = arith.constant 0 : i32
    %c0_i32_0 = arith.constant 0 : i32
    return %arg0, %c0_i32, %arg1 : i32, i32, i32
  }
}

module attributes {stable_mosaic.version = 11 : i64} {
  func.func @_xw_kernel(%arg0: i32, %arg1: memref<96x4xf32, #tpu.memory_space<vmem>>, %arg2: memref<4x16xf32, #tpu.memory_space<vmem>>, %arg3: memref<96x16xf32, #tpu.memory_space<vmem>>) attributes {dimension_semantics = [#tpu.dimension_semantics<parallel>], iteration_bounds = array<i64: 1>, scalar_prefetch = 0 : i64, scratch_operands = 0 : i64, tpu.core_type = #tpu.core_type<tc>, window_params = [{transform_indices = @transform_0, window_bounds = array<i64: 96, 4>}, {pipeline_mode = #tpu.pipeline_mode<synchronous>, transform_indices = @transform_1, window_bounds = array<i64: 4, 16>}, {transform_indices = @transform_2, window_bounds = array<i64: 96, 16>}]} {
    %c0 = arith.constant 0 : index
    %c0_0 = arith.constant 0 : index
    %0 = vector.load %arg1[%c0, %c0_0] : memref<96x4xf32, #tpu.memory_space<vmem>>, vector<96x4xf32>
    %c0_1 = arith.constant 0 : index
    %c0_2 = arith.constant 0 : index
    %1 = vector.load %arg2[%c0_1, %c0_2] : memref<4x16xf32, #tpu.memory_space<vmem>>, vector<4x16xf32>
    %cst = arith.constant dense<0.000000e+00> : vector<96x16xf32>
    %2 = tpu.matmul %0, %1, %cst {dimension_numbers = #tpu.dot_dimension_numbers<[1], [0], [0], [1], [0, 0, 1, 1], [], []>} : vector<96x4xf32>, vector<4x16xf32>, vector<96x16xf32> -> vector<96x16xf32>
    %c0_3 = arith.constant 0 : index
    %c0_4 = arith.constant 0 : index
    %3 = vector.load %arg3[%c0_3, %c0_4] : memref<96x16xf32, #tpu.memory_space<vmem>>, vector<96x16xf32>
    tpu.vector_store %arg3[%c0_3, %c0_4], %2 {strides = array<i32>} : memref<96x16xf32, #tpu.memory_space<vmem>>, vector<96x16xf32>,
    return
  }
  func.func @transform_0(%arg0: i32) -> (i32, i32) {
    %c0_i32 = arith.constant 0 : i32
    %c0_i32_0 = arith.constant 0 : i32
    return %arg0, %c0_i32 : i32, i32
  }
  func.func @transform_1(%arg0: i32) -> (i32, i32) {
    %c0_i32 = arith.constant 0 : i32
    %c0_i32_0 = arith.constant 0 : i32
    %c0_i32_1 = arith.constant 0 : i32
    return %c0_i32, %c0_i32_0 : i32, i32
  }
  func.func @transform_2(%arg0: i32) -> (i32, i32) {
    %c0_i32 = arith.constant 0 : i32
    %c0_i32_0 = arith.constant 0 : i32
    return %arg0, %c0_i32 : i32, i32
  }
}

module attributes {stable_mosaic.version = 11 : i64} {
  func.func @_wx_kernel(%arg0: i32, %arg1: i32, %arg2: memref<16x4xf32, #tpu.memory_space<vmem>>, %arg3: memref<1x4x128xf32, #tpu.memory_space<vmem>>, %arg4: memref<16x1xf32, #tpu.memory_space<vmem>>, %arg5: memref<1x16x128xf32, #tpu.memory_space<vmem>>) attributes {dimension_semantics = [#tpu.dimension_semantics<parallel>, #tpu.dimension_semantics<parallel>], iteration_bounds = array<i64: 24, 1>, scalar_prefetch = 0 : i64, scratch_operands = 0 : i64, tpu.core_type = #tpu.core_type<tc>, window_params = [{pipeline_mode = #tpu.pipeline_mode<synchronous>, transform_indices = @transform_0, window_bounds = array<i64: 16, 4>}, {transform_indices = @transform_1, window_bounds = array<i64: 1, 4, 128>}, {pipeline_mode = #tpu.pipeline_mode<synchronous>, transform_indices = @transform_2, window_bounds = array<i64: 16, 1>}, {transform_indices = @transform_3, window_bounds = array<i64: 1, 16, 128>}]} {
    %c0 = arith.constant 0 : index
    %c0_0 = arith.constant 0 : index
    %0 = vector.load %arg2[%c0, %c0_0] : memref<16x4xf32, #tpu.memory_space<vmem>>, vector<16x4xf32>
    %c0_1 = arith.constant 0 : index
    %c0_2 = arith.constant 0 : index
    %c0_3 = arith.constant 0 : index
    %1 = vector.load %arg3[%c0_1, %c0_2, %c0_3] : memref<1x4x128xf32, #tpu.memory_space<vmem>>, vector<1x4x128xf32>
    %2 = vector.shape_cast %1 : vector<1x4x128xf32> to vector<4x128xf32>
    %cst = arith.constant dense<0.000000e+00> : vector<16x128xf32>
    %3 = tpu.matmul %0, %2, %cst {dimension_numbers = #tpu.dot_dimension_numbers<[1], [0], [0], [1], [0, 0, 1, 1], [], []>} : vector<16x4xf32>, vector<4x128xf32>, vector<16x128xf32> -> vector<16x128xf32>
    %c0_4 = arith.constant 0 : index
    %c0_5 = arith.constant 0 : index
    %4 = vector.load %arg4[%c0_4, %c0_5] : memref<16x1xf32, #tpu.memory_space<vmem>>, vector<16x1xf32>
    %5 = vector.broadcast %4 : vector<16x1xf32> to vector<16x128xf32>
    %6 = arith.addf %3, %5 : vector<16x128xf32>
    %c0_6 = arith.constant 0 : index
    %c0_7 = arith.constant 0 : index
    %c0_8 = arith.constant 0 : index
    %7 = vector.load %arg5[%c0_6, %c0_7, %c0_8] : memref<1x16x128xf32, #tpu.memory_space<vmem>>, vector<1x16x128xf32>
    %8 = vector.shape_cast %7 : vector<1x16x128xf32> to vector<16x128xf32>
    %9 = vector.shape_cast %6 : vector<16x128xf32> to vector<1x16x128xf32>
    tpu.vector_store %arg5[%c0_6, %c0_7, %c0_8], %9 {strides = array<i32>} : memref<1x16x128xf32, #tpu.memory_space<vmem>>, vector<1x16x128xf32>,
    return
  }
  func.func @transform_0(%arg0: i32, %arg1: i32) -> (i32, i32) {
    %c0_i32 = arith.constant 0 : i32
    %c0_i32_0 = arith.constant 0 : i32
    %c0_i32_1 = arith.constant 0 : i32
    return %c0_i32, %c0_i32_0 : i32, i32
  }
  func.func @transform_1(%arg0: i32, %arg1: i32) -> (i32, i32, i32) {
    %c0_i32 = arith.constant 0 : i32
    %c0_i32_0 = arith.constant 0 : i32
    return %arg0, %c0_i32, %arg1 : i32, i32, i32
  }
  func.func @transform_2(%arg0: i32, %arg1: i32) -> (i32, i32) {
    %c0_i32 = arith.constant 0 : i32
    %c0_i32_0 = arith.constant 0 : i32
    %c0_i32_1 = arith.constant 0 : i32
    return %c0_i32, %c0_i32_0 : i32, i32
  }
  func.func @transform_3(%arg0: i32, %arg1: i32) -> (i32, i32, i32) {
    %c0_i32 = arith.constant 0 : i32
    %c0_i32_0 = arith.constant 0 : i32
    return %arg0, %c0_i32, %arg1 : i32, i32, i32
  }
}

module attributes {stable_mosaic.version = 11 : i64} {
  func.func @kernel(%arg0: i32, %arg1: i32, %arg2: memref<1x4x256xf32, #tpu.memory_space<vmem>>, %arg3: memref<16x4xf32, #tpu.memory_space<vmem>>, %arg4: memref<1x8x256xf32, #tpu.memory_space<vmem>>, %arg5: memref<16x8xf32, #tpu.memory_space<vmem>>, %arg6: memref<1x16x256xf32, #tpu.memory_space<vmem>>, %arg7: memref<1x16x256xf32, #tpu.memory_space<vmem>>) attributes {dimension_semantics = [#tpu.dimension_semantics<parallel>, #tpu.dimension_semantics<parallel>], iteration_bounds = array<i64: 6, 1>, scalar_prefetch = 0 : i64, scratch_operands = 0 : i64, tpu.core_type = #tpu.core_type<tc>, window_params = [{transform_indices = @transform_0, window_bounds = array<i64: 1, 4, 256>}, {pipeline_mode = #tpu.pipeline_mode<synchronous>, transform_indices = @transform_1, window_bounds = array<i64: 16, 4>}, {transform_indices = @transform_2, window_bounds = array<i64: 1, 8, 256>}, {pipeline_mode = #tpu.pipeline_mode<synchronous>, transform_indices = @transform_3, window_bounds = array<i64: 16, 8>}, {transform_indices = @transform_4, window_bounds = array<i64: 1, 16, 256>}, {transform_indices = @transform_5, window_bounds = array<i64: 1, 16, 256>}]} {
    %c0 = arith.constant 0 : index
    %c0_0 = arith.constant 0 : index
    %0 = vector.load %arg3[%c0, %c0_0] : memref<16x4xf32, #tpu.memory_space<vmem>>, vector<16x4xf32>
    %c0_1 = arith.constant 0 : index
    %c0_2 = arith.constant 0 : index
    %c0_3 = arith.constant 0 : index
    %1 = vector.load %arg2[%c0_1, %c0_2, %c0_3] : memref<1x4x256xf32, #tpu.memory_space<vmem>>, vector<1x4x256xf32>
    %2 = vector.shape_cast %1 : vector<1x4x256xf32> to vector<4x256xf32>
    %cst = arith.constant dense<0.000000e+00> : vector<16x256xf32>
    %3 = tpu.matmul %0, %2, %cst {dimension_numbers = #tpu.dot_dimension_numbers<[1], [0], [0], [1], [0, 0, 1, 1], [], []>} : vector<16x4xf32>, vector<4x256xf32>, vector<16x256xf32> -> vector<16x256xf32>
    %c0_4 = arith.constant 0 : index
    %c0_5 = arith.constant 0 : index
    %4 = vector.load %arg5[%c0_4, %c0_5] : memref<16x8xf32, #tpu.memory_space<vmem>>, vector<16x8xf32>
    %c0_6 = arith.constant 0 : index
    %c0_7 = arith.constant 0 : index
    %c0_8 = arith.constant 0 : index
    %5 = vector.load %arg4[%c0_6, %c0_7, %c0_8] : memref<1x8x256xf32, #tpu.memory_space<vmem>>, vector<1x8x256xf32>
    %6 = vector.shape_cast %5 : vector<1x8x256xf32> to vector<8x256xf32>
    %cst_9 = arith.constant dense<0.000000e+00> : vector<16x256xf32>
    %7 = tpu.matmul %4, %6, %cst_9 {dimension_numbers = #tpu.dot_dimension_numbers<[1], [0], [0], [1], [0, 0, 1, 1], [], []>} : vector<16x8xf32>, vector<8x256xf32>, vector<16x256xf32> -> vector<16x256xf32>
    %8 = arith.addf %3, %7 : vector<16x256xf32>
    %c0_10 = arith.constant 0 : index
    %c0_11 = arith.constant 0 : index
    %c0_12 = arith.constant 0 : index
    %9 = vector.load %arg6[%c0_10, %c0_11, %c0_12] : memref<1x16x256xf32, #tpu.memory_space<vmem>>, vector<1x16x256xf32>
    %10 = vector.shape_cast %9 : vector<1x16x256xf32> to vector<16x256xf32>
    %11 = arith.addf %8, %10 : vector<16x256xf32>
    %c0_13 = arith.constant 0 : index
    %c0_14 = arith.constant 0 : index
    %c0_15 = arith.constant 0 : index
    %12 = vector.load %arg7[%c0_13, %c0_14, %c0_15] : memref<1x16x256xf32, #tpu.memory_space<vmem>>, vector<1x16x256xf32>
    %13 = vector.shape_cast %12 : vector<1x16x256xf32> to vector<16x256xf32>
    %14 = vector.shape_cast %11 : vector<16x256xf32> to vector<1x16x256xf32>
    tpu.vector_store %arg7[%c0_13, %c0_14, %c0_15], %14 {strides = array<i32>} : memref<1x16x256xf32, #tpu.memory_space<vmem>>, vector<1x16x256xf32>,
    return
  }
  func.func @transform_0(%arg0: i32, %arg1: i32) -> (i32, i32, i32) {
    %c0_i32 = arith.constant 0 : i32
    %c0_i32_0 = arith.constant 0 : i32
    return %arg0, %c0_i32, %arg1 : i32, i32, i32
  }
  func.func @transform_1(%arg0: i32, %arg1: i32) -> (i32, i32) {
    %c0_i32 = arith.constant 0 : i32
    %c0_i32_0 = arith.constant 0 : i32
    %c0_i32_1 = arith.constant 0 : i32
    return %c0_i32, %c0_i32_0 : i32, i32
  }
  func.func @transform_2(%arg0: i32, %arg1: i32) -> (i32, i32, i32) {
    %c0_i32 = arith.constant 0 : i32
    %c0_i32_0 = arith.constant 0 : i32
    return %arg0, %c0_i32, %arg1 : i32, i32, i32
  }
  func.func @transform_3(%arg0: i32, %arg1: i32) -> (i32, i32) {
    %c0_i32 = arith.constant 0 : i32
    %c0_i32_0 = arith.constant 0 : i32
    %c0_i32_1 = arith.constant 0 : i32
    return %c0_i32, %c0_i32_0 : i32, i32
  }
  func.func @transform_4(%arg0: i32, %arg1: i32) -> (i32, i32, i32) {
    %c0_i32 = arith.constant 0 : i32
    %c0_i32_0 = arith.constant 0 : i32
    return %arg0, %c0_i32, %arg1 : i32, i32, i32
  }
  func.func @transform_5(%arg0: i32, %arg1: i32) -> (i32, i32, i32) {
    %c0_i32 = arith.constant 0 : i32
    %c0_i32_0 = arith.constant 0 : i32
    return %arg0, %c0_i32, %arg1 : i32, i32, i32
  }
}

</mosaic_0001>

<bundles_post_ra>
// kernel: model_forward.13
= control target key start
LH: loop header
LB: loop body
LE: loop exit
PB: predicated region body
PF: predicated region fallthrough
CT: control target
= control target key end

     0   :  { %s1527_s12 = smov 0   ;;  %s1529_s13 = smov 0   ;;  %s1874_s0 = inlined_call_operand.vmem [shape: bf16[4,54], index: 0, kind: input, shape index: {}]   ;;  %s1875_s1 = inlined_call_operand.vmem [shape: bf16[2,54,4096], index: 1, kind: input, shape index: {}]   ;;  %s1876_s2 = inlined_call_operand.vmem [shape: f32[4,1], index: 2, kind: input, shape index: {}]   ;;  %s1877_s3 = inlined_call_operand.vmem [shape: bf16[2,4,4096], index: 3, kind: output, shape index: {}]  }
   0x1   :  { %s1531_s14 = smov 0   ;;  %s1533_s15 = smov 0  }
   0x2   :  { %s1535_s16 = smov 0   ;;  %s1537_s17 = smov 0  }
   0x3   :  { %s1539_s18 = smov 0  }
   0x4 LB: > { %s22_s19 = sadd.s32 1, %s1495_s16  ;;  %s25_s20 = sadd.s32 1, %s1499_s17  ;;  %s1503_s18 = sphi %s1539_s18, %s13_s18   ;;  %s1499_s17 = sphi %s1537_s17, %s1883_s17   ;;  %s1495_s16 = sphi %s1535_s16, %s1882_s16   ;;  %s1491_s15 = sphi %s1533_s15, %s1881_s15   ;;  %s1487_s14 = sphi %s1531_s14, %s1880_s14   ;;  %s1483_s13 = sphi %s1529_s13, %s1879_s13   ;;  %s1479_s12 = sphi %s1527_s12, %s1878_s12  }
   0x5   : > { %p23_p0 = scmp.ge.s32.totalorder %s22_s19, 2  ;;  %p62_p1 = scmp.ne.s32.totalorder %s1483_s13, %s1479_s12 }
   0x6   : > { %p63_p2 = scmp.eq.s32.totalorder %s1503_s18, 0  ;;  %s55_s24 = sadd.s32 1, %s1483_s13 }
   0x7   : > { %s1885_s19 = smov (%p23_p0, %s22_s19), 0  ;;  %s1887_s20 = smov (!%p23_p0, %s25_s20), %s1499_s17 }
   0x8   : > { %p64_p3 = por %p63_p2, %p62_p1  ;;  %p27_p4 = scmp.ge.s32.totalorder %s1887_s20, 2 }
   0x9   : > { %s51_s21 = ssub.s32 %s1495_s16, %s1885_s19  ;;  %p1274_p6 = scmp.ge.s32.totalorder %s1503_s18, 4 }
   0xa   : > { %s1889_s20 = smov (%p27_p4, %s1887_s20), 0 }
   0xb   : > { %s50_s22 = ssub.s32 %s1499_s17, %s1889_s20  ;;  %143 = sbr.rel (%p1274_p6) target bundleno = 52 (0x34), region = 24 }
   0xc   : > { %s52_s23 = sor.u32 %s51_s21, %s50_s22 }
   0xd   : > { %p53_p5 = scmp.eq.s32.totalorder %s52_s23, 0 }
   0xf   : > { %s1578_s25 = scalar_select %p53_p5, %s1483_s13, %s55_s24  }
  0x10   : > { %146 = sbr.rel (!%p64_p3) target bundleno = 52 (0x34), region = 28  ;;  %s148_s26 = sand.u32 (%p64_p3), 1, %s1483_s13  }
  0x11   : > { %s1371_s27 = smul.u32 (%p64_p3), 448, %s148_s26  ;;  %s1275_s28 = sshll.u32 (%p64_p3), %s1495_s16, 4 }
  0x12   : > { %s1372_s29 = smul.u32 (%p64_p3), 224, %s1499_s17 }
  0x13   : > { %s1592_s8 = scalar_lea.vmem (%p64_p3), [#allocation2], %s1371_s27 }
  0x14   : > { %s153_s30 = sadd.s32 (%p64_p3), %s1372_s29, %s1275_s28 }
  0x15   : > { %s1276_s4 = sshll.u32 %s153_s30, 2 }
  0x16   : > { %s1587_s7 = scalar_lea.vmem %s1875_s1, %s1276_s4 }
  0x17   : > { %v168_v0 = vld [vmem:[%s1587_s7] sm:$0xff]  ;;  %v170_v1 = vld [vmem:[%s1587_s7 + $0x8] sm:$0xff]  ;;  %v172_v2 = vld [vmem:[%s1587_s7 + $0x10] sm:$0xff] }
  0x18   : > { %169 = vst [vmem:[%s1592_s8] sm:$0xff] %v168_v0  ;;  %171 = vst [vmem:[%s1592_s8 + $0x8] sm:$0xff] %v170_v1  ;;  %v174_v3 = vld [vmem:[%s1587_s7 + $0x18] sm:$0xff]  ;;  %v176_v4 = vld [vmem:[%s1587_s7 + $0x20] sm:$0xff] }
  0x19   : > { %173 = vst [vmem:[%s1592_s8 + $0x10] sm:$0xff] %v172_v2  ;;  %v178_v5 = vld [vmem:[%s1587_s7 + $0x28] sm:$0xff]  ;;  %175 = vst [vmem:[%s1592_s8 + $0x18] sm:$0xff] %v174_v3  ;;  %v180_v6 = vld [vmem:[%s1587_s7 + $0x30] sm:$0xff] }
  0x1a   : > { %177 = vst [vmem:[%s1592_s8 + $0x20] sm:$0xff] %v176_v4  ;;  %179 = vst [vmem:[%s1592_s8 + $0x28] sm:$0xff] %v178_v5  ;;  %v182_v7 = vld [vmem:[%s1587_s7 + $0x38] sm:$0xff]  ;;  %v184_v8 = vld [vmem:[%s1587_s7 + $0x80] sm:$0xff] }
  0x1b   : > { %181 = vst [vmem:[%s1592_s8 + $0x30] sm:$0xff] %v180_v6  ;;  %183 = vst [vmem:[%s1592_s8 + $0x38] sm:$0xff] %v182_v7  ;;  %v186_v9 = vld [vmem:[%s1587_s7 + $0x88] sm:$0xff]  ;;  %v188_v10 = vld [vmem:[%s1587_s7 + $0x90] sm:$0xff] }
  0x1c   : > { %185 = vst [vmem:[%s1592_s8 + $0x40] sm:$0xff] %v184_v8  ;;  %v190_v11 = vld [vmem:[%s1587_s7 + $0x98] sm:$0xff]  ;;  %187 = vst [vmem:[%s1592_s8 + $0x48] sm:$0xff] %v186_v9  ;;  %v192_v12 = vld [vmem:[%s1587_s7 + $0xa0] sm:$0xff] }
  0x1d   : > { %189 = vst [vmem:[%s1592_s8 + $0x50] sm:$0xff] %v188_v10  ;;  %191 = vst [vmem:[%s1592_s8 + $0x58] sm:$0xff] %v190_v11  ;;  %v194_v13 = vld [vmem:[%s1587_s7 + $0xa8] sm:$0xff]  ;;  %v196_v14 = vld [vmem:[%s1587_s7 + $0xb0] sm:$0xff] }
  0x1e   : > { %193 = vst [vmem:[%s1592_s8 + $0x60] sm:$0xff] %v192_v12  ;;  %195 = vst [vmem:[%s1592_s8 + $0x68] sm:$0xff] %v194_v13  ;;  %v198_v15 = vld [vmem:[%s1587_s7 + $0xb8] sm:$0xff]  ;;  %v200_v16 = vld [vmem:[%s1587_s7 + $0x100] sm:$0xff] }
  0x1f   : > { %197 = vst [vmem:[%s1592_s8 + $0x70] sm:$0xff] %v196_v14  ;;  %v202_v17 = vld [vmem:[%s1587_s7 + $0x108] sm:$0xff]  ;;  %199 = vst [vmem:[%s1592_s8 + $0x78] sm:$0xff] %v198_v15  ;;  %v204_v18 = vld [vmem:[%s1587_s7 + $0x110] sm:$0xff] }
  0x20   : > { %201 = vst [vmem:[%s1592_s8 + $0x80] sm:$0xff] %v200_v16  ;;  %203 = vst [vmem:[%s1592_s8 + $0x88] sm:$0xff] %v202_v17  ;;  %v206_v19 = vld [vmem:[%s1587_s7 + $0x118] sm:$0xff]  ;;  %v208_v20 = vld [vmem:[%s1587_s7 + $0x120] sm:$0xff] }
  0x21   : > { %205 = vst [vmem:[%s1592_s8 + $0x90] sm:$0xff] %v204_v18  ;;  %207 = vst [vmem:[%s1592_s8 + $0x98] sm:$0xff] %v206_v19  ;;  %v210_v21 = vld [vmem:[%s1587_s7 + $0x128] sm:$0xff]  ;;  %v212_v22 = vld [vmem:[%s1587_s7 + $0x130] sm:$0xff] }
  0x22   : > { %209 = vst [vmem:[%s1592_s8 + $0xa0] sm:$0xff] %v208_v20  ;;  %v214_v23 = vld [vmem:[%s1587_s7 + $0x138] sm:$0xff]  ;;  %211 = vst [vmem:[%s1592_s8 + $0xa8] sm:$0xff] %v210_v21  ;;  %v216_v24 = vld [vmem:[%s1587_s7 + $0x180] sm:$0xff] }
  0x23   : > { %213 = vst [vmem:[%s1592_s8 + $0xb0] sm:$0xff] %v212_v22  ;;  %215 = vst [vmem:[%s1592_s8 + $0xb8] sm:$0xff] %v214_v23  ;;  %v218_v25 = vld [vmem:[%s1587_s7 + $0x188] sm:$0xff]  ;;  %v220_v26 = vld [vmem:[%s1587_s7 + $0x190] sm:$0xff] }
  0x24   : > { %217 = vst [vmem:[%s1592_s8 + $0xc0] sm:$0xff] %v216_v24  ;;  %219 = vst [vmem:[%s1592_s8 + $0xc8] sm:$0xff] %v218_v25  ;;  %v222_v27 = vld [vmem:[%s1587_s7 + $0x198] sm:$0xff]  ;;  %v224_v28 = vld [vmem:[%s1587_s7 + $0x1a0] sm:$0xff] }
  0x25   : > { %221 = vst [vmem:[%s1592_s8 + $0xd0] sm:$0xff] %v220_v26  ;;  %v226_v29 = vld [vmem:[%s1587_s7 + $0x1a8] sm:$0xff]  ;;  %223 = vst [vmem:[%s1592_s8 + $0xd8] sm:$0xff] %v222_v27  ;;  %v228_v30 = vld [vmem:[%s1587_s7 + $0x1b0] sm:$0xff] }
  0x26   : > { %225 = vst [vmem:[%s1592_s8 + $0xe0] sm:$0xff] %v224_v28  ;;  %227 = vst [vmem:[%s1592_s8 + $0xe8] sm:$0xff] %v226_v29  ;;  %v230_v31 = vld [vmem:[%s1587_s7 + $0x1b8] sm:$0xff]  ;;  %v232_v32 = vld [vmem:[%s1587_s7 + $0x200] sm:$0xff] }
  0x27   : > { %229 = vst [vmem:[%s1592_s8 + $0xf0] sm:$0xff] %v228_v30  ;;  %231 = vst [vmem:[%s1592_s8 + $0xf8] sm:$0xff] %v230_v31  ;;  %v234_v33 = vld [vmem:[%s1587_s7 + $0x208] sm:$0xff]  ;;  %v236_v34 = vld [vmem:[%s1587_s7 + $0x210] sm:$0xff] }
  0x28   : > { %233 = vst [vmem:[%s1592_s8 + $0x100] sm:$0xff] %v232_v32  ;;  %v238_v35 = vld [vmem:[%s1587_s7 + $0x218] sm:$0xff]  ;;  %235 = vst [vmem:[%s1592_s8 + $0x108] sm:$0xff] %v234_v33  ;;  %v240_v36 = vld [vmem:[%s1587_s7 + $0x220] sm:$0xff] }
  0x29   : > { %237 = vst [vmem:[%s1592_s8 + $0x110] sm:$0xff] %v236_v34  ;;  %239 = vst [vmem:[%s1592_s8 + $0x118] sm:$0xff] %v238_v35  ;;  %v242_v37 = vld [vmem:[%s1587_s7 + $0x228] sm:$0xff]  ;;  %v244_v38 = vld [vmem:[%s1587_s7 + $0x230] sm:$0xff] }
  0x2a   : > { %241 = vst [vmem:[%s1592_s8 + $0x120] sm:$0xff] %v240_v36  ;;  %243 = vst [vmem:[%s1592_s8 + $0x128] sm:$0xff] %v242_v37  ;;  %v246_v39 = vld [vmem:[%s1587_s7 + $0x238] sm:$0xff]  ;;  %v248_v40 = vld [vmem:[%s1587_s7 + $0x280] sm:$0xff] }
  0x2b   : > { %245 = vst [vmem:[%s1592_s8 + $0x130] sm:$0xff] %v244_v38  ;;  %v250_v41 = vld [vmem:[%s1587_s7 + $0x288] sm:$0xff]  ;;  %247 = vst [vmem:[%s1592_s8 + $0x138] sm:$0xff] %v246_v39  ;;  %v252_v42 = vld [vmem:[%s1587_s7 + $0x290] sm:$0xff] }
  0x2c   : > { %249 = vst [vmem:[%s1592_s8 + $0x140] sm:$0xff] %v248_v40  ;;  %251 = vst [vmem:[%s1592_s8 + $0x148] sm:$0xff] %v250_v41  ;;  %v254_v43 = vld [vmem:[%s1587_s7 + $0x298] sm:$0xff]  ;;  %v256_v44 = vld [vmem:[%s1587_s7 + $0x2a0] sm:$0xff] }
  0x2d   : > { %253 = vst [vmem:[%s1592_s8 + $0x150] sm:$0xff] %v252_v42  ;;  %255 = vst [vmem:[%s1592_s8 + $0x158] sm:$0xff] %v254_v43  ;;  %v258_v45 = vld [vmem:[%s1587_s7 + $0x2a8] sm:$0xff]  ;;  %v260_v46 = vld [vmem:[%s1587_s7 + $0x2b0] sm:$0xff] }
  0x2e   : > { %257 = vst [vmem:[%s1592_s8 + $0x160] sm:$0xff] %v256_v44  ;;  %v262_v47 = vld [vmem:[%s1587_s7 + $0x2b8] sm:$0xff]  ;;  %259 = vst [vmem:[%s1592_s8 + $0x168] sm:$0xff] %v258_v45  ;;  %v264_v48 = vld [vmem:[%s1587_s7 + $0x300] sm:$0xff] }
  0x2f   : > { %261 = vst [vmem:[%s1592_s8 + $0x170] sm:$0xff] %v260_v46  ;;  %263 = vst [vmem:[%s1592_s8 + $0x178] sm:$0xff] %v262_v47  ;;  %v266_v49 = vld [vmem:[%s1587_s7 + $0x308] sm:$0xff]  ;;  %v268_v50 = vld [vmem:[%s1587_s7 + $0x310] sm:$0xff] }
  0x30   : > { %265 = vst [vmem:[%s1592_s8 + $0x180] sm:$0xff] %v264_v48  ;;  %267 = vst [vmem:[%s1592_s8 + $0x188] sm:$0xff] %v266_v49  ;;  %v270_v51 = vld [vmem:[%s1587_s7 + $0x318] sm:$0xff]  ;;  %v272_v52 = vld [vmem:[%s1587_s7 + $0x320] sm:$0xff] }
  0x31   : > { %269 = vst [vmem:[%s1592_s8 + $0x190] sm:$0xff] %v268_v50  ;;  %v274_v53 = vld [vmem:[%s1587_s7 + $0x328] sm:$0xff]  ;;  %271 = vst [vmem:[%s1592_s8 + $0x198] sm:$0xff] %v270_v51  ;;  %v276_v54 = vld [vmem:[%s1587_s7 + $0x330] sm:$0xff] }
  0x32   : > { %273 = vst [vmem:[%s1592_s8 + $0x1a0] sm:$0xff] %v272_v52  ;;  %275 = vst [vmem:[%s1592_s8 + $0x1a8] sm:$0xff] %v274_v53  ;;  %v278_v55 = vld [vmem:[%s1587_s7 + $0x338] sm:$0xff] }
  0x33   : > { %277 = vst [vmem:[%s1592_s8 + $0x1b0] sm:$0xff] %v276_v54  ;;  %279 = vst [vmem:[%s1592_s8 + $0x1b8] sm:$0xff] %v278_v55 }
  0x34 PF: > { %p1277_p7 = scmp.ge.s32.totalorder %s1503_s18, 1  ;;  %p284_p8 = scmp.lt.s32.totalorder %s1503_s18, 5 }
  0x36   : > { %p285_p9 = pnand %p1277_p7, %p284_p8 }
  0x37   : > { %s291_s9 = sand.u32 (!%p285_p9), 1, %s1479_s12   ;;  %s1278_s24 = sshll.u32 (!%p285_p9), %s1487_s14, 4 }
  0x38   : > { %288 = sbr.rel (%p285_p9) target bundleno = 335 (0x14f), region = 51  ;;  %p320_p10 = scmp.lt.s32.totalorder (!%p285_p9), %s1491_s15, 1 }
  0x39   : > { %s1373_s10 = smul.u32 (!%p285_p9), 448, %s291_s9  ;;  %p322_p11 = scmp.lt.s32.totalorder (!%p285_p9), %s1278_s24, 31 }
  0x3b   : > { %s1712_s22 = scalar_lea.vmem (!%p285_p9), [#allocation2], %s1373_s10 }
  0x3d   : > { %v1505_v56 = vmov 0   ;;  %v387_v57 = vld [vmem:[%s1876_s2] sm:$0xf]  ;;  %vm677_vm0 = vcmask 1042432   ;;  %v380_v59 = vld [vmem:[%s1712_s22 + $0x188] sm:$0x77] }
  0x3e   : > { %758 = vmatprep.mubr.bf16.mxu0 %v1505_v56  ;;  %799 = vmatprep.mubr.bf16.mxu1 %v1505_v56  ;;  %v379_v58 = vld [vmem:[%s1712_s22 + $0x180] sm:$0x77]  ;;  %v1332_v62 = vcombine.high %v380_v59, %v380_v59  ;;  %v1331_v0 = vcombine.low %v380_v59, %v380_v59  ;;  %v364_v2 = vld [vmem:[%s1712_s22 + $0x108] sm:$0xff]  ;;  %v381_v24 = vld [vmem:[%s1712_s22 + $0x190] sm:$0x77]  ;;  %vm673_vm1 = vcmask 441344  }
  0x3f   : > { %1432 = vset.pattern.permute.xlu0 %v1505_v56  ;;  %v363_v60 = vld [vmem:[%s1712_s22 + $0x100] sm:$0xff]  ;;  %v1330_v61 = vcombine.high %v379_v58, %v379_v58  ;;  %v1329_v63 = vcombine.low %v379_v58, %v379_v58  ;;  %v372_v3 = vld [vmem:[%s1712_s22 + $0x148] sm:$0xff]  ;;  %v382_v25 = vld [vmem:[%s1712_s22 + $0x198] sm:$0x77]  ;;  %v1334_v28 = vcombine.high %v381_v24, %v381_v24  ;;  %v1333_v30 = vcombine.low %v381_v24, %v381_v24  ;;  %s1891_s15 = smov (!%p320_p10, %s1491_s15), 1  ;;  %s1893_s24 = smov (!%p322_p11, %s1278_s24), 31 }
  0x40   : > { %390 = vperm.xlu0 %1432, %v387_v57   ;;  %v371_v1 = vld [vmem:[%s1712_s22 + $0x140] sm:$0xff]  ;;  %v1316_v5 = vcombine.high %v364_v2, %v372_v3  ;;  %v348_v8 = vld [vmem:[%s1712_s22 + $0x88] sm:$0xff]  ;;  %1347 = vmatprep.subr.msk.bf16.mxu1 %vm677_vm0, %v1332_v62  ;;  %v685_v10 = vsel %vm677_vm0, %v1331_v0, 0  ;;  %v1315_v13 = vcombine.low %v364_v2, %v372_v3  ;;  %v1336_v29 = vcombine.high %v382_v25, %v382_v25  ;;  %v365_v32 = vld [vmem:[%s1712_s22 + $0x110] sm:$0xff]  ;;  %s1279_s26 = sshll.u32 %s1891_s15, 5 }
  0x41   : > { %v1314_v4 = vcombine.high %v363_v60, %v371_v1  ;;  %v347_v6 = vld [vmem:[%s1712_s22 + $0x80] sm:$0xff]  ;;  %1345 = vmatprep.subr.msk.bf16.mxu0 %vm677_vm0, %v1330_v61  ;;  %v679_v9 = vsel %vm677_vm0, %v1329_v63, 0  ;;  %v356_v11 = vld [vmem:[%s1712_s22 + $0xc8] sm:$0xff]  ;;  %776 = vmatpush1.bf16.msra.mxu1 %v685_v10  ;;  %v1313_v12 = vcombine.low %v363_v60, %v371_v1  ;;  %v1335_v31 = vcombine.low %v382_v25, %v382_v25  ;;  %v373_v33 = vld [vmem:[%s1712_s22 + $0x150] sm:$0xff]  ;;  %s325_s14 = sadd.s32 %s1279_s26, %s1893_s24 }
  0x42   : > { %v355_v7 = vld [vmem:[%s1712_s22 + $0xc0] sm:$0xff]  ;;  %735 = vmatpush1.bf16.msra.mxu0 %v679_v9  ;;  %777 = vmatprep.subr.bf16.mxu1 %v1316_v5  ;;  %v1300_v15 = vcombine.high %v348_v8, %v356_v11  ;;  %v332_v18 = vld [vmem:[%s1712_s22 + $0x8] sm:$0xff]  ;;  %v1299_v21 = vcombine.low %v348_v8, %v356_v11  ;;  %v366_v34 = vld [vmem:[%s1712_s22 + $0x118] sm:$0xff]  ;;  %v691_v37 = vsel %vm677_vm0, %v1333_v30, 0  ;;  %v1318_v39 = vcombine.high %v365_v32, %v373_v33  ;;  %s1280_s15 = sshll.u32 %s325_s14, 1 }
  0x43   : > { %736 = vmatprep.subr.bf16.mxu0 %v1314_v4  ;;  %v1298_v14 = vcombine.high %v347_v6, %v355_v7  ;;  %v331_v16 = vld [vmem:[%s1712_s22] sm:$0xff]  ;;  %v340_v19 = vld [vmem:[%s1712_s22 + $0x48] sm:$0xff]  ;;  %v1297_v20 = vcombine.low %v347_v6, %v355_v7  ;;  %v374_v35 = vld [vmem:[%s1712_s22 + $0x158] sm:$0xff]  ;;  %v697_v38 = vsel %vm677_vm0, %v1335_v31, 0  ;;  %v1317_v45 = vcombine.low %v365_v32, %v373_v33  ;;  %s1829_s29 = scalar_lea.vmem %s1877_s3, %s1280_s15 }
  0x44   : > { %v339_v17 = vld [vmem:[%s1712_s22 + $0x40] sm:$0xff]  ;;  %v1284_v23 = vcombine.high %v332_v18, %v340_v19  ;;  %v1283_v27 = vcombine.low %v332_v18, %v340_v19  ;;  %v1320_v40 = vcombine.high %v366_v34, %v374_v35  ;;  %v349_v41 = vld [vmem:[%s1712_s22 + $0x90] sm:$0xff]  ;;  %v350_v43 = vld [vmem:[%s1712_s22 + $0x98] sm:$0xff]  ;;  %v1319_v46 = vcombine.low %v366_v34, %v374_v35 }
  0x45   : > { %778 = vmatpush1.bf16.msra.mxu1 %v1315_v13  ;;  %v1282_v22 = vcombine.high %v331_v16, %v339_v17  ;;  %v1281_v26 = vcombine.low %v331_v16, %v339_v17  ;;  %v1741_v36 = vld [vmem:[%s1874_s0] sm:$0x3]  ;;  %v357_v42 = vld [vmem:[%s1712_s22 + $0xd0] sm:$0xff]  ;;  %v358_v44 = vld [vmem:[%s1712_s22 + $0xd8] sm:$0xff] }
  0x46   : > { %737 = vmatpush1.bf16.msra.mxu0 %v1313_v12  ;;  %779 = vmatprep.subr.bf16.mxu1 %v1300_v15  ;;  %v1302_v47 = vcombine.high %v349_v41, %v357_v42  ;;  %v1304_v48 = vcombine.high %v350_v43, %v358_v44  ;;  %v333_v49 = vld [vmem:[%s1712_s22 + $0x10] sm:$0xff]  ;;  %v334_v51 = vld [vmem:[%s1712_s22 + $0x18] sm:$0xff]  ;;  %v1301_v53 = vcombine.low %v349_v41, %v357_v42  ;;  %v383_v58 = vld [vmem:[%s1712_s22 + $0x1a0] sm:$0x77] }
  0x47   : > { %738 = vmatprep.subr.bf16.mxu0 %v1298_v14  ;;  %v341_v50 = vld [vmem:[%s1712_s22 + $0x50] sm:$0xff]  ;;  %v342_v52 = vld [vmem:[%s1712_s22 + $0x58] sm:$0xff]  ;;  %v1303_v54 = vcombine.low %v350_v43, %v358_v44  ;;  %v384_v59 = vld [vmem:[%s1712_s22 + $0x1a8] sm:$0x77]  ;;  %v1338_v62 = vcombine.high %v383_v58, %v383_v58  ;;  %v1337_v0 = vcombine.low %v383_v58, %v383_v58 }
  0x48   : > { %v1286_v55 = vcombine.high %v333_v49, %v341_v50  ;;  %v1288_v57 = vcombine.high %v334_v51, %v342_v52  ;;  %v1285_v60 = vcombine.low %v333_v49, %v341_v50  ;;  %v1287_v61 = vcombine.low %v334_v51, %v342_v52  ;;  %v367_v2 = vld [vmem:[%s1712_s22 + $0x120] sm:$0xff]  ;;  %v368_v4 = vld [vmem:[%s1712_s22 + $0x128] sm:$0xff]  ;;  %v369_v34 = vld [vmem:[%s1712_s22 + $0x130] sm:$0xff] }
  0x49   : > { %780 = vmatpush1.bf16.msra.mxu1 %v1299_v21  ;;  %v1340_v63 = vcombine.high %v384_v59, %v384_v59  ;;  %v1339_v1 = vcombine.low %v384_v59, %v384_v59  ;;  %v375_v3 = vld [vmem:[%s1712_s22 + $0x160] sm:$0xff]  ;;  %v376_v5 = vld [vmem:[%s1712_s22 + $0x168] sm:$0xff]  ;;  %v703_v6 = vsel %vm677_vm0, %v1337_v0, 0  ;;  %v377_v35 = vld [vmem:[%s1712_s22 + $0x170] sm:$0xff] }
  0x4a   : > { %739 = vmatpush1.bf16.msra.mxu0 %v1297_v20  ;;  %781 = vmatprep.subr.bf16.mxu1 %v1284_v23  ;;  %v1322_v8 = vcombine.high %v367_v2, %v375_v3  ;;  %v1324_v9 = vcombine.high %v368_v4, %v376_v5  ;;  %v351_v10 = vld [vmem:[%s1712_s22 + $0xa0] sm:$0xff]  ;;  %v352_v12 = vld [vmem:[%s1712_s22 + $0xa8] sm:$0xff]  ;;  %v1321_v14 = vcombine.low %v367_v2, %v375_v3  ;;  %v353_v43 = vld [vmem:[%s1712_s22 + $0xb0] sm:$0xff] }
  0x4b   : > { %740 = vmatprep.subr.bf16.mxu0 %v1282_v22  ;;  %v709_v7 = vsel %vm677_vm0, %v1339_v1, 0  ;;  %v359_v11 = vld [vmem:[%s1712_s22 + $0xe0] sm:$0xff]  ;;  %v360_v13 = vld [vmem:[%s1712_s22 + $0xe8] sm:$0xff]  ;;  %v1323_v15 = vcombine.low %v368_v4, %v376_v5  ;;  %v1326_v41 = vcombine.high %v369_v34, %v377_v35  ;;  %v361_v44 = vld [vmem:[%s1712_s22 + $0xf0] sm:$0xff] }
  0x4c   : > { %v1306_v16 = vcombine.high %v351_v10, %v359_v11  ;;  %v1308_v17 = vcombine.high %v352_v12, %v360_v13  ;;  %v335_v18 = vld [vmem:[%s1712_s22 + $0x20] sm:$0xff]  ;;  %v336_v20 = vld [vmem:[%s1712_s22 + $0x28] sm:$0xff]  ;;  %v1305_v22 = vcombine.low %v351_v10, %v359_v11  ;;  %v1307_v23 = vcombine.low %v352_v12, %v360_v13  ;;  %v337_v51 = vld [vmem:[%s1712_s22 + $0x30] sm:$0xff] }
  0x4d   : > { %782 = vmatpush1.bf16.msra.mxu1 %v1283_v27  ;;  %v343_v19 = vld [vmem:[%s1712_s22 + $0x60] sm:$0xff]  ;;  %v344_v21 = vld [vmem:[%s1712_s22 + $0x68] sm:$0xff]  ;;  %v386_v27 = vld [vmem:[%s1712_s22 + $0x1b8] sm:$0x77]  ;;  %v1310_v49 = vcombine.high %v353_v43, %v361_v44 }
  0x4e   : > { %741 = vmatpush1.bf16.msra.mxu0 %v1281_v26  ;;  %1351 = vmatprep.subr.msk.bf16.mxu1 %vm677_vm0, %v1336_v29  ;;  %v1290_v24 = vcombine.high %v335_v18, %v343_v19  ;;  %v1292_v25 = vcombine.high %v336_v20, %v344_v21  ;;  %v385_v26 = vld [vmem:[%s1712_s22 + $0x1b0] sm:$0x77]  ;;  %v1291_v29 = vcombine.low %v336_v20, %v344_v21 }
  0x4f   : > { %1349 = vmatprep.subr.msk.bf16.mxu0 %vm677_vm0, %v1334_v28  ;;  %v1289_v28 = vcombine.low %v335_v18, %v343_v19  ;;  %v1342_v30 = vcombine.high %v385_v26, %v385_v26  ;;  %v1344_v31 = vcombine.high %v386_v27, %v386_v27  ;;  %v1341_v32 = vcombine.low %v385_v26, %v385_v26  ;;  %v345_v52 = vld [vmem:[%s1712_s22 + $0x70] sm:$0xff] }
  0x50   : > { %1348 = vmatmul.mubr.msk.bf16.vlgmr.msra.gmra.mxu1 %vm673_vm1, %v1741_v36  ;;  %v1343_v33 = vcombine.low %v386_v27, %v386_v27  ;;  %v1294_v58 = vcombine.high %v337_v51, %v345_v52 }
  0x51   : > { %1346 = vmatmul.mubr.msk.bf16.vlgmr.msra.gmra.mxu0 %vm673_vm1, %v1741_v36  ;;  %858 = vmatpush1.bf16.msra.mxu1 %v697_v38  ;;  %v378_v38 = vld [vmem:[%s1712_s22 + $0x178] sm:$0xff] }
  0x52   : > { %817 = vmatpush1.bf16.msra.mxu0 %v691_v37  ;;  %859 = vmatprep.subr.bf16.mxu1 %v1320_v40  ;;  %v370_v37 = vld [vmem:[%s1712_s22 + $0x138] sm:$0xff]  ;;  %v721_v40 = vsel %vm677_vm0, %v1343_v33, 0 }
  0x53   : > { %818 = vmatprep.subr.bf16.mxu0 %v1318_v39  ;;  %840 = vmatprep.mubr.bf16.mxu0 %v1505_v56  ;;  %v715_v39 = vsel %vm677_vm0, %v1341_v32, 0  ;;  %v1328_v42 = vcombine.high %v370_v37, %v378_v38 }
  0x54   : > { %881 = vmatprep.mubr.bf16.mxu1 %v1505_v56 }
  0x55   : > { %860 = vmatpush1.bf16.msra.mxu1 %v1319_v46  ;;  %v362_v46 = vld [vmem:[%s1712_s22 + $0xf8] sm:$0xff] }
  0x56   : > { %819 = vmatpush1.bf16.msra.mxu0 %v1317_v45  ;;  %861 = vmatprep.subr.bf16.mxu1 %v1304_v48  ;;  %v354_v45 = vld [vmem:[%s1712_s22 + $0xb8] sm:$0xff]  ;;  %v1327_v48 = vcombine.low %v370_v37, %v378_v38 }
  0x57   : > { %820 = vmatprep.subr.bf16.mxu0 %v1302_v47  ;;  %v1325_v47 = vcombine.low %v369_v34, %v377_v35  ;;  %v1312_v50 = vcombine.high %v354_v45, %v362_v46 }
  0x59   : > { %862 = vmatpush1.bf16.msra.mxu1 %v1303_v54  ;;  %v346_v54 = vld [vmem:[%s1712_s22 + $0x78] sm:$0xff] }
  0x5a   : > { %821 = vmatpush1.bf16.msra.mxu0 %v1301_v53  ;;  %863 = vmatprep.subr.bf16.mxu1 %v1288_v57  ;;  %v338_v53 = vld [vmem:[%s1712_s22 + $0x38] sm:$0xff]  ;;  %v1311_v57 = vcombine.low %v354_v45, %v362_v46 }
  0x5b   : > { %822 = vmatprep.subr.bf16.mxu0 %v1286_v55  ;;  %v1309_v55 = vcombine.low %v353_v43, %v361_v44  ;;  %v1296_v59 = vcombine.high %v338_v53, %v346_v54 }
  0x5d   : > { %864 = vmatpush1.bf16.msra.mxu1 %v1287_v61  ;;  %v1295_v61 = vcombine.low %v338_v53, %v346_v54 }
  0x5e   : > { %823 = vmatpush1.bf16.msra.mxu0 %v1285_v60  ;;  %1355 = vmatprep.subr.msk.bf16.mxu1 %vm677_vm0, %v1340_v63  ;;  %v1293_v60 = vcombine.low %v337_v51, %v345_v52  ;;  %v1107_v63 = vlaneseq }
  0x5f   : > { %1353 = vmatprep.subr.msk.bf16.mxu0 %vm677_vm0, %v1338_v62 }
  0x60   : > { %1352 = vmatmul.mubr.msk.bf16.vlgmr.msra.gmra.mxu1 %vm673_vm1, %v1741_v36  ;;  %v1108_v5 = vshrl.u32 %v1107_v63, 7 }
  0x61   : > { %1350 = vmatmul.mubr.msk.bf16.vlgmr.msra.gmra.mxu0 %vm673_vm1, %v1741_v36  ;;  %940 = vmatpush1.bf16.msra.mxu1 %v709_v7 }
  0x62   : > { %899 = vmatpush1.bf16.msra.mxu0 %v703_v6  ;;  %941 = vmatprep.subr.bf16.mxu1 %v1324_v9 }
  0x63   : > { %900 = vmatprep.subr.bf16.mxu0 %v1322_v8  ;;  %922 = vmatprep.mubr.bf16.mxu0 %v1505_v56 }
  0x64   : > { %963 = vmatprep.mubr.bf16.mxu1 %v1505_v56 }
  0x65   : > { %942 = vmatpush1.bf16.msra.mxu1 %v1323_v15 }
  0x66   : > { %901 = vmatpush1.bf16.msra.mxu0 %v1321_v14  ;;  %943 = vmatprep.subr.bf16.mxu1 %v1308_v17 }
  0x67   : > { %902 = vmatprep.subr.bf16.mxu0 %v1306_v16 }
  0x69   : > { %944 = vmatpush1.bf16.msra.mxu1 %v1307_v23 }
  0x6a   : > { %903 = vmatpush1.bf16.msra.mxu0 %v1305_v22  ;;  %945 = vmatprep.subr.bf16.mxu1 %v1292_v25 }
  0x6b   : > { %904 = vmatprep.subr.bf16.mxu0 %v1290_v24 }
  0x6d   : > { %946 = vmatpush1.bf16.msra.mxu1 %v1291_v29 }
  0x6e   : > { %905 = vmatpush1.bf16.msra.mxu0 %v1289_v28  ;;  %1359 = vmatprep.subr.msk.bf16.mxu1 %vm677_vm0, %v1344_v31 }
  0x6f   : > { %1357 = vmatprep.subr.msk.bf16.mxu0 %vm677_vm0, %v1342_v30 }
  0x70   : > { %1356 = vmatmul.mubr.msk.bf16.vlgmr.msra.gmra.mxu1 %vm673_vm1, %v1741_v36 }
  0x71   : > { %1354 = vmatmul.mubr.msk.bf16.vlgmr.msra.gmra.mxu0 %vm673_vm1, %v1741_v36  ;;  %1022 = vmatpush1.bf16.msra.mxu1 %v721_v40 }
  0x72   : > { %981 = vmatpush1.bf16.msra.mxu0 %v715_v39  ;;  %1023 = vmatprep.subr.bf16.mxu1 %v1328_v42 }
  0x73   : > { %982 = vmatprep.subr.bf16.mxu0 %v1326_v41  ;;  %1004 = vmatprep.mubr.bf16.mxu0 %v1505_v56 }
  0x74   : > { %1045 = vmatprep.mubr.bf16.mxu1 %v1505_v56  ;;  %v1506_v56 = vmov 1983009808  }
  0x75   : > { %1024 = vmatpush1.bf16.msra.mxu1 %v1327_v48  ;;  %v1105_v62 = vunpack.c.l.s4 %v1506_v56 }
  0x76   : > { %983 = vmatpush1.bf16.msra.mxu0 %v1325_v47  ;;  %1025 = vmatprep.subr.bf16.mxu1 %v1312_v50 }
  0x77   : > { %984 = vmatprep.subr.bf16.mxu0 %v1310_v49  ;;  %v1106_v4 = vunpack.c.0.s8 %v1105_v62 }
  0x79   : > { %1026 = vmatpush1.bf16.msra.mxu1 %v1311_v57  ;;  %v1822_v15 = vsub.s32 %v1106_v4, %v1108_v5 }
  0x7a   : > { %985 = vmatpush1.bf16.msra.mxu0 %v1309_v55  ;;  %1027 = vmatprep.subr.bf16.mxu1 %v1296_v59 }
  0x7b   : > { %986 = vmatprep.subr.bf16.mxu0 %v1294_v58 }
  0x7d   : > { %1028 = vmatpush1.bf16.msra.mxu1 %v1295_v61 }
  0x7e   : > { %987 = vmatpush1.bf16.msra.mxu0 %v1293_v60 }
  0x80   : > { %1360 = vmatmul.mubr.msk.bf16.vlgmr.msra.gmra.mxu1 %vm673_vm1, %v1741_v36 }
  0x81   : > { %1358 = vmatmul.mubr.msk.bf16.vlgmr.msra.gmra.mxu0 %vm673_vm1, %v1741_v36 }
  0xbb   : > { %v1816_v0 = vpop.permute.xlu0 %390 }
 0x110   : > { %v801_v2 = vpop.f32.mrf.mxu1 }
 0x111   : > { %v760_v1 = vpop.f32.mrf.mxu0  ;;  %v802_v6 = vadd.f32 %v801_v2, %v1816_v0 }
 0x112   : > { %v761_v3 = vadd.f32 %v760_v1, %v1816_v0  ;;  %v803_v7 = vpop.f32.mrf.mxu1 }
 0x113   : > { %v762_v36 = vpop.f32.mrf.mxu0  ;;  %v804_v10 = vadd.f32 %v803_v7, %v1816_v0  ;;  %v1056_v11 = vmax.f32 %v802_v6, 0.0 }
 0x114   : > { %v763_v8 = vadd.f32 %v762_v36, %v1816_v0  ;;  %v1054_v9 = vmax.f32 %v761_v3, 0.0  ;;  %v805_v13 = vpop.f32.mrf.mxu1 }
 0x115   : > { %v764_v12 = vpop.f32.mrf.mxu0  ;;  %v1057_v16 = vmax.f32 %v804_v10, 0.0 }
 0x116   : > { %v1055_v14 = vmax.f32 %v763_v8, 0.0  ;;  %v806_v18 = vpop.f32.mrf.mxu1 }
 0x117   : > { %v765_v17 = vpop.f32.mrf.mxu0  ;;  %v1362_v20 = vpack.c.bf16 %v1057_v16, %v1056_v11 }
 0x118   : > { %v1361_v19 = vpack.c.bf16 %v1055_v14, %v1054_v9 }
 0x119   : > { %v1117_v22 = vrot.slane %v1362_v20, %v1822_v15 }
 0x11a   : > { %v1110_v21 = vrot.slane %v1361_v19, %v1822_v15 }
 0x11c   : > { %v1118_v23 = vcombine.low %v1110_v21, %v1117_v22 }
 0x11e   : > { %1174 = vst [vmem:[%s1829_s29] sm:$0xff] %v1118_v23 }
 0x120   : > { %v883_v25 = vpop.f32.mrf.mxu1 }
 0x121   : > { %v842_v24 = vpop.f32.mrf.mxu0  ;;  %v884_v27 = vadd.f32 %v883_v25, %v1816_v0 }
 0x122   : > { %v843_v26 = vadd.f32 %v842_v24, %v1816_v0  ;;  %v885_v29 = vpop.f32.mrf.mxu1 }
 0x123   : > { %v844_v28 = vpop.f32.mrf.mxu0  ;;  %v1060_v31 = vmax.f32 %v884_v27, 0.0  ;;  %v886_v33 = vadd.f32 %v885_v29, %v1816_v0 }
 0x124   : > { %v1058_v30 = vmax.f32 %v843_v26, 0.0  ;;  %v845_v32 = vadd.f32 %v844_v28, %v1816_v0  ;;  %v887_v35 = vpop.f32.mrf.mxu1 }
 0x125   : > { %v846_v34 = vpop.f32.mrf.mxu0  ;;  %v1061_v38 = vmax.f32 %v886_v33, 0.0 }
 0x126   : > { %v1059_v37 = vmax.f32 %v845_v32, 0.0  ;;  %v888_v40 = vpop.f32.mrf.mxu1 }
 0x127   : > { %v847_v39 = vpop.f32.mrf.mxu0  ;;  %v1364_v42 = vpack.c.bf16 %v1061_v38, %v1060_v31 }
 0x128   : > { %v1363_v41 = vpack.c.bf16 %v1059_v37, %v1058_v30 }
 0x129   : > { %v1134_v44 = vrot.slane %v1364_v42, %v1822_v15 }
 0x12a   : > { %v1127_v43 = vrot.slane %v1363_v41, %v1822_v15 }
 0x12c   : > { %v1135_v45 = vcombine.low %v1127_v43, %v1134_v44 }
 0x12e   : > { %1175 = vst [vmem:[%s1829_s29 + $0x8] sm:$0xff] %v1135_v45 }
 0x130   : > { %v965_v47 = vpop.f32.mrf.mxu1 }
 0x131   : > { %v924_v46 = vpop.f32.mrf.mxu0  ;;  %v966_v49 = vadd.f32 %v965_v47, %v1816_v0 }
 0x132   : > { %v925_v48 = vadd.f32 %v924_v46, %v1816_v0  ;;  %v967_v51 = vpop.f32.mrf.mxu1 }
 0x133   : > { %v926_v50 = vpop.f32.mrf.mxu0  ;;  %v1064_v53 = vmax.f32 %v966_v49, 0.0  ;;  %v968_v55 = vadd.f32 %v967_v51, %v1816_v0 }
 0x134   : > { %v1062_v52 = vmax.f32 %v925_v48, 0.0  ;;  %v927_v54 = vadd.f32 %v926_v50, %v1816_v0  ;;  %v969_v58 = vpop.f32.mrf.mxu1 }
 0x135   : > { %v928_v57 = vpop.f32.mrf.mxu0  ;;  %v1065_v60 = vmax.f32 %v968_v55, 0.0 }
 0x136   : > { %v1063_v59 = vmax.f32 %v927_v54, 0.0  ;;  %v970_v56 = vpop.f32.mrf.mxu1 }
 0x137   : > { %v929_v61 = vpop.f32.mrf.mxu0  ;;  %v1366_v63 = vpack.c.bf16 %v1065_v60, %v1064_v53 }
 0x138   : > { %v1365_v62 = vpack.c.bf16 %v1063_v59, %v1062_v52 }
 0x139   : > { %v1151_v2 = vrot.slane %v1366_v63, %v1822_v15 }
 0x13a   : > { %v1144_v1 = vrot.slane %v1365_v62, %v1822_v15 }
 0x13c   : > { %v1152_v3 = vcombine.low %v1144_v1, %v1151_v2 }
 0x13e   : > { %1176 = vst [vmem:[%s1829_s29 + $0x10] sm:$0xff] %v1152_v3 }
 0x140   : > { %v1047_v5 = vpop.f32.mrf.mxu1 }
 0x141   : > { %v1006_v4 = vpop.f32.mrf.mxu0  ;;  %v1048_v36 = vadd.f32 %v1047_v5, %v1816_v0 }
 0x142   : > { %v1007_v6 = vadd.f32 %v1006_v4, %v1816_v0  ;;  %v1049_v8 = vpop.f32.mrf.mxu1 }
 0x143   : > { %v1008_v7 = vpop.f32.mrf.mxu0  ;;  %v1050_v10 = vadd.f32 %v1049_v8, %v1816_v0  ;;  %v1068_v14 = vmax.f32 %v1048_v36, 0.0 }
 0x144   : > { %v1009_v9 = vadd.f32 %v1008_v7, %v1816_v0  ;;  %v1051_v12 = vpop.f32.mrf.mxu1  ;;  %v1066_v13 = vmax.f32 %v1007_v6, 0.0 }
 0x145   : > { %v1010_v11 = vpop.f32.mrf.mxu0  ;;  %v1069_v17 = vmax.f32 %v1050_v10, 0.0 }
 0x146   : > { %v1067_v16 = vmax.f32 %v1009_v9, 0.0  ;;  %v1052_v19 = vpop.f32.mrf.mxu1 }
 0x147   : > { %v1011_v18 = vpop.f32.mrf.mxu0  ;;  %v1368_v21 = vpack.c.bf16 %v1069_v17, %v1068_v14 }
 0x148   : > { %v1367_v20 = vpack.c.bf16 %v1067_v16, %v1066_v13 }
 0x149   : > { %v1168_v23 = vrot.slane %v1368_v21, %v1822_v15 }
 0x14a   : > { %v1161_v22 = vrot.slane %v1367_v20, %v1822_v15 }
 0x14c   : > { %v1169_v24 = vcombine.low %v1161_v22, %v1168_v23 }
 0x14e   : > { %1177 = vst [vmem:[%s1829_s29 + $0x18] sm:$0xff] %v1169_v24 }
 0x14f PF: > { %s13_s18 = sadd.s32 1, %s1503_s18   ;;  %s1878_s12 = smov %s1483_s13 }
 0x150   : > { %p10_p12 = scmp.ge.s32.totalorder %s13_s18, 6   ;;  %s1879_s13 = smov %s1578_s25 }
 0x151   : > { %s1880_s14 = smov %s1495_s16  ;;  %s1881_s15 = smov %s1499_s17 }
 0x152   : > { %s1882_s16 = smov %s1885_s19  ;;  %s1883_s17 = smov %s1889_s20 }
 0x153   :  { %12 = sbr.rel (!%p10_p12) target bundleno = 4 (0x4), region = 90 }

// kernel: model_forward.14
= control target key start
LH: loop header
LB: loop body
LE: loop exit
PB: predicated region body
PF: predicated region fallthrough
CT: control target
= control target key end

     0   :  { %s751_s12 = smov 0   ;;  %s753_s13 = smov 0   ;;  %s824_s0 = inlined_call_operand.vmem [shape: bf16[8,108], index: 0, kind: input, shape index: {}]   ;;  %s825_s1 = inlined_call_operand.vmem [shape: bf16[2,108,512], index: 1, kind: input, shape index: {}]   ;;  %s826_s2 = inlined_call_operand.vmem [shape: f32[8,1], index: 2, kind: input, shape index: {}]   ;;  %s827_s3 = inlined_call_operand.vmem [shape: bf16[2,8,512], index: 3, kind: output, shape index: {}]  }
   0x1   :  { %s755_s14 = smov 0  }
   0x2 LB: > { %s25_s15 = sadd.s32 1, %s724_s13  ;;  %p594_p0 = scmp.ge.s32.totalorder %s728_s14, 1  ;;  %s728_s14 = sphi %s755_s14, %s13_s14   ;;  %s724_s13 = sphi %s753_s13, %s829_s13   ;;  %s720_s12 = sphi %s751_s12, %s828_s12  }
   0x3   : > { %p27_p1 = scmp.ge.s32.totalorder %s25_s15, 2  ;;  %p158_p2 = scmp.lt.s32.totalorder %s728_s14, 3 }
   0x5   : > { %s831_s15 = smov (%p27_p1, %s25_s15), 0  ;;  %p159_p3 = pnand %p594_p0, %p158_p2 }
   0x6   : > { %p191_p4 = scmp.lt.s32.totalorder (!%p159_p3), %s720_s12, 1 }
   0x7   : > { %162 = sbr.rel (%p159_p3) target bundleno = 248 (0xf8), region = 32 }
   0xc   : > { %v730_v0 = vmov 0   ;;  %v240_v1 = vld [vmem:[%s826_s2] sm:$0xff]  ;;  %s833_s12 = smov (!%p191_p4, %s720_s12), 1  ;;  %vm386_vm0 = vcmask 1045504   ;;  %vm382_vm1 = vcmask 883712  }
   0xd   : > { %431 = vmatprep.mubr.bf16.mxu0 %v730_v0  ;;  %472 = vmatprep.mubr.bf16.mxu1 %v730_v0  ;;  %s637_s18 = smul.u32 224, %s833_s12  ;;  %v211_v32 = vld [vmem:[%s824_s0] sm:$0xf]  ;;  %s634_s24 = sshll.u32 %s833_s12, 4 }
   0xe   : > { %663 = vset.pattern.permute.xlu0 %v730_v0  ;;  %s208_s27 = scalar_lea.vmem %s827_s3, %s634_s24 }
   0xf   : > { %243 = vperm.xlu0 %663, %v240_v1   ;;  %s778_s21 = scalar_lea.vmem %s825_s1, %s637_s18 }
  0x10   : > { %v664_v2 = vld [vmem:[%s778_s21 + $0xc4] ss:$16 sps:$4 sm:$0x3f]   ;;  %v666_v3 = vld [vmem:[%s778_s21 + $0xcc] ss:$16 sps:$4 sm:$0x3f]  }
  0x11   : > { %626 = vmatprep.subr.msk.bf16.mxu0 %vm386_vm0, %v664_v2  ;;  %v668_v4 = vld [vmem:[%s778_s21 + $0xc0] ss:$16 sps:$4 sm:$0x3f]   ;;  %v669_v5 = vld [vmem:[%s778_s21 + $0xc8] ss:$16 sps:$4 sm:$0x3f]   ;;  %628 = vmatprep.subr.msk.bf16.mxu1 %vm386_vm0, %v666_v3 }
  0x12   : > { %v670_v6 = vld [vmem:[%s778_s21 + $0xa4] ss:$16 sps:$4 sm:$0xff]   ;;  %v388_v7 = vsel %vm386_vm0, %v668_v4, 0  ;;  %v394_v8 = vsel %vm386_vm0, %v669_v5, 0  ;;  %v672_v9 = vld [vmem:[%s778_s21 + $0xac] ss:$16 sps:$4 sm:$0xff]  }
  0x13   : > { %402 = vmatpush1.bf16.msra.mxu0 %v388_v7  ;;  %443 = vmatpush1.bf16.msra.mxu1 %v394_v8  ;;  %v674_v10 = vld [vmem:[%s778_s21 + $0xa0] ss:$16 sps:$4 sm:$0xff]   ;;  %v675_v11 = vld [vmem:[%s778_s21 + $0xa8] ss:$16 sps:$4 sm:$0xff]   ;;  %v676_v12 = vld [vmem:[%s778_s21 + $0x84] ss:$16 sps:$4 sm:$0xff]  }
  0x14   : > { %403 = vmatprep.subr.bf16.mxu0 %v670_v6  ;;  %444 = vmatprep.subr.bf16.mxu1 %v672_v9  ;;  %v678_v13 = vld [vmem:[%s778_s21 + $0x8c] ss:$16 sps:$4 sm:$0xff]   ;;  %v680_v14 = vld [vmem:[%s778_s21 + $0x80] ss:$16 sps:$4 sm:$0xff]   ;;  %v681_v15 = vld [vmem:[%s778_s21 + $0x88] ss:$16 sps:$4 sm:$0xff]  }
  0x15   : > { %v682_v16 = vld [vmem:[%s778_s21 + $0x64] ss:$16 sps:$4 sm:$0xff]   ;;  %v684_v17 = vld [vmem:[%s778_s21 + $0x6c] ss:$16 sps:$4 sm:$0xff]   ;;  %v686_v18 = vld [vmem:[%s778_s21 + $0x60] ss:$16 sps:$4 sm:$0xff]  }
  0x16   : > { %v687_v19 = vld [vmem:[%s778_s21 + $0x68] ss:$16 sps:$4 sm:$0xff]   ;;  %v688_v20 = vld [vmem:[%s778_s21 + $0x44] ss:$16 sps:$4 sm:$0xff]   ;;  %v690_v21 = vld [vmem:[%s778_s21 + $0x4c] ss:$16 sps:$4 sm:$0xff]  }
  0x17   : > { %404 = vmatpush1.bf16.msra.mxu0 %v674_v10  ;;  %445 = vmatpush1.bf16.msra.mxu1 %v675_v11  ;;  %v692_v22 = vld [vmem:[%s778_s21 + $0x40] ss:$16 sps:$4 sm:$0xff]   ;;  %v693_v23 = vld [vmem:[%s778_s21 + $0x48] ss:$16 sps:$4 sm:$0xff]   ;;  %v694_v24 = vld [vmem:[%s778_s21 + $0x24] ss:$16 sps:$4 sm:$0xff]  }
  0x18   : > { %405 = vmatprep.subr.bf16.mxu0 %v676_v12  ;;  %446 = vmatprep.subr.bf16.mxu1 %v678_v13  ;;  %v696_v25 = vld [vmem:[%s778_s21 + $0x2c] ss:$16 sps:$4 sm:$0xff]   ;;  %v698_v26 = vld [vmem:[%s778_s21 + $0x20] ss:$16 sps:$4 sm:$0xff]   ;;  %v699_v27 = vld [vmem:[%s778_s21 + $0x28] ss:$16 sps:$4 sm:$0xff]  }
  0x19   : > { %v700_v28 = vld [vmem:[%s778_s21 + $0x4] ss:$16 sps:$4 sm:$0xff]   ;;  %v702_v29 = vld [vmem:[%s778_s21 + $0xc] ss:$16 sps:$4 sm:$0xff]   ;;  %v704_v30 = vld [vmem:[%s778_s21] ss:$16 sps:$4 sm:$0xff]  }
  0x1a   : > { %v705_v31 = vld [vmem:[%s778_s21 + $0x8] ss:$16 sps:$4 sm:$0xff]  }
  0x1b   : > { %406 = vmatpush1.bf16.msra.mxu0 %v680_v14  ;;  %447 = vmatpush1.bf16.msra.mxu1 %v681_v15 }
  0x1c   : > { %407 = vmatprep.subr.bf16.mxu0 %v682_v16  ;;  %448 = vmatprep.subr.bf16.mxu1 %v684_v17 }
  0x1f   : > { %408 = vmatpush1.bf16.msra.mxu0 %v686_v18  ;;  %449 = vmatpush1.bf16.msra.mxu1 %v687_v19 }
  0x20   : > { %409 = vmatprep.subr.bf16.mxu0 %v688_v20  ;;  %450 = vmatprep.subr.bf16.mxu1 %v690_v21 }
  0x23   : > { %410 = vmatpush1.bf16.msra.mxu0 %v692_v22  ;;  %451 = vmatpush1.bf16.msra.mxu1 %v693_v23 }
  0x24   : > { %411 = vmatprep.subr.bf16.mxu0 %v694_v24  ;;  %452 = vmatprep.subr.bf16.mxu1 %v696_v25 }
  0x27   : > { %412 = vmatpush1.bf16.msra.mxu0 %v698_v26  ;;  %453 = vmatpush1.bf16.msra.mxu1 %v699_v27 }
  0x28   : > { %413 = vmatprep.subr.bf16.mxu0 %v700_v28  ;;  %454 = vmatprep.subr.bf16.mxu1 %v702_v29 }
  0x2b   : > { %414 = vmatpush1.bf16.msra.mxu0 %v704_v30  ;;  %455 = vmatpush1.bf16.msra.mxu1 %v705_v31 }
  0x2e   : > { %627 = vmatmul.mubr.msk.bf16.vlgmr.msra.gmra.mxu0 %vm382_vm1, %v211_v32  ;;  %629 = vmatmul.mubr.msk.bf16.vlgmr.msra.gmra.mxu1 %vm382_vm1, %v211_v32 }
  0x8a   : > { %v244_v33 = vpop.permute.xlu0 %243 }
  0xee   : > { %v433_v34 = vpop.f32.mrf.mxu0  ;;  %v474_v35 = vpop.f32.mrf.mxu1 }
  0xef   : > { %v434_v36 = vadd.f32 %v433_v34, %v244_v33  ;;  %v475_v37 = vadd.f32 %v474_v35, %v244_v33 }
  0xf0   : > { %v435_v38 = vpop.f32.mrf.mxu0  ;;  %v476_v39 = vpop.f32.mrf.mxu1 }
  0xf1   : > { %v436_v40 = vadd.f32 %v435_v38, %v244_v33  ;;  %v477_v41 = vadd.f32 %v476_v39, %v244_v33  ;;  %v481_v44 = vmax.f32 %v434_v36, 0.0  ;;  %v483_v45 = vmax.f32 %v475_v37, 0.0 }
  0xf2   : > { %v437_v42 = vpop.f32.mrf.mxu0  ;;  %v478_v43 = vpop.f32.mrf.mxu1 }
  0xf3   : > { %v482_v46 = vmax.f32 %v436_v40, 0.0  ;;  %v484_v47 = vmax.f32 %v477_v41, 0.0 }
  0xf4   : > { %v438_v48 = vpop.f32.mrf.mxu0  ;;  %v479_v49 = vpop.f32.mrf.mxu1 }
  0xf5   : > { %v635_v50 = vpack.c.bf16 %v482_v46, %v481_v44  ;;  %v636_v51 = vpack.c.bf16 %v484_v47, %v483_v45 }
  0xf7   : > { %501 = vst [vmem:[%s208_s27] sm:$0xff] %v635_v50  ;;  %502 = vst [vmem:[%s208_s27 + $0x8] sm:$0xff] %v636_v51 }
  0xf8 PF: > { %s13_s14 = sadd.s32 1, %s728_s14   ;;  %s828_s12 = smov %s724_s13 }
  0xf9   : > { %p10_p5 = scmp.ge.s32.totalorder %s13_s14, 4   ;;  %s829_s13 = smov %s831_s15 }
  0xfb   :  { %12 = sbr.rel (!%p10_p5) target bundleno = 2 (0x2), region = 62 }

// kernel: model_forward.15
= control target key start
LH: loop header
LB: loop body
LE: loop exit
PB: predicated region body
PF: predicated region fallthrough
CT: control target
= control target key end

     0   :  { %s564_s12 = smov 0   ;;  %s566_s13 = smov 0   ;;  %s623_s0 = inlined_call_operand.vmem [shape: bf16[8,216], index: 0, kind: input, shape index: {}]   ;;  %s624_s1 = inlined_call_operand.vmem [shape: bf16[2,216,128], index: 1, kind: input, shape index: {}]   ;;  %s625_s2 = inlined_call_operand.vmem [shape: f32[8,1], index: 2, kind: input, shape index: {}]   ;;  %s626_s3 = inlined_call_operand.vmem [shape: bf16[2,8,128], index: 3, kind: output, shape index: {}]  }
   0x1   :  { %s568_s14 = smov 0  }
   0x2 LB: > { %s25_s15 = sadd.s32 1, %s537_s13  ;;  %p454_p0 = scmp.ge.s32.totalorder %s541_s14, 1  ;;  %s541_s14 = sphi %s568_s14, %s13_s14   ;;  %s537_s13 = sphi %s566_s13, %s628_s13   ;;  %s533_s12 = sphi %s564_s12, %s627_s12  }
   0x3   : > { %p27_p1 = scmp.ge.s32.totalorder %s25_s15, 2  ;;  %p156_p2 = scmp.lt.s32.totalorder %s541_s14, 3 }
   0x5   : > { %s630_s15 = smov (%p27_p1, %s25_s15), 0  ;;  %p157_p3 = pnand %p454_p0, %p156_p2 }
   0x6   : > { %p185_p4 = scmp.lt.s32.totalorder (!%p157_p3), %s533_s12, 1 }
   0x7   : > { %160 = sbr.rel (%p157_p3) target bundleno = 272 (0x110), region = 32 }
   0xc   : > { %v201_v0 = vld [vmem:[%s623_s0] sm:$0xff]  ;;  %vm322_vm0 = vcmask 719872   ;;  %v543_v2 = vmov 0   ;;  %s632_s12 = smov (!%p185_p4, %s533_s12), 1  ;;  %vm326_vm1 = vcmask 1043456  }
   0xd   : > { %v229_v1 = vld [vmem:[%s625_s2] sm:$0xff]  ;;  %330 = vmatprep.subr.bf16.mxu0 %v543_v2  ;;  %v458_v3 = vcombine.high %v201_v0, %v201_v0  ;;  %502 = vset.pattern.permute.xlu0 %v543_v2  ;;  %s476_s20 = smul.u32 108, %s632_s12  ;;  %v457_v19 = vcombine.low %v201_v0, %v201_v0  ;;  %s456_s24 = sshll.u32 %s632_s12, 2 }
   0xe   : > { %232 = vperm.xlu0 %502, %v229_v1   ;;  %s199_s27 = scalar_lea.vmem %s626_s3, %s456_s24 }
   0xf   : > { %473 = vmatprep.mubr.msk.bf16.mxu0 %vm322_vm0, %v458_v3  ;;  %s594_s23 = scalar_lea.vmem %s624_s1, %s476_s20 }
  0x10   : > { %v503_v4 = vld [vmem:[%s594_s23 + $0x38] sm:$0xff]   ;;  %v504_v5 = vld [vmem:[%s594_s23 + $0x30] sm:$0xff]   ;;  %v505_v6 = vld [vmem:[%s594_s23 + $0x28] sm:$0xff]  }
  0x11   : > { %331 = vmatpush1.bf16.msra.mxu0 %v503_v4  ;;  %v506_v7 = vld [vmem:[%s594_s23 + $0x20] sm:$0xff]   ;;  %v507_v8 = vld [vmem:[%s594_s23 + $0x18] sm:$0xff]   ;;  %v508_v9 = vld [vmem:[%s594_s23 + $0x10] sm:$0xff]  }
  0x12   : > { %332 = vmatprep.subr.bf16.mxu0 %v543_v2  ;;  %v509_v10 = vld [vmem:[%s594_s23 + $0x8] sm:$0xff]   ;;  %v510_v11 = vld [vmem:[%s594_s23] sm:$0xff]   ;;  %v513_v15 = vld [vmem:[%s594_s23 + $0x58] sm:$0xff]  }
  0x13   : > { %v511_v12 = vld [vmem:[%s594_s23 + $0x68] ss:$0 sps:$4 sm:$0xff]   ;;  %v512_v14 = vld [vmem:[%s594_s23 + $0x60] sm:$0xff]   ;;  %v514_v16 = vld [vmem:[%s594_s23 + $0x50] sm:$0xff]  }
  0x14   : > { %v328_v13 = vsel %vm326_vm1, %v511_v12, 0  ;;  %v515_v17 = vld [vmem:[%s594_s23 + $0x48] sm:$0xff]   ;;  %v516_v18 = vld [vmem:[%s594_s23 + $0x40] sm:$0xff]  }
  0x15   : > { %333 = vmatpush1.bf16.msra.mxu0 %v504_v5 }
  0x16   : > { %334 = vmatprep.subr.bf16.mxu0 %v543_v2 }
  0x19   : > { %335 = vmatpush1.bf16.msra.mxu0 %v505_v6 }
  0x1a   : > { %336 = vmatprep.subr.bf16.mxu0 %v543_v2 }
  0x1d   : > { %337 = vmatpush1.bf16.msra.mxu0 %v506_v7 }
  0x1e   : > { %338 = vmatprep.subr.bf16.mxu0 %v543_v2 }
  0x21   : > { %339 = vmatpush1.bf16.msra.mxu0 %v507_v8 }
  0x22   : > { %340 = vmatprep.subr.bf16.mxu0 %v543_v2 }
  0x25   : > { %341 = vmatpush1.bf16.msra.mxu0 %v508_v9 }
  0x26   : > { %342 = vmatprep.subr.bf16.mxu0 %v543_v2 }
  0x29   : > { %343 = vmatpush1.bf16.msra.mxu0 %v509_v10 }
  0x2a   : > { %344 = vmatprep.subr.bf16.mxu0 %v543_v2 }
  0x2d   : > { %345 = vmatpush1.bf16.msra.mxu0 %v510_v11 }
  0x2e   : > { %350 = vmatprep.subr.bf16.mxu0 %v543_v2 }
  0x31   : > { %351 = vmatpush2.bf16.msra.mxu0 %v328_v13 }
  0x32   : > { %352 = vmatprep.subr.bf16.mxu0 %v543_v2 }
  0x35   : > { %353 = vmatpush2.bf16.msra.mxu0 %v512_v14 }
  0x36   : > { %354 = vmatprep.subr.bf16.mxu0 %v543_v2 }
  0x39   : > { %355 = vmatpush2.bf16.msra.mxu0 %v513_v15 }
  0x3a   : > { %356 = vmatprep.subr.bf16.mxu0 %v543_v2 }
  0x3d   : > { %357 = vmatpush2.bf16.msra.mxu0 %v514_v16 }
  0x3e   : > { %358 = vmatprep.subr.bf16.mxu0 %v543_v2 }
  0x41   : > { %359 = vmatpush2.bf16.msra.mxu0 %v515_v17 }
  0x42   : > { %360 = vmatprep.subr.bf16.mxu0 %v543_v2 }
  0x45   : > { %361 = vmatpush2.bf16.msra.mxu0 %v516_v18 }
  0x48   : > { %363 = vmatmul.mubr.bf16.vlgmr.msra.gmra.mxu0 %v457_v19 }
  0x89   : > { %v233_v20 = vpop.permute.xlu0 %232 }
 0x108   : > { %v364_v21 = vpop.f32.mrf.mxu0 }
 0x109   : > { %v365_v22 = vadd.f32 %v364_v21, %v233_v20 }
 0x10a   : > { %v366_v23 = vpop.f32.mrf.mxu0 }
 0x10b   : > { %v370_v24 = vmax.f32 %v365_v22, 0.0 }
 0x10c   : > { %v367_v25 = vpop.f32.mrf.mxu0 }
 0x10d   : > { %v371_v26 = vpack.c.bf16 %v370_v24, %v370_v24 }
 0x10e   : > { %v368_v27 = vpop.f32.mrf.mxu0 }
 0x10f   : > { %372 = vst [vmem:[%s199_s27] sm:$0xf] %v371_v26 }
 0x110 PF: > { %s13_s14 = sadd.s32 1, %s541_s14   ;;  %s627_s12 = smov %s537_s13 }
 0x111   : > { %p10_p5 = scmp.ge.s32.totalorder %s13_s14, 4   ;;  %s628_s13 = smov %s630_s15 }
 0x113   :  { %12 = sbr.rel (!%p10_p5) target bundleno = 2 (0x2), region = 62 }

// kernel: model_forward.16
= control target key start
LH: loop header
LB: loop body
LE: loop exit
PB: predicated region body
PF: predicated region fallthrough
CT: control target
= control target key end

     0   :  { %s1524_s12 = smov 0   ;;  %s1526_s13 = smov 0   ;;  %s1710_s0 = inlined_call_operand.vmem [shape: bf16[8,432], index: 0, kind: input, shape index: {}]   ;;  %s1711_s1 = inlined_call_operand.vmem [shape: bf16[2,432,512], index: 1, kind: input, shape index: {}]   ;;  %s1712_s2 = inlined_call_operand.vmem [shape: f32[8,1], index: 2, kind: input, shape index: {}]   ;;  %s1713_s3 = inlined_call_operand.vmem [shape: bf16[2,8,512], index: 3, kind: output, shape index: {}]  }
   0x1   :  { %s1528_s14 = smov 0  }
   0x2 LB: > { %s25_s15 = sadd.s32 1, %s1497_s13  ;;  %p1161_p0 = scmp.ge.s32.totalorder %s1501_s14, 1  ;;  %s1501_s14 = sphi %s1528_s14, %s13_s14   ;;  %s1497_s13 = sphi %s1526_s13, %s1715_s13   ;;  %s1493_s12 = sphi %s1524_s12, %s1714_s12  }
   0x3   : > { %p27_p1 = scmp.ge.s32.totalorder %s25_s15, 2  ;;  %p158_p2 = scmp.lt.s32.totalorder %s1501_s14, 3 }
   0x5   : > { %s1717_s15 = smov (%p27_p1, %s25_s15), 0  ;;  %p159_p3 = pnand %p1161_p0, %p158_p2 }
   0x6   : > { %p191_p4 = scmp.lt.s32.totalorder (!%p159_p3), %s1493_s12, 1 }
   0x7   : > { %162 = sbr.rel (%p159_p3) target bundleno = 330 (0x14a), region = 32 }
   0xc   : > { %v1545_v0 = vld [vmem:[%s1710_s0 + $0x8] sm:$0xff]  ;;  %vm880_vm0 = vcmask 392192   ;;  %v1550_v1 = vld [vmem:[%s1710_s0] sm:$0xff]  ;;  %v1503_v5 = vmov 0   ;;  %s1719_s12 = smov (!%p191_p4, %s1493_s12), 1 }
   0xd   : > { %v321_v2 = vld [vmem:[%s1712_s2] sm:$0xff]  ;;  %v1557_v3 = vcombine.high %v1545_v0, %v1545_v0  ;;  %v1561_v4 = vcombine.high %v1550_v1, %v1550_v1  ;;  %1312 = vset.pattern.permute.xlu0 %v1503_v5  ;;  %s1286_s22 = smul.u32 864, %s1719_s12  ;;  %v1622_v52 = vcombine.low %v1545_v0, %v1545_v0  ;;  %s1283_s26 = sshll.u32 %s1719_s12, 4 }
   0xe   : > { %324 = vperm.xlu0 %1312, %v321_v2   ;;  %s208_s29 = scalar_lea.vmem %s1713_s3, %s1283_s26 }
   0xf   : > { %1277 = vmatprep.mubr.msk.bf16.mxu1 %vm880_vm0, %v1557_v3  ;;  %916 = vmatprep.mubr.bf16.mxu0 %v1561_v4  ;;  %s1572_s25 = scalar_lea.vmem %s1711_s1, %s1286_s22 }
  0x10   : > { %v1313_v6 = vld [vmem:[%s1572_s25 + $0xe4] ss:$16 sps:$4 sm:$0xff]   ;;  %v1317_v8 = vld [vmem:[%s1572_s25 + $0xe0] ss:$16 sps:$4 sm:$0xff]   ;;  %v1385_v51 = vld [vmem:[%s1572_s25 + $0xec] ss:$16 sps:$4 sm:$0xff]  }
  0x11   : > { %v1315_v7 = vld [vmem:[%s1572_s25 + $0x2e4] ss:$16 sps:$4 sm:$0xff]   ;;  %884 = vmatprep.subr.bf16.mxu0 %v1313_v6  ;;  %v1318_v9 = vld [vmem:[%s1572_s25 + $0x2e0] ss:$16 sps:$4 sm:$0xff]   ;;  %v1383_v53 = vld [vmem:[%s1572_s25 + $0xe8] ss:$16 sps:$4 sm:$0xff]  }
  0x12   : > { %925 = vmatprep.subr.bf16.mxu1 %v1315_v7  ;;  %v1319_v10 = vld [vmem:[%s1572_s25 + $0xc4] ss:$16 sps:$4 sm:$0xff]   ;;  %885 = vmatpush1.bf16.msra.mxu0 %v1317_v8  ;;  %v1323_v12 = vld [vmem:[%s1572_s25 + $0xc0] ss:$16 sps:$4 sm:$0xff]   ;;  %v1391_v56 = vld [vmem:[%s1572_s25 + $0xcc] ss:$16 sps:$4 sm:$0xff]  }
  0x13   : > { %926 = vmatpush1.bf16.msra.mxu1 %v1318_v9  ;;  %v1321_v11 = vld [vmem:[%s1572_s25 + $0x2c4] ss:$16 sps:$4 sm:$0xff]   ;;  %886 = vmatprep.subr.bf16.mxu0 %v1319_v10  ;;  %v1324_v13 = vld [vmem:[%s1572_s25 + $0x2c0] ss:$16 sps:$4 sm:$0xff]   ;;  %v1389_v57 = vld [vmem:[%s1572_s25 + $0xc8] ss:$16 sps:$4 sm:$0xff]  }
  0x14   : > { %927 = vmatprep.subr.bf16.mxu1 %v1321_v11  ;;  %v1325_v14 = vld [vmem:[%s1572_s25 + $0xa4] ss:$16 sps:$4 sm:$0xff]   ;;  %v1329_v16 = vld [vmem:[%s1572_s25 + $0xa0] ss:$16 sps:$4 sm:$0xff]   ;;  %v1397_v60 = vld [vmem:[%s1572_s25 + $0xac] ss:$16 sps:$4 sm:$0xff]   ;;  %v1648_v11 = vcombine.low %v1550_v1, %v1550_v1 }
  0x15   : > { %v1327_v15 = vld [vmem:[%s1572_s25 + $0x2a4] ss:$16 sps:$4 sm:$0xff]   ;;  %v1330_v17 = vld [vmem:[%s1572_s25 + $0x2a0] ss:$16 sps:$4 sm:$0xff]   ;;  %v1395_v61 = vld [vmem:[%s1572_s25 + $0xa8] ss:$16 sps:$4 sm:$0xff]  }
  0x16   : > { %887 = vmatpush1.bf16.msra.mxu0 %v1323_v12  ;;  %v1331_v18 = vld [vmem:[%s1572_s25 + $0x84] ss:$16 sps:$4 sm:$0xff]   ;;  %v1335_v20 = vld [vmem:[%s1572_s25 + $0x80] ss:$16 sps:$4 sm:$0xff]   ;;  %v1403_v0 = vld [vmem:[%s1572_s25 + $0x8c] ss:$16 sps:$4 sm:$0xff]  }
  0x17   : > { %928 = vmatpush1.bf16.msra.mxu1 %v1324_v13  ;;  %888 = vmatprep.subr.bf16.mxu0 %v1325_v14  ;;  %v1333_v19 = vld [vmem:[%s1572_s25 + $0x284] ss:$16 sps:$4 sm:$0xff]   ;;  %v1336_v21 = vld [vmem:[%s1572_s25 + $0x280] ss:$16 sps:$4 sm:$0xff]   ;;  %v1401_v2 = vld [vmem:[%s1572_s25 + $0x88] ss:$16 sps:$4 sm:$0xff]  }
  0x18   : > { %929 = vmatprep.subr.bf16.mxu1 %v1327_v15  ;;  %v1337_v22 = vld [vmem:[%s1572_s25 + $0x64] ss:$16 sps:$4 sm:$0xff]   ;;  %v1341_v24 = vld [vmem:[%s1572_s25 + $0x60] ss:$16 sps:$4 sm:$0xff]   ;;  %v1409_v6 = vld [vmem:[%s1572_s25 + $0x6c] ss:$16 sps:$4 sm:$0xff]  }
  0x19   : > { %v1339_v23 = vld [vmem:[%s1572_s25 + $0x264] ss:$16 sps:$4 sm:$0xff]   ;;  %v1342_v25 = vld [vmem:[%s1572_s25 + $0x260] ss:$16 sps:$4 sm:$0xff]   ;;  %v1407_v7 = vld [vmem:[%s1572_s25 + $0x68] ss:$16 sps:$4 sm:$0xff]  }
  0x1a   : > { %889 = vmatpush1.bf16.msra.mxu0 %v1329_v16  ;;  %v1343_v26 = vld [vmem:[%s1572_s25 + $0x44] ss:$16 sps:$4 sm:$0xff]   ;;  %v1347_v28 = vld [vmem:[%s1572_s25 + $0x40] ss:$16 sps:$4 sm:$0xff]   ;;  %v1415_v9 = vld [vmem:[%s1572_s25 + $0x4c] ss:$16 sps:$4 sm:$0xff]  }
  0x1b   : > { %930 = vmatpush1.bf16.msra.mxu1 %v1330_v17  ;;  %890 = vmatprep.subr.bf16.mxu0 %v1331_v18  ;;  %v1345_v27 = vld [vmem:[%s1572_s25 + $0x244] ss:$16 sps:$4 sm:$0xff]   ;;  %v1348_v29 = vld [vmem:[%s1572_s25 + $0x240] ss:$16 sps:$4 sm:$0xff]   ;;  %v1418_v10 = vld [vmem:[%s1572_s25 + $0x2ec] ss:$16 sps:$4 sm:$0xff]  }
  0x1c   : > { %931 = vmatprep.subr.bf16.mxu1 %v1333_v19  ;;  %v1349_v30 = vld [vmem:[%s1572_s25 + $0x24] ss:$16 sps:$4 sm:$0xff]   ;;  %v1353_v32 = vld [vmem:[%s1572_s25 + $0x20] ss:$16 sps:$4 sm:$0xff]   ;;  %v1413_v12 = vld [vmem:[%s1572_s25 + $0x48] ss:$16 sps:$4 sm:$0xff]  }
  0x1d   : > { %v1351_v31 = vld [vmem:[%s1572_s25 + $0x224] ss:$16 sps:$4 sm:$0xff]   ;;  %v1354_v33 = vld [vmem:[%s1572_s25 + $0x220] ss:$16 sps:$4 sm:$0xff]   ;;  %v1416_v13 = vld [vmem:[%s1572_s25 + $0x2e8] ss:$16 sps:$4 sm:$0xff]  }
  0x1e   : > { %891 = vmatpush1.bf16.msra.mxu0 %v1335_v20  ;;  %v1355_v34 = vld [vmem:[%s1572_s25 + $0x4] ss:$16 sps:$4 sm:$0xff]   ;;  %v1359_v36 = vld [vmem:[%s1572_s25] ss:$16 sps:$4 sm:$0xff]   ;;  %v1421_v14 = vld [vmem:[%s1572_s25 + $0x2c] ss:$16 sps:$4 sm:$0xff]  }
  0x1f   : > { %932 = vmatpush1.bf16.msra.mxu1 %v1336_v21  ;;  %892 = vmatprep.subr.bf16.mxu0 %v1337_v22  ;;  %v1357_v35 = vld [vmem:[%s1572_s25 + $0x204] ss:$16 sps:$4 sm:$0xff]   ;;  %v1360_v37 = vld [vmem:[%s1572_s25 + $0x200] ss:$16 sps:$4 sm:$0xff]   ;;  %v1424_v15 = vld [vmem:[%s1572_s25 + $0x2cc] ss:$16 sps:$4 sm:$0xff]  }
  0x20   : > { %933 = vmatprep.subr.bf16.mxu1 %v1339_v23  ;;  %v1361_v38 = vld [vmem:[%s1572_s25 + $0x1e4] ss:$16 sps:$4 sm:$0xff]   ;;  %v1365_v40 = vld [vmem:[%s1572_s25 + $0x1e0] ss:$16 sps:$4 sm:$0xff]   ;;  %v1419_v16 = vld [vmem:[%s1572_s25 + $0x28] ss:$16 sps:$4 sm:$0xff]  }
  0x21   : > { %v1363_v39 = vld [vmem:[%s1572_s25 + $0x344] ss:$16 sps:$4 sm:$0xff]   ;;  %v1366_v41 = vld [vmem:[%s1572_s25 + $0x340] ss:$16 sps:$4 sm:$0xff]   ;;  %v1422_v17 = vld [vmem:[%s1572_s25 + $0x2c8] ss:$16 sps:$4 sm:$0xff]  }
  0x22   : > { %893 = vmatpush1.bf16.msra.mxu0 %v1341_v24  ;;  %v1367_v42 = vld [vmem:[%s1572_s25 + $0x1c4] ss:$16 sps:$4 sm:$0xff]   ;;  %v1371_v44 = vld [vmem:[%s1572_s25 + $0x1c0] ss:$16 sps:$4 sm:$0xff]   ;;  %v1427_v1 = vld [vmem:[%s1572_s25 + $0xc] ss:$16 sps:$4 sm:$0xff]  }
  0x23   : > { %934 = vmatpush1.bf16.msra.mxu1 %v1342_v25  ;;  %894 = vmatprep.subr.bf16.mxu0 %v1343_v26  ;;  %v1369_v43 = vld [vmem:[%s1572_s25 + $0x324] ss:$16 sps:$4 sm:$0xff]   ;;  %v1372_v45 = vld [vmem:[%s1572_s25 + $0x320] ss:$16 sps:$4 sm:$0xff]   ;;  %v1430_v18 = vld [vmem:[%s1572_s25 + $0x2ac] ss:$16 sps:$4 sm:$0xff]  }
  0x24   : > { %935 = vmatprep.subr.bf16.mxu1 %v1345_v27  ;;  %v1373_v46 = vld [vmem:[%s1572_s25 + $0x1a4] ss:$16 sps:$4 sm:$0xff]   ;;  %v1377_v48 = vld [vmem:[%s1572_s25 + $0x1a0] ss:$16 sps:$4 sm:$0xff]   ;;  %v1425_v19 = vld [vmem:[%s1572_s25 + $0x8] ss:$16 sps:$4 sm:$0xff]  }
  0x25   : > { %v1375_v47 = vld [vmem:[%s1572_s25 + $0x304] ss:$16 sps:$4 sm:$0xff]   ;;  %v1378_v49 = vld [vmem:[%s1572_s25 + $0x300] ss:$16 sps:$4 sm:$0xff]   ;;  %v1428_v20 = vld [vmem:[%s1572_s25 + $0x2a8] ss:$16 sps:$4 sm:$0xff]  }
  0x26   : > { %895 = vmatpush1.bf16.msra.mxu0 %v1347_v28  ;;  %v1381_v50 = vld [vmem:[%s1572_s25 + $0x184] ss:$16 sps:$4 sm:$0xff]   ;;  %v1386_v54 = vld [vmem:[%s1572_s25 + $0x180] ss:$16 sps:$4 sm:$0xff]   ;;  %v1433_v21 = vld [vmem:[%s1572_s25 + $0x1ec] ss:$16 sps:$4 sm:$0xff]  }
  0x27   : > { %936 = vmatpush1.bf16.msra.mxu1 %v1348_v29  ;;  %896 = vmatprep.subr.bf16.mxu0 %v1349_v30  ;;  %v1387_v55 = vld [vmem:[%s1572_s25 + $0x164] ss:$16 sps:$4 sm:$0xff]   ;;  %v1392_v58 = vld [vmem:[%s1572_s25 + $0x160] ss:$16 sps:$4 sm:$0xff]   ;;  %v1436_v22 = vld [vmem:[%s1572_s25 + $0x28c] ss:$16 sps:$4 sm:$0xff]  }
  0x28   : > { %937 = vmatprep.subr.bf16.mxu1 %v1351_v31  ;;  %v1393_v59 = vld [vmem:[%s1572_s25 + $0x144] ss:$16 sps:$4 sm:$0xff]   ;;  %v1398_v62 = vld [vmem:[%s1572_s25 + $0x140] ss:$16 sps:$4 sm:$0xff]   ;;  %v1431_v23 = vld [vmem:[%s1572_s25 + $0x1e8] ss:$16 sps:$4 sm:$0xff]  }
  0x29   : > { %v1399_v63 = vld [vmem:[%s1572_s25 + $0x124] ss:$16 sps:$4 sm:$0xff]   ;;  %v1404_v5 = vld [vmem:[%s1572_s25 + $0x120] ss:$16 sps:$4 sm:$0xff]   ;;  %v1434_v24 = vld [vmem:[%s1572_s25 + $0x288] ss:$16 sps:$4 sm:$0xff]  }
  0x2a   : > { %897 = vmatpush1.bf16.msra.mxu0 %v1353_v32  ;;  %v1410_v8 = vld [vmem:[%s1572_s25 + $0x100] ss:$16 sps:$4 sm:$0xff]   ;;  %v1442_v25 = vld [vmem:[%s1572_s25 + $0x26c] ss:$16 sps:$4 sm:$0xff]   ;;  %v1437_v26 = vld [vmem:[%s1572_s25 + $0x1c8] ss:$16 sps:$4 sm:$0xff]  }
  0x2b   : > { %938 = vmatpush1.bf16.msra.mxu1 %v1354_v33  ;;  %898 = vmatprep.subr.bf16.mxu0 %v1355_v34  ;;  %v1440_v27 = vld [vmem:[%s1572_s25 + $0x268] ss:$16 sps:$4 sm:$0xff]   ;;  %v1445_v28 = vld [vmem:[%s1572_s25 + $0x1ac] ss:$16 sps:$4 sm:$0xff]  }
  0x2c   : > { %939 = vmatprep.subr.bf16.mxu1 %v1357_v35  ;;  %v1448_v29 = vld [vmem:[%s1572_s25 + $0x24c] ss:$16 sps:$4 sm:$0xff]   ;;  %v1443_v30 = vld [vmem:[%s1572_s25 + $0x1a8] ss:$16 sps:$4 sm:$0xff]  }
  0x2d   : > { %v1446_v31 = vld [vmem:[%s1572_s25 + $0x248] ss:$16 sps:$4 sm:$0xff]   ;;  %v1451_v32 = vld [vmem:[%s1572_s25 + $0x18c] ss:$16 sps:$4 sm:$0xff]  }
  0x2e   : > { %899 = vmatpush1.bf16.msra.mxu0 %v1359_v36  ;;  %v1454_v33 = vld [vmem:[%s1572_s25 + $0x22c] ss:$16 sps:$4 sm:$0xff]   ;;  %v1449_v34 = vld [vmem:[%s1572_s25 + $0x188] ss:$16 sps:$4 sm:$0xff]  }
  0x2f   : > { %940 = vmatpush1.bf16.msra.mxu1 %v1360_v37  ;;  %900 = vmatprep.subr.bf16.mxu0 %v1361_v38  ;;  %v1452_v35 = vld [vmem:[%s1572_s25 + $0x228] ss:$16 sps:$4 sm:$0xff]   ;;  %v1457_v36 = vld [vmem:[%s1572_s25 + $0x16c] ss:$16 sps:$4 sm:$0xff]  }
  0x30   : > { %951 = vmatprep.subr.bf16.mxu1 %v1363_v39  ;;  %v1460_v37 = vld [vmem:[%s1572_s25 + $0x20c] ss:$16 sps:$4 sm:$0xff]   ;;  %v1455_v38 = vld [vmem:[%s1572_s25 + $0x168] ss:$16 sps:$4 sm:$0xff]  }
  0x31   : > { %v1458_v39 = vld [vmem:[%s1572_s25 + $0x208] ss:$16 sps:$4 sm:$0xff]  }
  0x32   : > { %901 = vmatpush2.bf16.msra.mxu0 %v1365_v40  ;;  %v1463_v40 = vld [vmem:[%s1572_s25 + $0x14c] ss:$16 sps:$4 sm:$0xff]  }
  0x33   : > { %952 = vmatpush2.bf16.msra.mxu1 %v1366_v41  ;;  %902 = vmatprep.subr.bf16.mxu0 %v1367_v42  ;;  %v1466_v41 = vld [vmem:[%s1572_s25 + $0x34c] ss:$16 sps:$4 sm:$0xff]   ;;  %v1461_v42 = vld [vmem:[%s1572_s25 + $0x148] ss:$16 sps:$4 sm:$0xff]  }
  0x34   : > { %953 = vmatprep.subr.bf16.mxu1 %v1369_v43  ;;  %v1464_v43 = vld [vmem:[%s1572_s25 + $0x348] ss:$16 sps:$4 sm:$0xff]  }
  0x36   : > { %903 = vmatpush2.bf16.msra.mxu0 %v1371_v44  ;;  %v1469_v44 = vld [vmem:[%s1572_s25 + $0x12c] ss:$16 sps:$4 sm:$0xff]  }
  0x37   : > { %954 = vmatpush2.bf16.msra.mxu1 %v1372_v45  ;;  %904 = vmatprep.subr.bf16.mxu0 %v1373_v46  ;;  %v1472_v45 = vld [vmem:[%s1572_s25 + $0x32c] ss:$16 sps:$4 sm:$0xff]   ;;  %v1467_v46 = vld [vmem:[%s1572_s25 + $0x128] ss:$16 sps:$4 sm:$0xff]  }
  0x38   : > { %955 = vmatprep.subr.bf16.mxu1 %v1375_v47  ;;  %v1470_v47 = vld [vmem:[%s1572_s25 + $0x328] ss:$16 sps:$4 sm:$0xff]  }
  0x3a   : > { %905 = vmatpush2.bf16.msra.mxu0 %v1377_v48  ;;  %v1475_v48 = vld [vmem:[%s1572_s25 + $0x10c] ss:$16 sps:$4 sm:$0xff]  }
  0x3b   : > { %956 = vmatpush2.bf16.msra.mxu1 %v1378_v49  ;;  %906 = vmatprep.subr.bf16.mxu0 %v1381_v50  ;;  %v1478_v49 = vld [vmem:[%s1572_s25 + $0x30c] ss:$16 sps:$4 sm:$0xff]   ;;  %v1473_v50 = vld [vmem:[%s1572_s25 + $0x108] ss:$16 sps:$4 sm:$0xff]  }
  0x3c   : > { %966 = vmatprep.subr.bf16.mxu1 %v1385_v51  ;;  %v1476_v51 = vld [vmem:[%s1572_s25 + $0x308] ss:$16 sps:$4 sm:$0xff]  }
  0x3e   : > { %958 = vmatmul.mubr.bf16.vlgmr.msra.gmra.mxu1 %v1622_v52  ;;  %907 = vmatpush2.bf16.msra.mxu0 %v1386_v54 }
  0x3f   : > { %967 = vmatpush1.bf16.msra.mxu1 %v1383_v53  ;;  %908 = vmatprep.subr.bf16.mxu0 %v1387_v55 }
  0x40   : > { %968 = vmatprep.subr.bf16.mxu1 %v1391_v56  ;;  %998 = vmatprep.mubr.bf16.mxu1 %v1561_v4  ;;  %v1405_v4 = vld [vmem:[%s1572_s25 + $0x104] ss:$16 sps:$4 sm:$0xff]  }
  0x42   : > { %909 = vmatpush2.bf16.msra.mxu0 %v1392_v58 }
  0x43   : > { %969 = vmatpush1.bf16.msra.mxu1 %v1389_v57  ;;  %910 = vmatprep.subr.bf16.mxu0 %v1393_v59 }
  0x44   : > { %970 = vmatprep.subr.bf16.mxu1 %v1397_v60 }
  0x46   : > { %911 = vmatpush2.bf16.msra.mxu0 %v1398_v62 }
  0x47   : > { %971 = vmatpush1.bf16.msra.mxu1 %v1395_v61  ;;  %912 = vmatprep.subr.bf16.mxu0 %v1399_v63 }
  0x48   : > { %972 = vmatprep.subr.bf16.mxu1 %v1403_v0 }
  0x4a   : > { %913 = vmatpush2.bf16.msra.mxu0 %v1404_v5 }
  0x4b   : > { %973 = vmatpush1.bf16.msra.mxu1 %v1401_v2  ;;  %914 = vmatprep.subr.bf16.mxu0 %v1405_v4 }
  0x4c   : > { %974 = vmatprep.subr.bf16.mxu1 %v1409_v6 }
  0x4e   : > { %915 = vmatpush2.bf16.msra.mxu0 %v1410_v8 }
  0x4f   : > { %975 = vmatpush1.bf16.msra.mxu1 %v1407_v7  ;;  %1007 = vmatprep.subr.bf16.mxu0 %v1418_v10 }
  0x50   : > { %976 = vmatprep.subr.bf16.mxu1 %v1415_v9 }
  0x51   : > { %917 = vmatmul.mubr.bf16.vlgmr.msra.gmra.mxu0 %v1648_v11 }
  0x52   : > { %1008 = vmatpush1.bf16.msra.mxu0 %v1416_v13  ;;  %1278 = vmatprep.mubr.msk.bf16.mxu0 %vm880_vm0, %v1557_v3  ;;  %v1439_v3 = vld [vmem:[%s1572_s25 + $0x1cc] ss:$16 sps:$4 sm:$0xff]  }
  0x53   : > { %977 = vmatpush1.bf16.msra.mxu1 %v1413_v12  ;;  %1009 = vmatprep.subr.bf16.mxu0 %v1424_v15 }
  0x54   : > { %978 = vmatprep.subr.bf16.mxu1 %v1421_v14 }
  0x56   : > { %1010 = vmatpush1.bf16.msra.mxu0 %v1422_v17 }
  0x57   : > { %979 = vmatpush1.bf16.msra.mxu1 %v1419_v16  ;;  %1011 = vmatprep.subr.bf16.mxu0 %v1430_v18 }
  0x58   : > { %980 = vmatprep.subr.bf16.mxu1 %v1427_v1 }
  0x5a   : > { %1012 = vmatpush1.bf16.msra.mxu0 %v1428_v20 }
  0x5b   : > { %981 = vmatpush1.bf16.msra.mxu1 %v1425_v19  ;;  %1013 = vmatprep.subr.bf16.mxu0 %v1436_v22 }
  0x5c   : > { %982 = vmatprep.subr.bf16.mxu1 %v1433_v21 }
  0x5e   : > { %1014 = vmatpush1.bf16.msra.mxu0 %v1434_v24 }
  0x5f   : > { %983 = vmatpush2.bf16.msra.mxu1 %v1431_v23  ;;  %1015 = vmatprep.subr.bf16.mxu0 %v1442_v25 }
  0x60   : > { %984 = vmatprep.subr.bf16.mxu1 %v1439_v3 }
  0x62   : > { %1016 = vmatpush1.bf16.msra.mxu0 %v1440_v27 }
  0x63   : > { %985 = vmatpush2.bf16.msra.mxu1 %v1437_v26  ;;  %1017 = vmatprep.subr.bf16.mxu0 %v1448_v29 }
  0x64   : > { %986 = vmatprep.subr.bf16.mxu1 %v1445_v28 }
  0x66   : > { %1018 = vmatpush1.bf16.msra.mxu0 %v1446_v31 }
  0x67   : > { %987 = vmatpush2.bf16.msra.mxu1 %v1443_v30  ;;  %1019 = vmatprep.subr.bf16.mxu0 %v1454_v33 }
  0x68   : > { %988 = vmatprep.subr.bf16.mxu1 %v1451_v32 }
  0x6a   : > { %1020 = vmatpush1.bf16.msra.mxu0 %v1452_v35 }
  0x6b   : > { %989 = vmatpush2.bf16.msra.mxu1 %v1449_v34  ;;  %1021 = vmatprep.subr.bf16.mxu0 %v1460_v37 }
  0x6c   : > { %990 = vmatprep.subr.bf16.mxu1 %v1457_v36 }
  0x6e   : > { %1022 = vmatpush1.bf16.msra.mxu0 %v1458_v39 }
  0x6f   : > { %991 = vmatpush2.bf16.msra.mxu1 %v1455_v38  ;;  %1033 = vmatprep.subr.bf16.mxu0 %v1466_v41 }
  0x70   : > { %992 = vmatprep.subr.bf16.mxu1 %v1463_v40 }
  0x72   : > { %1034 = vmatpush2.bf16.msra.mxu0 %v1464_v43 }
  0x73   : > { %993 = vmatpush2.bf16.msra.mxu1 %v1461_v42  ;;  %1035 = vmatprep.subr.bf16.mxu0 %v1472_v45 }
  0x74   : > { %994 = vmatprep.subr.bf16.mxu1 %v1469_v44 }
  0x76   : > { %1036 = vmatpush2.bf16.msra.mxu0 %v1470_v47 }
  0x77   : > { %995 = vmatpush2.bf16.msra.mxu1 %v1467_v46  ;;  %1037 = vmatprep.subr.bf16.mxu0 %v1478_v49 }
  0x78   : > { %996 = vmatprep.subr.bf16.mxu1 %v1475_v48 }
  0x7a   : > { %1038 = vmatpush2.bf16.msra.mxu0 %v1476_v51 }
  0x7b   : > { %997 = vmatpush2.bf16.msra.mxu1 %v1473_v50 }
  0x7d   : > { %1040 = vmatmul.mubr.bf16.vlgmr.msra.gmra.mxu0 %v1622_v52 }
  0x7e   : > { %999 = vmatmul.mubr.bf16.vlgmr.msra.gmra.mxu1 %v1648_v11 }
  0x89   : > { %v325_v57 = vpop.permute.xlu0 %324 }
  0xfe   : > { %v959_v53 = vpop.f32.mrf.mxu1 }
 0x100   : > { %v961_v54 = vpop.f32.mrf.mxu1 }
 0x102   : > { %v963_v55 = vpop.f32.mrf.mxu1 }
 0x104   : > { %v964_v56 = vpop.f32.mrf.mxu1 }
 0x111   : > { %v918_v58 = vpop.f32.mrf.mxu0 }
 0x112   : > { %v919_v59 = vadd.f32 %v918_v58, %v325_v57 }
 0x113   : > { %v920_v60 = vpop.f32.mrf.mxu0 }
 0x114   : > { %v960_v61 = vadd.f32 %v959_v53, %v919_v59  ;;  %v921_v62 = vadd.f32 %v920_v60, %v325_v57 }
 0x115   : > { %v922_v63 = vpop.f32.mrf.mxu0 }
 0x116   : > { %v962_v0 = vadd.f32 %v961_v54, %v921_v62  ;;  %v1048_v5 = vmax.f32 %v960_v61, 0.0 }
 0x117   : > { %v923_v2 = vpop.f32.mrf.mxu0 }
 0x118   : > { %v1049_v4 = vmax.f32 %v962_v0, 0.0 }
 0x11a   : > { %v1284_v52 = vpack.c.bf16 %v1049_v4, %v1048_v5 }
 0x11c   : > { %1068 = vst [vmem:[%s208_s29] sm:$0xff] %v1284_v52 }
 0x13d   : > { %v1041_v7 = vpop.f32.mrf.mxu0 }
 0x13e   : > { %v1000_v6 = vpop.f32.mrf.mxu1 }
 0x13f   : > { %v1001_v8 = vadd.f32 %v1000_v6, %v325_v57  ;;  %v1043_v10 = vpop.f32.mrf.mxu0 }
 0x140   : > { %v1002_v9 = vpop.f32.mrf.mxu1 }
 0x141   : > { %v1042_v11 = vadd.f32 %v1041_v7, %v1001_v8  ;;  %v1003_v12 = vadd.f32 %v1002_v9, %v325_v57  ;;  %v1045_v14 = vpop.f32.mrf.mxu0 }
 0x142   : > { %v1004_v13 = vpop.f32.mrf.mxu1 }
 0x143   : > { %v1044_v15 = vadd.f32 %v1043_v10, %v1003_v12  ;;  %v1046_v17 = vpop.f32.mrf.mxu0  ;;  %v1050_v1 = vmax.f32 %v1042_v11, 0.0 }
 0x144   : > { %v1005_v16 = vpop.f32.mrf.mxu1 }
 0x145   : > { %v1051_v18 = vmax.f32 %v1044_v15, 0.0 }
 0x147   : > { %v1285_v19 = vpack.c.bf16 %v1051_v18, %v1050_v1 }
 0x149   : > { %1069 = vst [vmem:[%s208_s29 + $0x8] sm:$0xff] %v1285_v19 }
 0x14a PF: > { %s13_s14 = sadd.s32 1, %s1501_s14   ;;  %s1714_s12 = smov %s1497_s13 }
 0x14b   : > { %p10_p5 = scmp.ge.s32.totalorder %s13_s14, 4   ;;  %s1715_s13 = smov %s1717_s15 }
 0x14d   :  { %12 = sbr.rel (!%p10_p5) target bundleno = 2 (0x2), region = 62 }

// kernel: model_forward.24
= control target key start
LH: loop header
LB: loop body
LE: loop exit
PB: predicated region body
PF: predicated region fallthrough
CT: control target
= control target key end

     0   :  { %s943_s12 = smov 0   ;;  %s945_s13 = smov 0   ;;  %s1050_s0 = inlined_call_operand.vmem [shape: bf16[3,4], index: 0, kind: input, shape index: {}]   ;;  %s1051_s1 = inlined_call_operand.vmem [shape: bf16[2,4,4096], index: 1, kind: input, shape index: {}]   ;;  %s1052_s2 = inlined_call_operand.vmem [shape: f32[3,1], index: 2, kind: input, shape index: {}]   ;;  %s1053_s3 = inlined_call_operand.vmem [shape: f32[2,3,4096], index: 3, kind: output, shape index: {}]  }
   0x1   :  { %s947_s14 = smov 0   ;;  %s949_s15 = smov 0  }
   0x2   :  { %s951_s16 = smov 0  }
   0x3 LB: > { %s22_s17 = sadd.s32 1, %s911_s14  ;;  %s25_s18 = sadd.s32 1, %s915_s15  ;;  %s919_s16 = sphi %s951_s16, %s13_s16   ;;  %s915_s15 = sphi %s949_s15, %s1057_s15   ;;  %s911_s14 = sphi %s947_s14, %s1056_s14   ;;  %s907_s13 = sphi %s945_s13, %s1055_s13   ;;  %s903_s12 = sphi %s943_s12, %s1054_s12  }
   0x4   : > { %p23_p0 = scmp.ge.s32.totalorder %s22_s17, 2  ;;  %p809_p1 = scmp.ge.s32.totalorder %s919_s16, 1 }
   0x5   : > { %p158_p2 = scmp.lt.s32.totalorder %s919_s16, 5 }
   0x6   : > { %s1059_s17 = smov (%p23_p0, %s22_s17), 0  ;;  %s1061_s18 = smov (!%p23_p0, %s25_s18), %s915_s15 }
   0x7   : > { %p159_p3 = pnand %p809_p1, %p158_p2  ;;  %p27_p4 = scmp.ge.s32.totalorder %s1061_s18, 2 }
   0x8   : > { %s810_s19 = sshll.u32 (!%p159_p3), %s903_s12, 4  ;;  %p191_p5 = scmp.lt.s32.totalorder (!%p159_p3), %s907_s13, 1 }
   0x9   : > { %s1063_s18 = smov (%p27_p4, %s1061_s18), 0  ;;  %162 = sbr.rel (%p159_p3) target bundleno = 255 (0xff), region = 32 }
   0xa   : > { %p193_p6 = scmp.lt.s32.totalorder (!%p159_p3), %s810_s19, 31 }
   0xe   : > { %v230_v0 = vlaneseq  ;;  %v921_v1 = vmov 1983009808   ;;  %v922_v3 = vmov 0   ;;  %v216_v4 = vld [vmem:[%s1052_s2] sm:$0x7]  ;;  %s1065_s13 = smov (!%p191_p5, %s907_s13), 1 }
   0xf   : > { %v228_v2 = vunpack.c.l.s4 %v921_v1  ;;  %379 = vmatprep.mubr.bf16.mxu0 %v922_v3  ;;  %420 = vmatprep.mubr.bf16.mxu1 %v922_v3  ;;  %s1067_s19 = smov (!%p193_p6, %s810_s19), 31  ;;  %s811_s22 = sshll.u32 %s1065_s13, 5  ;;  %vm298_vm0 = vcmask 1041408   ;;  %v211_v25 = vld [vmem:[%s1050_s0] sm:$0x3]  ;;  %vm294_vm1 = vcmask 31744  }
  0x10   : > { %v231_v5 = vshrl.u32 %v230_v0, 7  ;;  %876 = vset.pattern.permute.xlu0 %v922_v3  ;;  %s982_s23 = sadd.s32 %s811_s22, %s1067_s19 }
  0x11   : > { %v229_v6 = vunpack.c.0.s8 %v228_v2  ;;  %219 = vperm.xlu0 %876, %v216_v4   ;;  %s812_s24 = sshll.u32 %s982_s23, 1  ;;  %s815_s30 = sshll.u32 %s982_s23, 2 }
  0x12   : > { %s198_s27 = scalar_lea.vmem %s1051_s1, %s812_s24  ;;  %s1025_s6 = scalar_lea.vmem %s1053_s3, %s815_s30 }
  0x13   : > { %v232_v7 = vsub.s32 %v229_v6, %v231_v5  ;;  %v212_v8 = vld [vmem:[%s198_s27] sm:$0xff]  ;;  %v213_v9 = vld [vmem:[%s198_s27 + $0x8] sm:$0xff]  ;;  %v214_v10 = vld [vmem:[%s198_s27 + $0x10] sm:$0xff] }
  0x14   : > { %v226_v12 = vcombine.high %v212_v8, %v212_v8  ;;  %v243_v14 = vcombine.high %v213_v9, %v213_v9  ;;  %v260_v16 = vcombine.high %v214_v10, %v214_v10  ;;  %v215_v27 = vld [vmem:[%s198_s27 + $0x18] sm:$0xff] }
  0x15   : > { %v233_v11 = vrot.slane %v212_v8, %v232_v7  ;;  %v250_v13 = vrot.slane %v213_v9, %v232_v7  ;;  %v267_v15 = vrot.slane %v214_v10, %v232_v7  ;;  %v277_v32 = vcombine.high %v215_v27, %v215_v27 }
  0x16   : > { %v240_v19 = vrot.slane %v226_v12, %v232_v7  ;;  %v257_v21 = vrot.slane %v243_v14, %v232_v7  ;;  %v274_v24 = vrot.slane %v260_v16, %v232_v7  ;;  %v284_v33 = vrot.slane %v215_v27, %v232_v7 }
  0x17   : > { %v241_v17 = vcombine.high %v233_v11, %v233_v11  ;;  %v300_v18 = vsel %vm298_vm0, %v233_v11, 0  ;;  %v258_v20 = vcombine.high %v250_v13, %v250_v13  ;;  %v312_v28 = vsel %vm298_vm0, %v250_v13, 0 }
  0x18   : > { %v242_v22 = vcombine.high %v240_v19, %v240_v19  ;;  %v306_v23 = vsel %vm298_vm0, %v240_v19, 0  ;;  %v259_v26 = vcombine.high %v257_v21, %v257_v21  ;;  %v275_v29 = vcombine.high %v267_v15, %v267_v15 }
  0x19   : > { %816 = vmatprep.subr.msk.bf16.mxu0 %vm298_vm0, %v241_v17  ;;  %v318_v30 = vsel %vm298_vm0, %v257_v21, 0  ;;  %v276_v31 = vcombine.high %v274_v24, %v274_v24  ;;  %v291_v34 = vrot.slane %v277_v32, %v232_v7  ;;  %v324_v35 = vsel %vm298_vm0, %v267_v15, 0 }
  0x1a   : > { %362 = vmatpush1.bf16.msra.mxu0 %v300_v18  ;;  %818 = vmatprep.subr.msk.bf16.mxu1 %vm298_vm0, %v242_v22  ;;  %v292_v36 = vcombine.high %v284_v33, %v284_v33  ;;  %v330_v37 = vsel %vm298_vm0, %v274_v24, 0  ;;  %v336_v39 = vsel %vm298_vm0, %v284_v33, 0 }
  0x1b   : > { %820 = vmatprep.subr.msk.bf16.mxu0 %vm298_vm0, %v258_v20  ;;  %403 = vmatpush1.bf16.msra.mxu1 %v306_v23  ;;  %v293_v38 = vcombine.high %v291_v34, %v291_v34  ;;  %v342_v40 = vsel %vm298_vm0, %v291_v34, 0 }
  0x1c   : > { %822 = vmatprep.subr.msk.bf16.mxu1 %vm298_vm0, %v259_v26 }
  0x1d   : > { %817 = vmatmul.mubr.msk.bf16.vlgmr.msra.gmra.mxu0 %vm294_vm1, %v211_v25 }
  0x1e   : > { %444 = vmatpush1.bf16.msra.mxu0 %v312_v28  ;;  %461 = vmatprep.mubr.bf16.mxu0 %v922_v3 }
  0x1f   : > { %819 = vmatmul.mubr.msk.bf16.vlgmr.msra.gmra.mxu1 %vm294_vm1, %v211_v25  ;;  %824 = vmatprep.subr.msk.bf16.mxu0 %vm298_vm0, %v275_v29 }
  0x20   : > { %485 = vmatpush1.bf16.msra.mxu1 %v318_v30  ;;  %502 = vmatprep.mubr.bf16.mxu1 %v922_v3 }
  0x21   : > { %826 = vmatprep.subr.msk.bf16.mxu1 %vm298_vm0, %v276_v31 }
  0x25   : > { %821 = vmatmul.mubr.msk.bf16.vlgmr.msra.gmra.mxu0 %vm294_vm1, %v211_v25 }
  0x26   : > { %526 = vmatpush1.bf16.msra.mxu0 %v324_v35  ;;  %543 = vmatprep.mubr.bf16.mxu0 %v922_v3 }
  0x27   : > { %823 = vmatmul.mubr.msk.bf16.vlgmr.msra.gmra.mxu1 %vm294_vm1, %v211_v25  ;;  %828 = vmatprep.subr.msk.bf16.mxu0 %vm298_vm0, %v292_v36 }
  0x28   : > { %567 = vmatpush1.bf16.msra.mxu1 %v330_v37  ;;  %584 = vmatprep.mubr.bf16.mxu1 %v922_v3 }
  0x29   : > { %830 = vmatprep.subr.msk.bf16.mxu1 %vm298_vm0, %v293_v38 }
  0x2d   : > { %825 = vmatmul.mubr.msk.bf16.vlgmr.msra.gmra.mxu0 %vm294_vm1, %v211_v25 }
  0x2e   : > { %608 = vmatpush1.bf16.msra.mxu0 %v336_v39  ;;  %625 = vmatprep.mubr.bf16.mxu0 %v922_v3 }
  0x2f   : > { %827 = vmatmul.mubr.msk.bf16.vlgmr.msra.gmra.mxu1 %vm294_vm1, %v211_v25 }
  0x30   : > { %649 = vmatpush1.bf16.msra.mxu1 %v342_v40  ;;  %666 = vmatprep.mubr.bf16.mxu1 %v922_v3 }
  0x35   : > { %829 = vmatmul.mubr.msk.bf16.vlgmr.msra.gmra.mxu0 %vm294_vm1, %v211_v25 }
  0x37   : > { %831 = vmatmul.mubr.msk.bf16.vlgmr.msra.gmra.mxu1 %vm294_vm1, %v211_v25 }
  0x8c   : > { %v220_v41 = vpop.permute.xlu0 %219 }
  0xdd   : > { %v381_v42 = vpop.f32.mrf.mxu0 }
  0xde   : > { %v382_v43 = vadd.f32 %v381_v42, %v220_v41 }
  0xdf   : > { %v383_v44 = vpop.f32.mrf.mxu0  ;;  %v422_v45 = vpop.f32.mrf.mxu1 }
  0xe0   : > { %v384_v46 = vadd.f32 %v383_v44, %v220_v41  ;;  %v423_v50 = vadd.f32 %v422_v45, %v220_v41 }
  0xe1   : > { %v385_v47 = vpop.f32.mrf.mxu0  ;;  %v424_v48 = vpop.f32.mrf.mxu1 }
  0xe2   : > { %v691_v49 = vcombine.low %v382_v43, %v384_v46  ;;  %v425_v51 = vadd.f32 %v424_v48, %v220_v41 }
  0xe3   : > { %v386_v52 = vpop.f32.mrf.mxu0  ;;  %v426_v53 = vpop.f32.mrf.mxu1 }
  0xe4   : > { %707 = vst [vmem:[%s1025_s6] sm:$0x77] %v691_v49  ;;  %v692_v54 = vcombine.low %v423_v50, %v425_v51 }
  0xe5   : > { %v427_v55 = vpop.f32.mrf.mxu1  ;;  %v463_v56 = vpop.f32.mrf.mxu0 }
  0xe6   : > { %708 = vst [vmem:[%s1025_s6 + $0x8] sm:$0x77] %v692_v54  ;;  %v464_v57 = vadd.f32 %v463_v56, %v220_v41 }
  0xe7   : > { %v465_v58 = vpop.f32.mrf.mxu0  ;;  %v504_v59 = vpop.f32.mrf.mxu1 }
  0xe8   : > { %v466_v60 = vadd.f32 %v465_v58, %v220_v41  ;;  %v505_v0 = vadd.f32 %v504_v59, %v220_v41 }
  0xe9   : > { %v467_v61 = vpop.f32.mrf.mxu0  ;;  %v506_v62 = vpop.f32.mrf.mxu1 }
  0xea   : > { %v693_v63 = vcombine.low %v464_v57, %v466_v60  ;;  %v507_v1 = vadd.f32 %v506_v62, %v220_v41 }
  0xeb   : > { %v468_v2 = vpop.f32.mrf.mxu0  ;;  %v508_v3 = vpop.f32.mrf.mxu1 }
  0xec   : > { %709 = vst [vmem:[%s1025_s6 + $0x10] sm:$0x77] %v693_v63  ;;  %v694_v4 = vcombine.low %v505_v0, %v507_v1 }
  0xed   : > { %v509_v5 = vpop.f32.mrf.mxu1  ;;  %v545_v6 = vpop.f32.mrf.mxu0 }
  0xee   : > { %710 = vst [vmem:[%s1025_s6 + $0x18] sm:$0x77] %v694_v4  ;;  %v546_v7 = vadd.f32 %v545_v6, %v220_v41 }
  0xef   : > { %v547_v8 = vpop.f32.mrf.mxu0  ;;  %v586_v9 = vpop.f32.mrf.mxu1 }
  0xf0   : > { %v548_v10 = vadd.f32 %v547_v8, %v220_v41  ;;  %v587_v14 = vadd.f32 %v586_v9, %v220_v41 }
  0xf1   : > { %v549_v11 = vpop.f32.mrf.mxu0  ;;  %v588_v12 = vpop.f32.mrf.mxu1 }
  0xf2   : > { %v695_v13 = vcombine.low %v546_v7, %v548_v10  ;;  %v589_v15 = vadd.f32 %v588_v12, %v220_v41 }
  0xf3   : > { %v550_v16 = vpop.f32.mrf.mxu0  ;;  %v590_v17 = vpop.f32.mrf.mxu1 }
  0xf4   : > { %711 = vst [vmem:[%s1025_s6 + $0x20] sm:$0x77] %v695_v13  ;;  %v696_v18 = vcombine.low %v587_v14, %v589_v15 }
  0xf5   : > { %v591_v19 = vpop.f32.mrf.mxu1  ;;  %v627_v20 = vpop.f32.mrf.mxu0 }
  0xf6   : > { %712 = vst [vmem:[%s1025_s6 + $0x28] sm:$0x77] %v696_v18  ;;  %v628_v21 = vadd.f32 %v627_v20, %v220_v41 }
  0xf7   : > { %v629_v22 = vpop.f32.mrf.mxu0  ;;  %v668_v23 = vpop.f32.mrf.mxu1 }
  0xf8   : > { %v630_v24 = vadd.f32 %v629_v22, %v220_v41  ;;  %v669_v28 = vadd.f32 %v668_v23, %v220_v41 }
  0xf9   : > { %v631_v25 = vpop.f32.mrf.mxu0  ;;  %v670_v26 = vpop.f32.mrf.mxu1 }
  0xfa   : > { %v697_v27 = vcombine.low %v628_v21, %v630_v24  ;;  %v671_v29 = vadd.f32 %v670_v26, %v220_v41 }
  0xfb   : > { %v632_v30 = vpop.f32.mrf.mxu0  ;;  %v672_v31 = vpop.f32.mrf.mxu1 }
  0xfc   : > { %713 = vst [vmem:[%s1025_s6 + $0x30] sm:$0x77] %v697_v27  ;;  %v698_v32 = vcombine.low %v669_v28, %v671_v29 }
  0xfd   : > { %v673_v33 = vpop.f32.mrf.mxu1 }
  0xfe   : > { %714 = vst [vmem:[%s1025_s6 + $0x38] sm:$0x77] %v698_v32 }
  0xff PF: > { %s13_s16 = sadd.s32 1, %s919_s16   ;;  %s1054_s12 = smov %s911_s14 }
 0x100   : > { %p10_p7 = scmp.ge.s32.totalorder %s13_s16, 6   ;;  %s1055_s13 = smov %s915_s15 }
 0x101   : > { %s1056_s14 = smov %s1059_s17  ;;  %s1057_s15 = smov %s1063_s18 }
 0x102   :  { %12 = sbr.rel (!%p10_p7) target bundleno = 3 (0x3), region = 62 }

// kernel: model_forward.17
= control target key start
LH: loop header
LB: loop body
LE: loop exit
PB: predicated region body
PF: predicated region fallthrough
CT: control target
= control target key end

     0   :  { %s4323_s12 = smov 0   ;;  %s4325_s13 = smov 0   ;;  %s5539_s0 = inlined_call_operand.vmem [shape: bf16[4,324], index: 0, kind: input, shape index: {}]   ;;  %s5540_s1 = inlined_call_operand.vmem [shape: bf16[2,324,4096], index: 1, kind: input, shape index: {}]   ;;  %s5541_s2 = inlined_call_operand.vmem [shape: f32[4,1], index: 2, kind: input, shape index: {}]   ;;  %s5542_s3 = inlined_call_operand.vmem [shape: bf16[2,4,4096], index: 3, kind: output, shape index: {}]  }
   0x1   :  { %s4327_s14 = smov 0   ;;  %s4329_s15 = smov 0  }
   0x2   :  { %s4331_s16 = smov 0   ;;  %s4333_s17 = smov 0  }
   0x3   :  { %s4335_s18 = smov 0  }
   0x4 LB: > { %s22_s19 = sadd.s32 1, %s4291_s16  ;;  %s25_s20 = sadd.s32 1, %s4295_s17  ;;  %s4299_s18 = sphi %s4335_s18, %s13_s18   ;;  %s4295_s17 = sphi %s4333_s17, %s5549_s17   ;;  %s4291_s16 = sphi %s4331_s16, %s5548_s16   ;;  %s4287_s15 = sphi %s4329_s15, %s5547_s15   ;;  %s4283_s14 = sphi %s4327_s14, %s5546_s14   ;;  %s4279_s13 = sphi %s4325_s13, %s5545_s13   ;;  %s4275_s12 = sphi %s4323_s12, %s5544_s12  }
   0x5   : > { %p23_p0 = scmp.ge.s32.totalorder %s22_s19, 2  ;;  %p62_p1 = scmp.ne.s32.totalorder %s4279_s13, %s4275_s12 }
   0x6   : > { %p63_p2 = scmp.eq.s32.totalorder %s4299_s18, 0  ;;  %s55_s24 = sadd.s32 1, %s4279_s13 }
   0x7   : > { %s5551_s19 = smov (%p23_p0, %s22_s19), 0  ;;  %s5553_s20 = smov (!%p23_p0, %s25_s20), %s4295_s17 }
   0x8   : > { %p64_p3 = por %p63_p2, %p62_p1  ;;  %p27_p4 = scmp.ge.s32.totalorder %s5553_s20, 2 }
   0x9   : > { %s51_s21 = ssub.s32 %s4291_s16, %s5551_s19  ;;  %p3797_p6 = scmp.ge.s32.totalorder %s4299_s18, 4 }
   0xa   : > { %s5555_s20 = smov (%p27_p4, %s5553_s20), 0 }
   0xb   : > { %s50_s22 = ssub.s32 %s4295_s17, %s5555_s20  ;;  %143 = sbr.rel (%p3797_p6) target bundleno = 188 (0xbc), region = 24 }
   0xc   : > { %s52_s23 = sor.u32 %s51_s21, %s50_s22 }
   0xd   : > { %p53_p5 = scmp.eq.s32.totalorder %s52_s23, 0 }
   0xf   : > { %s4374_s25 = scalar_select %p53_p5, %s4279_s13, %s55_s24  }
  0x10   : > { %146 = sbr.rel (!%p64_p3) target bundleno = 188 (0xbc), region = 28  ;;  %s148_s26 = sand.u32 (%p64_p3), 1, %s4279_s13  }
  0x11   : > { %s4166_s27 = smul.u32 (%p64_p3), 2624, %s148_s26  ;;  %s3798_s28 = sshll.u32 (%p64_p3), %s4291_s16, 4 }
  0x12   : > { %s4167_s29 = smul.u32 (%p64_p3), 1312, %s4295_s17 }
  0x13   : > { %s4388_s8 = scalar_lea.vmem (%p64_p3), [#allocation2], %s4166_s27 }
  0x14   : > { %s153_s30 = sadd.s32 (%p64_p3), %s4167_s29, %s3798_s28 }
  0x15   : > { %s3799_s4 = sshll.u32 %s153_s30, 2 }
  0x16   : > { %s4383_s7 = scalar_lea.vmem %s5540_s1, %s3799_s4 }
  0x17   : > { %v168_v0 = vld [vmem:[%s4383_s7] sm:$0xff]  ;;  %v170_v1 = vld [vmem:[%s4383_s7 + $0x8] sm:$0xff]  ;;  %v172_v2 = vld [vmem:[%s4383_s7 + $0x10] sm:$0xff] }
  0x18   : > { %169 = vst [vmem:[%s4388_s8] sm:$0xff] %v168_v0  ;;  %171 = vst [vmem:[%s4388_s8 + $0x8] sm:$0xff] %v170_v1  ;;  %v174_v3 = vld [vmem:[%s4383_s7 + $0x18] sm:$0xff]  ;;  %v176_v4 = vld [vmem:[%s4383_s7 + $0x20] sm:$0xff] }
  0x19   : > { %173 = vst [vmem:[%s4388_s8 + $0x10] sm:$0xff] %v172_v2  ;;  %v178_v5 = vld [vmem:[%s4383_s7 + $0x28] sm:$0xff]  ;;  %175 = vst [vmem:[%s4388_s8 + $0x18] sm:$0xff] %v174_v3  ;;  %v180_v6 = vld [vmem:[%s4383_s7 + $0x30] sm:$0xff] }
  0x1a   : > { %177 = vst [vmem:[%s4388_s8 + $0x20] sm:$0xff] %v176_v4  ;;  %179 = vst [vmem:[%s4388_s8 + $0x28] sm:$0xff] %v178_v5  ;;  %v182_v7 = vld [vmem:[%s4383_s7 + $0x38] sm:$0xff]  ;;  %v184_v8 = vld [vmem:[%s4383_s7 + $0x80] sm:$0xff] }
  0x1b   : > { %181 = vst [vmem:[%s4388_s8 + $0x30] sm:$0xff] %v180_v6  ;;  %183 = vst [vmem:[%s4388_s8 + $0x38] sm:$0xff] %v182_v7  ;;  %v186_v9 = vld [vmem:[%s4383_s7 + $0x88] sm:$0xff]  ;;  %v188_v10 = vld [vmem:[%s4383_s7 + $0x90] sm:$0xff] }
  0x1c   : > { %185 = vst [vmem:[%s4388_s8 + $0x40] sm:$0xff] %v184_v8  ;;  %v190_v11 = vld [vmem:[%s4383_s7 + $0x98] sm:$0xff]  ;;  %187 = vst [vmem:[%s4388_s8 + $0x48] sm:$0xff] %v186_v9  ;;  %v192_v12 = vld [vmem:[%s4383_s7 + $0xa0] sm:$0xff] }
  0x1d   : > { %189 = vst [vmem:[%s4388_s8 + $0x50] sm:$0xff] %v188_v10  ;;  %191 = vst [vmem:[%s4388_s8 + $0x58] sm:$0xff] %v190_v11  ;;  %v194_v13 = vld [vmem:[%s4383_s7 + $0xa8] sm:$0xff]  ;;  %v196_v14 = vld [vmem:[%s4383_s7 + $0xb0] sm:$0xff] }
  0x1e   : > { %193 = vst [vmem:[%s4388_s8 + $0x60] sm:$0xff] %v192_v12  ;;  %195 = vst [vmem:[%s4388_s8 + $0x68] sm:$0xff] %v194_v13  ;;  %v198_v15 = vld [vmem:[%s4383_s7 + $0xb8] sm:$0xff]  ;;  %v200_v16 = vld [vmem:[%s4383_s7 + $0x100] sm:$0xff] }
  0x1f   : > { %197 = vst [vmem:[%s4388_s8 + $0x70] sm:$0xff] %v196_v14  ;;  %v202_v17 = vld [vmem:[%s4383_s7 + $0x108] sm:$0xff]  ;;  %199 = vst [vmem:[%s4388_s8 + $0x78] sm:$0xff] %v198_v15  ;;  %v204_v18 = vld [vmem:[%s4383_s7 + $0x110] sm:$0xff] }
  0x20   : > { %201 = vst [vmem:[%s4388_s8 + $0x80] sm:$0xff] %v200_v16  ;;  %203 = vst [vmem:[%s4388_s8 + $0x88] sm:$0xff] %v202_v17  ;;  %v206_v19 = vld [vmem:[%s4383_s7 + $0x118] sm:$0xff]  ;;  %v208_v20 = vld [vmem:[%s4383_s7 + $0x120] sm:$0xff] }
  0x21   : > { %205 = vst [vmem:[%s4388_s8 + $0x90] sm:$0xff] %v204_v18  ;;  %207 = vst [vmem:[%s4388_s8 + $0x98] sm:$0xff] %v206_v19  ;;  %v210_v21 = vld [vmem:[%s4383_s7 + $0x128] sm:$0xff]  ;;  %v212_v22 = vld [vmem:[%s4383_s7 + $0x130] sm:$0xff] }
  0x22   : > { %209 = vst [vmem:[%s4388_s8 + $0xa0] sm:$0xff] %v208_v20  ;;  %v214_v23 = vld [vmem:[%s4383_s7 + $0x138] sm:$0xff]  ;;  %211 = vst [vmem:[%s4388_s8 + $0xa8] sm:$0xff] %v210_v21  ;;  %v216_v24 = vld [vmem:[%s4383_s7 + $0x180] sm:$0xff] }
  0x23   : > { %213 = vst [vmem:[%s4388_s8 + $0xb0] sm:$0xff] %v212_v22  ;;  %215 = vst [vmem:[%s4388_s8 + $0xb8] sm:$0xff] %v214_v23  ;;  %v218_v25 = vld [vmem:[%s4383_s7 + $0x188] sm:$0xff]  ;;  %v220_v26 = vld [vmem:[%s4383_s7 + $0x190] sm:$0xff] }
  0x24   : > { %217 = vst [vmem:[%s4388_s8 + $0xc0] sm:$0xff] %v216_v24  ;;  %219 = vst [vmem:[%s4388_s8 + $0xc8] sm:$0xff] %v218_v25  ;;  %v222_v27 = vld [vmem:[%s4383_s7 + $0x198] sm:$0xff]  ;;  %v224_v28 = vld [vmem:[%s4383_s7 + $0x1a0] sm:$0xff] }
  0x25   : > { %221 = vst [vmem:[%s4388_s8 + $0xd0] sm:$0xff] %v220_v26  ;;  %v226_v29 = vld [vmem:[%s4383_s7 + $0x1a8] sm:$0xff]  ;;  %223 = vst [vmem:[%s4388_s8 + $0xd8] sm:$0xff] %v222_v27  ;;  %v228_v30 = vld [vmem:[%s4383_s7 + $0x1b0] sm:$0xff] }
  0x26   : > { %225 = vst [vmem:[%s4388_s8 + $0xe0] sm:$0xff] %v224_v28  ;;  %227 = vst [vmem:[%s4388_s8 + $0xe8] sm:$0xff] %v226_v29  ;;  %v230_v31 = vld [vmem:[%s4383_s7 + $0x1b8] sm:$0xff]  ;;  %v232_v32 = vld [vmem:[%s4383_s7 + $0x200] sm:$0xff] }
  0x27   : > { %229 = vst [vmem:[%s4388_s8 + $0xf0] sm:$0xff] %v228_v30  ;;  %231 = vst [vmem:[%s4388_s8 + $0xf8] sm:$0xff] %v230_v31  ;;  %v234_v33 = vld [vmem:[%s4383_s7 + $0x208] sm:$0xff]  ;;  %v236_v34 = vld [vmem:[%s4383_s7 + $0x210] sm:$0xff] }
  0x28   : > { %233 = vst [vmem:[%s4388_s8 + $0x100] sm:$0xff] %v232_v32  ;;  %v238_v35 = vld [vmem:[%s4383_s7 + $0x218] sm:$0xff]  ;;  %235 = vst [vmem:[%s4388_s8 + $0x108] sm:$0xff] %v234_v33  ;;  %v240_v36 = vld [vmem:[%s4383_s7 + $0x220] sm:$0xff] }
  0x29   : > { %237 = vst [vmem:[%s4388_s8 + $0x110] sm:$0xff] %v236_v34  ;;  %239 = vst [vmem:[%s4388_s8 + $0x118] sm:$0xff] %v238_v35  ;;  %v242_v37 = vld [vmem:[%s4383_s7 + $0x228] sm:$0xff]  ;;  %v244_v38 = vld [vmem:[%s4383_s7 + $0x230] sm:$0xff] }
  0x2a   : > { %241 = vst [vmem:[%s4388_s8 + $0x120] sm:$0xff] %v240_v36  ;;  %243 = vst [vmem:[%s4388_s8 + $0x128] sm:$0xff] %v242_v37  ;;  %v246_v39 = vld [vmem:[%s4383_s7 + $0x238] sm:$0xff]  ;;  %v248_v40 = vld [vmem:[%s4383_s7 + $0x280] sm:$0xff] }
  0x2b   : > { %245 = vst [vmem:[%s4388_s8 + $0x130] sm:$0xff] %v244_v38  ;;  %v250_v41 = vld [vmem:[%s4383_s7 + $0x288] sm:$0xff]  ;;  %247 = vst [vmem:[%s4388_s8 + $0x138] sm:$0xff] %v246_v39  ;;  %v252_v42 = vld [vmem:[%s4383_s7 + $0x290] sm:$0xff] }
  0x2c   : > { %249 = vst [vmem:[%s4388_s8 + $0x140] sm:$0xff] %v248_v40  ;;  %251 = vst [vmem:[%s4388_s8 + $0x148] sm:$0xff] %v250_v41  ;;  %v254_v43 = vld [vmem:[%s4383_s7 + $0x298] sm:$0xff]  ;;  %v256_v44 = vld [vmem:[%s4383_s7 + $0x2a0] sm:$0xff] }
  0x2d   : > { %253 = vst [vmem:[%s4388_s8 + $0x150] sm:$0xff] %v252_v42  ;;  %255 = vst [vmem:[%s4388_s8 + $0x158] sm:$0xff] %v254_v43  ;;  %v258_v45 = vld [vmem:[%s4383_s7 + $0x2a8] sm:$0xff]  ;;  %v260_v46 = vld [vmem:[%s4383_s7 + $0x2b0] sm:$0xff] }
  0x2e   : > { %257 = vst [vmem:[%s4388_s8 + $0x160] sm:$0xff] %v256_v44  ;;  %v262_v47 = vld [vmem:[%s4383_s7 + $0x2b8] sm:$0xff]  ;;  %259 = vst [vmem:[%s4388_s8 + $0x168] sm:$0xff] %v258_v45  ;;  %v264_v48 = vld [vmem:[%s4383_s7 + $0x300] sm:$0xff] }
  0x2f   : > { %261 = vst [vmem:[%s4388_s8 + $0x170] sm:$0xff] %v260_v46  ;;  %263 = vst [vmem:[%s4388_s8 + $0x178] sm:$0xff] %v262_v47  ;;  %v266_v49 = vld [vmem:[%s4383_s7 + $0x308] sm:$0xff]  ;;  %v268_v50 = vld [vmem:[%s4383_s7 + $0x310] sm:$0xff] }
  0x30   : > { %265 = vst [vmem:[%s4388_s8 + $0x180] sm:$0xff] %v264_v48  ;;  %267 = vst [vmem:[%s4388_s8 + $0x188] sm:$0xff] %v266_v49  ;;  %v270_v51 = vld [vmem:[%s4383_s7 + $0x318] sm:$0xff]  ;;  %v272_v52 = vld [vmem:[%s4383_s7 + $0x320] sm:$0xff] }
  0x31   : > { %269 = vst [vmem:[%s4388_s8 + $0x190] sm:$0xff] %v268_v50  ;;  %v274_v53 = vld [vmem:[%s4383_s7 + $0x328] sm:$0xff]  ;;  %271 = vst [vmem:[%s4388_s8 + $0x198] sm:$0xff] %v270_v51  ;;  %v276_v54 = vld [vmem:[%s4383_s7 + $0x330] sm:$0xff] }
  0x32   : > { %273 = vst [vmem:[%s4388_s8 + $0x1a0] sm:$0xff] %v272_v52  ;;  %275 = vst [vmem:[%s4388_s8 + $0x1a8] sm:$0xff] %v274_v53  ;;  %v278_v55 = vld [vmem:[%s4383_s7 + $0x338] sm:$0xff]  ;;  %v280_v56 = vld [vmem:[%s4383_s7 + $0x380] sm:$0xff] }
  0x33   : > { %277 = vst [vmem:[%s4388_s8 + $0x1b0] sm:$0xff] %v276_v54  ;;  %279 = vst [vmem:[%s4388_s8 + $0x1b8] sm:$0xff] %v278_v55  ;;  %v282_v57 = vld [vmem:[%s4383_s7 + $0x388] sm:$0xff]  ;;  %v284_v58 = vld [vmem:[%s4383_s7 + $0x390] sm:$0xff] }
  0x34   : > { %281 = vst [vmem:[%s4388_s8 + $0x1c0] sm:$0xff] %v280_v56  ;;  %v286_v59 = vld [vmem:[%s4383_s7 + $0x398] sm:$0xff]  ;;  %283 = vst [vmem:[%s4388_s8 + $0x1c8] sm:$0xff] %v282_v57  ;;  %v288_v60 = vld [vmem:[%s4383_s7 + $0x3a0] sm:$0xff] }
  0x35   : > { %285 = vst [vmem:[%s4388_s8 + $0x1d0] sm:$0xff] %v284_v58  ;;  %287 = vst [vmem:[%s4388_s8 + $0x1d8] sm:$0xff] %v286_v59  ;;  %v290_v61 = vld [vmem:[%s4383_s7 + $0x3a8] sm:$0xff]  ;;  %v292_v62 = vld [vmem:[%s4383_s7 + $0x3b0] sm:$0xff] }
  0x36   : > { %289 = vst [vmem:[%s4388_s8 + $0x1e0] sm:$0xff] %v288_v60  ;;  %291 = vst [vmem:[%s4388_s8 + $0x1e8] sm:$0xff] %v290_v61  ;;  %v294_v63 = vld [vmem:[%s4383_s7 + $0x3b8] sm:$0xff]  ;;  %v296_v0 = vld [vmem:[%s4383_s7 + $0x400] sm:$0xff] }
  0x37   : > { %293 = vst [vmem:[%s4388_s8 + $0x1f0] sm:$0xff] %v292_v62  ;;  %v298_v1 = vld [vmem:[%s4383_s7 + $0x408] sm:$0xff]  ;;  %295 = vst [vmem:[%s4388_s8 + $0x1f8] sm:$0xff] %v294_v63  ;;  %v300_v2 = vld [vmem:[%s4383_s7 + $0x410] sm:$0xff] }
  0x38   : > { %297 = vst [vmem:[%s4388_s8 + $0x200] sm:$0xff] %v296_v0  ;;  %299 = vst [vmem:[%s4388_s8 + $0x208] sm:$0xff] %v298_v1  ;;  %v302_v3 = vld [vmem:[%s4383_s7 + $0x418] sm:$0xff]  ;;  %v304_v4 = vld [vmem:[%s4383_s7 + $0x420] sm:$0xff] }
  0x39   : > { %301 = vst [vmem:[%s4388_s8 + $0x210] sm:$0xff] %v300_v2  ;;  %303 = vst [vmem:[%s4388_s8 + $0x218] sm:$0xff] %v302_v3  ;;  %v306_v5 = vld [vmem:[%s4383_s7 + $0x428] sm:$0xff]  ;;  %v308_v6 = vld [vmem:[%s4383_s7 + $0x430] sm:$0xff] }
  0x3a   : > { %305 = vst [vmem:[%s4388_s8 + $0x220] sm:$0xff] %v304_v4  ;;  %v310_v7 = vld [vmem:[%s4383_s7 + $0x438] sm:$0xff]  ;;  %307 = vst [vmem:[%s4388_s8 + $0x228] sm:$0xff] %v306_v5  ;;  %v312_v8 = vld [vmem:[%s4383_s7 + $0x480] sm:$0xff] }
  0x3b   : > { %309 = vst [vmem:[%s4388_s8 + $0x230] sm:$0xff] %v308_v6  ;;  %311 = vst [vmem:[%s4388_s8 + $0x238] sm:$0xff] %v310_v7  ;;  %v314_v9 = vld [vmem:[%s4383_s7 + $0x488] sm:$0xff]  ;;  %v316_v10 = vld [vmem:[%s4383_s7 + $0x490] sm:$0xff] }
  0x3c   : > { %313 = vst [vmem:[%s4388_s8 + $0x240] sm:$0xff] %v312_v8  ;;  %315 = vst [vmem:[%s4388_s8 + $0x248] sm:$0xff] %v314_v9  ;;  %v318_v11 = vld [vmem:[%s4383_s7 + $0x498] sm:$0xff]  ;;  %v320_v12 = vld [vmem:[%s4383_s7 + $0x4a0] sm:$0xff] }
  0x3d   : > { %317 = vst [vmem:[%s4388_s8 + $0x250] sm:$0xff] %v316_v10  ;;  %v322_v13 = vld [vmem:[%s4383_s7 + $0x4a8] sm:$0xff]  ;;  %319 = vst [vmem:[%s4388_s8 + $0x258] sm:$0xff] %v318_v11  ;;  %v324_v14 = vld [vmem:[%s4383_s7 + $0x4b0] sm:$0xff] }
  0x3e   : > { %321 = vst [vmem:[%s4388_s8 + $0x260] sm:$0xff] %v320_v12  ;;  %323 = vst [vmem:[%s4388_s8 + $0x268] sm:$0xff] %v322_v13  ;;  %v326_v15 = vld [vmem:[%s4383_s7 + $0x4b8] sm:$0xff]  ;;  %v328_v16 = vld [vmem:[%s4383_s7 + $0x500] sm:$0xff] }
  0x3f   : > { %325 = vst [vmem:[%s4388_s8 + $0x270] sm:$0xff] %v324_v14  ;;  %327 = vst [vmem:[%s4388_s8 + $0x278] sm:$0xff] %v326_v15  ;;  %v330_v17 = vld [vmem:[%s4383_s7 + $0x508] sm:$0xff]  ;;  %v332_v18 = vld [vmem:[%s4383_s7 + $0x510] sm:$0xff] }
  0x40   : > { %329 = vst [vmem:[%s4388_s8 + $0x280] sm:$0xff] %v328_v16  ;;  %v334_v19 = vld [vmem:[%s4383_s7 + $0x518] sm:$0xff]  ;;  %331 = vst [vmem:[%s4388_s8 + $0x288] sm:$0xff] %v330_v17  ;;  %v336_v20 = vld [vmem:[%s4383_s7 + $0x520] sm:$0xff] }
  0x41   : > { %333 = vst [vmem:[%s4388_s8 + $0x290] sm:$0xff] %v332_v18  ;;  %335 = vst [vmem:[%s4388_s8 + $0x298] sm:$0xff] %v334_v19  ;;  %v338_v21 = vld [vmem:[%s4383_s7 + $0x528] sm:$0xff]  ;;  %v340_v22 = vld [vmem:[%s4383_s7 + $0x530] sm:$0xff] }
  0x42   : > { %337 = vst [vmem:[%s4388_s8 + $0x2a0] sm:$0xff] %v336_v20  ;;  %339 = vst [vmem:[%s4388_s8 + $0x2a8] sm:$0xff] %v338_v21  ;;  %v342_v23 = vld [vmem:[%s4383_s7 + $0x538] sm:$0xff]  ;;  %v344_v24 = vld [vmem:[%s4383_s7 + $0x580] sm:$0xff] }
  0x43   : > { %341 = vst [vmem:[%s4388_s8 + $0x2b0] sm:$0xff] %v340_v22  ;;  %v346_v25 = vld [vmem:[%s4383_s7 + $0x588] sm:$0xff]  ;;  %343 = vst [vmem:[%s4388_s8 + $0x2b8] sm:$0xff] %v342_v23  ;;  %v348_v26 = vld [vmem:[%s4383_s7 + $0x590] sm:$0xff] }
  0x44   : > { %345 = vst [vmem:[%s4388_s8 + $0x2c0] sm:$0xff] %v344_v24  ;;  %347 = vst [vmem:[%s4388_s8 + $0x2c8] sm:$0xff] %v346_v25  ;;  %v350_v27 = vld [vmem:[%s4383_s7 + $0x598] sm:$0xff]  ;;  %v352_v28 = vld [vmem:[%s4383_s7 + $0x5a0] sm:$0xff] }
  0x45   : > { %349 = vst [vmem:[%s4388_s8 + $0x2d0] sm:$0xff] %v348_v26  ;;  %351 = vst [vmem:[%s4388_s8 + $0x2d8] sm:$0xff] %v350_v27  ;;  %v354_v29 = vld [vmem:[%s4383_s7 + $0x5a8] sm:$0xff]  ;;  %v356_v30 = vld [vmem:[%s4383_s7 + $0x5b0] sm:$0xff] }
  0x46   : > { %353 = vst [vmem:[%s4388_s8 + $0x2e0] sm:$0xff] %v352_v28  ;;  %v358_v31 = vld [vmem:[%s4383_s7 + $0x5b8] sm:$0xff]  ;;  %355 = vst [vmem:[%s4388_s8 + $0x2e8] sm:$0xff] %v354_v29  ;;  %v360_v32 = vld [vmem:[%s4383_s7 + $0x600] sm:$0xff] }
  0x47   : > { %357 = vst [vmem:[%s4388_s8 + $0x2f0] sm:$0xff] %v356_v30  ;;  %359 = vst [vmem:[%s4388_s8 + $0x2f8] sm:$0xff] %v358_v31  ;;  %v362_v33 = vld [vmem:[%s4383_s7 + $0x608] sm:$0xff]  ;;  %v364_v34 = vld [vmem:[%s4383_s7 + $0x610] sm:$0xff] }
  0x48   : > { %361 = vst [vmem:[%s4388_s8 + $0x300] sm:$0xff] %v360_v32  ;;  %363 = vst [vmem:[%s4388_s8 + $0x308] sm:$0xff] %v362_v33  ;;  %v366_v35 = vld [vmem:[%s4383_s7 + $0x618] sm:$0xff]  ;;  %v368_v36 = vld [vmem:[%s4383_s7 + $0x620] sm:$0xff] }
  0x49   : > { %365 = vst [vmem:[%s4388_s8 + $0x310] sm:$0xff] %v364_v34  ;;  %v370_v37 = vld [vmem:[%s4383_s7 + $0x628] sm:$0xff]  ;;  %367 = vst [vmem:[%s4388_s8 + $0x318] sm:$0xff] %v366_v35  ;;  %v372_v38 = vld [vmem:[%s4383_s7 + $0x630] sm:$0xff] }
  0x4a   : > { %369 = vst [vmem:[%s4388_s8 + $0x320] sm:$0xff] %v368_v36  ;;  %371 = vst [vmem:[%s4388_s8 + $0x328] sm:$0xff] %v370_v37  ;;  %v374_v39 = vld [vmem:[%s4383_s7 + $0x638] sm:$0xff]  ;;  %v376_v40 = vld [vmem:[%s4383_s7 + $0x680] sm:$0xff] }
  0x4b   : > { %373 = vst [vmem:[%s4388_s8 + $0x330] sm:$0xff] %v372_v38  ;;  %375 = vst [vmem:[%s4388_s8 + $0x338] sm:$0xff] %v374_v39  ;;  %v378_v41 = vld [vmem:[%s4383_s7 + $0x688] sm:$0xff]  ;;  %v380_v42 = vld [vmem:[%s4383_s7 + $0x690] sm:$0xff] }
  0x4c   : > { %377 = vst [vmem:[%s4388_s8 + $0x340] sm:$0xff] %v376_v40  ;;  %v382_v43 = vld [vmem:[%s4383_s7 + $0x698] sm:$0xff]  ;;  %379 = vst [vmem:[%s4388_s8 + $0x348] sm:$0xff] %v378_v41  ;;  %v384_v44 = vld [vmem:[%s4383_s7 + $0x6a0] sm:$0xff] }
  0x4d   : > { %381 = vst [vmem:[%s4388_s8 + $0x350] sm:$0xff] %v380_v42  ;;  %383 = vst [vmem:[%s4388_s8 + $0x358] sm:$0xff] %v382_v43  ;;  %v386_v45 = vld [vmem:[%s4383_s7 + $0x6a8] sm:$0xff]  ;;  %v388_v46 = vld [vmem:[%s4383_s7 + $0x6b0] sm:$0xff] }
  0x4e   : > { %385 = vst [vmem:[%s4388_s8 + $0x360] sm:$0xff] %v384_v44  ;;  %387 = vst [vmem:[%s4388_s8 + $0x368] sm:$0xff] %v386_v45  ;;  %v390_v47 = vld [vmem:[%s4383_s7 + $0x6b8] sm:$0xff]  ;;  %v392_v48 = vld [vmem:[%s4383_s7 + $0x700] sm:$0xff] }
  0x4f   : > { %389 = vst [vmem:[%s4388_s8 + $0x370] sm:$0xff] %v388_v46  ;;  %v394_v49 = vld [vmem:[%s4383_s7 + $0x708] sm:$0xff]  ;;  %391 = vst [vmem:[%s4388_s8 + $0x378] sm:$0xff] %v390_v47  ;;  %v396_v50 = vld [vmem:[%s4383_s7 + $0x710] sm:$0xff] }
  0x50   : > { %393 = vst [vmem:[%s4388_s8 + $0x380] sm:$0xff] %v392_v48  ;;  %395 = vst [vmem:[%s4388_s8 + $0x388] sm:$0xff] %v394_v49  ;;  %v398_v51 = vld [vmem:[%s4383_s7 + $0x718] sm:$0xff]  ;;  %v400_v52 = vld [vmem:[%s4383_s7 + $0x720] sm:$0xff] }
  0x51   : > { %397 = vst [vmem:[%s4388_s8 + $0x390] sm:$0xff] %v396_v50  ;;  %399 = vst [vmem:[%s4388_s8 + $0x398] sm:$0xff] %v398_v51  ;;  %v402_v53 = vld [vmem:[%s4383_s7 + $0x728] sm:$0xff]  ;;  %v404_v54 = vld [vmem:[%s4383_s7 + $0x730] sm:$0xff] }
  0x52   : > { %401 = vst [vmem:[%s4388_s8 + $0x3a0] sm:$0xff] %v400_v52  ;;  %v406_v55 = vld [vmem:[%s4383_s7 + $0x738] sm:$0xff]  ;;  %403 = vst [vmem:[%s4388_s8 + $0x3a8] sm:$0xff] %v402_v53  ;;  %v408_v56 = vld [vmem:[%s4383_s7 + $0x780] sm:$0xff] }
  0x53   : > { %405 = vst [vmem:[%s4388_s8 + $0x3b0] sm:$0xff] %v404_v54  ;;  %407 = vst [vmem:[%s4388_s8 + $0x3b8] sm:$0xff] %v406_v55  ;;  %v410_v57 = vld [vmem:[%s4383_s7 + $0x788] sm:$0xff]  ;;  %v412_v58 = vld [vmem:[%s4383_s7 + $0x790] sm:$0xff] }
  0x54   : > { %409 = vst [vmem:[%s4388_s8 + $0x3c0] sm:$0xff] %v408_v56  ;;  %411 = vst [vmem:[%s4388_s8 + $0x3c8] sm:$0xff] %v410_v57  ;;  %v414_v59 = vld [vmem:[%s4383_s7 + $0x798] sm:$0xff]  ;;  %v416_v60 = vld [vmem:[%s4383_s7 + $0x7a0] sm:$0xff] }
  0x55   : > { %413 = vst [vmem:[%s4388_s8 + $0x3d0] sm:$0xff] %v412_v58  ;;  %v418_v61 = vld [vmem:[%s4383_s7 + $0x7a8] sm:$0xff]  ;;  %415 = vst [vmem:[%s4388_s8 + $0x3d8] sm:$0xff] %v414_v59  ;;  %v420_v62 = vld [vmem:[%s4383_s7 + $0x7b0] sm:$0xff] }
  0x56   : > { %417 = vst [vmem:[%s4388_s8 + $0x3e0] sm:$0xff] %v416_v60  ;;  %419 = vst [vmem:[%s4388_s8 + $0x3e8] sm:$0xff] %v418_v61  ;;  %v422_v63 = vld [vmem:[%s4383_s7 + $0x7b8] sm:$0xff]  ;;  %v424_v0 = vld [vmem:[%s4383_s7 + $0x800] sm:$0xff] }
  0x57   : > { %421 = vst [vmem:[%s4388_s8 + $0x3f0] sm:$0xff] %v420_v62  ;;  %423 = vst [vmem:[%s4388_s8 + $0x3f8] sm:$0xff] %v422_v63  ;;  %v426_v1 = vld [vmem:[%s4383_s7 + $0x808] sm:$0xff]  ;;  %v428_v2 = vld [vmem:[%s4383_s7 + $0x810] sm:$0xff] }
  0x58   : > { %425 = vst [vmem:[%s4388_s8 + $0x400] sm:$0xff] %v424_v0  ;;  %v430_v3 = vld [vmem:[%s4383_s7 + $0x818] sm:$0xff]  ;;  %427 = vst [vmem:[%s4388_s8 + $0x408] sm:$0xff] %v426_v1  ;;  %v432_v4 = vld [vmem:[%s4383_s7 + $0x820] sm:$0xff] }
  0x59   : > { %429 = vst [vmem:[%s4388_s8 + $0x410] sm:$0xff] %v428_v2  ;;  %431 = vst [vmem:[%s4388_s8 + $0x418] sm:$0xff] %v430_v3  ;;  %v434_v5 = vld [vmem:[%s4383_s7 + $0x828] sm:$0xff]  ;;  %v436_v6 = vld [vmem:[%s4383_s7 + $0x830] sm:$0xff] }
  0x5a   : > { %433 = vst [vmem:[%s4388_s8 + $0x420] sm:$0xff] %v432_v4  ;;  %435 = vst [vmem:[%s4388_s8 + $0x428] sm:$0xff] %v434_v5  ;;  %v438_v7 = vld [vmem:[%s4383_s7 + $0x838] sm:$0xff]  ;;  %v440_v8 = vld [vmem:[%s4383_s7 + $0x880] sm:$0xff] }
  0x5b   : > { %437 = vst [vmem:[%s4388_s8 + $0x430] sm:$0xff] %v436_v6  ;;  %v442_v9 = vld [vmem:[%s4383_s7 + $0x888] sm:$0xff]  ;;  %439 = vst [vmem:[%s4388_s8 + $0x438] sm:$0xff] %v438_v7  ;;  %v444_v10 = vld [vmem:[%s4383_s7 + $0x890] sm:$0xff] }
  0x5c   : > { %441 = vst [vmem:[%s4388_s8 + $0x440] sm:$0xff] %v440_v8  ;;  %443 = vst [vmem:[%s4388_s8 + $0x448] sm:$0xff] %v442_v9  ;;  %v446_v11 = vld [vmem:[%s4383_s7 + $0x898] sm:$0xff]  ;;  %v448_v12 = vld [vmem:[%s4383_s7 + $0x8a0] sm:$0xff] }
  0x5d   : > { %445 = vst [vmem:[%s4388_s8 + $0x450] sm:$0xff] %v444_v10  ;;  %447 = vst [vmem:[%s4388_s8 + $0x458] sm:$0xff] %v446_v11  ;;  %v450_v13 = vld [vmem:[%s4383_s7 + $0x8a8] sm:$0xff]  ;;  %v452_v14 = vld [vmem:[%s4383_s7 + $0x8b0] sm:$0xff] }
  0x5e   : > { %449 = vst [vmem:[%s4388_s8 + $0x460] sm:$0xff] %v448_v12  ;;  %v454_v15 = vld [vmem:[%s4383_s7 + $0x8b8] sm:$0xff]  ;;  %451 = vst [vmem:[%s4388_s8 + $0x468] sm:$0xff] %v450_v13  ;;  %v456_v16 = vld [vmem:[%s4383_s7 + $0x900] sm:$0xff] }
  0x5f   : > { %453 = vst [vmem:[%s4388_s8 + $0x470] sm:$0xff] %v452_v14  ;;  %455 = vst [vmem:[%s4388_s8 + $0x478] sm:$0xff] %v454_v15  ;;  %v458_v17 = vld [vmem:[%s4383_s7 + $0x908] sm:$0xff]  ;;  %v460_v18 = vld [vmem:[%s4383_s7 + $0x910] sm:$0xff] }
  0x60   : > { %457 = vst [vmem:[%s4388_s8 + $0x480] sm:$0xff] %v456_v16  ;;  %459 = vst [vmem:[%s4388_s8 + $0x488] sm:$0xff] %v458_v17  ;;  %v462_v19 = vld [vmem:[%s4383_s7 + $0x918] sm:$0xff]  ;;  %v464_v20 = vld [vmem:[%s4383_s7 + $0x920] sm:$0xff] }
  0x61   : > { %461 = vst [vmem:[%s4388_s8 + $0x490] sm:$0xff] %v460_v18  ;;  %v466_v21 = vld [vmem:[%s4383_s7 + $0x928] sm:$0xff]  ;;  %463 = vst [vmem:[%s4388_s8 + $0x498] sm:$0xff] %v462_v19  ;;  %v468_v22 = vld [vmem:[%s4383_s7 + $0x930] sm:$0xff] }
  0x62   : > { %465 = vst [vmem:[%s4388_s8 + $0x4a0] sm:$0xff] %v464_v20  ;;  %467 = vst [vmem:[%s4388_s8 + $0x4a8] sm:$0xff] %v466_v21  ;;  %v470_v23 = vld [vmem:[%s4383_s7 + $0x938] sm:$0xff]  ;;  %v472_v24 = vld [vmem:[%s4383_s7 + $0x980] sm:$0xff] }
  0x63   : > { %469 = vst [vmem:[%s4388_s8 + $0x4b0] sm:$0xff] %v468_v22  ;;  %471 = vst [vmem:[%s4388_s8 + $0x4b8] sm:$0xff] %v470_v23  ;;  %v474_v25 = vld [vmem:[%s4383_s7 + $0x988] sm:$0xff]  ;;  %v476_v26 = vld [vmem:[%s4383_s7 + $0x990] sm:$0xff] }
  0x64   : > { %473 = vst [vmem:[%s4388_s8 + $0x4c0] sm:$0xff] %v472_v24  ;;  %v478_v27 = vld [vmem:[%s4383_s7 + $0x998] sm:$0xff]  ;;  %475 = vst [vmem:[%s4388_s8 + $0x4c8] sm:$0xff] %v474_v25  ;;  %v480_v28 = vld [vmem:[%s4383_s7 + $0x9a0] sm:$0xff] }
  0x65   : > { %477 = vst [vmem:[%s4388_s8 + $0x4d0] sm:$0xff] %v476_v26  ;;  %479 = vst [vmem:[%s4388_s8 + $0x4d8] sm:$0xff] %v478_v27  ;;  %v482_v29 = vld [vmem:[%s4383_s7 + $0x9a8] sm:$0xff]  ;;  %v484_v30 = vld [vmem:[%s4383_s7 + $0x9b0] sm:$0xff] }
  0x66   : > { %481 = vst [vmem:[%s4388_s8 + $0x4e0] sm:$0xff] %v480_v28  ;;  %483 = vst [vmem:[%s4388_s8 + $0x4e8] sm:$0xff] %v482_v29  ;;  %v486_v31 = vld [vmem:[%s4383_s7 + $0x9b8] sm:$0xff]  ;;  %v488_v32 = vld [vmem:[%s4383_s7 + $0xa00] sm:$0xff] }
  0x67   : > { %485 = vst [vmem:[%s4388_s8 + $0x4f0] sm:$0xff] %v484_v30  ;;  %v490_v33 = vld [vmem:[%s4383_s7 + $0xa08] sm:$0xff]  ;;  %487 = vst [vmem:[%s4388_s8 + $0x4f8] sm:$0xff] %v486_v31  ;;  %v492_v34 = vld [vmem:[%s4383_s7 + $0xa10] sm:$0xff] }
  0x68   : > { %489 = vst [vmem:[%s4388_s8 + $0x500] sm:$0xff] %v488_v32  ;;  %491 = vst [vmem:[%s4388_s8 + $0x508] sm:$0xff] %v490_v33  ;;  %v494_v35 = vld [vmem:[%s4383_s7 + $0xa18] sm:$0xff]  ;;  %v496_v36 = vld [vmem:[%s4383_s7 + $0xa20] sm:$0xff] }
  0x69   : > { %493 = vst [vmem:[%s4388_s8 + $0x510] sm:$0xff] %v492_v34  ;;  %495 = vst [vmem:[%s4388_s8 + $0x518] sm:$0xff] %v494_v35  ;;  %v498_v37 = vld [vmem:[%s4383_s7 + $0xa28] sm:$0xff]  ;;  %v500_v38 = vld [vmem:[%s4383_s7 + $0xa30] sm:$0xff] }
  0x6a   : > { %497 = vst [vmem:[%s4388_s8 + $0x520] sm:$0xff] %v496_v36  ;;  %v502_v39 = vld [vmem:[%s4383_s7 + $0xa38] sm:$0xff]  ;;  %499 = vst [vmem:[%s4388_s8 + $0x528] sm:$0xff] %v498_v37  ;;  %v504_v40 = vld [vmem:[%s4383_s7 + $0xa80] sm:$0xff] }
  0x6b   : > { %501 = vst [vmem:[%s4388_s8 + $0x530] sm:$0xff] %v500_v38  ;;  %503 = vst [vmem:[%s4388_s8 + $0x538] sm:$0xff] %v502_v39  ;;  %v506_v41 = vld [vmem:[%s4383_s7 + $0xa88] sm:$0xff]  ;;  %v508_v42 = vld [vmem:[%s4383_s7 + $0xa90] sm:$0xff] }
  0x6c   : > { %505 = vst [vmem:[%s4388_s8 + $0x540] sm:$0xff] %v504_v40  ;;  %507 = vst [vmem:[%s4388_s8 + $0x548] sm:$0xff] %v506_v41  ;;  %v510_v43 = vld [vmem:[%s4383_s7 + $0xa98] sm:$0xff]  ;;  %v512_v44 = vld [vmem:[%s4383_s7 + $0xaa0] sm:$0xff] }
  0x6d   : > { %509 = vst [vmem:[%s4388_s8 + $0x550] sm:$0xff] %v508_v42  ;;  %v514_v45 = vld [vmem:[%s4383_s7 + $0xaa8] sm:$0xff]  ;;  %511 = vst [vmem:[%s4388_s8 + $0x558] sm:$0xff] %v510_v43  ;;  %v516_v46 = vld [vmem:[%s4383_s7 + $0xab0] sm:$0xff] }
  0x6e   : > { %513 = vst [vmem:[%s4388_s8 + $0x560] sm:$0xff] %v512_v44  ;;  %515 = vst [vmem:[%s4388_s8 + $0x568] sm:$0xff] %v514_v45  ;;  %v518_v47 = vld [vmem:[%s4383_s7 + $0xab8] sm:$0xff]  ;;  %v520_v48 = vld [vmem:[%s4383_s7 + $0xb00] sm:$0xff] }
  0x6f   : > { %517 = vst [vmem:[%s4388_s8 + $0x570] sm:$0xff] %v516_v46  ;;  %519 = vst [vmem:[%s4388_s8 + $0x578] sm:$0xff] %v518_v47  ;;  %v522_v49 = vld [vmem:[%s4383_s7 + $0xb08] sm:$0xff]  ;;  %v524_v50 = vld [vmem:[%s4383_s7 + $0xb10] sm:$0xff] }
  0x70   : > { %521 = vst [vmem:[%s4388_s8 + $0x580] sm:$0xff] %v520_v48  ;;  %v526_v51 = vld [vmem:[%s4383_s7 + $0xb18] sm:$0xff]  ;;  %523 = vst [vmem:[%s4388_s8 + $0x588] sm:$0xff] %v522_v49  ;;  %v528_v52 = vld [vmem:[%s4383_s7 + $0xb20] sm:$0xff] }
  0x71   : > { %525 = vst [vmem:[%s4388_s8 + $0x590] sm:$0xff] %v524_v50  ;;  %527 = vst [vmem:[%s4388_s8 + $0x598] sm:$0xff] %v526_v51  ;;  %v530_v53 = vld [vmem:[%s4383_s7 + $0xb28] sm:$0xff]  ;;  %v532_v54 = vld [vmem:[%s4383_s7 + $0xb30] sm:$0xff] }
  0x72   : > { %529 = vst [vmem:[%s4388_s8 + $0x5a0] sm:$0xff] %v528_v52  ;;  %531 = vst [vmem:[%s4388_s8 + $0x5a8] sm:$0xff] %v530_v53  ;;  %v534_v55 = vld [vmem:[%s4383_s7 + $0xb38] sm:$0xff]  ;;  %v536_v56 = vld [vmem:[%s4383_s7 + $0xb80] sm:$0xff] }
  0x73   : > { %533 = vst [vmem:[%s4388_s8 + $0x5b0] sm:$0xff] %v532_v54  ;;  %v538_v57 = vld [vmem:[%s4383_s7 + $0xb88] sm:$0xff]  ;;  %535 = vst [vmem:[%s4388_s8 + $0x5b8] sm:$0xff] %v534_v55  ;;  %v540_v58 = vld [vmem:[%s4383_s7 + $0xb90] sm:$0xff] }
  0x74   : > { %537 = vst [vmem:[%s4388_s8 + $0x5c0] sm:$0xff] %v536_v56  ;;  %539 = vst [vmem:[%s4388_s8 + $0x5c8] sm:$0xff] %v538_v57  ;;  %v542_v59 = vld [vmem:[%s4383_s7 + $0xb98] sm:$0xff]  ;;  %v544_v60 = vld [vmem:[%s4383_s7 + $0xba0] sm:$0xff] }
  0x75   : > { %541 = vst [vmem:[%s4388_s8 + $0x5d0] sm:$0xff] %v540_v58  ;;  %543 = vst [vmem:[%s4388_s8 + $0x5d8] sm:$0xff] %v542_v59  ;;  %v546_v61 = vld [vmem:[%s4383_s7 + $0xba8] sm:$0xff]  ;;  %v548_v62 = vld [vmem:[%s4383_s7 + $0xbb0] sm:$0xff] }
  0x76   : > { %545 = vst [vmem:[%s4388_s8 + $0x5e0] sm:$0xff] %v544_v60  ;;  %v550_v63 = vld [vmem:[%s4383_s7 + $0xbb8] sm:$0xff]  ;;  %547 = vst [vmem:[%s4388_s8 + $0x5e8] sm:$0xff] %v546_v61  ;;  %v552_v0 = vld [vmem:[%s4383_s7 + $0xc00] sm:$0xff] }
  0x77   : > { %549 = vst [vmem:[%s4388_s8 + $0x5f0] sm:$0xff] %v548_v62  ;;  %551 = vst [vmem:[%s4388_s8 + $0x5f8] sm:$0xff] %v550_v63  ;;  %v554_v1 = vld [vmem:[%s4383_s7 + $0xc08] sm:$0xff]  ;;  %v556_v2 = vld [vmem:[%s4383_s7 + $0xc10] sm:$0xff] }
  0x78   : > { %553 = vst [vmem:[%s4388_s8 + $0x600] sm:$0xff] %v552_v0  ;;  %555 = vst [vmem:[%s4388_s8 + $0x608] sm:$0xff] %v554_v1  ;;  %v558_v3 = vld [vmem:[%s4383_s7 + $0xc18] sm:$0xff]  ;;  %v560_v4 = vld [vmem:[%s4383_s7 + $0xc20] sm:$0xff] }
  0x79   : > { %557 = vst [vmem:[%s4388_s8 + $0x610] sm:$0xff] %v556_v2  ;;  %v562_v5 = vld [vmem:[%s4383_s7 + $0xc28] sm:$0xff]  ;;  %559 = vst [vmem:[%s4388_s8 + $0x618] sm:$0xff] %v558_v3  ;;  %v564_v6 = vld [vmem:[%s4383_s7 + $0xc30] sm:$0xff] }
  0x7a   : > { %561 = vst [vmem:[%s4388_s8 + $0x620] sm:$0xff] %v560_v4  ;;  %563 = vst [vmem:[%s4388_s8 + $0x628] sm:$0xff] %v562_v5  ;;  %v566_v7 = vld [vmem:[%s4383_s7 + $0xc38] sm:$0xff]  ;;  %v568_v8 = vld [vmem:[%s4383_s7 + $0xc80] sm:$0xff] }
  0x7b   : > { %565 = vst [vmem:[%s4388_s8 + $0x630] sm:$0xff] %v564_v6  ;;  %567 = vst [vmem:[%s4388_s8 + $0x638] sm:$0xff] %v566_v7  ;;  %v570_v9 = vld [vmem:[%s4383_s7 + $0xc88] sm:$0xff]  ;;  %v572_v10 = vld [vmem:[%s4383_s7 + $0xc90] sm:$0xff] }
  0x7c   : > { %569 = vst [vmem:[%s4388_s8 + $0x640] sm:$0xff] %v568_v8  ;;  %v574_v11 = vld [vmem:[%s4383_s7 + $0xc98] sm:$0xff]  ;;  %571 = vst [vmem:[%s4388_s8 + $0x648] sm:$0xff] %v570_v9  ;;  %v576_v12 = vld [vmem:[%s4383_s7 + $0xca0] sm:$0xff] }
  0x7d   : > { %573 = vst [vmem:[%s4388_s8 + $0x650] sm:$0xff] %v572_v10  ;;  %575 = vst [vmem:[%s4388_s8 + $0x658] sm:$0xff] %v574_v11  ;;  %v578_v13 = vld [vmem:[%s4383_s7 + $0xca8] sm:$0xff]  ;;  %v580_v14 = vld [vmem:[%s4383_s7 + $0xcb0] sm:$0xff] }
  0x7e   : > { %577 = vst [vmem:[%s4388_s8 + $0x660] sm:$0xff] %v576_v12  ;;  %579 = vst [vmem:[%s4388_s8 + $0x668] sm:$0xff] %v578_v13  ;;  %v582_v15 = vld [vmem:[%s4383_s7 + $0xcb8] sm:$0xff]  ;;  %v584_v16 = vld [vmem:[%s4383_s7 + $0xd00] sm:$0xff] }
  0x7f   : > { %581 = vst [vmem:[%s4388_s8 + $0x670] sm:$0xff] %v580_v14  ;;  %v586_v17 = vld [vmem:[%s4383_s7 + $0xd08] sm:$0xff]  ;;  %583 = vst [vmem:[%s4388_s8 + $0x678] sm:$0xff] %v582_v15  ;;  %v588_v18 = vld [vmem:[%s4383_s7 + $0xd10] sm:$0xff] }
  0x80   : > { %585 = vst [vmem:[%s4388_s8 + $0x680] sm:$0xff] %v584_v16  ;;  %587 = vst [vmem:[%s4388_s8 + $0x688] sm:$0xff] %v586_v17  ;;  %v590_v19 = vld [vmem:[%s4383_s7 + $0xd18] sm:$0xff]  ;;  %v592_v20 = vld [vmem:[%s4383_s7 + $0xd20] sm:$0xff] }
  0x81   : > { %589 = vst [vmem:[%s4388_s8 + $0x690] sm:$0xff] %v588_v18  ;;  %591 = vst [vmem:[%s4388_s8 + $0x698] sm:$0xff] %v590_v19  ;;  %v594_v21 = vld [vmem:[%s4383_s7 + $0xd28] sm:$0xff]  ;;  %v596_v22 = vld [vmem:[%s4383_s7 + $0xd30] sm:$0xff] }
  0x82   : > { %593 = vst [vmem:[%s4388_s8 + $0x6a0] sm:$0xff] %v592_v20  ;;  %v598_v23 = vld [vmem:[%s4383_s7 + $0xd38] sm:$0xff]  ;;  %595 = vst [vmem:[%s4388_s8 + $0x6a8] sm:$0xff] %v594_v21  ;;  %v600_v24 = vld [vmem:[%s4383_s7 + $0xd80] sm:$0xff] }
  0x83   : > { %597 = vst [vmem:[%s4388_s8 + $0x6b0] sm:$0xff] %v596_v22  ;;  %599 = vst [vmem:[%s4388_s8 + $0x6b8] sm:$0xff] %v598_v23  ;;  %v602_v25 = vld [vmem:[%s4383_s7 + $0xd88] sm:$0xff]  ;;  %v604_v26 = vld [vmem:[%s4383_s7 + $0xd90] sm:$0xff] }
  0x84   : > { %601 = vst [vmem:[%s4388_s8 + $0x6c0] sm:$0xff] %v600_v24  ;;  %603 = vst [vmem:[%s4388_s8 + $0x6c8] sm:$0xff] %v602_v25  ;;  %v606_v27 = vld [vmem:[%s4383_s7 + $0xd98] sm:$0xff]  ;;  %v608_v28 = vld [vmem:[%s4383_s7 + $0xda0] sm:$0xff] }
  0x85   : > { %605 = vst [vmem:[%s4388_s8 + $0x6d0] sm:$0xff] %v604_v26  ;;  %v610_v29 = vld [vmem:[%s4383_s7 + $0xda8] sm:$0xff]  ;;  %607 = vst [vmem:[%s4388_s8 + $0x6d8] sm:$0xff] %v606_v27  ;;  %v612_v30 = vld [vmem:[%s4383_s7 + $0xdb0] sm:$0xff] }
  0x86   : > { %609 = vst [vmem:[%s4388_s8 + $0x6e0] sm:$0xff] %v608_v28  ;;  %611 = vst [vmem:[%s4388_s8 + $0x6e8] sm:$0xff] %v610_v29  ;;  %v614_v31 = vld [vmem:[%s4383_s7 + $0xdb8] sm:$0xff]  ;;  %v616_v32 = vld [vmem:[%s4383_s7 + $0xe00] sm:$0xff] }
  0x87   : > { %613 = vst [vmem:[%s4388_s8 + $0x6f0] sm:$0xff] %v612_v30  ;;  %615 = vst [vmem:[%s4388_s8 + $0x6f8] sm:$0xff] %v614_v31  ;;  %v618_v33 = vld [vmem:[%s4383_s7 + $0xe08] sm:$0xff]  ;;  %v620_v34 = vld [vmem:[%s4383_s7 + $0xe10] sm:$0xff] }
  0x88   : > { %617 = vst [vmem:[%s4388_s8 + $0x700] sm:$0xff] %v616_v32  ;;  %v622_v35 = vld [vmem:[%s4383_s7 + $0xe18] sm:$0xff]  ;;  %619 = vst [vmem:[%s4388_s8 + $0x708] sm:$0xff] %v618_v33  ;;  %v624_v36 = vld [vmem:[%s4383_s7 + $0xe20] sm:$0xff] }
  0x89   : > { %621 = vst [vmem:[%s4388_s8 + $0x710] sm:$0xff] %v620_v34  ;;  %623 = vst [vmem:[%s4388_s8 + $0x718] sm:$0xff] %v622_v35  ;;  %v626_v37 = vld [vmem:[%s4383_s7 + $0xe28] sm:$0xff]  ;;  %v628_v38 = vld [vmem:[%s4383_s7 + $0xe30] sm:$0xff] }
  0x8a   : > { %625 = vst [vmem:[%s4388_s8 + $0x720] sm:$0xff] %v624_v36  ;;  %627 = vst [vmem:[%s4388_s8 + $0x728] sm:$0xff] %v626_v37  ;;  %v630_v39 = vld [vmem:[%s4383_s7 + $0xe38] sm:$0xff]  ;;  %v632_v40 = vld [vmem:[%s4383_s7 + $0xe80] sm:$0xff] }
  0x8b   : > { %629 = vst [vmem:[%s4388_s8 + $0x730] sm:$0xff] %v628_v38  ;;  %v634_v41 = vld [vmem:[%s4383_s7 + $0xe88] sm:$0xff]  ;;  %631 = vst [vmem:[%s4388_s8 + $0x738] sm:$0xff] %v630_v39  ;;  %v636_v42 = vld [vmem:[%s4383_s7 + $0xe90] sm:$0xff] }
  0x8c   : > { %633 = vst [vmem:[%s4388_s8 + $0x740] sm:$0xff] %v632_v40  ;;  %635 = vst [vmem:[%s4388_s8 + $0x748] sm:$0xff] %v634_v41  ;;  %v638_v43 = vld [vmem:[%s4383_s7 + $0xe98] sm:$0xff]  ;;  %v640_v44 = vld [vmem:[%s4383_s7 + $0xea0] sm:$0xff] }
  0x8d   : > { %637 = vst [vmem:[%s4388_s8 + $0x750] sm:$0xff] %v636_v42  ;;  %639 = vst [vmem:[%s4388_s8 + $0x758] sm:$0xff] %v638_v43  ;;  %v642_v45 = vld [vmem:[%s4383_s7 + $0xea8] sm:$0xff]  ;;  %v644_v46 = vld [vmem:[%s4383_s7 + $0xeb0] sm:$0xff] }
  0x8e   : > { %641 = vst [vmem:[%s4388_s8 + $0x760] sm:$0xff] %v640_v44  ;;  %v646_v47 = vld [vmem:[%s4383_s7 + $0xeb8] sm:$0xff]  ;;  %643 = vst [vmem:[%s4388_s8 + $0x768] sm:$0xff] %v642_v45  ;;  %v648_v48 = vld [vmem:[%s4383_s7 + $0xf00] sm:$0xff] }
  0x8f   : > { %645 = vst [vmem:[%s4388_s8 + $0x770] sm:$0xff] %v644_v46  ;;  %647 = vst [vmem:[%s4388_s8 + $0x778] sm:$0xff] %v646_v47  ;;  %v650_v49 = vld [vmem:[%s4383_s7 + $0xf08] sm:$0xff]  ;;  %v652_v50 = vld [vmem:[%s4383_s7 + $0xf10] sm:$0xff] }
  0x90   : > { %649 = vst [vmem:[%s4388_s8 + $0x780] sm:$0xff] %v648_v48  ;;  %651 = vst [vmem:[%s4388_s8 + $0x788] sm:$0xff] %v650_v49  ;;  %v654_v51 = vld [vmem:[%s4383_s7 + $0xf18] sm:$0xff]  ;;  %v656_v52 = vld [vmem:[%s4383_s7 + $0xf20] sm:$0xff] }
  0x91   : > { %653 = vst [vmem:[%s4388_s8 + $0x790] sm:$0xff] %v652_v50  ;;  %v658_v53 = vld [vmem:[%s4383_s7 + $0xf28] sm:$0xff]  ;;  %655 = vst [vmem:[%s4388_s8 + $0x798] sm:$0xff] %v654_v51  ;;  %v660_v54 = vld [vmem:[%s4383_s7 + $0xf30] sm:$0xff] }
  0x92   : > { %657 = vst [vmem:[%s4388_s8 + $0x7a0] sm:$0xff] %v656_v52  ;;  %659 = vst [vmem:[%s4388_s8 + $0x7a8] sm:$0xff] %v658_v53  ;;  %v662_v55 = vld [vmem:[%s4383_s7 + $0xf38] sm:$0xff]  ;;  %v664_v56 = vld [vmem:[%s4383_s7 + $0xf80] sm:$0xff] }
  0x93   : > { %661 = vst [vmem:[%s4388_s8 + $0x7b0] sm:$0xff] %v660_v54  ;;  %663 = vst [vmem:[%s4388_s8 + $0x7b8] sm:$0xff] %v662_v55  ;;  %v666_v57 = vld [vmem:[%s4383_s7 + $0xf88] sm:$0xff]  ;;  %v668_v58 = vld [vmem:[%s4383_s7 + $0xf90] sm:$0xff] }
  0x94   : > { %665 = vst [vmem:[%s4388_s8 + $0x7c0] sm:$0xff] %v664_v56  ;;  %v670_v59 = vld [vmem:[%s4383_s7 + $0xf98] sm:$0xff]  ;;  %667 = vst [vmem:[%s4388_s8 + $0x7c8] sm:$0xff] %v666_v57  ;;  %v672_v60 = vld [vmem:[%s4383_s7 + $0xfa0] sm:$0xff] }
  0x95   : > { %669 = vst [vmem:[%s4388_s8 + $0x7d0] sm:$0xff] %v668_v58  ;;  %671 = vst [vmem:[%s4388_s8 + $0x7d8] sm:$0xff] %v670_v59  ;;  %v674_v61 = vld [vmem:[%s4383_s7 + $0xfa8] sm:$0xff]  ;;  %v676_v62 = vld [vmem:[%s4383_s7 + $0xfb0] sm:$0xff] }
  0x96   : > { %673 = vst [vmem:[%s4388_s8 + $0x7e0] sm:$0xff] %v672_v60  ;;  %675 = vst [vmem:[%s4388_s8 + $0x7e8] sm:$0xff] %v674_v61  ;;  %v678_v63 = vld [vmem:[%s4383_s7 + $0xfb8] sm:$0xff]  ;;  %v680_v0 = vld [vmem:[%s4383_s7 + $0x1000] sm:$0xff] }
  0x97   : > { %677 = vst [vmem:[%s4388_s8 + $0x7f0] sm:$0xff] %v676_v62  ;;  %v682_v1 = vld [vmem:[%s4383_s7 + $0x1008] sm:$0xff]  ;;  %679 = vst [vmem:[%s4388_s8 + $0x7f8] sm:$0xff] %v678_v63  ;;  %v684_v2 = vld [vmem:[%s4383_s7 + $0x1010] sm:$0xff] }
  0x98   : > { %681 = vst [vmem:[%s4388_s8 + $0x800] sm:$0xff] %v680_v0  ;;  %683 = vst [vmem:[%s4388_s8 + $0x808] sm:$0xff] %v682_v1  ;;  %v686_v3 = vld [vmem:[%s4383_s7 + $0x1018] sm:$0xff]  ;;  %v688_v4 = vld [vmem:[%s4383_s7 + $0x1020] sm:$0xff] }
  0x99   : > { %685 = vst [vmem:[%s4388_s8 + $0x810] sm:$0xff] %v684_v2  ;;  %687 = vst [vmem:[%s4388_s8 + $0x818] sm:$0xff] %v686_v3  ;;  %v690_v5 = vld [vmem:[%s4383_s7 + $0x1028] sm:$0xff]  ;;  %v692_v6 = vld [vmem:[%s4383_s7 + $0x1030] sm:$0xff] }
  0x9a   : > { %689 = vst [vmem:[%s4388_s8 + $0x820] sm:$0xff] %v688_v4  ;;  %v694_v7 = vld [vmem:[%s4383_s7 + $0x1038] sm:$0xff]  ;;  %691 = vst [vmem:[%s4388_s8 + $0x828] sm:$0xff] %v690_v5  ;;  %v696_v8 = vld [vmem:[%s4383_s7 + $0x1080] sm:$0xff] }
  0x9b   : > { %693 = vst [vmem:[%s4388_s8 + $0x830] sm:$0xff] %v692_v6  ;;  %695 = vst [vmem:[%s4388_s8 + $0x838] sm:$0xff] %v694_v7  ;;  %v698_v9 = vld [vmem:[%s4383_s7 + $0x1088] sm:$0xff]  ;;  %v700_v10 = vld [vmem:[%s4383_s7 + $0x1090] sm:$0xff] }
  0x9c   : > { %697 = vst [vmem:[%s4388_s8 + $0x840] sm:$0xff] %v696_v8  ;;  %699 = vst [vmem:[%s4388_s8 + $0x848] sm:$0xff] %v698_v9  ;;  %v702_v11 = vld [vmem:[%s4383_s7 + $0x1098] sm:$0xff]  ;;  %v704_v12 = vld [vmem:[%s4383_s7 + $0x10a0] sm:$0xff] }
  0x9d   : > { %701 = vst [vmem:[%s4388_s8 + $0x850] sm:$0xff] %v700_v10  ;;  %v706_v13 = vld [vmem:[%s4383_s7 + $0x10a8] sm:$0xff]  ;;  %703 = vst [vmem:[%s4388_s8 + $0x858] sm:$0xff] %v702_v11  ;;  %v708_v14 = vld [vmem:[%s4383_s7 + $0x10b0] sm:$0xff] }
  0x9e   : > { %705 = vst [vmem:[%s4388_s8 + $0x860] sm:$0xff] %v704_v12  ;;  %707 = vst [vmem:[%s4388_s8 + $0x868] sm:$0xff] %v706_v13  ;;  %v710_v15 = vld [vmem:[%s4383_s7 + $0x10b8] sm:$0xff]  ;;  %v712_v16 = vld [vmem:[%s4383_s7 + $0x1100] sm:$0xff] }
  0x9f   : > { %709 = vst [vmem:[%s4388_s8 + $0x870] sm:$0xff] %v708_v14  ;;  %711 = vst [vmem:[%s4388_s8 + $0x878] sm:$0xff] %v710_v15  ;;  %v714_v17 = vld [vmem:[%s4383_s7 + $0x1108] sm:$0xff]  ;;  %v716_v18 = vld [vmem:[%s4383_s7 + $0x1110] sm:$0xff] }
  0xa0   : > { %713 = vst [vmem:[%s4388_s8 + $0x880] sm:$0xff] %v712_v16  ;;  %v718_v19 = vld [vmem:[%s4383_s7 + $0x1118] sm:$0xff]  ;;  %715 = vst [vmem:[%s4388_s8 + $0x888] sm:$0xff] %v714_v17  ;;  %v720_v20 = vld [vmem:[%s4383_s7 + $0x1120] sm:$0xff] }
  0xa1   : > { %717 = vst [vmem:[%s4388_s8 + $0x890] sm:$0xff] %v716_v18  ;;  %719 = vst [vmem:[%s4388_s8 + $0x898] sm:$0xff] %v718_v19  ;;  %v722_v21 = vld [vmem:[%s4383_s7 + $0x1128] sm:$0xff]  ;;  %v724_v22 = vld [vmem:[%s4383_s7 + $0x1130] sm:$0xff] }
  0xa2   : > { %721 = vst [vmem:[%s4388_s8 + $0x8a0] sm:$0xff] %v720_v20  ;;  %723 = vst [vmem:[%s4388_s8 + $0x8a8] sm:$0xff] %v722_v21  ;;  %v726_v23 = vld [vmem:[%s4383_s7 + $0x1138] sm:$0xff]  ;;  %v728_v24 = vld [vmem:[%s4383_s7 + $0x1180] sm:$0xff] }
  0xa3   : > { %725 = vst [vmem:[%s4388_s8 + $0x8b0] sm:$0xff] %v724_v22  ;;  %v730_v25 = vld [vmem:[%s4383_s7 + $0x1188] sm:$0xff]  ;;  %727 = vst [vmem:[%s4388_s8 + $0x8b8] sm:$0xff] %v726_v23  ;;  %v732_v26 = vld [vmem:[%s4383_s7 + $0x1190] sm:$0xff] }
  0xa4   : > { %729 = vst [vmem:[%s4388_s8 + $0x8c0] sm:$0xff] %v728_v24  ;;  %731 = vst [vmem:[%s4388_s8 + $0x8c8] sm:$0xff] %v730_v25  ;;  %v734_v27 = vld [vmem:[%s4383_s7 + $0x1198] sm:$0xff]  ;;  %v736_v28 = vld [vmem:[%s4383_s7 + $0x11a0] sm:$0xff] }
  0xa5   : > { %733 = vst [vmem:[%s4388_s8 + $0x8d0] sm:$0xff] %v732_v26  ;;  %735 = vst [vmem:[%s4388_s8 + $0x8d8] sm:$0xff] %v734_v27  ;;  %v738_v29 = vld [vmem:[%s4383_s7 + $0x11a8] sm:$0xff]  ;;  %v740_v30 = vld [vmem:[%s4383_s7 + $0x11b0] sm:$0xff] }
  0xa6   : > { %737 = vst [vmem:[%s4388_s8 + $0x8e0] sm:$0xff] %v736_v28  ;;  %v742_v31 = vld [vmem:[%s4383_s7 + $0x11b8] sm:$0xff]  ;;  %739 = vst [vmem:[%s4388_s8 + $0x8e8] sm:$0xff] %v738_v29  ;;  %v744_v32 = vld [vmem:[%s4383_s7 + $0x1200] sm:$0xff] }
  0xa7   : > { %741 = vst [vmem:[%s4388_s8 + $0x8f0] sm:$0xff] %v740_v30  ;;  %743 = vst [vmem:[%s4388_s8 + $0x8f8] sm:$0xff] %v742_v31  ;;  %v746_v33 = vld [vmem:[%s4383_s7 + $0x1208] sm:$0xff]  ;;  %v748_v34 = vld [vmem:[%s4383_s7 + $0x1210] sm:$0xff] }
  0xa8   : > { %745 = vst [vmem:[%s4388_s8 + $0x900] sm:$0xff] %v744_v32  ;;  %747 = vst [vmem:[%s4388_s8 + $0x908] sm:$0xff] %v746_v33  ;;  %v750_v35 = vld [vmem:[%s4383_s7 + $0x1218] sm:$0xff]  ;;  %v752_v36 = vld [vmem:[%s4383_s7 + $0x1220] sm:$0xff] }
  0xa9   : > { %749 = vst [vmem:[%s4388_s8 + $0x910] sm:$0xff] %v748_v34  ;;  %v754_v37 = vld [vmem:[%s4383_s7 + $0x1228] sm:$0xff]  ;;  %751 = vst [vmem:[%s4388_s8 + $0x918] sm:$0xff] %v750_v35  ;;  %v756_v38 = vld [vmem:[%s4383_s7 + $0x1230] sm:$0xff] }
  0xaa   : > { %753 = vst [vmem:[%s4388_s8 + $0x920] sm:$0xff] %v752_v36  ;;  %755 = vst [vmem:[%s4388_s8 + $0x928] sm:$0xff] %v754_v37  ;;  %v758_v39 = vld [vmem:[%s4383_s7 + $0x1238] sm:$0xff]  ;;  %v760_v40 = vld [vmem:[%s4383_s7 + $0x1280] sm:$0xff] }
  0xab   : > { %757 = vst [vmem:[%s4388_s8 + $0x930] sm:$0xff] %v756_v38  ;;  %759 = vst [vmem:[%s4388_s8 + $0x938] sm:$0xff] %v758_v39  ;;  %v762_v41 = vld [vmem:[%s4383_s7 + $0x1288] sm:$0xff]  ;;  %v764_v42 = vld [vmem:[%s4383_s7 + $0x1290] sm:$0xff] }
  0xac   : > { %761 = vst [vmem:[%s4388_s8 + $0x940] sm:$0xff] %v760_v40  ;;  %v766_v43 = vld [vmem:[%s4383_s7 + $0x1298] sm:$0xff]  ;;  %763 = vst [vmem:[%s4388_s8 + $0x948] sm:$0xff] %v762_v41  ;;  %v768_v44 = vld [vmem:[%s4383_s7 + $0x12a0] sm:$0xff] }
  0xad   : > { %765 = vst [vmem:[%s4388_s8 + $0x950] sm:$0xff] %v764_v42  ;;  %767 = vst [vmem:[%s4388_s8 + $0x958] sm:$0xff] %v766_v43  ;;  %v770_v45 = vld [vmem:[%s4383_s7 + $0x12a8] sm:$0xff]  ;;  %v772_v46 = vld [vmem:[%s4383_s7 + $0x12b0] sm:$0xff] }
  0xae   : > { %769 = vst [vmem:[%s4388_s8 + $0x960] sm:$0xff] %v768_v44  ;;  %771 = vst [vmem:[%s4388_s8 + $0x968] sm:$0xff] %v770_v45  ;;  %v774_v47 = vld [vmem:[%s4383_s7 + $0x12b8] sm:$0xff]  ;;  %v776_v48 = vld [vmem:[%s4383_s7 + $0x1300] sm:$0xff] }
  0xaf   : > { %773 = vst [vmem:[%s4388_s8 + $0x970] sm:$0xff] %v772_v46  ;;  %v778_v49 = vld [vmem:[%s4383_s7 + $0x1308] sm:$0xff]  ;;  %775 = vst [vmem:[%s4388_s8 + $0x978] sm:$0xff] %v774_v47  ;;  %v780_v50 = vld [vmem:[%s4383_s7 + $0x1310] sm:$0xff] }
  0xb0   : > { %777 = vst [vmem:[%s4388_s8 + $0x980] sm:$0xff] %v776_v48  ;;  %779 = vst [vmem:[%s4388_s8 + $0x988] sm:$0xff] %v778_v49  ;;  %v782_v51 = vld [vmem:[%s4383_s7 + $0x1318] sm:$0xff]  ;;  %v784_v52 = vld [vmem:[%s4383_s7 + $0x1320] sm:$0xff] }
  0xb1   : > { %781 = vst [vmem:[%s4388_s8 + $0x990] sm:$0xff] %v780_v50  ;;  %783 = vst [vmem:[%s4388_s8 + $0x998] sm:$0xff] %v782_v51  ;;  %v786_v53 = vld [vmem:[%s4383_s7 + $0x1328] sm:$0xff]  ;;  %v788_v54 = vld [vmem:[%s4383_s7 + $0x1330] sm:$0xff] }
  0xb2   : > { %785 = vst [vmem:[%s4388_s8 + $0x9a0] sm:$0xff] %v784_v52  ;;  %v790_v55 = vld [vmem:[%s4383_s7 + $0x1338] sm:$0xff]  ;;  %787 = vst [vmem:[%s4388_s8 + $0x9a8] sm:$0xff] %v786_v53  ;;  %v792_v56 = vld [vmem:[%s4383_s7 + $0x1380] sm:$0xff] }
  0xb3   : > { %789 = vst [vmem:[%s4388_s8 + $0x9b0] sm:$0xff] %v788_v54  ;;  %791 = vst [vmem:[%s4388_s8 + $0x9b8] sm:$0xff] %v790_v55  ;;  %v794_v57 = vld [vmem:[%s4383_s7 + $0x1388] sm:$0xff]  ;;  %v796_v58 = vld [vmem:[%s4383_s7 + $0x1390] sm:$0xff] }
  0xb4   : > { %793 = vst [vmem:[%s4388_s8 + $0x9c0] sm:$0xff] %v792_v56  ;;  %795 = vst [vmem:[%s4388_s8 + $0x9c8] sm:$0xff] %v794_v57  ;;  %v798_v59 = vld [vmem:[%s4383_s7 + $0x1398] sm:$0xff]  ;;  %v800_v60 = vld [vmem:[%s4383_s7 + $0x13a0] sm:$0xff] }
  0xb5   : > { %797 = vst [vmem:[%s4388_s8 + $0x9d0] sm:$0xff] %v796_v58  ;;  %v802_v61 = vld [vmem:[%s4383_s7 + $0x13a8] sm:$0xff]  ;;  %799 = vst [vmem:[%s4388_s8 + $0x9d8] sm:$0xff] %v798_v59  ;;  %v804_v62 = vld [vmem:[%s4383_s7 + $0x13b0] sm:$0xff] }
  0xb6   : > { %801 = vst [vmem:[%s4388_s8 + $0x9e0] sm:$0xff] %v800_v60  ;;  %803 = vst [vmem:[%s4388_s8 + $0x9e8] sm:$0xff] %v802_v61  ;;  %v806_v63 = vld [vmem:[%s4383_s7 + $0x13b8] sm:$0xff]  ;;  %v808_v0 = vld [vmem:[%s4383_s7 + $0x1400] sm:$0xff] }
  0xb7   : > { %805 = vst [vmem:[%s4388_s8 + $0x9f0] sm:$0xff] %v804_v62  ;;  %807 = vst [vmem:[%s4388_s8 + $0x9f8] sm:$0xff] %v806_v63  ;;  %v810_v1 = vld [vmem:[%s4383_s7 + $0x1408] sm:$0xff]  ;;  %v812_v2 = vld [vmem:[%s4383_s7 + $0x1410] sm:$0xff] }
  0xb8   : > { %809 = vst [vmem:[%s4388_s8 + $0xa00] sm:$0xff] %v808_v0  ;;  %v814_v3 = vld [vmem:[%s4383_s7 + $0x1418] sm:$0xff]  ;;  %811 = vst [vmem:[%s4388_s8 + $0xa08] sm:$0xff] %v810_v1  ;;  %v816_v4 = vld [vmem:[%s4383_s7 + $0x1420] sm:$0xff] }
  0xb9   : > { %813 = vst [vmem:[%s4388_s8 + $0xa10] sm:$0xff] %v812_v2  ;;  %815 = vst [vmem:[%s4388_s8 + $0xa18] sm:$0xff] %v814_v3  ;;  %v818_v5 = vld [vmem:[%s4383_s7 + $0x1428] sm:$0xff]  ;;  %v820_v6 = vld [vmem:[%s4383_s7 + $0x1430] sm:$0xff] }
  0xba   : > { %817 = vst [vmem:[%s4388_s8 + $0xa20] sm:$0xff] %v816_v4  ;;  %819 = vst [vmem:[%s4388_s8 + $0xa28] sm:$0xff] %v818_v5  ;;  %v822_v7 = vld [vmem:[%s4383_s7 + $0x1438] sm:$0xff] }
  0xbb   : > { %821 = vst [vmem:[%s4388_s8 + $0xa30] sm:$0xff] %v820_v6  ;;  %823 = vst [vmem:[%s4388_s8 + $0xa38] sm:$0xff] %v822_v7 }
  0xbc PF: > { %p3800_p7 = scmp.ge.s32.totalorder %s4299_s18, 1  ;;  %p828_p8 = scmp.lt.s32.totalorder %s4299_s18, 5 }
  0xbe   : > { %p829_p9 = pnand %p3800_p7, %p828_p8 }
  0xbf   : > { %s835_s9 = sand.u32 (!%p829_p9), 1, %s4275_s12   ;;  %s3801_s24 = sshll.u32 (!%p829_p9), %s4283_s14, 4 }
  0xc0   : > { %832 = sbr.rel (%p829_p9) target bundleno = 747 (0x2eb), region = 51  ;;  %p864_p10 = scmp.lt.s32.totalorder (!%p829_p9), %s4287_s15, 1 }
  0xc1   : > { %s4168_s10 = smul.u32 (!%p829_p9), 2624, %s835_s9  ;;  %p5406_p11 = scmp.lt.s32.totalorder (!%p829_p9), %s3801_s24, 31 }
  0xc3   : > { %s5048_s11 = scalar_lea.vmem (!%p829_p9), [#allocation2], %s4168_s10 }
  0xc5   : > { %v1214_v8 = vlaneseq  ;;  %v4301_v9 = vmov 0   ;;  %v4302_v10 = vmov 1983009808   ;;  %v987_v12 = vld [vmem:[%s5048_s11 + $0x380] sm:$0xff]  ;;  %vm2872_vm0 = vcmask 1041408   ;;  %v988_v58 = vld [vmem:[%s5048_s11 + $0x388] sm:$0xff] }
  0xc6   : > { %2994 = vmatprep.mubr.bf16.mxu1 %v4301_v9  ;;  %4227 = vset.pattern.permute.xlu0 %v4301_v9  ;;  %v1212_v11 = vunpack.c.l.s4 %v4302_v10  ;;  %v995_v13 = vld [vmem:[%s5048_s11 + $0x3c0] sm:$0xff]  ;;  %v996_v59 = vld [vmem:[%s5048_s11 + $0x3c8] sm:$0xff]  ;;  %vm2868_vm1 = vcmask 556032   ;;  %s5557_s15 = smov (!%p864_p10, %s4287_s15), 1  ;;  %s5559_s24 = smov (!%p5406_p11, %s3801_s24), 31 }
  0xc7   : > { %v1195_v14 = vld [vmem:[%s5048_s11 + $0xa00] sm:$0x33]  ;;  %v1215_v16 = vshrl.u32 %v1214_v8, 7  ;;  %v3917_v17 = vcombine.high %v987_v12, %v995_v13  ;;  %v3916_v19 = vcombine.low %v987_v12, %v995_v13  ;;  %v3919_v0 = vcombine.high %v988_v58, %v996_v59  ;;  %v972_v3 = vld [vmem:[%s5048_s11 + $0x308] sm:$0xff]  ;;  %s3802_s26 = sshll.u32 %s5557_s15, 5 }
  0xc8   : > { %v1213_v15 = vunpack.c.0.s8 %v1212_v11  ;;  %v4125_v18 = vcombine.high %v1195_v14, %v1195_v14  ;;  %v4124_v20 = vcombine.low %v1195_v14, %v1195_v14  ;;  %v971_v21 = vld [vmem:[%s5048_s11 + $0x300] sm:$0xff]  ;;  %v980_v4 = vld [vmem:[%s5048_s11 + $0x348] sm:$0xff]  ;;  %v3918_v6 = vcombine.low %v988_v58, %v996_v59  ;;  %s5429_s27 = sadd.s32 %s3802_s26, %s5559_s24 }
  0xc9   : > { %v979_v22 = vld [vmem:[%s5048_s11 + $0x340] sm:$0xff]  ;;  %2921 = vmatprep.subr.bf16.mxu0 %v3917_v17  ;;  %v3903_v10 = vcombine.high %v972_v3, %v980_v4  ;;  %v956_v13 = vld [vmem:[%s5048_s11 + $0x288] sm:$0xff]  ;;  %s3803_s15 = sshll.u32 %s5429_s27, 1 }
  0xca   : > { %v1179_v23 = vld [vmem:[%s5048_s11 + $0x980] sm:$0xff]  ;;  %v3901_v24 = vcombine.high %v971_v21, %v979_v22  ;;  %4140 = vmatprep.subr.msk.bf16.mxu1 %vm2872_vm0, %v4125_v18  ;;  %v2874_v28 = vsel %vm2872_vm0, %v4124_v20, 0  ;;  %2922 = vmatpush1.bf16.msra.mxu0 %v3916_v19  ;;  %v3900_v32 = vcombine.low %v971_v21, %v979_v22  ;;  %v5063_v34 = vsub.s32 %v1213_v15, %v1215_v16  ;;  %v964_v14 = vld [vmem:[%s5048_s11 + $0x2c8] sm:$0xff]  ;;  %s5446_s30 = scalar_lea.vmem %s5542_s3, %s3803_s15 }
  0xcb   : > { %v1187_v25 = vld [vmem:[%s5048_s11 + $0x9c0] sm:$0xff]  ;;  %2969 = vmatpush1.bf16.msra.mxu1 %v2874_v28  ;;  %v3902_v15 = vcombine.low %v972_v3, %v980_v4  ;;  %v3887_v18 = vcombine.high %v956_v13, %v964_v14  ;;  %v940_v21 = vld [vmem:[%s5048_s11 + $0x208] sm:$0xff] }
  0xcc   : > { %v955_v26 = vld [vmem:[%s5048_s11 + $0x280] sm:$0xff]  ;;  %v4109_v29 = vcombine.high %v1179_v23, %v1187_v25  ;;  %v4108_v33 = vcombine.low %v1179_v23, %v1187_v25  ;;  %2923 = vmatprep.subr.bf16.mxu0 %v3901_v24  ;;  %v948_v22 = vld [vmem:[%s5048_s11 + $0x248] sm:$0xff]  ;;  %v3886_v23 = vcombine.low %v956_v13, %v964_v14 }
  0xcd   : > { %v963_v27 = vld [vmem:[%s5048_s11 + $0x2c0] sm:$0xff] }
  0xce   : > { %v1163_v30 = vld [vmem:[%s5048_s11 + $0x900] sm:$0xff]  ;;  %2970 = vmatprep.subr.bf16.mxu1 %v4109_v29  ;;  %v3885_v35 = vcombine.high %v955_v26, %v963_v27  ;;  %2924 = vmatpush1.bf16.msra.mxu0 %v3900_v32  ;;  %v3884_v43 = vcombine.low %v955_v26, %v963_v27  ;;  %v3871_v26 = vcombine.high %v940_v21, %v948_v22  ;;  %v924_v29 = vld [vmem:[%s5048_s11 + $0x188] sm:$0xff] }
  0xcf   : > { %v1171_v31 = vld [vmem:[%s5048_s11 + $0x940] sm:$0xff]  ;;  %2971 = vmatpush1.bf16.msra.mxu1 %v4108_v33 }
  0xd0   : > { %v4093_v36 = vcombine.high %v1163_v30, %v1171_v31  ;;  %v939_v37 = vld [vmem:[%s5048_s11 + $0x200] sm:$0xff]  ;;  %v4092_v44 = vcombine.low %v1163_v30, %v1171_v31  ;;  %2925 = vmatprep.subr.bf16.mxu0 %v3885_v35  ;;  %v932_v30 = vld [vmem:[%s5048_s11 + $0x1c8] sm:$0xff]  ;;  %v3870_v31 = vcombine.low %v940_v21, %v948_v22 }
  0xd1   : > { %v874_v38 = vld [vmem:[%s5539_s0] sm:$0x3f]  ;;  %v3855_v35 = vcombine.high %v924_v29, %v932_v30 }
  0xd2   : > { %v947_v39 = vld [vmem:[%s5048_s11 + $0x240] sm:$0xff]  ;;  %v5073_v42 = vrot.slane %v874_v38, %v5063_v34  ;;  %2972 = vmatprep.subr.bf16.mxu1 %v4093_v36  ;;  %2926 = vmatpush1.bf16.msra.mxu0 %v3884_v43  ;;  %v1210_v60 = vcombine.high %v874_v38, %v874_v38  ;;  %v908_v38 = vld [vmem:[%s5048_s11 + $0x108] sm:$0xff] }
  0xd3   : > { %v1147_v40 = vld [vmem:[%s5048_s11 + $0x880] sm:$0xff]  ;;  %v3869_v45 = vcombine.high %v939_v37, %v947_v39  ;;  %2973 = vmatpush1.bf16.msra.mxu1 %v4092_v44  ;;  %v3868_v52 = vcombine.low %v939_v37, %v947_v39  ;;  %v916_v39 = vld [vmem:[%s5048_s11 + $0x148] sm:$0xff] }
  0xd4   : > { %v1155_v41 = vld [vmem:[%s5048_s11 + $0x8c0] sm:$0xff]  ;;  %v5081_v51 = vcombine.high %v5073_v42, %v5073_v42  ;;  %v5093_v5 = vrot.slane %v1210_v60, %v5063_v34  ;;  %v3839_v44 = vcombine.high %v908_v38, %v916_v39 }
  0xd5   : > { %v4077_v46 = vcombine.high %v1147_v40, %v1155_v41  ;;  %v923_v47 = vld [vmem:[%s5048_s11 + $0x180] sm:$0xff]  ;;  %v4076_v53 = vcombine.low %v1147_v40, %v1155_v41  ;;  %2927 = vmatprep.subr.bf16.mxu0 %v3869_v45  ;;  %v3854_v40 = vcombine.low %v924_v29, %v932_v30 }
  0xd6   : > { %v931_v48 = vld [vmem:[%s5048_s11 + $0x1c0] sm:$0xff]  ;;  %2953 = vmatprep.mubr.bf16.mxu0 %v5081_v51  ;;  %2928 = vmatpush1.bf16.msra.mxu0 %v3868_v52 }
  0xd7   : > { %v1131_v49 = vld [vmem:[%s5048_s11 + $0x800] sm:$0xff]  ;;  %2974 = vmatprep.subr.bf16.mxu1 %v4077_v46  ;;  %v3853_v54 = vcombine.high %v923_v47, %v931_v48  ;;  %v3852_v61 = vcombine.low %v923_v47, %v931_v48  ;;  %v892_v47 = vld [vmem:[%s5048_s11 + $0x88] sm:$0xff] }
  0xd8   : > { %v1139_v50 = vld [vmem:[%s5048_s11 + $0x840] sm:$0xff]  ;;  %2975 = vmatpush1.bf16.msra.mxu1 %v4076_v53  ;;  %v900_v48 = vld [vmem:[%s5048_s11 + $0xc8] sm:$0xff] }
  0xd9   : > { %v4061_v55 = vcombine.high %v1131_v49, %v1139_v50  ;;  %v907_v56 = vld [vmem:[%s5048_s11 + $0x100] sm:$0xff]  ;;  %v4060_v62 = vcombine.low %v1131_v49, %v1139_v50  ;;  %2929 = vmatprep.subr.bf16.mxu0 %v3853_v54  ;;  %v3838_v49 = vcombine.low %v908_v38, %v916_v39  ;;  %v3823_v53 = vcombine.high %v892_v47, %v900_v48 }
  0xda   : > { %v915_v57 = vld [vmem:[%s5048_s11 + $0x140] sm:$0xff]  ;;  %2930 = vmatpush1.bf16.msra.mxu0 %v3852_v61  ;;  %v3822_v58 = vcombine.low %v892_v47, %v900_v48 }
  0xdb   : > { %2976 = vmatprep.subr.bf16.mxu1 %v4061_v55  ;;  %v3837_v63 = vcombine.high %v907_v56, %v915_v57  ;;  %v891_v1 = vld [vmem:[%s5048_s11 + $0x80] sm:$0xff]  ;;  %v3836_v7 = vcombine.low %v907_v56, %v915_v57  ;;  %v876_v56 = vld [vmem:[%s5048_s11 + $0x8] sm:$0xff] }
  0xdc   : > { %v899_v2 = vld [vmem:[%s5048_s11 + $0xc0] sm:$0xff]  ;;  %2977 = vmatpush1.bf16.msra.mxu1 %v4060_v62  ;;  %v884_v57 = vld [vmem:[%s5048_s11 + $0x48] sm:$0xff] }
  0xdd   : > { %2931 = vmatprep.subr.bf16.mxu0 %v3837_v63  ;;  %3003 = vmatprep.subr.bf16.mxu1 %v3919_v0  ;;  %v3821_v8 = vcombine.high %v891_v1, %v899_v2  ;;  %v875_v11 = vld [vmem:[%s5048_s11] sm:$0xff]  ;;  %v3820_v16 = vcombine.low %v891_v1, %v899_v2  ;;  %v3807_v62 = vcombine.high %v876_v56, %v884_v57  ;;  %v1116_v1 = vld [vmem:[%s5048_s11 + $0x788] sm:$0xff] }
  0xde   : > { %v883_v12 = vld [vmem:[%s5048_s11 + $0x40] sm:$0xff]  ;;  %2932 = vmatpush1.bf16.msra.mxu0 %v3836_v7  ;;  %v1124_v2 = vld [vmem:[%s5048_s11 + $0x7c8] sm:$0xff]  ;;  %v3806_v3 = vcombine.low %v876_v56, %v884_v57 }
  0xdf   : > { %4141 = vmatmul.mubr.msk.bf16.vlgmr.msra.gmra.mxu1 %vm2868_vm1, %v5093_v5  ;;  %2933 = vmatprep.subr.bf16.mxu0 %v3821_v8  ;;  %v3805_v17 = vcombine.high %v875_v11, %v883_v12  ;;  %v1115_v19 = vld [vmem:[%s5048_s11 + $0x780] sm:$0xff]  ;;  %v3804_v24 = vcombine.low %v875_v11, %v883_v12  ;;  %v4047_v7 = vcombine.high %v1116_v1, %v1124_v2  ;;  %v1100_v11 = vld [vmem:[%s5048_s11 + $0x708] sm:$0xff] }
  0xe0   : > { %3004 = vmatpush1.bf16.msra.mxu1 %v3918_v6  ;;  %v1123_v20 = vld [vmem:[%s5048_s11 + $0x7c0] sm:$0xff]  ;;  %3035 = vmatprep.mubr.bf16.mxu1 %v5081_v51  ;;  %v1108_v12 = vld [vmem:[%s5048_s11 + $0x748] sm:$0xff]  ;;  %v4046_v13 = vcombine.low %v1116_v1, %v1124_v2 }
  0xe1   : > { %3005 = vmatprep.subr.bf16.mxu1 %v3903_v10  ;;  %v4045_v25 = vcombine.high %v1115_v19, %v1123_v20  ;;  %v1099_v27 = vld [vmem:[%s5048_s11 + $0x700] sm:$0xff]  ;;  %v4044_v32 = vcombine.low %v1115_v19, %v1123_v20  ;;  %v1084_v19 = vld [vmem:[%s5048_s11 + $0x688] sm:$0xff]  ;;  %v4030_v21 = vcombine.low %v1100_v11, %v1108_v12 }
  0xe2   : > { %2934 = vmatpush1.bf16.msra.mxu0 %v3820_v16  ;;  %v1107_v28 = vld [vmem:[%s5048_s11 + $0x740] sm:$0xff]  ;;  %v4031_v16 = vcombine.high %v1100_v11, %v1108_v12  ;;  %v1092_v20 = vld [vmem:[%s5048_s11 + $0x6c8] sm:$0xff] }
  0xe3   : > { %2935 = vmatprep.subr.bf16.mxu0 %v3805_v17  ;;  %v4029_v33 = vcombine.high %v1099_v27, %v1107_v28  ;;  %v1083_v36 = vld [vmem:[%s5048_s11 + $0x680] sm:$0xff]  ;;  %v4028_v41 = vcombine.low %v1099_v27, %v1107_v28  ;;  %v1196_v27 = vld [vmem:[%s5048_s11 + $0xa08] sm:$0x33]  ;;  %v4014_v28 = vcombine.low %v1084_v19, %v1092_v20 }
  0xe4   : > { %3006 = vmatpush1.bf16.msra.mxu1 %v3902_v15  ;;  %v1091_v37 = vld [vmem:[%s5048_s11 + $0x6c0] sm:$0xff] }
  0xe5   : > { %3007 = vmatprep.subr.bf16.mxu1 %v3887_v18  ;;  %v4013_v43 = vcombine.high %v1083_v36, %v1091_v37  ;;  %v1067_v45 = vld [vmem:[%s5048_s11 + $0x600] sm:$0xff]  ;;  %v4012_v50 = vcombine.low %v1083_v36, %v1091_v37  ;;  %v1180_v36 = vld [vmem:[%s5048_s11 + $0x988] sm:$0xff] }
  0xe6   : > { %2936 = vmatpush1.bf16.msra.mxu0 %v3804_v24  ;;  %v1075_v46 = vld [vmem:[%s5048_s11 + $0x640] sm:$0xff]  ;;  %v4015_v24 = vcombine.high %v1084_v19, %v1092_v20  ;;  %v1188_v37 = vld [vmem:[%s5048_s11 + $0x9c8] sm:$0xff] }
  0xe7   : > { %2937 = vmatprep.subr.bf16.mxu0 %v4045_v25  ;;  %v3997_v52 = vcombine.high %v1067_v45, %v1075_v46  ;;  %v1051_v54 = vld [vmem:[%s5048_s11 + $0x580] sm:$0xff]  ;;  %v3996_v59 = vcombine.low %v1067_v45, %v1075_v46  ;;  %v1068_v25 = vld [vmem:[%s5048_s11 + $0x608] sm:$0xff]  ;;  %v4110_v48 = vcombine.low %v1180_v36, %v1188_v37 }
  0xe8   : > { %3008 = vmatpush1.bf16.msra.mxu1 %v3886_v23  ;;  %v1059_v55 = vld [vmem:[%s5048_s11 + $0x5c0] sm:$0xff]  ;;  %v1164_v45 = vld [vmem:[%s5048_s11 + $0x908] sm:$0xff] }
  0xe9   : > { %3009 = vmatprep.subr.bf16.mxu1 %v3871_v26  ;;  %v1203_v60 = vld [vmem:[%s5541_s2] sm:$0xf]  ;;  %v3981_v61 = vcombine.high %v1051_v54, %v1059_v55  ;;  %v3980_v4 = vcombine.low %v1051_v54, %v1059_v55  ;;  %v1076_v26 = vld [vmem:[%s5048_s11 + $0x648] sm:$0xff] }
  0xea   : > { %2938 = vmatpush2.bf16.msra.mxu0 %v4044_v32  ;;  %v1035_v63 = vld [vmem:[%s5048_s11 + $0x500] sm:$0xff]  ;;  %1206 = vperm.xlu0 %4227, %v1203_v60   ;;  %v3999_v30 = vcombine.high %v1068_v25, %v1076_v26  ;;  %v4126_v32 = vcombine.low %v1196_v27, %v1196_v27  ;;  %v3998_v38 = vcombine.low %v1068_v25, %v1076_v26  ;;  %v1172_v46 = vld [vmem:[%s5048_s11 + $0x948] sm:$0xff]  ;;  %v1173_v25 = vld [vmem:[%s5048_s11 + $0x950] sm:$0xff] }
  0xeb   : > { %2939 = vmatprep.subr.bf16.mxu0 %v4029_v33  ;;  %v1043_v0 = vld [vmem:[%s5048_s11 + $0x540] sm:$0xff]  ;;  %v1052_v33 = vld [vmem:[%s5048_s11 + $0x588] sm:$0xff]  ;;  %v4094_v57 = vcombine.low %v1164_v45, %v1172_v46 }
  0xec   : > { %3010 = vmatpush1.bf16.msra.mxu1 %v3870_v31  ;;  %v3965_v6 = vcombine.high %v1035_v63, %v1043_v0  ;;  %v1019_v8 = vld [vmem:[%s5048_s11 + $0x480] sm:$0xff]  ;;  %v3964_v14 = vcombine.low %v1035_v63, %v1043_v0  ;;  %v4127_v31 = vcombine.high %v1196_v27, %v1196_v27  ;;  %v2880_v39 = vsel %vm2872_vm0, %v4126_v32, 0  ;;  %v1148_v54 = vld [vmem:[%s5048_s11 + $0x888] sm:$0xff]  ;;  %v1149_v32 = vld [vmem:[%s5048_s11 + $0x890] sm:$0xff] }
  0xed   : > { %3011 = vmatprep.subr.bf16.mxu1 %v3855_v35  ;;  %v1027_v10 = vld [vmem:[%s5048_s11 + $0x4c0] sm:$0xff]  ;;  %v1060_v35 = vld [vmem:[%s5048_s11 + $0x5c8] sm:$0xff] }
  0xee   : > { %2940 = vmatpush2.bf16.msra.mxu0 %v4028_v41  ;;  %v3949_v15 = vcombine.high %v1019_v8, %v1027_v10  ;;  %v1003_v17 = vld [vmem:[%s5048_s11 + $0x400] sm:$0xff]  ;;  %v3948_v22 = vcombine.low %v1019_v8, %v1027_v10  ;;  %v4111_v41 = vcombine.high %v1180_v36, %v1188_v37  ;;  %v3982_v47 = vcombine.low %v1052_v33, %v1060_v35  ;;  %v1156_v55 = vld [vmem:[%s5048_s11 + $0x8c8] sm:$0xff] }
  0xef   : > { %2941 = vmatprep.subr.bf16.mxu0 %v4013_v43  ;;  %v1011_v18 = vld [vmem:[%s5048_s11 + $0x440] sm:$0xff]  ;;  %v1036_v43 = vld [vmem:[%s5048_s11 + $0x508] sm:$0xff]  ;;  %v4078_v1 = vcombine.low %v1148_v54, %v1156_v55 }
  0xf0   : > { %3012 = vmatpush1.bf16.msra.mxu1 %v3854_v40  ;;  %v3933_v23 = vcombine.high %v1003_v17, %v1011_v18  ;;  %v3932_v29 = vcombine.low %v1003_v17, %v1011_v18  ;;  %v3983_v40 = vcombine.high %v1052_v33, %v1060_v35  ;;  %v1004_v60 = vld [vmem:[%s5048_s11 + $0x408] sm:$0xff]  ;;  %v1189_v17 = vld [vmem:[%s5048_s11 + $0x9d0] sm:$0xff] }
  0xf1   : > { %3013 = vmatprep.subr.bf16.mxu1 %v3839_v44  ;;  %v1044_v44 = vld [vmem:[%s5048_s11 + $0x548] sm:$0xff]  ;;  %v1157_v33 = vld [vmem:[%s5048_s11 + $0x8d0] sm:$0xff] }
  0xf2   : > { %2942 = vmatpush2.bf16.msra.mxu0 %v4012_v50  ;;  %v4095_v50 = vcombine.high %v1164_v45, %v1172_v46  ;;  %v3966_v56 = vcombine.low %v1036_v43, %v1044_v44  ;;  %v1140_v63 = vld [vmem:[%s5048_s11 + $0x848] sm:$0xff]  ;;  %v4080_v45 = vcombine.low %v1149_v32, %v1157_v33 }
  0xf3   : > { %2943 = vmatprep.subr.bf16.mxu0 %v3997_v52  ;;  %v1020_v52 = vld [vmem:[%s5048_s11 + $0x488] sm:$0xff] }
  0xf4   : > { %3014 = vmatpush1.bf16.msra.mxu1 %v3838_v49  ;;  %v3967_v49 = vcombine.high %v1036_v43, %v1044_v44  ;;  %v1141_v43 = vld [vmem:[%s5048_s11 + $0x850] sm:$0xff] }
  0xf5   : > { %3015 = vmatprep.subr.bf16.mxu1 %v3823_v53  ;;  %v1028_v53 = vld [vmem:[%s5048_s11 + $0x4c8] sm:$0xff] }
  0xf6   : > { %2944 = vmatpush2.bf16.msra.mxu0 %v3996_v59  ;;  %v4079_v59 = vcombine.high %v1148_v54, %v1156_v55  ;;  %v3950_v0 = vcombine.low %v1020_v52, %v1028_v53 }
  0xf7   : > { %2945 = vmatprep.subr.bf16.mxu0 %v3981_v61  ;;  %v1012_v61 = vld [vmem:[%s5048_s11 + $0x448] sm:$0xff] }
  0xf8   : > { %3016 = vmatpush1.bf16.msra.mxu1 %v3822_v58  ;;  %v3951_v58 = vcombine.high %v1020_v52, %v1028_v53  ;;  %v3935_v2 = vcombine.high %v1004_v60, %v1012_v61  ;;  %v3934_v8 = vcombine.low %v1004_v60, %v1012_v61  ;;  %v998_v52 = vld [vmem:[%s5048_s11 + $0x3d8] sm:$0xff] }
  0xf9   : > { %3017 = vmatprep.subr.bf16.mxu1 %v3807_v62  ;;  %v1132_v62 = vld [vmem:[%s5048_s11 + $0x808] sm:$0xff]  ;;  %v982_v60 = vld [vmem:[%s5048_s11 + $0x358] sm:$0xff] }
  0xfa   : > { %2946 = vmatpush2.bf16.msra.mxu0 %v3980_v4  ;;  %v989_v4 = vld [vmem:[%s5048_s11 + $0x390] sm:$0xff]  ;;  %v4062_v10 = vcombine.low %v1132_v62, %v1140_v63 }
  0xfb   : > { %2947 = vmatprep.subr.bf16.mxu0 %v3965_v6  ;;  %v997_v6 = vld [vmem:[%s5048_s11 + $0x3d0] sm:$0xff] }
  0xfc   : > { %3018 = vmatpush1.bf16.msra.mxu1 %v3806_v3  ;;  %v4063_v3 = vcombine.high %v1132_v62, %v1140_v63  ;;  %v3921_v11 = vcombine.high %v989_v4, %v997_v6  ;;  %v3920_v18 = vcombine.low %v989_v4, %v997_v6  ;;  %v966_v4 = vld [vmem:[%s5048_s11 + $0x2d8] sm:$0xff] }
  0xfd   : > { %3019 = vmatprep.subr.bf16.mxu1 %v4047_v7  ;;  %v1197_v7 = vld [vmem:[%s5048_s11 + $0xa10] sm:$0x33] }
  0xfe   : > { %2948 = vmatpush2.bf16.msra.mxu0 %v3964_v14  ;;  %v4129_v12 = vcombine.high %v1197_v7, %v1197_v7  ;;  %v973_v14 = vld [vmem:[%s5048_s11 + $0x310] sm:$0xff] }
  0xff   : > { %2949 = vmatprep.subr.bf16.mxu0 %v3949_v15  ;;  %v981_v15 = vld [vmem:[%s5048_s11 + $0x350] sm:$0xff] }
 0x100   : > { %3020 = vmatpush2.bf16.msra.mxu1 %v4046_v13  ;;  %v4128_v13 = vcombine.low %v1197_v7, %v1197_v7  ;;  %v3905_v20 = vcombine.high %v973_v14, %v981_v15  ;;  %v3904_v26 = vcombine.low %v973_v14, %v981_v15  ;;  %v950_v14 = vld [vmem:[%s5048_s11 + $0x258] sm:$0xff] }
 0x101   : > { %3021 = vmatprep.subr.bf16.mxu1 %v4031_v16  ;;  %v1181_v16 = vld [vmem:[%s5048_s11 + $0x990] sm:$0xff] }
 0x102   : > { %2950 = vmatpush2.bf16.msra.mxu0 %v3948_v22  ;;  %v2886_v19 = vsel %vm2872_vm0, %v4128_v13, 0  ;;  %v957_v22 = vld [vmem:[%s5048_s11 + $0x290] sm:$0xff]  ;;  %v4112_v27 = vcombine.low %v1181_v16, %v1189_v17  ;;  %v942_v13 = vld [vmem:[%s5048_s11 + $0x218] sm:$0xff] }
 0x103   : > { %2951 = vmatprep.subr.bf16.mxu0 %v3933_v23  ;;  %v965_v23 = vld [vmem:[%s5048_s11 + $0x2d0] sm:$0xff] }
 0x104   : > { %3022 = vmatpush2.bf16.msra.mxu1 %v4030_v21  ;;  %v4113_v21 = vcombine.high %v1181_v16, %v1189_v17  ;;  %v3888_v35 = vcombine.low %v957_v22, %v965_v23 }
 0x105   : > { %3023 = vmatprep.subr.bf16.mxu1 %v4015_v24  ;;  %v1165_v24 = vld [vmem:[%s5048_s11 + $0x910] sm:$0xff] }
 0x106   : > { %2952 = vmatpush2.bf16.msra.mxu0 %v3932_v29  ;;  %v4097_v29 = vcombine.high %v1165_v24, %v1173_v25  ;;  %v4096_v36 = vcombine.low %v1165_v24, %v1173_v25  ;;  %v3874_v24 = vcombine.low %v942_v13, %v950_v14 }
 0x107   : > { %4142 = vmatprep.subr.msk.bf16.mxu0 %vm2872_vm0, %v4127_v31  ;;  %v949_v31 = vld [vmem:[%s5048_s11 + $0x250] sm:$0xff] }
 0x108   : > { %3024 = vmatpush2.bf16.msra.mxu1 %v4014_v28  ;;  %v3889_v28 = vcombine.high %v957_v22, %v965_v23  ;;  %v934_v22 = vld [vmem:[%s5048_s11 + $0x1d8] sm:$0xff] }
 0x109   : > { %3025 = vmatprep.subr.bf16.mxu1 %v3999_v30  ;;  %2954 = vmatmul.mubr.bf16.vlgmr.msra.gmra.mxu0 %v5073_v42  ;;  %v941_v30 = vld [vmem:[%s5048_s11 + $0x210] sm:$0xff] }
 0x10a   : > { %3051 = vmatpush1.bf16.msra.mxu0 %v2880_v39  ;;  %3076 = vmatprep.mubr.bf16.mxu0 %v4301_v9  ;;  %v3873_v37 = vcombine.high %v941_v30, %v949_v31  ;;  %v925_v39 = vld [vmem:[%s5048_s11 + $0x190] sm:$0xff]  ;;  %v3872_v44 = vcombine.low %v941_v30, %v949_v31  ;;  %v918_v30 = vld [vmem:[%s5048_s11 + $0x158] sm:$0xff] }
 0x10b   : > { %3052 = vmatprep.subr.bf16.mxu0 %v4111_v41  ;;  %v1133_v41 = vld [vmem:[%s5048_s11 + $0x810] sm:$0xff] }
 0x10c   : > { %3026 = vmatpush2.bf16.msra.mxu1 %v3998_v38  ;;  %v4081_v38 = vcombine.high %v1149_v32, %v1157_v33  ;;  %v4064_v54 = vcombine.low %v1133_v41, %v1141_v43 }
 0x10d   : > { %3027 = vmatprep.subr.bf16.mxu1 %v3983_v40  ;;  %v933_v40 = vld [vmem:[%s5048_s11 + $0x1d0] sm:$0xff] }
 0x10e   : > { %3053 = vmatpush1.bf16.msra.mxu0 %v4110_v48  ;;  %v3857_v46 = vcombine.high %v925_v39, %v933_v40  ;;  %v909_v48 = vld [vmem:[%s5048_s11 + $0x110] sm:$0xff]  ;;  %v3856_v53 = vcombine.low %v925_v39, %v933_v40  ;;  %v902_v39 = vld [vmem:[%s5048_s11 + $0xd8] sm:$0xff] }
 0x10f   : > { %3054 = vmatprep.subr.bf16.mxu0 %v4095_v50  ;;  %v990_v50 = vld [vmem:[%s5048_s11 + $0x398] sm:$0xff] }
 0x110   : > { %3028 = vmatpush2.bf16.msra.mxu1 %v3982_v47  ;;  %v4065_v47 = vcombine.high %v1133_v41, %v1141_v43  ;;  %v3922_v62 = vcombine.low %v990_v50, %v998_v52 }
 0x111   : > { %3029 = vmatprep.subr.bf16.mxu1 %v3967_v49  ;;  %v917_v49 = vld [vmem:[%s5048_s11 + $0x150] sm:$0xff] }
 0x112   : > { %3055 = vmatpush1.bf16.msra.mxu0 %v4094_v57  ;;  %v3841_v55 = vcombine.high %v909_v48, %v917_v49  ;;  %v893_v57 = vld [vmem:[%s5048_s11 + $0x90] sm:$0xff]  ;;  %v3840_v61 = vcombine.low %v909_v48, %v917_v49  ;;  %v886_v48 = vld [vmem:[%s5048_s11 + $0x58] sm:$0xff] }
 0x113   : > { %3056 = vmatprep.subr.bf16.mxu0 %v4079_v59  ;;  %v974_v59 = vld [vmem:[%s5048_s11 + $0x318] sm:$0xff] }
 0x114   : > { %3030 = vmatpush2.bf16.msra.mxu1 %v3966_v56  ;;  %v3923_v56 = vcombine.high %v990_v50, %v998_v52  ;;  %v3906_v7 = vcombine.low %v974_v59, %v982_v60 }
 0x115   : > { %3031 = vmatprep.subr.bf16.mxu1 %v3951_v58  ;;  %v901_v58 = vld [vmem:[%s5048_s11 + $0xd0] sm:$0xff] }
 0x116   : > { %3057 = vmatpush1.bf16.msra.mxu0 %v4078_v1  ;;  %v3825_v63 = vcombine.high %v893_v57, %v901_v58  ;;  %v877_v1 = vld [vmem:[%s5048_s11 + $0x10] sm:$0xff]  ;;  %v3824_v6 = vcombine.low %v893_v57, %v901_v58  ;;  %v1126_v57 = vld [vmem:[%s5048_s11 + $0x7d8] sm:$0xff] }
 0x117   : > { %3058 = vmatprep.subr.bf16.mxu0 %v4063_v3  ;;  %v958_v3 = vld [vmem:[%s5048_s11 + $0x298] sm:$0xff] }
 0x118   : > { %3032 = vmatpush2.bf16.msra.mxu1 %v3950_v0  ;;  %v3907_v0 = vcombine.high %v974_v59, %v982_v60  ;;  %v3890_v16 = vcombine.low %v958_v3, %v966_v4 }
 0x119   : > { %3033 = vmatprep.subr.bf16.mxu1 %v3935_v2  ;;  %v885_v2 = vld [vmem:[%s5048_s11 + $0x50] sm:$0xff] }
 0x11a   : > { %3059 = vmatpush1.bf16.msra.mxu0 %v4062_v10  ;;  %v3891_v10 = vcombine.high %v958_v3, %v966_v4  ;;  %v3808_v15 = vcombine.low %v877_v1, %v885_v2 }
 0x11b   : > { %3085 = vmatprep.subr.bf16.mxu0 %v3921_v11  ;;  %v1117_v11 = vld [vmem:[%s5048_s11 + $0x790] sm:$0xff] }
 0x11c   : > { %3034 = vmatpush2.bf16.msra.mxu1 %v3934_v8  ;;  %v3809_v8 = vcombine.high %v877_v1, %v885_v2  ;;  %v1110_v1 = vld [vmem:[%s5048_s11 + $0x758] sm:$0xff] }
 0x11d   : > { %4144 = vmatprep.subr.msk.bf16.mxu1 %vm2872_vm0, %v4129_v12  ;;  %4143 = vmatmul.mubr.msk.bf16.vlgmr.msra.gmra.mxu0 %vm2868_vm1, %v5093_v5  ;;  %v1125_v12 = vld [vmem:[%s5048_s11 + $0x7d0] sm:$0xff] }
 0x11e   : > { %3086 = vmatpush1.bf16.msra.mxu0 %v3920_v18  ;;  %3117 = vmatprep.mubr.bf16.mxu0 %v5081_v51  ;;  %v4049_v17 = vcombine.high %v1117_v11, %v1125_v12  ;;  %v3875_v18 = vcombine.high %v942_v13, %v950_v14  ;;  %v4048_v23 = vcombine.low %v1117_v11, %v1125_v12  ;;  %v1094_v11 = vld [vmem:[%s5048_s11 + $0x6d8] sm:$0xff] }
 0x11f   : > { %3036 = vmatmul.mubr.bf16.vlgmr.msra.gmra.mxu1 %v5073_v42  ;;  %3087 = vmatprep.subr.bf16.mxu0 %v3905_v20  ;;  %v1109_v20 = vld [vmem:[%s5048_s11 + $0x750] sm:$0xff] }
 0x120   : > { %3133 = vmatpush1.bf16.msra.mxu1 %v2886_v19  ;;  %3158 = vmatprep.mubr.bf16.mxu1 %v4301_v9  ;;  %v1101_v19 = vld [vmem:[%s5048_s11 + $0x710] sm:$0xff] }
 0x121   : > { %3134 = vmatprep.subr.bf16.mxu1 %v4113_v21  ;;  %v926_v21 = vld [vmem:[%s5048_s11 + $0x198] sm:$0xff]  ;;  %v4033_v25 = vcombine.high %v1101_v19, %v1109_v20  ;;  %v4032_v31 = vcombine.low %v1101_v19, %v1109_v20 }
 0x122   : > { %3088 = vmatpush1.bf16.msra.mxu0 %v3904_v26  ;;  %v3859_v26 = vcombine.high %v926_v21, %v934_v22  ;;  %v3858_v32 = vcombine.low %v926_v21, %v934_v22 }
 0x123   : > { %3089 = vmatprep.subr.bf16.mxu0 %v3889_v28  ;;  %v1093_v28 = vld [vmem:[%s5048_s11 + $0x6d0] sm:$0xff] }
 0x124   : > { %3135 = vmatpush1.bf16.msra.mxu1 %v4112_v27  ;;  %v1085_v27 = vld [vmem:[%s5048_s11 + $0x690] sm:$0xff] }
 0x125   : > { %3136 = vmatprep.subr.bf16.mxu1 %v4097_v29  ;;  %v910_v29 = vld [vmem:[%s5048_s11 + $0x118] sm:$0xff]  ;;  %v4017_v33 = vcombine.high %v1085_v27, %v1093_v28  ;;  %v4016_v40 = vcombine.low %v1085_v27, %v1093_v28 }
 0x126   : > { %3090 = vmatpush1.bf16.msra.mxu0 %v3888_v35  ;;  %v3843_v35 = vcombine.high %v910_v29, %v918_v30  ;;  %v3842_v41 = vcombine.low %v910_v29, %v918_v30  ;;  %v1190_v27 = vld [vmem:[%s5048_s11 + $0x9d8] sm:$0xff] }
 0x127   : > { %3091 = vmatprep.subr.bf16.mxu0 %v3873_v37  ;;  %v1077_v37 = vld [vmem:[%s5048_s11 + $0x650] sm:$0xff] }
 0x128   : > { %3137 = vmatpush1.bf16.msra.mxu1 %v4096_v36  ;;  %v1069_v36 = vld [vmem:[%s5048_s11 + $0x610] sm:$0xff] }
 0x129   : > { %3138 = vmatprep.subr.bf16.mxu1 %v4081_v38  ;;  %v894_v38 = vld [vmem:[%s5048_s11 + $0x98] sm:$0xff]  ;;  %v4001_v43 = vcombine.high %v1069_v36, %v1077_v37  ;;  %v4000_v49 = vcombine.low %v1069_v36, %v1077_v37 }
 0x12a   : > { %3092 = vmatpush1.bf16.msra.mxu0 %v3872_v44  ;;  %v3827_v44 = vcombine.high %v894_v38, %v902_v39  ;;  %v3826_v50 = vcombine.low %v894_v38, %v902_v39  ;;  %v1174_v36 = vld [vmem:[%s5048_s11 + $0x958] sm:$0xff] }
 0x12b   : > { %3093 = vmatprep.subr.bf16.mxu0 %v3857_v46  ;;  %v1061_v46 = vld [vmem:[%s5048_s11 + $0x5d0] sm:$0xff] }
 0x12c   : > { %3139 = vmatpush1.bf16.msra.mxu1 %v4080_v45  ;;  %v1053_v45 = vld [vmem:[%s5048_s11 + $0x590] sm:$0xff] }
 0x12d   : > { %3140 = vmatprep.subr.bf16.mxu1 %v4065_v47  ;;  %v878_v47 = vld [vmem:[%s5048_s11 + $0x18] sm:$0xff]  ;;  %v3985_v52 = vcombine.high %v1053_v45, %v1061_v46  ;;  %v3984_v58 = vcombine.low %v1053_v45, %v1061_v46 }
 0x12e   : > { %3094 = vmatpush1.bf16.msra.mxu0 %v3856_v53  ;;  %v3811_v53 = vcombine.high %v878_v47, %v886_v48  ;;  %v3810_v59 = vcombine.low %v878_v47, %v886_v48  ;;  %v1158_v45 = vld [vmem:[%s5048_s11 + $0x8d8] sm:$0xff] }
 0x12f   : > { %3095 = vmatprep.subr.bf16.mxu0 %v3841_v55  ;;  %v1045_v55 = vld [vmem:[%s5048_s11 + $0x550] sm:$0xff] }
 0x130   : > { %3141 = vmatpush1.bf16.msra.mxu1 %v4064_v54  ;;  %v1037_v54 = vld [vmem:[%s5048_s11 + $0x510] sm:$0xff] }
 0x131   : > { %3167 = vmatprep.subr.bf16.mxu1 %v3923_v56  ;;  %v1118_v56 = vld [vmem:[%s5048_s11 + $0x798] sm:$0xff]  ;;  %v3969_v60 = vcombine.high %v1037_v54, %v1045_v55  ;;  %v3968_v2 = vcombine.low %v1037_v54, %v1045_v55 }
 0x132   : > { %3096 = vmatpush1.bf16.msra.mxu0 %v3840_v61  ;;  %v4051_v61 = vcombine.high %v1118_v56, %v1126_v57  ;;  %v4050_v3 = vcombine.low %v1118_v56, %v1126_v57  ;;  %v1142_v54 = vld [vmem:[%s5048_s11 + $0x858] sm:$0xff] }
 0x133   : > { %4145 = vmatmul.mubr.msk.bf16.vlgmr.msra.gmra.mxu1 %vm2868_vm1, %v5093_v5  ;;  %3097 = vmatprep.subr.bf16.mxu0 %v3825_v63  ;;  %v1029_v63 = vld [vmem:[%s5048_s11 + $0x4d0] sm:$0xff] }
 0x134   : > { %3168 = vmatpush1.bf16.msra.mxu1 %v3922_v62  ;;  %3199 = vmatprep.mubr.bf16.mxu1 %v5081_v51  ;;  %v1021_v62 = vld [vmem:[%s5048_s11 + $0x490] sm:$0xff] }
 0x135   : > { %3169 = vmatprep.subr.bf16.mxu1 %v3907_v0  ;;  %v1102_v0 = vld [vmem:[%s5048_s11 + $0x718] sm:$0xff]  ;;  %v3953_v4 = vcombine.high %v1021_v62, %v1029_v63  ;;  %v3952_v12 = vcombine.low %v1021_v62, %v1029_v63 }
 0x136   : > { %3098 = vmatpush1.bf16.msra.mxu0 %v3824_v6  ;;  %v4035_v6 = vcombine.high %v1102_v0, %v1110_v1  ;;  %v4034_v13 = vcombine.low %v1102_v0, %v1110_v1 }
 0x137   : > { %3099 = vmatprep.subr.bf16.mxu0 %v3809_v8  ;;  %v1013_v8 = vld [vmem:[%s5048_s11 + $0x450] sm:$0xff] }
 0x138   : > { %3170 = vmatpush1.bf16.msra.mxu1 %v3906_v7  ;;  %v1005_v7 = vld [vmem:[%s5048_s11 + $0x410] sm:$0xff] }
 0x139   : > { %3171 = vmatprep.subr.bf16.mxu1 %v3891_v10  ;;  %v1086_v10 = vld [vmem:[%s5048_s11 + $0x698] sm:$0xff]  ;;  %v3937_v14 = vcombine.high %v1005_v7, %v1013_v8  ;;  %v3936_v19 = vcombine.low %v1005_v7, %v1013_v8  ;;  %v1191_v7 = vld [vmem:[%s5048_s11 + $0x9e0] sm:$0xff] }
 0x13a   : > { %3100 = vmatpush1.bf16.msra.mxu0 %v3808_v15  ;;  %v4019_v15 = vcombine.high %v1086_v10, %v1094_v11  ;;  %v4018_v20 = vcombine.low %v1086_v10, %v1094_v11 }
 0x13b   : > { %3101 = vmatprep.subr.bf16.mxu0 %v4049_v17  ;;  %v1078_v17 = vld [vmem:[%s5048_s11 + $0x658] sm:$0xff] }
 0x13c   : > { %3172 = vmatpush1.bf16.msra.mxu1 %v3890_v16  ;;  %v1070_v16 = vld [vmem:[%s5048_s11 + $0x618] sm:$0xff] }
 0x13d   : > { %3173 = vmatprep.subr.bf16.mxu1 %v3875_v18  ;;  %v1198_v18 = vld [vmem:[%s5048_s11 + $0xa18] sm:$0x33]  ;;  %v4003_v21 = vcombine.high %v1070_v16, %v1078_v17  ;;  %v4002_v28 = vcombine.low %v1070_v16, %v1078_v17  ;;  %v1175_v16 = vld [vmem:[%s5048_s11 + $0x960] sm:$0xff] }
 0x13e   : > { %3102 = vmatpush2.bf16.msra.mxu0 %v4048_v23  ;;  %v4131_v22 = vcombine.high %v1198_v18, %v1198_v18  ;;  %v4130_v23 = vcombine.low %v1198_v18, %v1198_v18 }
 0x13f   : > { %3103 = vmatprep.subr.bf16.mxu0 %v4033_v25  ;;  %v1062_v25 = vld [vmem:[%s5048_s11 + $0x5d8] sm:$0xff] }
 0x140   : > { %3174 = vmatpush1.bf16.msra.mxu1 %v3874_v24  ;;  %v1054_v24 = vld [vmem:[%s5048_s11 + $0x598] sm:$0xff]  ;;  %v2892_v29 = vsel %vm2872_vm0, %v4130_v23, 0  ;;  %v1151_v23 = vld [vmem:[%s5048_s11 + $0x8a0] sm:$0xff] }
 0x141   : > { %3175 = vmatprep.subr.bf16.mxu1 %v3859_v26  ;;  %v1182_v26 = vld [vmem:[%s5048_s11 + $0x998] sm:$0xff]  ;;  %v3987_v30 = vcombine.high %v1054_v24, %v1062_v25  ;;  %v3986_v37 = vcombine.low %v1054_v24, %v1062_v25  ;;  %v1159_v24 = vld [vmem:[%s5048_s11 + $0x8e0] sm:$0xff] }
 0x142   : > { %3104 = vmatpush2.bf16.msra.mxu0 %v4032_v31  ;;  %v4115_v31 = vcombine.high %v1182_v26, %v1190_v27  ;;  %v4114_v38 = vcombine.low %v1182_v26, %v1190_v27 }
 0x143   : > { %3105 = vmatprep.subr.bf16.mxu0 %v4017_v33  ;;  %v1046_v33 = vld [vmem:[%s5048_s11 + $0x558] sm:$0xff] }
 0x144   : > { %3176 = vmatpush1.bf16.msra.mxu1 %v3858_v32  ;;  %v1038_v32 = vld [vmem:[%s5048_s11 + $0x518] sm:$0xff] }
 0x145   : > { %3177 = vmatprep.subr.bf16.mxu1 %v3843_v35  ;;  %v1166_v35 = vld [vmem:[%s5048_s11 + $0x918] sm:$0xff]  ;;  %v3971_v39 = vcombine.high %v1038_v32, %v1046_v33  ;;  %v3970_v46 = vcombine.low %v1038_v32, %v1046_v33  ;;  %v1143_v32 = vld [vmem:[%s5048_s11 + $0x860] sm:$0xff] }
 0x146   : > { %3106 = vmatpush2.bf16.msra.mxu0 %v4016_v40  ;;  %v4099_v40 = vcombine.high %v1166_v35, %v1174_v36  ;;  %v4098_v47 = vcombine.low %v1166_v35, %v1174_v36  ;;  %v4084_v35 = vcombine.low %v1151_v23, %v1159_v24 }
 0x147   : > { %3107 = vmatprep.subr.bf16.mxu0 %v4001_v43  ;;  %v1030_v43 = vld [vmem:[%s5048_s11 + $0x4d8] sm:$0xff] }
 0x148   : > { %3178 = vmatpush1.bf16.msra.mxu1 %v3842_v41  ;;  %v1022_v41 = vld [vmem:[%s5048_s11 + $0x498] sm:$0xff] }
 0x149   : > { %3179 = vmatprep.subr.bf16.mxu1 %v3827_v44  ;;  %v1150_v44 = vld [vmem:[%s5048_s11 + $0x898] sm:$0xff]  ;;  %v3955_v48 = vcombine.high %v1022_v41, %v1030_v43  ;;  %v3954_v55 = vcombine.low %v1022_v41, %v1030_v43  ;;  %v1000_v41 = vld [vmem:[%s5048_s11 + $0x3e8] sm:$0xff] }
 0x14a   : > { %3108 = vmatpush2.bf16.msra.mxu0 %v4000_v49  ;;  %v4083_v49 = vcombine.high %v1150_v44, %v1158_v45  ;;  %v4082_v56 = vcombine.low %v1150_v44, %v1158_v45 }
 0x14b   : > { %3109 = vmatprep.subr.bf16.mxu0 %v3985_v52  ;;  %v1014_v52 = vld [vmem:[%s5048_s11 + $0x458] sm:$0xff] }
 0x14c   : > { %3180 = vmatpush1.bf16.msra.mxu1 %v3826_v50  ;;  %v1006_v50 = vld [vmem:[%s5048_s11 + $0x418] sm:$0xff] }
 0x14d   : > { %3181 = vmatprep.subr.bf16.mxu1 %v3811_v53  ;;  %v1134_v53 = vld [vmem:[%s5048_s11 + $0x818] sm:$0xff]  ;;  %v3939_v57 = vcombine.high %v1006_v50, %v1014_v52  ;;  %v3938_v62 = vcombine.low %v1006_v50, %v1014_v52  ;;  %v984_v50 = vld [vmem:[%s5048_s11 + $0x368] sm:$0xff] }
 0x14e   : > { %3110 = vmatpush2.bf16.msra.mxu0 %v3984_v58  ;;  %v4067_v58 = vcombine.high %v1134_v53, %v1142_v54  ;;  %v4066_v63 = vcombine.low %v1134_v53, %v1142_v54 }
 0x14f   : > { %3111 = vmatprep.subr.bf16.mxu0 %v3969_v60  ;;  %v999_v60 = vld [vmem:[%s5048_s11 + $0x3e0] sm:$0xff] }
 0x150   : > { %3182 = vmatpush1.bf16.msra.mxu1 %v3810_v59  ;;  %v991_v59 = vld [vmem:[%s5048_s11 + $0x3a0] sm:$0xff] }
 0x151   : > { %3183 = vmatprep.subr.bf16.mxu1 %v4051_v61  ;;  %v1199_v61 = vld [vmem:[%s5048_s11 + $0xa20] sm:$0x33]  ;;  %v3925_v0 = vcombine.high %v991_v59, %v999_v60  ;;  %v3924_v8 = vcombine.low %v991_v59, %v999_v60  ;;  %v968_v59 = vld [vmem:[%s5048_s11 + $0x2e8] sm:$0xff] }
 0x152   : > { %3112 = vmatpush2.bf16.msra.mxu0 %v3968_v2  ;;  %v4133_v1 = vcombine.high %v1199_v61, %v1199_v61  ;;  %v4132_v2 = vcombine.low %v1199_v61, %v1199_v61 }
 0x153   : > { %3113 = vmatprep.subr.bf16.mxu0 %v3953_v4  ;;  %v983_v4 = vld [vmem:[%s5048_s11 + $0x360] sm:$0xff] }
 0x154   : > { %3184 = vmatpush2.bf16.msra.mxu1 %v4050_v3  ;;  %v975_v3 = vld [vmem:[%s5048_s11 + $0x320] sm:$0xff]  ;;  %v2898_v10 = vsel %vm2872_vm0, %v4132_v2, 0  ;;  %v944_v2 = vld [vmem:[%s5048_s11 + $0x228] sm:$0xff] }
 0x155   : > { %3185 = vmatprep.subr.bf16.mxu1 %v4035_v6  ;;  %v1183_v6 = vld [vmem:[%s5048_s11 + $0x9a0] sm:$0xff]  ;;  %v3909_v11 = vcombine.high %v975_v3, %v983_v4  ;;  %v3908_v17 = vcombine.low %v975_v3, %v983_v4  ;;  %v952_v3 = vld [vmem:[%s5048_s11 + $0x268] sm:$0xff] }
 0x156   : > { %3114 = vmatpush2.bf16.msra.mxu0 %v3952_v12  ;;  %v4117_v12 = vcombine.high %v1183_v6, %v1191_v7  ;;  %v4116_v18 = vcombine.low %v1183_v6, %v1191_v7 }
 0x157   : > { %3115 = vmatprep.subr.bf16.mxu0 %v3937_v14  ;;  %v967_v14 = vld [vmem:[%s5048_s11 + $0x2e0] sm:$0xff] }
 0x158   : > { %3186 = vmatpush2.bf16.msra.mxu1 %v4034_v13  ;;  %v959_v13 = vld [vmem:[%s5048_s11 + $0x2a0] sm:$0xff] }
 0x159   : > { %3187 = vmatprep.subr.bf16.mxu1 %v4019_v15  ;;  %v1167_v15 = vld [vmem:[%s5048_s11 + $0x920] sm:$0xff]  ;;  %v3892_v25 = vcombine.low %v959_v13, %v967_v14 }
 0x15a   : > { %3116 = vmatpush2.bf16.msra.mxu0 %v3936_v19  ;;  %v3893_v19 = vcombine.high %v959_v13, %v967_v14  ;;  %v4100_v26 = vcombine.low %v1167_v15, %v1175_v16  ;;  %v936_v13 = vld [vmem:[%s5048_s11 + $0x1e8] sm:$0xff] }
 0x15b   : > { %4146 = vmatprep.subr.msk.bf16.mxu0 %vm2872_vm0, %v4131_v22  ;;  %v951_v22 = vld [vmem:[%s5048_s11 + $0x260] sm:$0xff] }
 0x15c   : > { %3188 = vmatpush2.bf16.msra.mxu1 %v4018_v20  ;;  %v4101_v20 = vcombine.high %v1167_v15, %v1175_v16  ;;  %v3878_v15 = vcombine.low %v944_v2, %v952_v3 }
 0x15d   : > { %3189 = vmatprep.subr.bf16.mxu1 %v4003_v21  ;;  %3118 = vmatmul.mubr.bf16.vlgmr.msra.gmra.mxu0 %v5073_v42  ;;  %v943_v21 = vld [vmem:[%s5048_s11 + $0x220] sm:$0xff] }
 0x15e   : > { %3215 = vmatpush1.bf16.msra.mxu0 %v2892_v29  ;;  %3240 = vmatprep.mubr.bf16.mxu0 %v4301_v9  ;;  %v3877_v27 = vcombine.high %v943_v21, %v951_v22  ;;  %v927_v29 = vld [vmem:[%s5048_s11 + $0x1a0] sm:$0xff]  ;;  %v3876_v33 = vcombine.low %v943_v21, %v951_v22  ;;  %v920_v21 = vld [vmem:[%s5048_s11 + $0x168] sm:$0xff] }
 0x15f   : > { %3216 = vmatprep.subr.bf16.mxu0 %v4115_v31  ;;  %v1135_v31 = vld [vmem:[%s5048_s11 + $0x820] sm:$0xff] }
 0x160   : > { %3190 = vmatpush2.bf16.msra.mxu1 %v4002_v28  ;;  %v4085_v28 = vcombine.high %v1151_v23, %v1159_v24  ;;  %v4068_v44 = vcombine.low %v1135_v31, %v1143_v32 }
 0x161   : > { %3191 = vmatprep.subr.bf16.mxu1 %v3987_v30  ;;  %v935_v30 = vld [vmem:[%s5048_s11 + $0x1e0] sm:$0xff] }
 0x162   : > { %3217 = vmatpush1.bf16.msra.mxu0 %v4114_v38  ;;  %v3861_v36 = vcombine.high %v927_v29, %v935_v30  ;;  %v911_v38 = vld [vmem:[%s5048_s11 + $0x120] sm:$0xff]  ;;  %v3860_v43 = vcombine.low %v927_v29, %v935_v30  ;;  %v904_v29 = vld [vmem:[%s5048_s11 + $0xe8] sm:$0xff] }
 0x163   : > { %3218 = vmatprep.subr.bf16.mxu0 %v4099_v40  ;;  %v992_v40 = vld [vmem:[%s5048_s11 + $0x3a8] sm:$0xff] }
 0x164   : > { %3192 = vmatpush2.bf16.msra.mxu1 %v3986_v37  ;;  %v4069_v37 = vcombine.high %v1135_v31, %v1143_v32  ;;  %v3926_v53 = vcombine.low %v992_v40, %v1000_v41 }
 0x165   : > { %3193 = vmatprep.subr.bf16.mxu1 %v3971_v39  ;;  %v919_v39 = vld [vmem:[%s5048_s11 + $0x160] sm:$0xff] }
 0x166   : > { %3219 = vmatpush1.bf16.msra.mxu0 %v4098_v47  ;;  %v3845_v45 = vcombine.high %v911_v38, %v919_v39  ;;  %v895_v47 = vld [vmem:[%s5048_s11 + $0xa0] sm:$0xff]  ;;  %v3844_v52 = vcombine.low %v911_v38, %v919_v39  ;;  %v888_v38 = vld [vmem:[%s5048_s11 + $0x68] sm:$0xff] }
 0x167   : > { %3220 = vmatprep.subr.bf16.mxu0 %v4083_v49  ;;  %v976_v49 = vld [vmem:[%s5048_s11 + $0x328] sm:$0xff] }
 0x168   : > { %3194 = vmatpush2.bf16.msra.mxu1 %v3970_v46  ;;  %v3927_v46 = vcombine.high %v992_v40, %v1000_v41  ;;  %v3910_v61 = vcombine.low %v976_v49, %v984_v50 }
 0x169   : > { %3195 = vmatprep.subr.bf16.mxu1 %v3955_v48  ;;  %v903_v48 = vld [vmem:[%s5048_s11 + $0xe0] sm:$0xff] }
 0x16a   : > { %3221 = vmatpush1.bf16.msra.mxu0 %v4082_v56  ;;  %v3829_v54 = vcombine.high %v895_v47, %v903_v48  ;;  %v879_v56 = vld [vmem:[%s5048_s11 + $0x20] sm:$0xff]  ;;  %v3828_v60 = vcombine.low %v895_v47, %v903_v48  ;;  %v1128_v47 = vld [vmem:[%s5048_s11 + $0x7e8] sm:$0xff] }
 0x16b   : > { %3222 = vmatprep.subr.bf16.mxu0 %v4067_v58  ;;  %v960_v58 = vld [vmem:[%s5048_s11 + $0x2a8] sm:$0xff] }
 0x16c   : > { %3196 = vmatpush2.bf16.msra.mxu1 %v3954_v55  ;;  %v3911_v55 = vcombine.high %v976_v49, %v984_v50  ;;  %v3894_v6 = vcombine.low %v960_v58, %v968_v59 }
 0x16d   : > { %3197 = vmatprep.subr.bf16.mxu1 %v3939_v57  ;;  %v887_v57 = vld [vmem:[%s5048_s11 + $0x60] sm:$0xff] }
 0x16e   : > { %3223 = vmatpush1.bf16.msra.mxu0 %v4066_v63  ;;  %v3895_v63 = vcombine.high %v960_v58, %v968_v59  ;;  %v3812_v4 = vcombine.low %v879_v56, %v887_v57  ;;  %v1112_v58 = vld [vmem:[%s5048_s11 + $0x768] sm:$0xff] }
 0x16f   : > { %3249 = vmatprep.subr.bf16.mxu0 %v3925_v0  ;;  %v1119_v0 = vld [vmem:[%s5048_s11 + $0x7a0] sm:$0xff] }
 0x170   : > { %3198 = vmatpush2.bf16.msra.mxu1 %v3938_v62  ;;  %v3813_v62 = vcombine.high %v879_v56, %v887_v57  ;;  %v1031_v56 = vld [vmem:[%s5048_s11 + $0x4e0] sm:$0xff]  ;;  %v1104_v57 = vld [vmem:[%s5048_s11 + $0x728] sm:$0xff] }
 0x171   : > { %4148 = vmatprep.subr.msk.bf16.mxu1 %vm2872_vm0, %v4133_v1  ;;  %4147 = vmatmul.mubr.msk.bf16.vlgmr.msra.gmra.mxu0 %vm2868_vm1, %v5093_v5  ;;  %v1127_v1 = vld [vmem:[%s5048_s11 + $0x7e0] sm:$0xff] }
 0x172   : > { %3250 = vmatpush1.bf16.msra.mxu0 %v3924_v8  ;;  %3281 = vmatprep.mubr.bf16.mxu0 %v5081_v51  ;;  %v4053_v7 = vcombine.high %v1119_v0, %v1127_v1  ;;  %v3879_v8 = vcombine.high %v944_v2, %v952_v3  ;;  %v4052_v14 = vcombine.low %v1119_v0, %v1127_v1  ;;  %v1007_v1 = vld [vmem:[%s5048_s11 + $0x420] sm:$0xff]  ;;  %v1088_v3 = vld [vmem:[%s5048_s11 + $0x6a8] sm:$0xff] }
 0x173   : > { %3200 = vmatmul.mubr.bf16.vlgmr.msra.gmra.mxu1 %v5073_v42  ;;  %3251 = vmatprep.subr.bf16.mxu0 %v3909_v11  ;;  %v1111_v11 = vld [vmem:[%s5048_s11 + $0x760] sm:$0xff]  ;;  %v4039_v0 = vcombine.high %v1104_v57, %v1112_v58 }
 0x174   : > { %3297 = vmatpush1.bf16.msra.mxu1 %v2898_v10  ;;  %3322 = vmatprep.mubr.bf16.mxu1 %v4301_v9  ;;  %v1103_v10 = vld [vmem:[%s5048_s11 + $0x720] sm:$0xff] }
 0x175   : > { %3298 = vmatprep.subr.bf16.mxu1 %v4117_v12  ;;  %v928_v12 = vld [vmem:[%s5048_s11 + $0x1a8] sm:$0xff]  ;;  %v4037_v16 = vcombine.high %v1103_v10, %v1111_v11  ;;  %v4036_v22 = vcombine.low %v1103_v10, %v1111_v11  ;;  %v1015_v2 = vld [vmem:[%s5048_s11 + $0x460] sm:$0xff] }
 0x176   : > { %3252 = vmatpush1.bf16.msra.mxu0 %v3908_v17  ;;  %v3863_v17 = vcombine.high %v928_v12, %v936_v13  ;;  %v3862_v23 = vcombine.low %v928_v12, %v936_v13  ;;  %v1072_v11 = vld [vmem:[%s5048_s11 + $0x628] sm:$0xff] }
 0x177   : > { %3253 = vmatprep.subr.bf16.mxu0 %v3893_v19  ;;  %v1095_v19 = vld [vmem:[%s5048_s11 + $0x6e0] sm:$0xff]  ;;  %v1080_v12 = vld [vmem:[%s5048_s11 + $0x668] sm:$0xff] }
 0x178   : > { %3299 = vmatpush1.bf16.msra.mxu1 %v4116_v18  ;;  %v1087_v18 = vld [vmem:[%s5048_s11 + $0x6a0] sm:$0xff]  ;;  %v1200_v13 = vld [vmem:[%s5048_s11 + $0xa28] sm:$0x33] }
 0x179   : > { %3300 = vmatprep.subr.bf16.mxu1 %v4101_v20  ;;  %v912_v20 = vld [vmem:[%s5048_s11 + $0x128] sm:$0xff]  ;;  %v4021_v24 = vcombine.high %v1087_v18, %v1095_v19  ;;  %v4020_v30 = vcombine.low %v1087_v18, %v1095_v19  ;;  %v4134_v18 = vcombine.low %v1200_v13, %v1200_v13 }
 0x17a   : > { %3254 = vmatpush1.bf16.msra.mxu0 %v3892_v25  ;;  %v3847_v25 = vcombine.high %v912_v20, %v920_v21  ;;  %v3846_v31 = vcombine.low %v912_v20, %v920_v21  ;;  %v1056_v19 = vld [vmem:[%s5048_s11 + $0x5a8] sm:$0xff] }
 0x17b   : > { %3255 = vmatprep.subr.bf16.mxu0 %v3877_v27  ;;  %v1079_v27 = vld [vmem:[%s5048_s11 + $0x660] sm:$0xff]  ;;  %v1064_v20 = vld [vmem:[%s5048_s11 + $0x5e8] sm:$0xff] }
 0x17c   : > { %3301 = vmatpush1.bf16.msra.mxu1 %v4100_v26  ;;  %v1071_v26 = vld [vmem:[%s5048_s11 + $0x620] sm:$0xff]  ;;  %v1184_v21 = vld [vmem:[%s5048_s11 + $0x9a8] sm:$0xff] }
 0x17d   : > { %3302 = vmatprep.subr.bf16.mxu1 %v4085_v28  ;;  %v896_v28 = vld [vmem:[%s5048_s11 + $0xa8] sm:$0xff]  ;;  %v4005_v32 = vcombine.high %v1071_v26, %v1079_v27  ;;  %v4004_v39 = vcombine.low %v1071_v26, %v1079_v27 }
 0x17e   : > { %3256 = vmatpush1.bf16.msra.mxu0 %v3876_v33  ;;  %v3831_v33 = vcombine.high %v896_v28, %v904_v29  ;;  %v3830_v40 = vcombine.low %v896_v28, %v904_v29  ;;  %v1040_v27 = vld [vmem:[%s5048_s11 + $0x528] sm:$0xff] }
 0x17f   : > { %3257 = vmatprep.subr.bf16.mxu0 %v3861_v36  ;;  %v1063_v36 = vld [vmem:[%s5048_s11 + $0x5e0] sm:$0xff]  ;;  %v1048_v28 = vld [vmem:[%s5048_s11 + $0x568] sm:$0xff] }
 0x180   : > { %3303 = vmatpush1.bf16.msra.mxu1 %v4084_v35  ;;  %v1055_v35 = vld [vmem:[%s5048_s11 + $0x5a0] sm:$0xff]  ;;  %v1168_v29 = vld [vmem:[%s5048_s11 + $0x928] sm:$0xff] }
 0x181   : > { %3304 = vmatprep.subr.bf16.mxu1 %v4069_v37  ;;  %v880_v37 = vld [vmem:[%s5048_s11 + $0x28] sm:$0xff]  ;;  %v3989_v41 = vcombine.high %v1055_v35, %v1063_v36  ;;  %v3988_v49 = vcombine.low %v1055_v35, %v1063_v36 }
 0x182   : > { %3258 = vmatpush1.bf16.msra.mxu0 %v3860_v43  ;;  %v3815_v43 = vcombine.high %v880_v37, %v888_v38  ;;  %v3814_v50 = vcombine.low %v880_v37, %v888_v38  ;;  %v1024_v36 = vld [vmem:[%s5048_s11 + $0x4a8] sm:$0xff] }
 0x183   : > { %3259 = vmatprep.subr.bf16.mxu0 %v3845_v45  ;;  %v1047_v45 = vld [vmem:[%s5048_s11 + $0x560] sm:$0xff]  ;;  %v1032_v37 = vld [vmem:[%s5048_s11 + $0x4e8] sm:$0xff] }
 0x184   : > { %3305 = vmatpush1.bf16.msra.mxu1 %v4068_v44  ;;  %v1039_v44 = vld [vmem:[%s5048_s11 + $0x520] sm:$0xff]  ;;  %v1152_v38 = vld [vmem:[%s5048_s11 + $0x8a8] sm:$0xff] }
 0x185   : > { %3331 = vmatprep.subr.bf16.mxu1 %v3927_v46  ;;  %v1120_v46 = vld [vmem:[%s5048_s11 + $0x7a8] sm:$0xff] }
 0x186   : > { %3260 = vmatpush1.bf16.msra.mxu0 %v3844_v52 }
 0x187   : > { %4149 = vmatmul.mubr.msk.bf16.vlgmr.msra.gmra.mxu1 %vm2868_vm1, %v5093_v5  ;;  %3261 = vmatprep.subr.bf16.mxu0 %v3829_v54  ;;  %v4055_v54 = vcombine.high %v1120_v46, %v1128_v47 }
 0x188   : > { %3332 = vmatpush1.bf16.msra.mxu1 %v3926_v53  ;;  %3363 = vmatprep.mubr.bf16.mxu1 %v5081_v51  ;;  %v3973_v53 = vcombine.high %v1039_v44, %v1047_v45 }
 0x189   : > { %3333 = vmatprep.subr.bf16.mxu1 %v3911_v55  ;;  %v1023_v55 = vld [vmem:[%s5048_s11 + $0x4a0] sm:$0xff] }
 0x18a   : > { %3262 = vmatpush1.bf16.msra.mxu0 %v3828_v60  ;;  %v3972_v60 = vcombine.low %v1039_v44, %v1047_v45  ;;  %v1008_v45 = vld [vmem:[%s5048_s11 + $0x428] sm:$0xff] }
 0x18b   : > { %3263 = vmatprep.subr.bf16.mxu0 %v3813_v62 }
 0x18c   : > { %3334 = vmatpush1.bf16.msra.mxu1 %v3910_v61  ;;  %v4054_v61 = vcombine.low %v1120_v46, %v1128_v47  ;;  %v1016_v46 = vld [vmem:[%s5048_s11 + $0x468] sm:$0xff] }
 0x18d   : > { %3335 = vmatprep.subr.bf16.mxu1 %v3895_v63  ;;  %v3957_v63 = vcombine.high %v1023_v55, %v1031_v56  ;;  %v1136_v47 = vld [vmem:[%s5048_s11 + $0x828] sm:$0xff] }
 0x18e   : > { %3264 = vmatpush1.bf16.msra.mxu0 %v3812_v4  ;;  %v1096_v4 = vld [vmem:[%s5048_s11 + $0x6e8] sm:$0xff] }
 0x18f   : > { %3265 = vmatprep.subr.bf16.mxu0 %v4053_v7  ;;  %v4038_v7 = vcombine.low %v1104_v57, %v1112_v58  ;;  %v4023_v10 = vcombine.high %v1088_v3, %v1096_v4  ;;  %v1001_v57 = vld [vmem:[%s5048_s11 + $0x3f0] sm:$0xff] }
 0x190   : > { %3336 = vmatpush1.bf16.msra.mxu1 %v3894_v6  ;;  %v3956_v6 = vcombine.low %v1023_v55, %v1031_v56  ;;  %v993_v56 = vld [vmem:[%s5048_s11 + $0x3b0] sm:$0xff] }
 0x191   : > { %3337 = vmatprep.subr.bf16.mxu1 %v3879_v8  ;;  %v3941_v8 = vcombine.high %v1007_v1, %v1015_v2  ;;  %v1201_v58 = vld [vmem:[%s5048_s11 + $0xa30] sm:$0x33] }
 0x192   : > { %3266 = vmatpush2.bf16.msra.mxu0 %v4052_v14  ;;  %v3940_v14 = vcombine.low %v1007_v1, %v1015_v2  ;;  %v985_v1 = vld [vmem:[%s5048_s11 + $0x370] sm:$0xff] }
 0x193   : > { %3267 = vmatprep.subr.bf16.mxu0 %v4037_v16  ;;  %v4007_v16 = vcombine.high %v1072_v11, %v1080_v12  ;;  %v1185_v2 = vld [vmem:[%s5048_s11 + $0x9b0] sm:$0xff] }
 0x194   : > { %3338 = vmatpush1.bf16.msra.mxu1 %v3878_v15  ;;  %v4022_v15 = vcombine.low %v1088_v3, %v1096_v4  ;;  %v1193_v3 = vld [vmem:[%s5048_s11 + $0x9f0] sm:$0xff]  ;;  %v3928_v4 = vcombine.low %v993_v56, %v1001_v57 }
 0x195   : > { %3339 = vmatprep.subr.bf16.mxu1 %v3863_v17  ;;  %v4135_v17 = vcombine.high %v1200_v13, %v1200_v13  ;;  %v1177_v13 = vld [vmem:[%s5048_s11 + $0x970] sm:$0xff] }
 0x196   : > { %3268 = vmatpush2.bf16.msra.mxu0 %v4036_v22  ;;  %v1192_v22 = vld [vmem:[%s5048_s11 + $0x9e8] sm:$0xff] }
 0x197   : > { %3269 = vmatprep.subr.bf16.mxu0 %v4021_v24  ;;  %v2904_v24 = vsel %vm2872_vm0, %v4134_v18, 0  ;;  %v4119_v26 = vcombine.high %v1184_v21, %v1192_v22 }
 0x198   : > { %3340 = vmatpush1.bf16.msra.mxu1 %v3862_v23  ;;  %v4006_v23 = vcombine.low %v1072_v11, %v1080_v12  ;;  %v969_v11 = vld [vmem:[%s5048_s11 + $0x2f0] sm:$0xff] }
 0x199   : > { %3341 = vmatprep.subr.bf16.mxu1 %v3847_v25  ;;  %v3991_v25 = vcombine.high %v1056_v19, %v1064_v20  ;;  %v1169_v12 = vld [vmem:[%s5048_s11 + $0x930] sm:$0xff] }
 0x19a   : > { %3270 = vmatpush2.bf16.msra.mxu0 %v4020_v30  ;;  %v1176_v30 = vld [vmem:[%s5048_s11 + $0x968] sm:$0xff]  ;;  %v4105_v18 = vcombine.high %v1169_v12, %v1177_v13 }
 0x19b   : > { %3271 = vmatprep.subr.bf16.mxu0 %v4005_v32  ;;  %v4118_v32 = vcombine.low %v1184_v21, %v1192_v22  ;;  %v4103_v35 = vcombine.high %v1168_v29, %v1176_v30  ;;  %v1153_v21 = vld [vmem:[%s5048_s11 + $0x8b0] sm:$0xff] }
 0x19c   : > { %3342 = vmatpush1.bf16.msra.mxu1 %v3846_v31  ;;  %v3990_v31 = vcombine.low %v1056_v19, %v1064_v20  ;;  %v945_v19 = vld [vmem:[%s5048_s11 + $0x230] sm:$0xff] }
 0x19d   : > { %3343 = vmatprep.subr.bf16.mxu1 %v3831_v33  ;;  %v3975_v33 = vcombine.high %v1040_v27, %v1048_v28  ;;  %v953_v20 = vld [vmem:[%s5048_s11 + $0x270] sm:$0xff] }
 0x19e   : > { %3272 = vmatpush2.bf16.msra.mxu0 %v4004_v39  ;;  %v1160_v39 = vld [vmem:[%s5048_s11 + $0x8e8] sm:$0xff]  ;;  %v1161_v22 = vld [vmem:[%s5048_s11 + $0x8f0] sm:$0xff] }
 0x19f   : > { %v5321_v48 = vpop.f32.mrf.mxu1  ;;  %3273 = vmatprep.subr.bf16.mxu0 %v3989_v41  ;;  %v4102_v41 = vcombine.low %v1168_v29, %v1176_v30  ;;  %v4087_v44 = vcombine.high %v1152_v38, %v1160_v39  ;;  %v4089_v29 = vcombine.high %v1153_v21, %v1161_v22  ;;  %v929_v30 = vld [vmem:[%s5048_s11 + $0x1b0] sm:$0xff] }
 0x1a0   : > { %3344 = vmatpush1.bf16.msra.mxu1 %v3830_v40  ;;  %v3974_v40 = vcombine.low %v1040_v27, %v1048_v28  ;;  %v3881_v28 = vcombine.high %v945_v19, %v953_v20 }
 0x1a1   : > { %v5323_v52 = vpop.f32.mrf.mxu1  ;;  %3345 = vmatprep.subr.bf16.mxu1 %v3815_v43  ;;  %v3959_v43 = vcombine.high %v1024_v36, %v1032_v37 }
 0x1a2   : > { %3274 = vmatpush2.bf16.msra.mxu0 %v3988_v49  ;;  %v1144_v49 = vld [vmem:[%s5048_s11 + $0x868] sm:$0xff] }
 0x1a3   : > { %v3000_v59 = vpop.f32.mrf.mxu1  ;;  %3275 = vmatprep.subr.bf16.mxu0 %v3973_v53  ;;  %v4086_v53 = vcombine.low %v1152_v38, %v1160_v39  ;;  %v4071_v55 = vcombine.high %v1136_v47, %v1144_v49  ;;  %v3880_v39 = vcombine.low %v945_v19, %v953_v20 }
 0x1a4   : > { %3346 = vmatpush1.bf16.msra.mxu1 %v3814_v50  ;;  %v3958_v50 = vcombine.low %v1024_v36, %v1032_v37  ;;  %v3942_v59 = vcombine.low %v1008_v45, %v1016_v46  ;;  %v1145_v36 = vld [vmem:[%s5048_s11 + $0x870] sm:$0xff] }
 0x1a5   : > { %v3001_v62 = vpop.f32.mrf.mxu1  ;;  %3347 = vmatprep.subr.bf16.mxu1 %v4055_v54  ;;  %v3943_v54 = vcombine.high %v1008_v45, %v1016_v46 }
 0x1a6   : > { %3276 = vmatpush2.bf16.msra.mxu0 %v3972_v60  ;;  %v4070_v60 = vcombine.low %v1136_v47, %v1144_v49  ;;  %v4137_v62 = vcombine.high %v1201_v58, %v1201_v58  ;;  %v921_v47 = vld [vmem:[%s5048_s11 + $0x170] sm:$0xff]  ;;  %v994_v49 = vld [vmem:[%s5048_s11 + $0x3b8] sm:$0xff] }
 0x1a7   : > { %3277 = vmatprep.subr.bf16.mxu0 %v3957_v63  ;;  %v4136_v63 = vcombine.low %v1201_v58, %v1201_v58  ;;  %v905_v58 = vld [vmem:[%s5048_s11 + $0xf0] sm:$0xff] }
 0x1a8   : > { %3348 = vmatpush2.bf16.msra.mxu1 %v4054_v61  ;;  %v3929_v61 = vcombine.high %v993_v56, %v1001_v57  ;;  %v897_v57 = vld [vmem:[%s5048_s11 + $0xb0] sm:$0xff] }
 0x1a9   : > { %3349 = vmatprep.subr.bf16.mxu1 %v4039_v0  ;;  %v977_v0 = vld [vmem:[%s5048_s11 + $0x330] sm:$0xff] }
 0x1aa   : > { %3278 = vmatpush2.bf16.msra.mxu0 %v3956_v6  ;;  %v2910_v6 = vsel %vm2872_vm0, %v4136_v63, 0  ;;  %v3833_v63 = vcombine.high %v897_v57, %v905_v58 }
 0x1ab   : > { %3279 = vmatprep.subr.bf16.mxu0 %v3941_v8  ;;  %v4121_v8 = vcombine.high %v1185_v2, %v1193_v3 }
 0x1ac   : > { %3350 = vmatpush2.bf16.msra.mxu1 %v4038_v7  ;;  %v3913_v7 = vcombine.high %v977_v0, %v985_v1 }
 0x1ad   : > { %3351 = vmatprep.subr.bf16.mxu1 %v4023_v10  ;;  %v961_v10 = vld [vmem:[%s5048_s11 + $0x2b0] sm:$0xff] }
 0x1ae   : > { %3280 = vmatpush2.bf16.msra.mxu0 %v3940_v14  ;;  %v3912_v14 = vcombine.low %v977_v0, %v985_v1  ;;  %v881_v1 = vld [vmem:[%s5048_s11 + $0x30] sm:$0xff] }
 0x1af   : > { %4150 = vmatprep.subr.msk.bf16.mxu0 %vm2872_vm0, %v4135_v17  ;;  %v3897_v17 = vcombine.high %v961_v10, %v969_v11 }
 0x1b0   : > { %3352 = vmatpush2.bf16.msra.mxu1 %v4022_v15  ;;  %v4120_v15 = vcombine.low %v1185_v2, %v1193_v3  ;;  %v889_v2 = vld [vmem:[%s5048_s11 + $0x70] sm:$0xff]  ;;  %v962_v3 = vld [vmem:[%s5048_s11 + $0x2b8] sm:$0xff] }
 0x1b1   : > { %3353 = vmatprep.subr.bf16.mxu1 %v4007_v16  ;;  %3282 = vmatmul.mubr.bf16.vlgmr.msra.gmra.mxu0 %v5073_v42  ;;  %v5372_v16 = vpop.permute.xlu0 %1206  ;;  %v3816_v19 = vcombine.low %v881_v1, %v889_v2 }
 0x1b2   : > { %3379 = vmatpush1.bf16.msra.mxu0 %v2904_v24  ;;  %3404 = vmatprep.mubr.bf16.mxu0 %v4301_v9 }
 0x1b3   : > { %3380 = vmatprep.subr.bf16.mxu0 %v4119_v26  ;;  %v4104_v26 = vcombine.low %v1169_v12, %v1177_v13  ;;  %v1129_v12 = vld [vmem:[%s5048_s11 + $0x7f0] sm:$0xff]  ;;  %v946_v13 = vld [vmem:[%s5048_s11 + $0x238] sm:$0xff] }
 0x1b4   : > { %3354 = vmatpush2.bf16.msra.mxu1 %v4006_v23 }
 0x1b5   : > { %3355 = vmatprep.subr.bf16.mxu1 %v3991_v25  ;;  %v3896_v25 = vcombine.low %v961_v10, %v969_v11  ;;  %v1121_v11 = vld [vmem:[%s5048_s11 + $0x7b0] sm:$0xff] }
 0x1b6   : > { %3381 = vmatpush1.bf16.msra.mxu0 %v4118_v32 }
 0x1b7   : > { %3382 = vmatprep.subr.bf16.mxu0 %v4103_v35  ;;  %v1137_v35 = vld [vmem:[%s5048_s11 + $0x830] sm:$0xff] }
 0x1b8   : > { %3356 = vmatpush2.bf16.msra.mxu1 %v3990_v31 }
 0x1b9   : > { %3357 = vmatprep.subr.bf16.mxu1 %v3975_v33  ;;  %v937_v33 = vld [vmem:[%s5048_s11 + $0x1f0] sm:$0xff] }
 0x1ba   : > { %3383 = vmatpush1.bf16.msra.mxu0 %v4102_v41 }
 0x1bb   : > { %3384 = vmatprep.subr.bf16.mxu0 %v4087_v44  ;;  %v913_v44 = vld [vmem:[%s5048_s11 + $0x130] sm:$0xff] }
 0x1bc   : > { %3358 = vmatpush2.bf16.msra.mxu1 %v3974_v40  ;;  %v4088_v40 = vcombine.low %v1153_v21, %v1161_v22 }
 0x1bd   : > { %3359 = vmatprep.subr.bf16.mxu1 %v3959_v43  ;;  %v4073_v43 = vcombine.high %v1137_v35, %v1145_v36 }
 0x1be   : > { %3385 = vmatpush1.bf16.msra.mxu0 %v4086_v53  ;;  %v3864_v53 = vcombine.low %v929_v30, %v937_v33 }
 0x1bf   : > { %3386 = vmatprep.subr.bf16.mxu0 %v4071_v55  ;;  %v3849_v55 = vcombine.high %v913_v44, %v921_v47 }
 0x1c0   : > { %3360 = vmatpush2.bf16.msra.mxu1 %v3958_v50  ;;  %v1002_v50 = vld [vmem:[%s5048_s11 + $0x3f8] sm:$0xff] }
 0x1c1   : > { %3361 = vmatprep.subr.bf16.mxu1 %v3943_v54  ;;  %v4072_v54 = vcombine.low %v1137_v35, %v1145_v36  ;;  %v3931_v56 = vcombine.high %v994_v49, %v1002_v50  ;;  %v4056_v35 = vcombine.low %v1121_v11, %v1129_v12 }
 0x1c2   : > { %3387 = vmatpush1.bf16.msra.mxu0 %v4070_v60  ;;  %v986_v60 = vld [vmem:[%s5048_s11 + $0x378] sm:$0xff] }
 0x1c3   : > { %3413 = vmatprep.subr.bf16.mxu0 %v3929_v61  ;;  %v3848_v61 = vcombine.low %v913_v44, %v921_v47  ;;  %v914_v44 = vld [vmem:[%s5048_s11 + $0x138] sm:$0xff] }
 0x1c4   : > { %3362 = vmatpush2.bf16.msra.mxu1 %v3942_v59  ;;  %v978_v59 = vld [vmem:[%s5048_s11 + $0x338] sm:$0xff] }
 0x1c5   : > { %4152 = vmatprep.subr.msk.bf16.mxu1 %vm2872_vm0, %v4137_v62  ;;  %4151 = vmatmul.mubr.msk.bf16.vlgmr.msra.gmra.mxu0 %vm2868_vm1, %v5093_v5  ;;  %v3930_v62 = vcombine.low %v994_v49, %v1002_v50  ;;  %v3915_v0 = vcombine.high %v978_v59, %v986_v60 }
 0x1c6   : > { %3414 = vmatpush1.bf16.msra.mxu0 %v3928_v4  ;;  %3445 = vmatprep.mubr.bf16.mxu0 %v5081_v51  ;;  %v970_v4 = vld [vmem:[%s5048_s11 + $0x2f8] sm:$0xff] }
 0x1c7   : > { %3364 = vmatmul.mubr.bf16.vlgmr.msra.gmra.mxu1 %v5073_v42  ;;  %3415 = vmatprep.subr.bf16.mxu0 %v3913_v7  ;;  %v3914_v7 = vcombine.low %v978_v59, %v986_v60  ;;  %v3899_v10 = vcombine.high %v962_v3, %v970_v4  ;;  %v3898_v20 = vcombine.low %v962_v3, %v970_v4  ;;  %v906_v59 = vld [vmem:[%s5048_s11 + $0xf8] sm:$0xff] }
 0x1c8   : > { %3461 = vmatpush1.bf16.msra.mxu1 %v2910_v6  ;;  %3486 = vmatprep.mubr.bf16.mxu1 %v4301_v9  ;;  %v3832_v6 = vcombine.low %v897_v57, %v905_v58  ;;  %v1081_v57 = vld [vmem:[%s5048_s11 + $0x670] sm:$0xff]  ;;  %v898_v58 = vld [vmem:[%s5048_s11 + $0xb8] sm:$0xff] }
 0x1c9   : > { %3462 = vmatprep.subr.bf16.mxu1 %v4121_v8  ;;  %v2955_v23 = vpop.f32.mrf.mxu0  ;;  %v3817_v8 = vcombine.high %v881_v1, %v889_v2  ;;  %v1065_v1 = vld [vmem:[%s5048_s11 + $0x5f0] sm:$0xff]  ;;  %v882_v2 = vld [vmem:[%s5048_s11 + $0x38] sm:$0xff] }
 0x1ca   : > { %v2956_v24 = vadd.f32 %v2955_v23, %v5372_v16  ;;  %3416 = vmatpush1.bf16.msra.mxu0 %v3912_v14  ;;  %v954_v14 = vld [vmem:[%s5048_s11 + $0x278] sm:$0xff]  ;;  %v4057_v23 = vcombine.high %v1121_v11, %v1129_v12  ;;  %v1049_v11 = vld [vmem:[%s5048_s11 + $0x570] sm:$0xff] }
 0x1cb   : > { %v2957_v27 = vpop.f32.mrf.mxu0  ;;  %3417 = vmatprep.subr.bf16.mxu0 %v3897_v17  ;;  %v3882_v36 = vcombine.low %v946_v13, %v954_v14  ;;  %v890_v3 = vld [vmem:[%s5048_s11 + $0x78] sm:$0xff] }
 0x1cc   : > { %3463 = vmatpush1.bf16.msra.mxu1 %v4120_v15  ;;  %v2997_v31 = vadd.f32 %v5321_v48, %v2956_v24  ;;  %v2958_v32 = vadd.f32 %v2957_v27, %v5372_v16  ;;  %v3865_v48 = vcombine.high %v929_v30, %v937_v33  ;;  %v1105_v24 = vld [vmem:[%s5048_s11 + $0x730] sm:$0xff]  ;;  %v1122_v12 = vld [vmem:[%s5048_s11 + $0x7b8] sm:$0xff] }
 0x1cd   : > { %3464 = vmatprep.subr.bf16.mxu1 %v4105_v18  ;;  %v2959_v37 = vpop.f32.mrf.mxu0  ;;  %v1113_v27 = vld [vmem:[%s5048_s11 + $0x770] sm:$0xff] }
 0x1ce   : > { %v2999_v38 = vadd.f32 %v5323_v52, %v2958_v32  ;;  %3418 = vmatpush1.bf16.msra.mxu0 %v3896_v25  ;;  %v3577_v45 = vmax.f32 %v2997_v31, 0.0  ;;  %v4040_v47 = vcombine.low %v1105_v24, %v1113_v27 }
 0x1cf   : > { %v2960_v41 = vpop.f32.mrf.mxu0  ;;  %3419 = vmatprep.subr.bf16.mxu0 %v3881_v28  ;;  %v930_v28 = vld [vmem:[%s5048_s11 + $0x1b8] sm:$0xff] }
 0x1d0   : > { %3465 = vmatpush1.bf16.msra.mxu1 %v4104_v26  ;;  %v3578_v46 = vmax.f32 %v2999_v38, 0.0  ;;  %v1089_v41 = vld [vmem:[%s5048_s11 + $0x6b0] sm:$0xff] }
 0x1d1   : > { %3466 = vmatprep.subr.bf16.mxu1 %v4089_v29  ;;  %v938_v29 = vld [vmem:[%s5048_s11 + $0x1f8] sm:$0xff] }
 0x1d2   : > { %v5392_v52 = vpack.c.bf16 %v3578_v46, %v3577_v45  ;;  %3420 = vmatpush1.bf16.msra.mxu0 %v3880_v39  ;;  %v4041_v39 = vcombine.high %v1105_v24, %v1113_v27  ;;  %v922_v45 = vld [vmem:[%s5048_s11 + $0x178] sm:$0xff]  ;;  %v3866_v49 = vcombine.low %v930_v28, %v938_v29 }
 0x1d3   : > { %3421 = vmatprep.subr.bf16.mxu0 %v3865_v48 }
 0x1d4   : > { %3467 = vmatpush1.bf16.msra.mxu1 %v4088_v40  ;;  %v3867_v40 = vcombine.high %v930_v28, %v938_v29 }
 0x1d5   : > { %3468 = vmatprep.subr.bf16.mxu1 %v4073_v43  ;;  %v1097_v43 = vld [vmem:[%s5048_s11 + $0x6f0] sm:$0xff] }
 0x1d6   : > { %3422 = vmatpush1.bf16.msra.mxu0 %v3864_v53  ;;  %v4025_v50 = vcombine.high %v1089_v41, %v1097_v43  ;;  %v3851_v53 = vcombine.high %v914_v44, %v922_v45 }
 0x1d7   : > { %3423 = vmatprep.subr.bf16.mxu0 %v3849_v55  ;;  %v3633_v55 = vrot.slane %v5392_v52, %v5063_v34 }
 0x1d8   : > { %3469 = vmatpush1.bf16.msra.mxu1 %v4072_v54  ;;  %v1073_v54 = vld [vmem:[%s5048_s11 + $0x630] sm:$0xff] }
 0x1d9   : > { %3495 = vmatprep.subr.bf16.mxu1 %v3931_v56  ;;  %v4009_v52 = vcombine.high %v1073_v54, %v1081_v57  ;;  %v4008_v4 = vcombine.low %v1073_v54, %v1081_v57 }
 0x1da   : > { %3424 = vmatpush1.bf16.msra.mxu0 %v3848_v61  ;;  %v4024_v61 = vcombine.low %v1089_v41, %v1097_v43  ;;  %v1202_v41 = vld [vmem:[%s5048_s11 + $0xa38] sm:$0x33] }
 0x1db   : > { %4153 = vmatmul.mubr.msk.bf16.vlgmr.msra.gmra.mxu1 %vm2868_vm1, %v5093_v5  ;;  %3425 = vmatprep.subr.bf16.mxu0 %v3833_v63  ;;  %v3835_v63 = vcombine.high %v898_v58, %v906_v59 }
 0x1dc   : > { %3496 = vmatpush1.bf16.msra.mxu1 %v3930_v62  ;;  %3527 = vmatprep.mubr.bf16.mxu1 %v5081_v51  ;;  %v3883_v51 = vcombine.high %v946_v13, %v954_v14  ;;  %v3850_v62 = vcombine.low %v914_v44, %v922_v45  ;;  %v1130_v13 = vld [vmem:[%s5048_s11 + $0x7f8] sm:$0xff]  ;;  %v4139_v45 = vcombine.high %v1202_v41, %v1202_v41 }
 0x1dd   : > { %3497 = vmatprep.subr.bf16.mxu1 %v3915_v0  ;;  %v3078_v17 = vpop.f32.mrf.mxu0  ;;  %v1057_v0 = vld [vmem:[%s5048_s11 + $0x5b0] sm:$0xff] }
 0x1de   : > { %3426 = vmatpush1.bf16.msra.mxu0 %v3832_v6  ;;  %v3834_v6 = vcombine.low %v898_v58, %v906_v59  ;;  %v1042_v58 = vld [vmem:[%s5048_s11 + $0x538] sm:$0xff] }
 0x1df   : > { %v3037_v15 = vpop.f32.mrf.mxu1  ;;  %v3080_v22 = vpop.f32.mrf.mxu0  ;;  %3427 = vmatprep.subr.bf16.mxu0 %v3817_v8  ;;  %v3819_v8 = vcombine.high %v882_v2, %v890_v3  ;;  %v1050_v59 = vld [vmem:[%s5048_s11 + $0x578] sm:$0xff] }
 0x1e0   : > { %v3038_v18 = vadd.f32 %v3037_v15, %v5372_v16  ;;  %3498 = vmatpush1.bf16.msra.mxu1 %v3914_v7  ;;  %v3993_v7 = vcombine.high %v1057_v0, %v1065_v1  ;;  %v3992_v15 = vcombine.low %v1057_v0, %v1065_v1  ;;  %v1026_v1 = vld [vmem:[%s5048_s11 + $0x4b8] sm:$0xff] }
 0x1e1   : > { %v3039_v21 = vpop.f32.mrf.mxu1  ;;  %3499 = vmatprep.subr.bf16.mxu1 %v3899_v10  ;;  %v3082_v31 = vpop.f32.mrf.mxu0  ;;  %v1041_v10 = vld [vmem:[%s5048_s11 + $0x530] sm:$0xff] }
 0x1e2   : > { %v3079_v25 = vadd.f32 %v3078_v17, %v3038_v18  ;;  %v3040_v26 = vadd.f32 %v3039_v21, %v5372_v16  ;;  %3428 = vmatpush1.bf16.msra.mxu0 %v3816_v19  ;;  %v3818_v17 = vcombine.low %v882_v2, %v890_v3  ;;  %v3977_v19 = vcombine.high %v1041_v10, %v1049_v11  ;;  %v1025_v21 = vld [vmem:[%s5048_s11 + $0x4b0] sm:$0xff]  ;;  %v1034_v2 = vld [vmem:[%s5048_s11 + $0x4f8] sm:$0xff] }
 0x1e3   : > { %v3041_v30 = vpop.f32.mrf.mxu1  ;;  %v3083_v38 = vpop.f32.mrf.mxu0  ;;  %3429 = vmatprep.subr.bf16.mxu0 %v4057_v23  ;;  %v1106_v23 = vld [vmem:[%s5048_s11 + $0x738] sm:$0xff]  ;;  %v1017_v31 = vld [vmem:[%s5048_s11 + $0x470] sm:$0xff] }
 0x1e4   : > { %v3579_v32 = vmax.f32 %v3079_v25, 0.0  ;;  %v3081_v33 = vadd.f32 %v3080_v22, %v3040_v26  ;;  %3500 = vmatpush1.bf16.msra.mxu1 %v3898_v20  ;;  %v4059_v20 = vcombine.high %v1122_v12, %v1130_v13  ;;  %v1033_v22 = vld [vmem:[%s5048_s11 + $0x4f0] sm:$0xff]  ;;  %v3976_v25 = vcombine.low %v1041_v10, %v1049_v11  ;;  %v1154_v3 = vld [vmem:[%s5048_s11 + $0x8b8] sm:$0xff] }
 0x1e5   : > { %v3042_v37 = vpop.f32.mrf.mxu1  ;;  %3501 = vmatprep.subr.bf16.mxu1 %v3883_v51  ;;  %v1114_v51 = vld [vmem:[%s5048_s11 + $0x778] sm:$0xff]  ;;  %v4058_v26 = vcombine.low %v1122_v12, %v1130_v13  ;;  %v3961_v28 = vcombine.high %v1025_v21, %v1033_v22  ;;  %v1009_v30 = vld [vmem:[%s5048_s11 + $0x430] sm:$0xff] }
 0x1e6   : > { %v3580_v48 = vmax.f32 %v3081_v33, 0.0  ;;  %3430 = vmatpush2.bf16.msra.mxu0 %v4056_v35  ;;  %v4043_v29 = vcombine.high %v1106_v23, %v1114_v51  ;;  %v1098_v33 = vld [vmem:[%s5048_s11 + $0x6f8] sm:$0xff]  ;;  %v3960_v35 = vcombine.low %v1025_v21, %v1033_v22  ;;  %v3945_v37 = vcombine.high %v1009_v30, %v1017_v31 }
 0x1e7   : > { %3431 = vmatprep.subr.bf16.mxu0 %v4041_v39  ;;  %v1074_v39 = vld [vmem:[%s5048_s11 + $0x638] sm:$0xff] }
 0x1e8   : > { %v4157_v46 = vpack.c.bf16 %v3580_v48, %v3579_v32  ;;  %3502 = vmatpush1.bf16.msra.mxu1 %v3882_v36  ;;  %v1090_v32 = vld [vmem:[%s5048_s11 + $0x6b8] sm:$0xff]  ;;  %v4042_v36 = vcombine.low %v1106_v23, %v1114_v51  ;;  %v3944_v48 = vcombine.low %v1009_v30, %v1017_v31 }
 0x1e9   : > { %3503 = vmatprep.subr.bf16.mxu1 %v3867_v40  ;;  %v4027_v38 = vcombine.high %v1090_v32, %v1098_v33  ;;  %v1082_v40 = vld [vmem:[%s5048_s11 + $0x678] sm:$0xff]  ;;  %v4026_v43 = vcombine.low %v1090_v32, %v1098_v33 }
 0x1ea   : > { %v3640_v56 = vrot.slane %v4157_v46, %v5063_v34  ;;  %3432 = vmatpush2.bf16.msra.mxu0 %v4040_v47  ;;  %v4011_v44 = vcombine.high %v1074_v39, %v1082_v40  ;;  %v4138_v46 = vcombine.low %v1202_v41, %v1202_v41  ;;  %v1058_v47 = vld [vmem:[%s5048_s11 + $0x5b8] sm:$0xff]  ;;  %v4010_v54 = vcombine.low %v1074_v39, %v1082_v40 }
 0x1eb   : > { %3433 = vmatprep.subr.bf16.mxu0 %v4025_v50  ;;  %v1186_v50 = vld [vmem:[%s5048_s11 + $0x9b8] sm:$0xff] }
 0x1ec   : > { %v3641_v60 = vcombine.low %v3633_v55, %v3640_v56  ;;  %3504 = vmatpush1.bf16.msra.mxu1 %v3866_v49  ;;  %v1066_v49 = vld [vmem:[%s5048_s11 + $0x5f8] sm:$0xff]  ;;  %v2916_v55 = vsel %vm2872_vm0, %v4138_v46, 0 }
 0x1ed   : > { %3505 = vmatprep.subr.bf16.mxu1 %v3851_v53  ;;  %v1194_v53 = vld [vmem:[%s5048_s11 + $0x9f8] sm:$0xff]  ;;  %v3995_v56 = vcombine.high %v1058_v47, %v1066_v49 }
 0x1ee   : > { %3697 = vst [vmem:[%s5446_s30] sm:$0xff] %v3641_v60  ;;  %3434 = vmatpush2.bf16.msra.mxu0 %v4024_v61  ;;  %v4123_v57 = vcombine.high %v1186_v50, %v1194_v53  ;;  %v1170_v60 = vld [vmem:[%s5048_s11 + $0x938] sm:$0xff] }
 0x1ef   : > { %3435 = vmatprep.subr.bf16.mxu0 %v4009_v52  ;;  %v1178_v61 = vld [vmem:[%s5048_s11 + $0x978] sm:$0xff]  ;;  %v4122_v52 = vcombine.low %v1186_v50, %v1194_v53 }
 0x1f0   : > { %3506 = vmatpush1.bf16.msra.mxu1 %v3850_v62  ;;  %v3994_v62 = vcombine.low %v1058_v47, %v1066_v49  ;;  %v4107_v0 = vcombine.high %v1170_v60, %v1178_v61  ;;  %v1010_v11 = vld [vmem:[%s5048_s11 + $0x438] sm:$0xff] }
 0x1f1   : > { %3507 = vmatprep.subr.bf16.mxu1 %v3835_v63  ;;  %v3979_v63 = vcombine.high %v1042_v58, %v1050_v59  ;;  %v1018_v12 = vld [vmem:[%s5048_s11 + $0x478] sm:$0xff] }
 0x1f2   : > { %3436 = vmatpush2.bf16.msra.mxu0 %v4008_v4  ;;  %v1162_v4 = vld [vmem:[%s5048_s11 + $0x8f8] sm:$0xff]  ;;  %v3946_v21 = vcombine.low %v1010_v11, %v1018_v12 }
 0x1f3   : > { %v5457_v14 = vpop.f32.mrf.mxu1  ;;  %3437 = vmatprep.subr.bf16.mxu0 %v3993_v7  ;;  %v4106_v7 = vcombine.low %v1170_v60, %v1178_v61  ;;  %v4091_v10 = vcombine.high %v1154_v3, %v1162_v4  ;;  %v1138_v13 = vld [vmem:[%s5048_s11 + $0x838] sm:$0xff] }
 0x1f4   : > { %3508 = vmatpush1.bf16.msra.mxu1 %v3834_v6  ;;  %v3978_v6 = vcombine.low %v1042_v58, %v1050_v59 }
 0x1f5   : > { %v5459_v18 = vpop.f32.mrf.mxu1  ;;  %3509 = vmatprep.subr.bf16.mxu1 %v3819_v8  ;;  %v3963_v8 = vcombine.high %v1026_v1, %v1034_v2 }
 0x1f6   : > { %3438 = vmatpush2.bf16.msra.mxu0 %v3992_v15  ;;  %v1146_v15 = vld [vmem:[%s5048_s11 + $0x878] sm:$0xff] }
 0x1f7   : > { %v3164_v24 = vpop.f32.mrf.mxu1  ;;  %3439 = vmatprep.subr.bf16.mxu0 %v3977_v19  ;;  %v4090_v19 = vcombine.low %v1154_v3, %v1162_v4  ;;  %v4074_v22 = vcombine.low %v1138_v13, %v1146_v15 }
 0x1f8   : > { %3510 = vmatpush1.bf16.msra.mxu1 %v3818_v17  ;;  %v3962_v17 = vcombine.low %v1026_v1, %v1034_v2 }
 0x1f9   : > { %v3165_v27 = vpop.f32.mrf.mxu1  ;;  %3511 = vmatprep.subr.bf16.mxu1 %v4059_v20  ;;  %v3947_v20 = vcombine.high %v1010_v11, %v1018_v12 }
 0x1fa   : > { %3440 = vmatpush2.bf16.msra.mxu0 %v3976_v25 }
 0x1fb   : > { %3441 = vmatprep.subr.bf16.mxu0 %v3961_v28 }
 0x1fc   : > { %3512 = vmatpush2.bf16.msra.mxu1 %v4058_v26 }
 0x1fd   : > { %3513 = vmatprep.subr.bf16.mxu1 %v4043_v29 }
 0x1fe   : > { %3442 = vmatpush2.bf16.msra.mxu0 %v3960_v35 }
 0x1ff   : > { %3443 = vmatprep.subr.bf16.mxu0 %v3945_v37 }
 0x200   : > { %3514 = vmatpush2.bf16.msra.mxu1 %v4042_v36 }
 0x201   : > { %3515 = vmatprep.subr.bf16.mxu1 %v4027_v38 }
 0x202   : > { %3444 = vmatpush2.bf16.msra.mxu0 %v3944_v48 }
 0x203   : > { %4154 = vmatprep.subr.msk.bf16.mxu0 %vm2872_vm0, %v4139_v45 }
 0x204   : > { %3516 = vmatpush2.bf16.msra.mxu1 %v4026_v43 }
 0x205   : > { %3517 = vmatprep.subr.bf16.mxu1 %v4011_v44  ;;  %3446 = vmatmul.mubr.bf16.vlgmr.msra.gmra.mxu0 %v5073_v42 }
 0x206   : > { %3543 = vmatpush1.bf16.msra.mxu0 %v2916_v55  ;;  %3568 = vmatprep.mubr.bf16.mxu0 %v4301_v9  ;;  %v4075_v9 = vcombine.high %v1138_v13, %v1146_v15 }
 0x207   : > { %3544 = vmatprep.subr.bf16.mxu0 %v4123_v57 }
 0x208   : > { %3518 = vmatpush2.bf16.msra.mxu1 %v4010_v54 }
 0x209   : > { %3519 = vmatprep.subr.bf16.mxu1 %v3995_v56 }
 0x20a   : > { %3545 = vmatpush1.bf16.msra.mxu0 %v4122_v52 }
 0x20b   : > { %3546 = vmatprep.subr.bf16.mxu0 %v4107_v0 }
 0x20c   : > { %3520 = vmatpush2.bf16.msra.mxu1 %v3994_v62 }
 0x20d   : > { %3521 = vmatprep.subr.bf16.mxu1 %v3979_v63 }
 0x20e   : > { %3547 = vmatpush1.bf16.msra.mxu0 %v4106_v7 }
 0x20f   : > { %3548 = vmatprep.subr.bf16.mxu0 %v4091_v10 }
 0x210   : > { %3522 = vmatpush2.bf16.msra.mxu1 %v3978_v6 }
 0x211   : > { %3523 = vmatprep.subr.bf16.mxu1 %v3963_v8 }
 0x212   : > { %3549 = vmatpush1.bf16.msra.mxu0 %v4090_v19 }
 0x213   : > { %3550 = vmatprep.subr.bf16.mxu0 %v4075_v9 }
 0x214   : > { %3524 = vmatpush2.bf16.msra.mxu1 %v3962_v17 }
 0x215   : > { %3525 = vmatprep.subr.bf16.mxu1 %v3947_v20 }
 0x216   : > { %3551 = vmatpush1.bf16.msra.mxu0 %v4074_v22 }
 0x218   : > { %3526 = vmatpush2.bf16.msra.mxu1 %v3946_v21 }
 0x219   : > { %4155 = vmatmul.mubr.msk.bf16.vlgmr.msra.gmra.mxu0 %vm2868_vm1, %v5093_v5 }
 0x21b   : > { %3528 = vmatmul.mubr.bf16.vlgmr.msra.gmra.mxu1 %v5073_v42 }
 0x21d   : > { %v3119_v23 = vpop.f32.mrf.mxu0 }
 0x21e   : > { %v3120_v51 = vadd.f32 %v3119_v23, %v5372_v16 }
 0x21f   : > { %v3121_v24 = vpop.f32.mrf.mxu0 }
 0x220   : > { %v3161_v25 = vadd.f32 %v5457_v14, %v3120_v51  ;;  %v3122_v26 = vadd.f32 %v3121_v24, %v5372_v16 }
 0x221   : > { %v3123_v27 = vpop.f32.mrf.mxu0 }
 0x222   : > { %v3163_v28 = vadd.f32 %v5459_v18, %v3122_v26  ;;  %v3581_v30 = vmax.f32 %v3161_v25, 0.0 }
 0x223   : > { %v3124_v29 = vpop.f32.mrf.mxu0 }
 0x224   : > { %v3582_v31 = vmax.f32 %v3163_v28, 0.0 }
 0x226   : > { %v4158_v32 = vpack.c.bf16 %v3582_v31, %v3581_v30 }
 0x228   : > { %v3650_v45 = vrot.slane %v4158_v32, %v5063_v34 }
 0x231   : > { %v3242_v42 = vpop.f32.mrf.mxu0 }
 0x233   : > { %v3201_v33 = vpop.f32.mrf.mxu1  ;;  %v3244_v36 = vpop.f32.mrf.mxu0 }
 0x234   : > { %v3202_v35 = vadd.f32 %v3201_v33, %v5372_v16 }
 0x235   : > { %v3203_v5 = vpop.f32.mrf.mxu1  ;;  %v3246_v39 = vpop.f32.mrf.mxu0 }
 0x236   : > { %v3243_v37 = vadd.f32 %v3242_v42, %v3202_v35  ;;  %v3204_v38 = vadd.f32 %v3203_v5, %v5372_v16 }
 0x237   : > { %v3205_v14 = vpop.f32.mrf.mxu1  ;;  %v3247_v18 = vpop.f32.mrf.mxu0 }
 0x238   : > { %v3583_v40 = vmax.f32 %v3243_v37, 0.0  ;;  %v3245_v41 = vadd.f32 %v3244_v36, %v3204_v38 }
 0x239   : > { %v3206_v48 = vpop.f32.mrf.mxu1 }
 0x23a   : > { %v3584_v43 = vmax.f32 %v3245_v41, 0.0 }
 0x23c   : > { %v4159_v44 = vpack.c.bf16 %v3584_v43, %v3583_v40 }
 0x23e   : > { %v3657_v46 = vrot.slane %v4159_v44, %v5063_v34 }
 0x240   : > { %v3658_v47 = vcombine.low %v3650_v45, %v3657_v46 }
 0x242   : > { %3698 = vst [vmem:[%s5446_s30 + $0x8] sm:$0xff] %v3658_v47 }
 0x247   : > { %v3324_v49 = vpop.f32.mrf.mxu1 }
 0x249   : > { %v3326_v50 = vpop.f32.mrf.mxu1 }
 0x24b   : > { %v3328_v53 = vpop.f32.mrf.mxu1 }
 0x24d   : > { %v3329_v54 = vpop.f32.mrf.mxu1 }
 0x271   : > { %v3283_v55 = vpop.f32.mrf.mxu0 }
 0x272   : > { %v3284_v56 = vadd.f32 %v3283_v55, %v5372_v16 }
 0x273   : > { %v3285_v57 = vpop.f32.mrf.mxu0 }
 0x274   : > { %v3325_v58 = vadd.f32 %v3324_v49, %v3284_v56  ;;  %v3286_v59 = vadd.f32 %v3285_v57, %v5372_v16 }
 0x275   : > { %v3287_v60 = vpop.f32.mrf.mxu0 }
 0x276   : > { %v3327_v61 = vadd.f32 %v3326_v50, %v3286_v59  ;;  %v3585_v52 = vmax.f32 %v3325_v58, 0.0 }
 0x277   : > { %v3288_v62 = vpop.f32.mrf.mxu0 }
 0x278   : > { %v3586_v63 = vmax.f32 %v3327_v61, 0.0 }
 0x27a   : > { %v4160_v0 = vpack.c.bf16 %v3586_v63, %v3585_v52 }
 0x27c   : > { %v3667_v9 = vrot.slane %v4160_v0, %v5063_v34 }
 0x285   : > { %v3406_v2 = vpop.f32.mrf.mxu0 }
 0x287   : > { %v3365_v1 = vpop.f32.mrf.mxu1  ;;  %v3408_v6 = vpop.f32.mrf.mxu0 }
 0x288   : > { %v3366_v3 = vadd.f32 %v3365_v1, %v5372_v16 }
 0x289   : > { %v3367_v4 = vpop.f32.mrf.mxu1  ;;  %v3410_v11 = vpop.f32.mrf.mxu0 }
 0x28a   : > { %v3407_v7 = vadd.f32 %v3406_v2, %v3366_v3  ;;  %v3368_v8 = vadd.f32 %v3367_v4, %v5372_v16 }
 0x28b   : > { %v3369_v10 = vpop.f32.mrf.mxu1  ;;  %v3411_v17 = vpop.f32.mrf.mxu0 }
 0x28c   : > { %v3587_v12 = vmax.f32 %v3407_v7, 0.0  ;;  %v3409_v13 = vadd.f32 %v3408_v6, %v3368_v8 }
 0x28d   : > { %v3370_v15 = vpop.f32.mrf.mxu1 }
 0x28e   : > { %v3588_v19 = vmax.f32 %v3409_v13, 0.0 }
 0x290   : > { %v4161_v20 = vpack.c.bf16 %v3588_v19, %v3587_v12 }
 0x292   : > { %v3674_v21 = vrot.slane %v4161_v20, %v5063_v34 }
 0x294   : > { %v3675_v22 = vcombine.low %v3667_v9, %v3674_v21 }
 0x296   : > { %3699 = vst [vmem:[%s5446_s30 + $0x10] sm:$0xff] %v3675_v22 }
 0x29b   : > { %v3488_v23 = vpop.f32.mrf.mxu1 }
 0x29d   : > { %v3490_v51 = vpop.f32.mrf.mxu1 }
 0x29f   : > { %v3492_v24 = vpop.f32.mrf.mxu1 }
 0x2a1   : > { %v3493_v25 = vpop.f32.mrf.mxu1 }
 0x2c5   : > { %v3447_v26 = vpop.f32.mrf.mxu0 }
 0x2c6   : > { %v3448_v27 = vadd.f32 %v3447_v26, %v5372_v16 }
 0x2c7   : > { %v3449_v28 = vpop.f32.mrf.mxu0 }
 0x2c8   : > { %v3489_v29 = vadd.f32 %v3488_v23, %v3448_v27  ;;  %v3450_v30 = vadd.f32 %v3449_v28, %v5372_v16 }
 0x2c9   : > { %v3451_v31 = vpop.f32.mrf.mxu0 }
 0x2ca   : > { %v3491_v32 = vadd.f32 %v3490_v51, %v3450_v30  ;;  %v3589_v42 = vmax.f32 %v3489_v29, 0.0 }
 0x2cb   : > { %v3452_v33 = vpop.f32.mrf.mxu0 }
 0x2cc   : > { %v3590_v35 = vmax.f32 %v3491_v32, 0.0 }
 0x2ce   : > { %v4162_v5 = vpack.c.bf16 %v3590_v35, %v3589_v42 }
 0x2d0   : > { %v3684_v50 = vrot.slane %v4162_v5, %v5063_v34 }
 0x2d9   : > { %v3570_v37 = vpop.f32.mrf.mxu0 }
 0x2db   : > { %v3529_v36 = vpop.f32.mrf.mxu1  ;;  %v3572_v39 = vpop.f32.mrf.mxu0 }
 0x2dc   : > { %v3530_v38 = vadd.f32 %v3529_v36, %v5372_v16 }
 0x2dd   : > { %v3531_v14 = vpop.f32.mrf.mxu1  ;;  %v3574_v18 = vpop.f32.mrf.mxu0 }
 0x2de   : > { %v3571_v40 = vadd.f32 %v3570_v37, %v3530_v38  ;;  %v3532_v41 = vadd.f32 %v3531_v14, %v5372_v16 }
 0x2df   : > { %v3533_v48 = vpop.f32.mrf.mxu1  ;;  %v3575_v45 = vpop.f32.mrf.mxu0 }
 0x2e0   : > { %v3573_v43 = vadd.f32 %v3572_v39, %v3532_v41  ;;  %v3591_v46 = vmax.f32 %v3571_v40, 0.0 }
 0x2e1   : > { %v3534_v44 = vpop.f32.mrf.mxu1 }
 0x2e2   : > { %v3592_v47 = vmax.f32 %v3573_v43, 0.0 }
 0x2e4   : > { %v4163_v49 = vpack.c.bf16 %v3592_v47, %v3591_v46 }
 0x2e6   : > { %v3691_v53 = vrot.slane %v4163_v49, %v5063_v34 }
 0x2e8   : > { %v3692_v54 = vcombine.low %v3684_v50, %v3691_v53 }
 0x2ea   : > { %3700 = vst [vmem:[%s5446_s30 + $0x18] sm:$0xff] %v3692_v54 }
 0x2eb PF: > { %s13_s18 = sadd.s32 1, %s4299_s18   ;;  %s5544_s12 = smov %s4279_s13 }
 0x2ec   : > { %p10_p12 = scmp.ge.s32.totalorder %s13_s18, 6   ;;  %s5545_s13 = smov %s4374_s25 }
 0x2ed   : > { %s5546_s14 = smov %s4291_s16  ;;  %s5547_s15 = smov %s4295_s17 }
 0x2ee   : > { %s5548_s16 = smov %s5551_s19  ;;  %s5549_s17 = smov %s5555_s20 }
 0x2ef   :  { %12 = sbr.rel (!%p10_p12) target bundleno = 4 (0x4), region = 90 }

// kernel: model_forward.21
= control target key start
LH: loop header
LB: loop body
LE: loop exit
PB: predicated region body
PF: predicated region fallthrough
CT: control target
= control target key end

     0   :  { %s522_s12 = smov 0   ;;  %s524_s13 = smov 0   ;;  %s564_s0 = inlined_call_operand.vmem [shape: bf16[3,8], index: 0, kind: input, shape index: {}]   ;;  %s565_s1 = inlined_call_operand.vmem [shape: bf16[2,8,512], index: 1, kind: input, shape index: {}]   ;;  %s566_s2 = inlined_call_operand.vmem [shape: f32[3,1], index: 2, kind: input, shape index: {}]   ;;  %s567_s3 = inlined_call_operand.vmem [shape: f32[2,3,512], index: 3, kind: output, shape index: {}]  }
   0x1   :  { %s526_s14 = smov 0  }
   0x2 LB: > { %s25_s15 = sadd.s32 1, %s495_s13  ;;  %p430_p0 = scmp.ge.s32.totalorder %s499_s14, 1  ;;  %s499_s14 = sphi %s526_s14, %s13_s14   ;;  %s495_s13 = sphi %s524_s13, %s569_s13   ;;  %s491_s12 = sphi %s522_s12, %s568_s12  }
   0x3   : > { %p27_p1 = scmp.ge.s32.totalorder %s25_s15, 2  ;;  %p158_p2 = scmp.lt.s32.totalorder %s499_s14, 3 }
   0x5   : > { %s571_s15 = smov (%p27_p1, %s25_s15), 0  ;;  %p159_p3 = pnand %p430_p0, %p158_p2 }
   0x6   : > { %p191_p4 = scmp.lt.s32.totalorder (!%p159_p3), %s491_s12, 1 }
   0x7   : > { %162 = sbr.rel (%p159_p3) target bundleno = 222 (0xde), region = 32 }
   0xc   : > { %v501_v0 = vmov 0   ;;  %v214_v1 = vld [vmem:[%s566_s2] sm:$0x7]  ;;  %s573_s12 = smov (!%p191_p4, %s491_s12), 1  ;;  %vm234_vm0 = vcmask 1043456   ;;  %vm230_vm1 = vcmask 64512  }
   0xd   : > { %279 = vmatprep.mubr.bf16.mxu0 %v501_v0  ;;  %320 = vmatprep.mubr.bf16.mxu1 %v501_v0  ;;  %s445_s18 = sshll.u32 %s573_s12, 4  ;;  %v211_v10 = vld [vmem:[%s564_s0] sm:$0x3] }
   0xe   : > { %472 = vset.pattern.permute.xlu0 %v501_v0  ;;  %s198_s21 = scalar_lea.vmem %s565_s1, %s445_s18  ;;  %s208_s26 = scalar_lea.vmem %s567_s3, %s445_s18 }
   0xf   : > { %217 = vperm.xlu0 %472, %v214_v1   ;;  %v212_v2 = vld [vmem:[%s198_s21] sm:$0xff]  ;;  %v213_v3 = vld [vmem:[%s198_s21 + $0x8] sm:$0xff] }
  0x10   : > { %v436_v4 = vcombine.high %v212_v2, %v212_v2  ;;  %v438_v5 = vcombine.high %v213_v3, %v213_v3  ;;  %v435_v6 = vcombine.low %v212_v2, %v212_v2  ;;  %v437_v7 = vcombine.low %v213_v3, %v213_v3 }
  0x12   : > { %439 = vmatprep.subr.msk.bf16.mxu0 %vm234_vm0, %v436_v4  ;;  %441 = vmatprep.subr.msk.bf16.mxu1 %vm234_vm0, %v438_v5  ;;  %v236_v8 = vsel %vm234_vm0, %v435_v6, 0  ;;  %v242_v9 = vsel %vm234_vm0, %v437_v7, 0 }
  0x13   : > { %262 = vmatpush1.bf16.msra.mxu0 %v236_v8  ;;  %303 = vmatpush1.bf16.msra.mxu1 %v242_v9 }
  0x16   : > { %440 = vmatmul.mubr.msk.bf16.vlgmr.msra.gmra.mxu0 %vm230_vm1, %v211_v10  ;;  %442 = vmatmul.mubr.msk.bf16.vlgmr.msra.gmra.mxu1 %vm230_vm1, %v211_v10 }
  0x8a   : > { %v218_v11 = vpop.permute.xlu0 %217 }
  0xd6   : > { %v281_v12 = vpop.f32.mrf.mxu0  ;;  %v322_v13 = vpop.f32.mrf.mxu1 }
  0xd7   : > { %v282_v16 = vadd.f32 %v281_v12, %v218_v11  ;;  %v323_v17 = vadd.f32 %v322_v13, %v218_v11 }
  0xd8   : > { %v283_v14 = vpop.f32.mrf.mxu0  ;;  %v324_v15 = vpop.f32.mrf.mxu1 }
  0xd9   : > { %v284_v18 = vadd.f32 %v283_v14, %v218_v11  ;;  %v325_v19 = vadd.f32 %v324_v15, %v218_v11 }
  0xda   : > { %v285_v20 = vpop.f32.mrf.mxu0  ;;  %v326_v21 = vpop.f32.mrf.mxu1 }
  0xdb   : > { %v333_v22 = vcombine.low %v282_v16, %v284_v18  ;;  %v334_v23 = vcombine.low %v323_v17, %v325_v19 }
  0xdc   : > { %v286_v24 = vpop.f32.mrf.mxu0  ;;  %v327_v25 = vpop.f32.mrf.mxu1 }
  0xdd   : > { %337 = vst [vmem:[%s208_s26] sm:$0x77] %v333_v22  ;;  %338 = vst [vmem:[%s208_s26 + $0x8] sm:$0x77] %v334_v23 }
  0xde PF: > { %s13_s14 = sadd.s32 1, %s499_s14   ;;  %s568_s12 = smov %s495_s13 }
  0xdf   : > { %p10_p5 = scmp.ge.s32.totalorder %s13_s14, 4   ;;  %s569_s13 = smov %s571_s15 }
  0xe1   :  { %12 = sbr.rel (!%p10_p5) target bundleno = 2 (0x2), region = 62 }

// kernel: model_forward.22
= control target key start
LH: loop header
LB: loop body
LE: loop exit
PB: predicated region body
PF: predicated region fallthrough
CT: control target
= control target key end

     0   :  { %vm60_vm0 = vcmask 64512   ;;  %vm510_vm1 = vcmask 130048   ;;  %s1138_s1 = inlined_call_operand.vmem [shape: f32[8,16], index: 1, kind: input, shape index: {}]   ;;  %s1139_s0 = inlined_call_operand.vmem [shape: f32[384,8], index: 0, kind: input, shape index: {}]   ;;  %s1140_s2 = inlined_call_operand.vmem [shape: f32[384,16], index: 2, kind: output, shape index: {}]  }
   0x1   :  { %v59_v0 = vld [vmem:[%s1138_s1] sm:$0xff]  ;;  %v12_v3 = vld [vmem:[%s1139_s0 + $0x8] sm:$0xff]  ;;  %v13_v5 = vld [vmem:[%s1139_s0 + $0x10] sm:$0xff] }
   0x2   :  { %v11_v1 = vld [vmem:[%s1139_s0] sm:$0xff]  ;;  %660 = vmatprep.subr.mxu0 %v59_v0  ;;  %734 = vmatprep.subr.mxu1 %v59_v0  ;;  %v36_v4 = vld [vmem:[%s1139_s0 + $0xc8] sm:$0xff]  ;;  %v37_v6 = vld [vmem:[%s1139_s0 + $0xd0] sm:$0xff] }
   0x3   :  { %v35_v2 = vld [vmem:[%s1139_s0 + $0xc0] sm:$0xff]  ;;  %661 = vmatpush3.msra.mxu0 %v59_v0  ;;  %735 = vmatpush3.msra.mxu1 %v59_v0  ;;  %v14_v7 = vld [vmem:[%s1139_s0 + $0x18] sm:$0xff]  ;;  %v16_v11 = vld [vmem:[%s1139_s0 + $0x28] sm:$0xff] }
   0x4   :  { %662 = vmatprep.mubr.msk.f32.mxu0 %vm60_vm0, %v11_v1  ;;  %698 = vmatprep.mubr.msk.f32.mxu1 %vm60_vm0, %v35_v2  ;;  %v38_v8 = vld [vmem:[%s1139_s0 + $0xd8] sm:$0xff]  ;;  %v15_v9 = vld [vmem:[%s1139_s0 + $0x20] sm:$0xff]  ;;  %v40_v12 = vld [vmem:[%s1139_s0 + $0xe8] sm:$0xff] }
   0x5   :  { %663 = vmatmul.mubr.msk.f32.vlgmr.msra.gmra.mxu0 %vm60_vm0, %v12_v3  ;;  %699 = vmatmul.mubr.msk.f32.vlgmr.msra.gmra.mxu1 %vm60_vm0, %v36_v4  ;;  %v39_v10 = vld [vmem:[%s1139_s0 + $0xe0] sm:$0xff]  ;;  %v17_v13 = vld [vmem:[%s1139_s0 + $0x30] sm:$0xff]  ;;  %v18_v15 = vld [vmem:[%s1139_s0 + $0x38] sm:$0xff] }
   0x6   :  { %665 = vmatprep.mubr.msk.f32.mxu0 %vm60_vm0, %v13_v5  ;;  %701 = vmatprep.mubr.msk.f32.mxu1 %vm60_vm0, %v37_v6  ;;  %v41_v14 = vld [vmem:[%s1139_s0 + $0xf0] sm:$0xff]  ;;  %v42_v16 = vld [vmem:[%s1139_s0 + $0xf8] sm:$0xff]  ;;  %v19_v17 = vld [vmem:[%s1139_s0 + $0x40] sm:$0xff] }
   0x7   :  { %v43_v18 = vld [vmem:[%s1139_s0 + $0x100] sm:$0xff]  ;;  %v20_v19 = vld [vmem:[%s1139_s0 + $0x48] sm:$0xff]  ;;  %v21_v21 = vld [vmem:[%s1139_s0 + $0x50] sm:$0xff] }
   0x8   :  { %v44_v20 = vld [vmem:[%s1139_s0 + $0x108] sm:$0xff]  ;;  %v45_v22 = vld [vmem:[%s1139_s0 + $0x110] sm:$0xff]  ;;  %v22_v23 = vld [vmem:[%s1139_s0 + $0x58] sm:$0xff] }
   0x9   :  { %666 = vmatmul.mubr.msk.f32.gmra.mxu0 %vm60_vm0, %v14_v7  ;;  %702 = vmatmul.mubr.msk.f32.gmra.mxu1 %vm60_vm0, %v38_v8  ;;  %v46_v24 = vld [vmem:[%s1139_s0 + $0x118] sm:$0xff]  ;;  %v23_v25 = vld [vmem:[%s1139_s0 + $0x60] sm:$0xff]  ;;  %v24_v27 = vld [vmem:[%s1139_s0 + $0x68] sm:$0xff] }
   0xa   :  { %668 = vmatprep.mubr.msk.f32.mxu0 %vm60_vm0, %v15_v9  ;;  %704 = vmatprep.mubr.msk.f32.mxu1 %vm60_vm0, %v39_v10  ;;  %v47_v26 = vld [vmem:[%s1139_s0 + $0x120] sm:$0xff]  ;;  %v48_v28 = vld [vmem:[%s1139_s0 + $0x128] sm:$0xff]  ;;  %v25_v29 = vld [vmem:[%s1139_s0 + $0x70] sm:$0xff] }
   0xb   :  { %v49_v30 = vld [vmem:[%s1139_s0 + $0x130] sm:$0xff]  ;;  %v26_v31 = vld [vmem:[%s1139_s0 + $0x78] sm:$0xff]  ;;  %v27_v33 = vld [vmem:[%s1139_s0 + $0x80] sm:$0xff] }
   0xc   :  { %v50_v32 = vld [vmem:[%s1139_s0 + $0x138] sm:$0xff]  ;;  %v51_v34 = vld [vmem:[%s1139_s0 + $0x140] sm:$0xff]  ;;  %v28_v35 = vld [vmem:[%s1139_s0 + $0x88] sm:$0xff] }
   0xd   :  { %669 = vmatmul.mubr.msk.f32.gmra.mxu0 %vm60_vm0, %v16_v11  ;;  %705 = vmatmul.mubr.msk.f32.gmra.mxu1 %vm60_vm0, %v40_v12  ;;  %v52_v36 = vld [vmem:[%s1139_s0 + $0x148] sm:$0xff]  ;;  %v29_v37 = vld [vmem:[%s1139_s0 + $0x90] sm:$0xff]  ;;  %v30_v39 = vld [vmem:[%s1139_s0 + $0x98] sm:$0xff] }
   0xe   :  { %671 = vmatprep.mubr.msk.f32.mxu0 %vm60_vm0, %v17_v13  ;;  %707 = vmatprep.mubr.msk.f32.mxu1 %vm60_vm0, %v41_v14  ;;  %v53_v38 = vld [vmem:[%s1139_s0 + $0x150] sm:$0xff]  ;;  %v54_v40 = vld [vmem:[%s1139_s0 + $0x158] sm:$0xff]  ;;  %v31_v41 = vld [vmem:[%s1139_s0 + $0xa0] sm:$0xff] }
   0xf   :  { %v55_v42 = vld [vmem:[%s1139_s0 + $0x160] sm:$0xff]  ;;  %v32_v43 = vld [vmem:[%s1139_s0 + $0xa8] sm:$0xff]  ;;  %v33_v45 = vld [vmem:[%s1139_s0 + $0xb0] sm:$0xff] }
  0x10   :  { %v56_v44 = vld [vmem:[%s1139_s0 + $0x168] sm:$0xff]  ;;  %v57_v46 = vld [vmem:[%s1139_s0 + $0x170] sm:$0xff]  ;;  %v34_v47 = vld [vmem:[%s1139_s0 + $0xb8] sm:$0xff] }
  0x11   :  { %672 = vmatmul.mubr.msk.f32.gmra.mxu0 %vm60_vm0, %v18_v15  ;;  %708 = vmatmul.mubr.msk.f32.gmra.mxu1 %vm60_vm0, %v42_v16  ;;  %v58_v48 = vld [vmem:[%s1139_s0 + $0x178] sm:$0xff] }
  0x12   :  { %674 = vmatprep.mubr.msk.f32.mxu0 %vm60_vm0, %v19_v17  ;;  %710 = vmatprep.mubr.msk.f32.mxu1 %vm60_vm0, %v43_v18 }
  0x15   :  { %675 = vmatmul.mubr.msk.f32.gmra.mxu0 %vm60_vm0, %v20_v19  ;;  %711 = vmatmul.mubr.msk.f32.gmra.mxu1 %vm60_vm0, %v44_v20 }
  0x16   :  { %677 = vmatprep.mubr.msk.f32.mxu0 %vm60_vm0, %v21_v21  ;;  %713 = vmatprep.mubr.msk.f32.mxu1 %vm60_vm0, %v45_v22 }
  0x19   :  { %678 = vmatmul.mubr.msk.f32.gmra.mxu0 %vm60_vm0, %v22_v23  ;;  %714 = vmatmul.mubr.msk.f32.gmra.mxu1 %vm60_vm0, %v46_v24 }
  0x1a   :  { %680 = vmatprep.mubr.msk.f32.mxu0 %vm60_vm0, %v23_v25  ;;  %716 = vmatprep.mubr.msk.f32.mxu1 %vm60_vm0, %v47_v26 }
  0x1d   :  { %681 = vmatmul.mubr.msk.f32.gmra.mxu0 %vm60_vm0, %v24_v27  ;;  %717 = vmatmul.mubr.msk.f32.gmra.mxu1 %vm60_vm0, %v48_v28 }
  0x1e   :  { %683 = vmatprep.mubr.msk.f32.mxu0 %vm60_vm0, %v25_v29  ;;  %719 = vmatprep.mubr.msk.f32.mxu1 %vm60_vm0, %v49_v30 }
  0x21   :  { %684 = vmatmul.mubr.msk.f32.gmra.mxu0 %vm60_vm0, %v26_v31  ;;  %720 = vmatmul.mubr.msk.f32.gmra.mxu1 %vm60_vm0, %v50_v32 }
  0x22   :  { %686 = vmatprep.mubr.msk.f32.mxu0 %vm60_vm0, %v27_v33  ;;  %722 = vmatprep.mubr.msk.f32.mxu1 %vm60_vm0, %v51_v34 }
  0x25   :  { %687 = vmatmul.mubr.msk.f32.gmra.mxu0 %vm60_vm0, %v28_v35  ;;  %723 = vmatmul.mubr.msk.f32.gmra.mxu1 %vm60_vm0, %v52_v36 }
  0x26   :  { %689 = vmatprep.mubr.msk.f32.mxu0 %vm60_vm0, %v29_v37  ;;  %725 = vmatprep.mubr.msk.f32.mxu1 %vm60_vm0, %v53_v38 }
  0x29   :  { %690 = vmatmul.mubr.msk.f32.gmra.mxu0 %vm60_vm0, %v30_v39  ;;  %726 = vmatmul.mubr.msk.f32.gmra.mxu1 %vm60_vm0, %v54_v40 }
  0x2a   :  { %692 = vmatprep.mubr.msk.f32.mxu0 %vm60_vm0, %v31_v41  ;;  %728 = vmatprep.mubr.msk.f32.mxu1 %vm60_vm0, %v55_v42 }
  0x2d   :  { %693 = vmatmul.mubr.msk.f32.gmra.mxu0 %vm60_vm0, %v32_v43  ;;  %729 = vmatmul.mubr.msk.f32.gmra.mxu1 %vm60_vm0, %v56_v44 }
  0x2e   :  { %695 = vmatprep.mubr.msk.f32.mxu0 %vm60_vm0, %v33_v45  ;;  %731 = vmatprep.mubr.msk.f32.mxu1 %vm60_vm0, %v57_v46 }
  0x31   :  { %696 = vmatmul.mubr.msk.f32.gmra.mxu0 %vm60_vm0, %v34_v47  ;;  %732 = vmatmul.mubr.msk.f32.gmra.mxu1 %vm60_vm0, %v58_v48 }
  0xc5   :  { %v664_v49 = vpop.f32.mrf.mxu0  ;;  %v700_v50 = vpop.f32.mrf.mxu1 }
  0xc6   :  { %512 = vst.msk [vmem:[%s1140_s2 + $0x8] sm:$0xff] %vm510_vm1, %v664_v49  ;;  %536 = vst.msk [vmem:[%s1140_s2 + $0xc8] sm:$0xff] %vm510_vm1, %v700_v50 }
  0xc7   :  { %v271_v51 = vpop.f32.mrf.mxu0  ;;  %v391_v52 = vpop.f32.mrf.mxu1 }
  0xc8   :  { %511 = vst.msk [vmem:[%s1140_s2] sm:$0xff] %vm510_vm1, %v271_v51  ;;  %535 = vst.msk [vmem:[%s1140_s2 + $0xc0] sm:$0xff] %vm510_vm1, %v391_v52 }
  0xc9   :  { %v667_v53 = vpop.f32.mrf.mxu0  ;;  %v703_v54 = vpop.f32.mrf.mxu1 }
  0xca   :  { %514 = vst.msk [vmem:[%s1140_s2 + $0x18] sm:$0xff] %vm510_vm1, %v667_v53  ;;  %538 = vst.msk [vmem:[%s1140_s2 + $0xd8] sm:$0xff] %vm510_vm1, %v703_v54 }
  0xcb   :  { %v281_v55 = vpop.f32.mrf.mxu0  ;;  %v401_v56 = vpop.f32.mrf.mxu1 }
  0xcc   :  { %513 = vst.msk [vmem:[%s1140_s2 + $0x10] sm:$0xff] %vm510_vm1, %v281_v55  ;;  %537 = vst.msk [vmem:[%s1140_s2 + $0xd0] sm:$0xff] %vm510_vm1, %v401_v56 }
  0xcd   :  { %v670_v57 = vpop.f32.mrf.mxu0  ;;  %v706_v58 = vpop.f32.mrf.mxu1 }
  0xce   :  { %516 = vst.msk [vmem:[%s1140_s2 + $0x28] sm:$0xff] %vm510_vm1, %v670_v57  ;;  %540 = vst.msk [vmem:[%s1140_s2 + $0xe8] sm:$0xff] %vm510_vm1, %v706_v58 }
  0xcf   :  { %v291_v59 = vpop.f32.mrf.mxu0  ;;  %v411_v60 = vpop.f32.mrf.mxu1 }
  0xd0   :  { %515 = vst.msk [vmem:[%s1140_s2 + $0x20] sm:$0xff] %vm510_vm1, %v291_v59  ;;  %539 = vst.msk [vmem:[%s1140_s2 + $0xe0] sm:$0xff] %vm510_vm1, %v411_v60 }
  0xd1   :  { %v673_v61 = vpop.f32.mrf.mxu0  ;;  %v709_v62 = vpop.f32.mrf.mxu1 }
  0xd2   :  { %518 = vst.msk [vmem:[%s1140_s2 + $0x38] sm:$0xff] %vm510_vm1, %v673_v61  ;;  %542 = vst.msk [vmem:[%s1140_s2 + $0xf8] sm:$0xff] %vm510_vm1, %v709_v62 }
  0xd3   :  { %v301_v63 = vpop.f32.mrf.mxu0  ;;  %v421_v0 = vpop.f32.mrf.mxu1 }
  0xd4   :  { %517 = vst.msk [vmem:[%s1140_s2 + $0x30] sm:$0xff] %vm510_vm1, %v301_v63  ;;  %541 = vst.msk [vmem:[%s1140_s2 + $0xf0] sm:$0xff] %vm510_vm1, %v421_v0 }
  0xd5   :  { %v676_v1 = vpop.f32.mrf.mxu0  ;;  %v712_v2 = vpop.f32.mrf.mxu1 }
  0xd6   :  { %520 = vst.msk [vmem:[%s1140_s2 + $0x48] sm:$0xff] %vm510_vm1, %v676_v1  ;;  %544 = vst.msk [vmem:[%s1140_s2 + $0x108] sm:$0xff] %vm510_vm1, %v712_v2 }
  0xd7   :  { %v311_v3 = vpop.f32.mrf.mxu0  ;;  %v431_v4 = vpop.f32.mrf.mxu1 }
  0xd8   :  { %519 = vst.msk [vmem:[%s1140_s2 + $0x40] sm:$0xff] %vm510_vm1, %v311_v3  ;;  %543 = vst.msk [vmem:[%s1140_s2 + $0x100] sm:$0xff] %vm510_vm1, %v431_v4 }
  0xd9   :  { %v679_v5 = vpop.f32.mrf.mxu0  ;;  %v715_v6 = vpop.f32.mrf.mxu1 }
  0xda   :  { %522 = vst.msk [vmem:[%s1140_s2 + $0x58] sm:$0xff] %vm510_vm1, %v679_v5  ;;  %546 = vst.msk [vmem:[%s1140_s2 + $0x118] sm:$0xff] %vm510_vm1, %v715_v6 }
  0xdb   :  { %v321_v7 = vpop.f32.mrf.mxu0  ;;  %v441_v8 = vpop.f32.mrf.mxu1 }
  0xdc   :  { %521 = vst.msk [vmem:[%s1140_s2 + $0x50] sm:$0xff] %vm510_vm1, %v321_v7  ;;  %545 = vst.msk [vmem:[%s1140_s2 + $0x110] sm:$0xff] %vm510_vm1, %v441_v8 }
  0xdd   :  { %v682_v9 = vpop.f32.mrf.mxu0  ;;  %v718_v10 = vpop.f32.mrf.mxu1 }
  0xde   :  { %524 = vst.msk [vmem:[%s1140_s2 + $0x68] sm:$0xff] %vm510_vm1, %v682_v9  ;;  %548 = vst.msk [vmem:[%s1140_s2 + $0x128] sm:$0xff] %vm510_vm1, %v718_v10 }
  0xdf   :  { %v331_v11 = vpop.f32.mrf.mxu0  ;;  %v451_v12 = vpop.f32.mrf.mxu1 }
  0xe0   :  { %523 = vst.msk [vmem:[%s1140_s2 + $0x60] sm:$0xff] %vm510_vm1, %v331_v11  ;;  %547 = vst.msk [vmem:[%s1140_s2 + $0x120] sm:$0xff] %vm510_vm1, %v451_v12 }
  0xe1   :  { %v685_v13 = vpop.f32.mrf.mxu0  ;;  %v721_v14 = vpop.f32.mrf.mxu1 }
  0xe2   :  { %526 = vst.msk [vmem:[%s1140_s2 + $0x78] sm:$0xff] %vm510_vm1, %v685_v13  ;;  %550 = vst.msk [vmem:[%s1140_s2 + $0x138] sm:$0xff] %vm510_vm1, %v721_v14 }
  0xe3   :  { %v341_v15 = vpop.f32.mrf.mxu0  ;;  %v461_v16 = vpop.f32.mrf.mxu1 }
  0xe4   :  { %525 = vst.msk [vmem:[%s1140_s2 + $0x70] sm:$0xff] %vm510_vm1, %v341_v15  ;;  %549 = vst.msk [vmem:[%s1140_s2 + $0x130] sm:$0xff] %vm510_vm1, %v461_v16 }
  0xe5   :  { %v688_v17 = vpop.f32.mrf.mxu0  ;;  %v724_v18 = vpop.f32.mrf.mxu1 }
  0xe6   :  { %528 = vst.msk [vmem:[%s1140_s2 + $0x88] sm:$0xff] %vm510_vm1, %v688_v17  ;;  %552 = vst.msk [vmem:[%s1140_s2 + $0x148] sm:$0xff] %vm510_vm1, %v724_v18 }
  0xe7   :  { %v351_v19 = vpop.f32.mrf.mxu0  ;;  %v471_v20 = vpop.f32.mrf.mxu1 }
  0xe8   :  { %527 = vst.msk [vmem:[%s1140_s2 + $0x80] sm:$0xff] %vm510_vm1, %v351_v19  ;;  %551 = vst.msk [vmem:[%s1140_s2 + $0x140] sm:$0xff] %vm510_vm1, %v471_v20 }
  0xe9   :  { %v691_v21 = vpop.f32.mrf.mxu0  ;;  %v727_v22 = vpop.f32.mrf.mxu1 }
  0xea   :  { %530 = vst.msk [vmem:[%s1140_s2 + $0x98] sm:$0xff] %vm510_vm1, %v691_v21  ;;  %554 = vst.msk [vmem:[%s1140_s2 + $0x158] sm:$0xff] %vm510_vm1, %v727_v22 }
  0xeb   :  { %v361_v23 = vpop.f32.mrf.mxu0  ;;  %v481_v24 = vpop.f32.mrf.mxu1 }
  0xec   :  { %529 = vst.msk [vmem:[%s1140_s2 + $0x90] sm:$0xff] %vm510_vm1, %v361_v23  ;;  %553 = vst.msk [vmem:[%s1140_s2 + $0x150] sm:$0xff] %vm510_vm1, %v481_v24 }
  0xed   :  { %v694_v25 = vpop.f32.mrf.mxu0  ;;  %v730_v26 = vpop.f32.mrf.mxu1 }
  0xee   :  { %532 = vst.msk [vmem:[%s1140_s2 + $0xa8] sm:$0xff] %vm510_vm1, %v694_v25  ;;  %556 = vst.msk [vmem:[%s1140_s2 + $0x168] sm:$0xff] %vm510_vm1, %v730_v26 }
  0xef   :  { %v371_v27 = vpop.f32.mrf.mxu0  ;;  %v491_v28 = vpop.f32.mrf.mxu1 }
  0xf0   :  { %531 = vst.msk [vmem:[%s1140_s2 + $0xa0] sm:$0xff] %vm510_vm1, %v371_v27  ;;  %555 = vst.msk [vmem:[%s1140_s2 + $0x160] sm:$0xff] %vm510_vm1, %v491_v28 }
  0xf1   :  { %v697_v29 = vpop.f32.mrf.mxu0  ;;  %v733_v30 = vpop.f32.mrf.mxu1 }
  0xf2   :  { %534 = vst.msk [vmem:[%s1140_s2 + $0xb8] sm:$0xff] %vm510_vm1, %v697_v29  ;;  %558 = vst.msk [vmem:[%s1140_s2 + $0x178] sm:$0xff] %vm510_vm1, %v733_v30 }
  0xf3   :  { %v381_v31 = vpop.f32.mrf.mxu0  ;;  %v501_v32 = vpop.f32.mrf.mxu1 }
  0xf4   :  { %533 = vst.msk [vmem:[%s1140_s2 + $0xb0] sm:$0xff] %vm510_vm1, %v381_v31  ;;  %557 = vst.msk [vmem:[%s1140_s2 + $0x170] sm:$0xff] %vm510_vm1, %v501_v32 }

// kernel: model_forward.23
= control target key start
LH: loop header
LB: loop body
LE: loop exit
PB: predicated region body
PF: predicated region fallthrough
CT: control target
= control target key end

     0   :  { %s470_s12 = smov 0   ;;  %s472_s13 = smov 0   ;;  %s515_s0 = inlined_call_operand.vmem [shape: f32[16,8], index: 0, kind: input, shape index: {}]   ;;  %s516_s1 = inlined_call_operand.vmem [shape: f32[48,8,128], index: 1, kind: input, shape index: {}]   ;;  %s517_s2 = inlined_call_operand.vmem [shape: f32[16,1], index: 2, kind: input, shape index: {}]   ;;  %s518_s3 = inlined_call_operand.vmem [shape: f32[48,16,128], index: 3, kind: output, shape index: {}]  }
   0x1   :  { %s474_s14 = smov 0  }
   0x2 LB: > { %s25_s15 = sadd.s32 1, %s443_s13  ;;  %p382_p0 = scmp.ge.s32.totalorder %s447_s14, 1  ;;  %s447_s14 = sphi %s474_s14, %s13_s14   ;;  %s443_s13 = sphi %s472_s13, %s520_s13   ;;  %s439_s12 = sphi %s470_s12, %s519_s12  }
   0x3   : > { %p27_p1 = scmp.ge.s32.totalorder %s25_s15, 48  ;;  %p155_p2 = scmp.lt.s32.totalorder %s447_s14, 49 }
   0x5   : > { %s522_s15 = smov (%p27_p1, %s25_s15), 0  ;;  %p156_p3 = pnand %p382_p0, %p155_p2 }
   0x6   : > { %p184_p4 = scmp.lt.s32.totalorder (!%p156_p3), %s439_s12, 47 }
   0x7   : > { %159 = sbr.rel (%p156_p3) target bundleno = 216 (0xd8), region = 32 }
   0xc   : > { %v199_v0 = vld [vmem:[%s515_s0] sm:$0xff]  ;;  %vm214_vm0 = vcmask 64512   ;;  %v449_v2 = vmov 0   ;;  %s524_s12 = smov (!%p184_p4, %s439_s12), 47  ;;  %v203_v3 = vld [vmem:[%s517_s2 + $0x8] sm:$0xff] }
   0xd   : > { %v202_v1 = vld [vmem:[%s517_s2] sm:$0xff]  ;;  %396 = vmatprep.mubr.msk.f32.mxu0 %vm214_vm0, %v199_v0  ;;  %424 = vset.pattern.permute.xlu0 %v449_v2  ;;  %s383_s22 = sshll.u32 %s524_s12, 3  ;;  %v200_v5 = vld [vmem:[%s515_s0 + $0x8] sm:$0xff]  ;;  %s390_s28 = sshll.u32 %s524_s12, 4 }
   0xe   : > { %206 = vperm.xlu0 %424, %v202_v1   ;;  %s190_s25 = scalar_lea.vmem %s516_s1, %s383_s22  ;;  %s198_s4 = scalar_lea.vmem %s518_s3, %s390_s28 }
   0xf   : > { %v201_v4 = vld [vmem:[%s190_s25] sm:$0xff] }
  0x10   : > { %394 = vmatprep.subr.mxu0 %v201_v4 }
  0x11   : > { %395 = vmatpush3.msra.mxu0 %v201_v4 }
  0x12   : > { %211 = vperm.xlu0 %424, %v203_v3   ;;  %397 = vmatmul.mubr.msk.f32.vlgmr.msra.gmra.mxu0 %vm214_vm0, %v200_v5 }
  0x89   : > { %v207_v6 = vpop.permute.xlu0 %206 }
  0x8d   : > { %v212_v7 = vpop.permute.xlu0 %211 }
  0xd2   : > { %v398_v8 = vpop.f32.mrf.mxu0 }
  0xd3   : > { %v293_v9 = vadd.f32 %v398_v8, %v212_v7 }
  0xd4   : > { %v287_v10 = vpop.f32.mrf.mxu0 }
  0xd5   : > { %297 = vst [vmem:[%s198_s4 + $0x8] sm:$0xff] %v293_v9  ;;  %v288_v11 = vadd.f32 %v287_v10, %v207_v6 }
  0xd7   : > { %296 = vst [vmem:[%s198_s4] sm:$0xff] %v288_v11 }
  0xd8 PF: > { %s13_s14 = sadd.s32 1, %s447_s14   ;;  %s519_s12 = smov %s443_s13 }
  0xd9   : > { %p10_p5 = scmp.ge.s32.totalorder %s13_s14, 50   ;;  %s520_s13 = smov %s522_s15 }
  0xdb   :  { %12 = sbr.rel (!%p10_p5) target bundleno = 2 (0x2), region = 62 }

// kernel: model_forward.18
= control target key start
LH: loop header
LB: loop body
LE: loop exit
PB: predicated region body
PF: predicated region fallthrough
CT: control target
= control target key end

     0   :  { %s422_s12 = smov 0   ;;  %s424_s13 = smov 0   ;;  %s461_s0 = inlined_call_operand.vmem [shape: bf16[3,8], index: 0, kind: input, shape index: {}]   ;;  %s462_s1 = inlined_call_operand.vmem [shape: bf16[2,8,128], index: 1, kind: input, shape index: {}]   ;;  %s463_s2 = inlined_call_operand.vmem [shape: f32[3,1], index: 2, kind: input, shape index: {}]   ;;  %s464_s3 = inlined_call_operand.vmem [shape: f32[2,3,128], index: 3, kind: output, shape index: {}]  }
   0x1   :  { %s426_s14 = smov 0  }
   0x2 LB: > { %s25_s15 = sadd.s32 1, %s393_s13  ;;  %p333_p0 = scmp.ge.s32.totalorder %s397_s14, 1  ;;  %s397_s14 = sphi %s426_s14, %s13_s14   ;;  %s393_s13 = sphi %s424_s13, %s466_s13   ;;  %s389_s12 = sphi %s422_s12, %s465_s12  }
   0x3   : > { %p27_p1 = scmp.ge.s32.totalorder %s25_s15, 2  ;;  %p155_p2 = scmp.lt.s32.totalorder %s397_s14, 3 }
   0x5   : > { %s468_s15 = smov (%p27_p1, %s25_s15), 0  ;;  %p156_p3 = pnand %p333_p0, %p155_p2 }
   0x6   : > { %p183_p4 = scmp.lt.s32.totalorder (!%p156_p3), %s389_s12, 1 }
   0x7   : > { %159 = sbr.rel (%p156_p3) target bundleno = 219 (0xdb), region = 32 }
   0xc   : > { %v399_v0 = vmov 0.0   ;;  %vm400_vm0 = vmmov 0   ;;  %v200_v1 = vld [vmem:[%s463_s2] sm:$0x7]  ;;  %s470_s12 = smov (!%p183_p4, %s389_s12), 1  ;;  %v401_v2 = vmov 0  }
   0xd   : > { %341 = vmatprep.subr.bf16.mxu0 %v399_v0  ;;  %343 = vmatprep.mubr.msk.bf16.mxu0 %vm400_vm0, %v399_v0  ;;  %s334_s18 = sshll.u32 %s470_s12, 2  ;;  %vm210_vm1 = vcmask 1043456   ;;  %v198_v5 = vld [vmem:[%s461_s0] sm:$0x3]  ;;  %vm206_vm2 = vcmask 64512  }
   0xe   : > { %374 = vset.pattern.permute.xlu0 %v401_v2  ;;  %s189_s21 = scalar_lea.vmem %s462_s1, %s334_s18  ;;  %s196_s26 = scalar_lea.vmem %s464_s3, %s334_s18 }
   0xf   : > { %203 = vperm.xlu0 %374, %v200_v1   ;;  %v199_v3 = vld [vmem:[%s189_s21] sm:$0xf] }
  0x10   : > { %v212_v4 = vsel %vm210_vm1, %v199_v3, 0 }
  0x11   : > { %342 = vmatpush3.bf16.msra.mxu0 %v212_v4 }
  0x14   : > { %344 = vmatmul.mubr.msk.bf16.vlgmr.msra.gmra.mxu0 %vm206_vm2, %v198_v5 }
  0x8a   : > { %v204_v6 = vpop.permute.xlu0 %203 }
  0xd4   : > { %v248_v7 = vpop.f32.mrf.mxu0 }
  0xd5   : > { %v249_v8 = vadd.f32 %v248_v7, %v204_v6 }
  0xd6   : > { %v345_v9 = vpop.f32.mrf.mxu0 }
  0xd7   : > { %254 = vst [vmem:[%s196_s26] sm:$0x7] %v249_v8 }
  0xd8   : > { %v251_v10 = vpop.f32.mrf.mxu0 }
  0xda   : > { %v346_v11 = vpop.f32.mrf.mxu0 }
  0xdb PF: > { %s13_s14 = sadd.s32 1, %s397_s14   ;;  %s465_s12 = smov %s393_s13 }
  0xdc   : > { %p10_p5 = scmp.ge.s32.totalorder %s13_s14, 4   ;;  %s466_s13 = smov %s468_s15 }
  0xde   :  { %12 = sbr.rel (!%p10_p5) target bundleno = 2 (0x2), region = 62 }

// kernel: model_forward.19
= control target key start
LH: loop header
LB: loop body
LE: loop exit
PB: predicated region body
PF: predicated region fallthrough
CT: control target
= control target key end

     0   :  { %vm61_vm0 = vcmask 1043456   ;;  %vm24_vm1 = vcmask 31744   ;;  %vm190_vm2 = vcmask 130048   ;;  %s369_s1 = inlined_call_operand.vmem [shape: f32[4,16], index: 1, kind: input, shape index: {}]   ;;  %s370_s0 = inlined_call_operand.vmem [shape: f32[96,4], index: 0, kind: input, shape index: {}]   ;;  %s371_s2 = inlined_call_operand.vmem [shape: f32[96,16], index: 2, kind: output, shape index: {}]  }
   0x1   :  { %v23_v0 = vld [vmem:[%s369_s1] sm:$0xf]  ;;  %v17_v2 = vld [vmem:[%s370_s0 + $0x30] sm:$0xff]  ;;  %v12_v3 = vld [vmem:[%s370_s0 + $0x8] sm:$0xff] }
   0x2   :  { %v11_v1 = vld [vmem:[%s370_s0] sm:$0xff]  ;;  %233 = vmatprep.subr.msk.mxu0 %vm61_vm0, %v23_v0  ;;  %253 = vmatprep.subr.msk.mxu1 %vm61_vm0, %v23_v0  ;;  %v18_v4 = vld [vmem:[%s370_s0 + $0x38] sm:$0xff]  ;;  %v13_v5 = vld [vmem:[%s370_s0 + $0x10] sm:$0xff] }
   0x3   :  { %234 = vmatpush3.msk.msra.mxu0 %vm61_vm0, %v23_v0  ;;  %254 = vmatpush3.msk.msra.mxu1 %vm61_vm0, %v23_v0  ;;  %v19_v6 = vld [vmem:[%s370_s0 + $0x40] sm:$0xff]  ;;  %v14_v7 = vld [vmem:[%s370_s0 + $0x18] sm:$0xff]  ;;  %v20_v8 = vld [vmem:[%s370_s0 + $0x48] sm:$0xff] }
   0x4   :  { %235 = vmatprep.mubr.msk.f32.mxu0 %vm24_vm1, %v11_v1  ;;  %244 = vmatprep.mubr.msk.f32.mxu1 %vm24_vm1, %v17_v2  ;;  %v15_v9 = vld [vmem:[%s370_s0 + $0x20] sm:$0xff]  ;;  %v21_v10 = vld [vmem:[%s370_s0 + $0x50] sm:$0xff]  ;;  %v16_v11 = vld [vmem:[%s370_s0 + $0x28] sm:$0xff] }
   0x5   :  { %236 = vmatmul.mubr.msk.f32.vlgmr.msra.gmra.mxu0 %vm24_vm1, %v12_v3  ;;  %245 = vmatmul.mubr.msk.f32.vlgmr.msra.gmra.mxu1 %vm24_vm1, %v18_v4  ;;  %v22_v12 = vld [vmem:[%s370_s0 + $0x58] sm:$0xff] }
   0x6   :  { %238 = vmatprep.mubr.msk.f32.mxu0 %vm24_vm1, %v13_v5  ;;  %247 = vmatprep.mubr.msk.f32.mxu1 %vm24_vm1, %v19_v6 }
   0x9   :  { %239 = vmatmul.mubr.msk.f32.gmra.mxu0 %vm24_vm1, %v14_v7  ;;  %248 = vmatmul.mubr.msk.f32.gmra.mxu1 %vm24_vm1, %v20_v8 }
   0xa   :  { %241 = vmatprep.mubr.msk.f32.mxu0 %vm24_vm1, %v15_v9  ;;  %250 = vmatprep.mubr.msk.f32.mxu1 %vm24_vm1, %v21_v10 }
   0xd   :  { %242 = vmatmul.mubr.msk.f32.gmra.mxu0 %vm24_vm1, %v16_v11  ;;  %251 = vmatmul.mubr.msk.f32.gmra.mxu1 %vm24_vm1, %v22_v12 }
  0xc5   :  { %v237_v13 = vpop.f32.mrf.mxu0  ;;  %v246_v14 = vpop.f32.mrf.mxu1 }
  0xc6   :  { %192 = vst.msk [vmem:[%s371_s2 + $0x8] sm:$0xff] %vm190_vm2, %v237_v13  ;;  %198 = vst.msk [vmem:[%s371_s2 + $0x38] sm:$0xff] %vm190_vm2, %v246_v14 }
  0xc7   :  { %v131_v15 = vpop.f32.mrf.mxu0  ;;  %v161_v16 = vpop.f32.mrf.mxu1 }
  0xc8   :  { %191 = vst.msk [vmem:[%s371_s2] sm:$0xff] %vm190_vm2, %v131_v15  ;;  %197 = vst.msk [vmem:[%s371_s2 + $0x30] sm:$0xff] %vm190_vm2, %v161_v16 }
  0xc9   :  { %v240_v17 = vpop.f32.mrf.mxu0  ;;  %v249_v18 = vpop.f32.mrf.mxu1 }
  0xca   :  { %194 = vst.msk [vmem:[%s371_s2 + $0x18] sm:$0xff] %vm190_vm2, %v240_v17  ;;  %200 = vst.msk [vmem:[%s371_s2 + $0x48] sm:$0xff] %vm190_vm2, %v249_v18 }
  0xcb   :  { %v141_v19 = vpop.f32.mrf.mxu0  ;;  %v171_v20 = vpop.f32.mrf.mxu1 }
  0xcc   :  { %193 = vst.msk [vmem:[%s371_s2 + $0x10] sm:$0xff] %vm190_vm2, %v141_v19  ;;  %199 = vst.msk [vmem:[%s371_s2 + $0x40] sm:$0xff] %vm190_vm2, %v171_v20 }
  0xcd   :  { %v243_v21 = vpop.f32.mrf.mxu0  ;;  %v252_v22 = vpop.f32.mrf.mxu1 }
  0xce   :  { %196 = vst.msk [vmem:[%s371_s2 + $0x28] sm:$0xff] %vm190_vm2, %v243_v21  ;;  %202 = vst.msk [vmem:[%s371_s2 + $0x58] sm:$0xff] %vm190_vm2, %v252_v22 }
  0xcf   :  { %v151_v23 = vpop.f32.mrf.mxu0  ;;  %v181_v24 = vpop.f32.mrf.mxu1 }
  0xd0   :  { %195 = vst.msk [vmem:[%s371_s2 + $0x20] sm:$0xff] %vm190_vm2, %v151_v23  ;;  %201 = vst.msk [vmem:[%s371_s2 + $0x50] sm:$0xff] %vm190_vm2, %v181_v24 }

// kernel: model_forward.20
= control target key start
LH: loop header
LB: loop body
LE: loop exit
PB: predicated region body
PF: predicated region fallthrough
CT: control target
= control target key end

     0   :  { %s475_s12 = smov 0   ;;  %s477_s13 = smov 0   ;;  %s522_s0 = inlined_call_operand.vmem [shape: f32[16,4], index: 0, kind: input, shape index: {}]   ;;  %s523_s1 = inlined_call_operand.vmem [shape: f32[24,4,128], index: 1, kind: input, shape index: {}]   ;;  %s524_s2 = inlined_call_operand.vmem [shape: f32[16,1], index: 2, kind: input, shape index: {}]   ;;  %s525_s3 = inlined_call_operand.vmem [shape: f32[24,16,128], index: 3, kind: output, shape index: {}]  }
   0x1   :  { %s479_s14 = smov 0  }
   0x2 LB: > { %s25_s15 = sadd.s32 1, %s448_s13  ;;  %p386_p0 = scmp.ge.s32.totalorder %s452_s14, 1  ;;  %s452_s14 = sphi %s479_s14, %s13_s14   ;;  %s448_s13 = sphi %s477_s13, %s527_s13   ;;  %s444_s12 = sphi %s475_s12, %s526_s12  }
   0x3   : > { %p27_p1 = scmp.ge.s32.totalorder %s25_s15, 24  ;;  %p155_p2 = scmp.lt.s32.totalorder %s452_s14, 25 }
   0x5   : > { %s529_s15 = smov (%p27_p1, %s25_s15), 0  ;;  %p156_p3 = pnand %p386_p0, %p155_p2 }
   0x6   : > { %p184_p4 = scmp.lt.s32.totalorder (!%p156_p3), %s444_s12, 23 }
   0x7   : > { %159 = sbr.rel (%p156_p3) target bundleno = 216 (0xd8), region = 32 }
   0xc   : > { %v199_v0 = vld [vmem:[%s522_s0] sm:$0xff]  ;;  %vm214_vm0 = vcmask 31744   ;;  %v454_v1 = vmov 0   ;;  %s531_s12 = smov (!%p184_p4, %s444_s12), 23  ;;  %v203_v3 = vld [vmem:[%s524_s2 + $0x8] sm:$0xff]  ;;  %vm221_vm1 = vcmask 1043456  }
   0xd   : > { %401 = vmatprep.mubr.msk.f32.mxu0 %vm214_vm0, %v199_v0  ;;  %429 = vset.pattern.permute.xlu0 %v454_v1  ;;  %v202_v2 = vld [vmem:[%s524_s2] sm:$0xff]  ;;  %s387_s22 = sshll.u32 %s531_s12, 2  ;;  %v200_v5 = vld [vmem:[%s522_s0 + $0x8] sm:$0xff]  ;;  %s395_s28 = sshll.u32 %s531_s12, 4 }
   0xe   : > { %206 = vperm.xlu0 %429, %v202_v2   ;;  %s190_s25 = scalar_lea.vmem %s523_s1, %s387_s22  ;;  %s198_s4 = scalar_lea.vmem %s525_s3, %s395_s28 }
   0xf   : > { %v201_v4 = vld [vmem:[%s190_s25] sm:$0xf] }
  0x10   : > { %399 = vmatprep.subr.msk.mxu0 %vm221_vm1, %v201_v4 }
  0x11   : > { %400 = vmatpush3.msk.msra.mxu0 %vm221_vm1, %v201_v4 }
  0x12   : > { %211 = vperm.xlu0 %429, %v203_v3   ;;  %402 = vmatmul.mubr.msk.f32.vlgmr.msra.gmra.mxu0 %vm214_vm0, %v200_v5 }
  0x89   : > { %v207_v6 = vpop.permute.xlu0 %206 }
  0x8d   : > { %v212_v7 = vpop.permute.xlu0 %211 }
  0xd2   : > { %v403_v8 = vpop.f32.mrf.mxu0 }
  0xd3   : > { %v297_v9 = vadd.f32 %v403_v8, %v212_v7 }
  0xd4   : > { %v291_v10 = vpop.f32.mrf.mxu0 }
  0xd5   : > { %301 = vst [vmem:[%s198_s4 + $0x8] sm:$0xff] %v297_v9  ;;  %v292_v11 = vadd.f32 %v291_v10, %v207_v6 }
  0xd7   : > { %300 = vst [vmem:[%s198_s4] sm:$0xff] %v292_v11 }
  0xd8 PF: > { %s13_s14 = sadd.s32 1, %s452_s14   ;;  %s526_s12 = smov %s448_s13 }
  0xd9   : > { %p10_p5 = scmp.ge.s32.totalorder %s13_s14, 26   ;;  %s527_s13 = smov %s529_s15 }
  0xdb   :  { %12 = sbr.rel (!%p10_p5) target bundleno = 2 (0x2), region = 62 }

// kernel: model_forward.25
= control target key start
LH: loop header
LB: loop body
LE: loop exit
PB: predicated region body
PF: predicated region fallthrough
CT: control target
= control target key end

     0   :  { %s759_s18 = smov 0   ;;  %s761_s19 = smov 0   ;;  %s817_s0 = inlined_call_operand.vmem [shape: f32[6,4,256], index: 0, kind: input, shape index: {}]   ;;  %s818_s1 = inlined_call_operand.vmem [shape: f32[16,4], index: 1, kind: input, shape index: {}]   ;;  %s819_s2 = inlined_call_operand.vmem [shape: f32[6,8,256], index: 2, kind: input, shape index: {}]   ;;  %s820_s3 = inlined_call_operand.vmem [shape: f32[16,8], index: 3, kind: input, shape index: {}]   ;;  %s821_s4 = inlined_call_operand.vmem [shape: f32[6,16,256], index: 4, kind: input, shape index: {}]   ;;  %s822_s5 = inlined_call_operand.vmem [shape: f32[6,16,256], index: 5, kind: output, shape index: {}]  }
   0x1   :  { %s763_s20 = smov 0  }
   0x2 LB: > { %s27_s21 = sadd.s32 1, %s722_s19  ;;  %p657_p0 = scmp.ge.s32.totalorder %s726_s20, 1  ;;  %s726_s20 = sphi %s763_s20, %s15_s20   ;;  %s722_s19 = sphi %s761_s19, %s824_s19   ;;  %s718_s18 = sphi %s759_s18, %s823_s18  }
   0x3   : > { %p29_p1 = scmp.ge.s32.totalorder %s27_s21, 6  ;;  %p242_p2 = scmp.lt.s32.totalorder %s726_s20, 7 }
   0x5   : > { %s826_s21 = smov (%p29_p1, %s27_s21), 0  ;;  %p243_p3 = pnand %p657_p0, %p242_p2 }
   0x6   : > { %p297_p4 = scmp.lt.s32.totalorder (!%p243_p3), %s718_s18, 5 }
   0x7   : > { %246 = sbr.rel (%p243_p3) target bundleno = 225 (0xe1), region = 40 }
   0xc   : > { %v728_v0 = vmov 0.0   ;;  %s828_s18 = smov (!%p297_p4, %s718_s18), 5  ;;  %v339_v1 = vld [vmem:[%s820_s3] sm:$0xff]  ;;  %vm343_vm0 = vcmask 64512   ;;  %vm436_vm1 = vcmask 1043456   ;;  %vm429_vm2 = vcmask 31744  }
   0xd   : > { %414 = vmatprep.mubr.f32.mxu0 %v728_v0  ;;  %505 = vmatprep.mubr.f32.mxu1 %v728_v0  ;;  %s675_s22 = sshll.u32 %s828_s18, 4  ;;  %s674_s23 = sshll.u32 %s828_s18, 3  ;;  %v336_v6 = vld [vmem:[%s818_s1] sm:$0xff]  ;;  %v340_v7 = vld [vmem:[%s820_s3 + $0x8] sm:$0xff] }
   0xe   : > { %s314_s26 = scalar_lea.vmem %s819_s2, %s675_s22  ;;  %s304_s6 = scalar_lea.vmem %s817_s0, %s674_s23  ;;  %v337_v8 = vld [vmem:[%s818_s1 + $0x8] sm:$0xff] }
   0xf   : > { %v342_v2 = vld [vmem:[%s314_s26 + $0x8] sm:$0xff]  ;;  %v341_v3 = vld [vmem:[%s314_s26] sm:$0xff]  ;;  %s676_s13 = sshll.u32 %s828_s18, 5 }
  0x10   : > { %v338_v4 = vld [vmem:[%s304_s6] sm:$0xff]  ;;  %380 = vmatprep.subr.mxu0 %v342_v2  ;;  %s324_s16 = scalar_lea.vmem %s821_s4, %s676_s13  ;;  %s334_s23 = scalar_lea.vmem %s822_s5, %s676_s13 }
  0x11   : > { %v428_v5 = vcombine.high %v338_v4, %v338_v4  ;;  %381 = vmatpush1.msra.mxu0 %v341_v3  ;;  %v518_v12 = vld [vmem:[%s324_s16] sm:$0xff]  ;;  %v519_v16 = vld [vmem:[%s324_s16 + $0x8] sm:$0xff]  ;;  %v520_v20 = vld [vmem:[%s324_s16 + $0x10] sm:$0xff] }
  0x12   : > { %666 = vmatmul.mubr.msk.f32.vlgmr.msra.gmra.mxu0 %vm343_vm0, %v339_v1  ;;  %v521_v25 = vld [vmem:[%s324_s16 + $0x18] sm:$0xff] }
  0x13   : > { %668 = vmatprep.subr.msk.mxu1 %vm436_vm1, %v428_v5  ;;  %420 = vmatprep.mubr.f32.mxu0 %v728_v0 }
  0x14   : > { %669 = vmatpush1.msk.msra.mxu1 %vm436_vm1, %v338_v4 }
  0x15   : > { %670 = vmatmul.mubr.msk.f32.vlgmr.msra.gmra.mxu1 %vm429_vm2, %v336_v6 }
  0x16   : > { %511 = vmatprep.mubr.f32.mxu1 %v728_v0  ;;  %667 = vmatmul.mubr.msk.f32.gmra.mxu0 %vm343_vm0, %v340_v7 }
  0x19   : > { %671 = vmatmul.mubr.msk.f32.gmra.mxu1 %vm429_vm2, %v337_v8 }
  0xd2   : > { %v416_v9 = vpop.f32.mrf.mxu0 }
  0xd4   : > { %v418_v10 = vpop.f32.mrf.mxu0 }
  0xd5   : > { %v507_v11 = vpop.f32.mrf.mxu1 }
  0xd6   : > { %v508_v13 = vadd.f32 %v507_v11, %v416_v9  ;;  %v422_v14 = vpop.f32.mrf.mxu0 }
  0xd7   : > { %v509_v15 = vpop.f32.mrf.mxu1 }
  0xd8   : > { %v522_v17 = vadd.f32 %v518_v12, %v508_v13  ;;  %v510_v18 = vadd.f32 %v509_v15, %v418_v10  ;;  %v424_v23 = vpop.f32.mrf.mxu0 }
  0xd9   : > { %v513_v19 = vpop.f32.mrf.mxu1 }
  0xda   : > { %526 = vst [vmem:[%s334_s23] sm:$0xff] %v522_v17  ;;  %v523_v21 = vadd.f32 %v519_v16, %v510_v18  ;;  %v514_v22 = vadd.f32 %v513_v19, %v422_v14 }
  0xdb   : > { %v515_v24 = vpop.f32.mrf.mxu1 }
  0xdc   : > { %527 = vst [vmem:[%s334_s23 + $0x8] sm:$0xff] %v523_v21  ;;  %v524_v26 = vadd.f32 %v520_v20, %v514_v22  ;;  %v516_v27 = vadd.f32 %v515_v24, %v424_v23 }
  0xde   : > { %528 = vst [vmem:[%s334_s23 + $0x10] sm:$0xff] %v524_v26  ;;  %v525_v28 = vadd.f32 %v521_v25, %v516_v27 }
  0xe0   : > { %529 = vst [vmem:[%s334_s23 + $0x18] sm:$0xff] %v525_v28 }
  0xe1 PF: > { %s15_s20 = sadd.s32 1, %s726_s20   ;;  %s823_s18 = smov %s722_s19 }
  0xe2   : > { %p12_p5 = scmp.ge.s32.totalorder %s15_s20, 8   ;;  %s824_s19 = smov %s826_s21 }
  0xe4   :  { %14 = sbr.rel (!%p12_p5) target bundleno = 2 (0x2), region = 76 }

</bundles_post_ra>
